<compile_context>
chip_gen: v6e
topology: v6e:2x2x1
jax: 0.10.0
libtpu: 0.0.40
codegen_flags: <defaults>
</compile_context>

<pallas_src>
import jax
import jax.numpy as jnp
from jax.experimental import pallas as pl
from jax.experimental.pallas import tpu as pltpu


def _pad_up(v, m):
    return -(-v // m) * m


# ---------------------------------------------------------------------------
# Fused kernel: stream x (C-tiled on lanes), pool over HW, project with w1,
# then on the last reduction step run BN (batch stats) + ReLU + classifier.
# ---------------------------------------------------------------------------
def classblock_kernel(x_ref, w1_ref, gamma_ref, beta_ref, w2_ref, b2_ref,
                      f_ref, out_ref, acc_ref):
    # x_ref   : (B, HW, TILE_C)  compute dtype, C on the lane axis
    # w1_ref  : (TILE_C, NB)     compute dtype
    # gamma/beta : (1, NB) f32   w2: (NB, NC) f32   b2: (1, NC) f32
    # f_ref   : (B, NB) f32      out_ref: (B, NC) f32
    # acc_ref : (B, NB) f32 VMEM scratch accumulator (resident across k)
    hw = x_ref.shape[1]
    x = x_ref[...]
    # avg + max pooling over spatial (sublane axis). Sum accumulates in f32;
    # max is exact in the input dtype, only its small result is upcast.
    s = jnp.sum(x, axis=1, dtype=jnp.float32)                 # (B, TILE_C)
    mx = jnp.max(x, axis=1).astype(jnp.float32)               # (B, TILE_C)
    pooled = s * (1.0 / hw) + mx                              # (B, TILE_C)
    partial = jnp.dot(pooled.astype(w1_ref.dtype), w1_ref[...],
                      preferred_element_type=jnp.float32)     # (B, NB)

    k = pl.program_id(0)

    @pl.when(k == 0)
    def _():
        acc_ref[...] = jnp.zeros_like(acc_ref)

    acc_ref[...] += partial

    # Fused head epilogue on the final reduction step.
    @pl.when(k == pl.num_programs(0) - 1)
    def _():
        h = acc_ref[...]                                      # (B, NB), f32
        # NOTE: add_block's Linear bias b1 is a per-feature constant and cancels
        # exactly under training-mode BatchNorm ((h+b1)-mean(h+b1) == h-mean(h)),
        # so it is folded out.
        # TODO(synk): running_mean/running_var updates (a PyTorch training side
        # effect) are not produced; only the forward() normalization math is.
        mean = jnp.mean(h, axis=0, keepdims=True)
        diff = h - mean
        var = jnp.mean(diff * diff, axis=0, keepdims=True)    # biased, eps=1e-5
        hn = diff * jax.lax.rsqrt(var + 1e-5) * gamma_ref[...] + beta_ref[...]
        f = jnp.maximum(hn, 0.0)
        f_ref[...] = f.astype(f_ref.dtype)
        out_ref[...] = (jnp.dot(f, w2_ref[...], preferred_element_type=jnp.float32)
                        + b2_ref[...]).astype(out_ref.dtype)


def classblock_forward(x_nchw, w1, b1, gamma, beta, w2, b2,
                       compute_dtype=jnp.bfloat16):
    """x_nchw: (B, C, H, W). Returns (f, logits) exactly like ClassBlock.forward."""
    del b1  # cancels exactly under training-mode (batch-stat) BatchNorm
    B, C, H, W = x_nchw.shape
    HW = H * W
    nb = w1.shape[1]
    nc = w2.shape[1]

    # C on the lane axis: NHWC-flattened, cast fused into the same XLA op.
    # TODO(synk): have the backbone emit NHWC / bf16 directly so this pass is free.
    x = jnp.transpose(x_nchw, (0, 2, 3, 1)).reshape(B, HW, C).astype(compute_dtype)
    # w1 is a parameter reused every call: in real use pre-cast it once outside
    # the hot path; here we only cast if it is not already in compute dtype.
    w1c = w1 if w1.dtype == compute_dtype else w1.astype(compute_dtype)

    itemsize = jnp.dtype(compute_dtype).itemsize
    sub = 8 * (4 // itemsize)            # sublane packing multiple: 8 f32, 16 bf16

    # Largest channel tile whose x block fits a modest per-buffer budget -> K=1-2
    # grid steps at small HW (per-step overhead ~0.35 us).
    x_buf_budget = 8 << 20
    TILE_C = C                           # fallback: single full-channel block
    for cand in (2048, 1024, 512, 256, 128):
        if (cand <= C and C % cand == 0 and
                B * _pad_up(HW, sub) * _pad_up(cand, 128) * itemsize <= x_buf_budget):
            TILE_C = cand
            break
    K = C // TILE_C

    # VMEM limit: ~2x the actual double-buffered need, capped at 32 MiB (v7x headroom).
    x_blk = B * _pad_up(HW, sub) * _pad_up(TILE_C, 128) * itemsize
    w1_blk = _pad_up(TILE_C, sub) * _pad_up(nb, 128) * itemsize
    small = (_pad_up(nb, 128) * _pad_up(nc, 128) * 4                 # w2
             + 4 * _pad_up(nb, 128) * 4 + 2 * _pad_up(nc, 128) * 4   # gamma/beta/b2
             + 2 * _pad_up(B, 8) * (_pad_up(nb, 128) + _pad_up(nc, 128)) * 4)  # acc/f/out
    vmem_need = 2 * (x_blk + w1_blk) + small
    vmem_limit = int(min(max(2 * vmem_need, 4 << 20), 32 << 20))

    f, out = pl.pallas_call(
        classblock_kernel,
        out_shape=(jax.ShapeDtypeStruct((B, nb), jnp.float32),
                   jax.ShapeDtypeStruct((B, nc), jnp.float32)),
        grid_spec=pltpu.PrefetchScalarGridSpec(
            num_scalar_prefetch=0,
            grid=(K,),
            in_specs=[
                pl.BlockSpec((B, HW, TILE_C), lambda k: (0, 0, k)),
                pl.BlockSpec((TILE_C, nb), lambda k: (k, 0)),
                pl.BlockSpec((1, nb), lambda k: (0, 0)),
                pl.BlockSpec((1, nb), lambda k: (0, 0)),
                pl.BlockSpec((nb, nc), lambda k: (0, 0)),
                pl.BlockSpec((1, nc), lambda k: (0, 0)),
            ],
            out_specs=[pl.BlockSpec((B, nb), lambda k: (0, 0)),
                       pl.BlockSpec((B, nc), lambda k: (0, 0))],
            scratch_shapes=[pltpu.VMEM((B, nb), jnp.float32)],
        ),
        compiler_params=pltpu.CompilerParams(
            dimension_semantics=("arbitrary",),
            vmem_limit_bytes=vmem_limit),
    )(x, w1c, gamma.reshape(1, nb), beta.reshape(1, nb), w2, b2.reshape(1, nc))
    return f, out


def make_params(key, in_dim=2048, num_bottleneck=256, class_num=128):
    k1, k2 = jax.random.split(key, 2)
    # add_block Linear (generic deterministic init)
    w1 = jax.random.normal(k1, (in_dim, num_bottleneck), jnp.float32) * 0.02
    b1 = jnp.zeros((num_bottleneck,), jnp.float32)
    # BatchNorm1d default affine params
    gamma = jnp.ones((num_bottleneck,), jnp.float32)
    beta = jnp.zeros((num_bottleneck,), jnp.float32)
    # classifier Linear per weights_init_classifier: normal(std=0.001), bias=0
    w2 = jax.random.normal(k2, (num_bottleneck, class_num), jnp.float32) * 0.001
    b2 = jnp.zeros((class_num,), jnp.float32)
    return w1, b1, gamma, beta, w2, b2


def reference_forward(x_nchw, w1, b1, gamma, beta, w2, b2,
                      compute_dtype=jnp.float32):
    # Pure-JAX reference. compute_dtype lets us check the bf16 streaming path
    # against an identically-quantized reference; f32 path == PyTorch math.
    xq = x_nchw.astype(compute_dtype).astype(jnp.float32)
    w1q = w1.astype(compute_dtype)
    pooled = jnp.mean(xq, axis=(2, 3)) + jnp.max(xq, axis=(2, 3))
    h = jnp.dot(pooled.astype(compute_dtype), w1q,
                preferred_element_type=jnp.float32) + b1
    mean = jnp.mean(h, axis=0, keepdims=True)
    var = jnp.mean((h - mean) ** 2, axis=0, keepdims=True)
    hn = (h - mean) / jnp.sqrt(var + 1e-5) * gamma + beta
    f = jnp.maximum(hn, 0.0)
    return f, f @ w2 + b2


if __name__ == "__main__":
    key = jax.random.PRNGKey(0)
    kx, kp = jax.random.split(key)

    # C must be 2048 because add_block hardcodes nn.Linear(2048, num_bottleneck).
    # B=8 fills the sublane dimension; spatial / bottleneck / classes stay small.
    B, C, H, W = 8, 2048, 4, 4
    num_bottleneck, class_num = 256, 128

    x = jax.random.normal(kx, (B, C, H, W), jnp.float32)
    params = make_params(kp, in_dim=C, num_bottleneck=num_bottleneck,
                         class_num=class_num)

    # Default (performance) path: bf16 streaming of x / w1, f32 accumulation.
    f_bf, out_bf = classblock_forward(x, *params, compute_dtype=jnp.bfloat16)
    jax.block_until_ready((f_bf, out_bf))
    f_ref_bf, out_ref_bf = reference_forward(x, *params, compute_dtype=jnp.bfloat16)
    assert f_bf.shape == (B, num_bottleneck) and out_bf.shape == (B, class_num)
    assert jnp.allclose(f_bf, f_ref_bf, atol=2e-2, rtol=2e-2)
    assert jnp.allclose(out_bf, out_ref_bf, atol=2e-2, rtol=2e-2)

    # Strict f32 path matches the PyTorch (training-mode BN) math.
    f32_f, f32_out = classblock_forward(x, *params, compute_dtype=jnp.float32)
    jax.block_until_ready((f32_f, f32_out))
    f_ref, out_ref = reference_forward(x, *params, compute_dtype=jnp.float32)
    assert jnp.allclose(f32_f, f_ref, atol=1e-4, rtol=1e-4)
    assert jnp.allclose(f32_out, out_ref, atol=1e-4, rtol=1e-4)

    print("KERNEL_OK")
</pallas_src>

<mosaic_0001>
module attributes {stable_mosaic.version = 11 : i64} {
  func.func @classblock_kernel(%arg0: i32, %arg1: memref<8x16x2048xbf16, #tpu.memory_space<vmem>>, %arg2: memref<2048x256xbf16, #tpu.memory_space<vmem>>, %arg3: memref<1x256xf32, #tpu.memory_space<vmem>>, %arg4: memref<1x256xf32, #tpu.memory_space<vmem>>, %arg5: memref<256x128xf32, #tpu.memory_space<vmem>>, %arg6: memref<1x128xf32, #tpu.memory_space<vmem>>, %arg7: memref<8x256xf32, #tpu.memory_space<vmem>>, %arg8: memref<8x128xf32, #tpu.memory_space<vmem>>, %arg9: memref<8x256xf32, #tpu.memory_space<vmem>>) attributes {dimension_semantics = [#tpu.dimension_semantics<arbitrary>], iteration_bounds = array<i64: 1>, scalar_prefetch = 0 : i64, scratch_operands = 1 : i64, tpu.core_type = #tpu.core_type<tc>, window_params = [{transform_indices = @transform_0, window_bounds = array<i64: 8, 16, 2048>}, {transform_indices = @transform_1, window_bounds = array<i64: 2048, 256>}, {pipeline_mode = #tpu.pipeline_mode<synchronous>, transform_indices = @transform_2, window_bounds = array<i64: 1, 256>}, {pipeline_mode = #tpu.pipeline_mode<synchronous>, transform_indices = @transform_3, window_bounds = array<i64: 1, 256>}, {pipeline_mode = #tpu.pipeline_mode<synchronous>, transform_indices = @transform_4, window_bounds = array<i64: 256, 128>}, {pipeline_mode = #tpu.pipeline_mode<synchronous>, transform_indices = @transform_5, window_bounds = array<i64: 1, 128>}, {pipeline_mode = #tpu.pipeline_mode<synchronous>, transform_indices = @transform_6, window_bounds = array<i64: 8, 256>}, {pipeline_mode = #tpu.pipeline_mode<synchronous>, transform_indices = @transform_7, window_bounds = array<i64: 8, 128>}]} {
    %c0 = arith.constant 0 : index
    %c0_0 = arith.constant 0 : index
    %c0_1 = arith.constant 0 : index
    %0 = vector.load %arg1[%c0, %c0_0, %c0_1] : memref<8x16x2048xbf16, #tpu.memory_space<vmem>>, vector<8x16x2048xbf16>
    %1 = arith.extf %0 : vector<8x16x2048xbf16> to vector<8x16x2048xf32>
    %cst = arith.constant dense<0.000000e+00> : vector<8x2048xf32>
    %2 = vector.multi_reduction <add>, %1, %cst [1] : vector<8x16x2048xf32> to vector<8x2048xf32>
    %cst_2 = arith.constant dense<0xFF80> : vector<8x2048xbf16>
    %3 = vector.multi_reduction <maximumf>, %0, %cst_2 [1] : vector<8x16x2048xbf16> to vector<8x2048xbf16>
    %4 = arith.extf %3 : vector<8x2048xbf16> to vector<8x2048xf32>
    %cst_3 = arith.constant 6.250000e-02 : f32
    %5 = vector.broadcast %cst_3 : f32 to vector<8x2048xf32>
    %6 = arith.mulf %2, %5 : vector<8x2048xf32>
    %7 = arith.addf %6, %4 : vector<8x2048xf32>
    %8 = arith.truncf %7 : vector<8x2048xf32> to vector<8x2048xbf16>
    %c0_4 = arith.constant 0 : index
    %c0_5 = arith.constant 0 : index
    %9 = vector.load %arg2[%c0_4, %c0_5] : memref<2048x256xbf16, #tpu.memory_space<vmem>>, vector<2048x256xbf16>
    %cst_6 = arith.constant dense<0.000000e+00> : vector<8x256xf32>
    %10 = tpu.matmul %8, %9, %cst_6 {dimension_numbers = #tpu.dot_dimension_numbers<[1], [0], [0], [1], [0, 0, 1, 1], [], []>} : vector<8x2048xbf16>, vector<2048x256xbf16>, vector<8x256xf32> -> vector<8x256xf32>
    %c0_i32 = arith.constant 0 : i32
    %11 = arith.cmpi eq, %arg0, %c0_i32 : i32
    %12 = arith.extui %11 : i1 to i32
    %c0_i32_7 = arith.constant 0 : i32
    %13 = arith.cmpi ne, %12, %c0_i32_7 : i32
    scf.if %13 {
      %cst_14 = arith.constant 0.000000e+00 : f32
      %20 = vector.broadcast %cst_14 : f32 to vector<8x256xf32>
      %c0_15 = arith.constant 0 : index
      %c0_16 = arith.constant 0 : index
      %21 = vector.load %arg9[%c0_15, %c0_16] : memref<8x256xf32, #tpu.memory_space<vmem>>, vector<8x256xf32>
      tpu.vector_store %arg9[%c0_15, %c0_16], %20 {strides = array<i32>} : memref<8x256xf32, #tpu.memory_space<vmem>>, vector<8x256xf32>,
    } else {
    }
    %c0_8 = arith.constant 0 : index
    %c0_9 = arith.constant 0 : index
    %14 = vector.load %arg9[%c0_8, %c0_9] : memref<8x256xf32, #tpu.memory_space<vmem>>, vector<8x256xf32>
    %15 = arith.addf %14, %10 : vector<8x256xf32>
    %c0_10 = arith.constant 0 : index
    %c0_11 = arith.constant 0 : index
    %16 = vector.load %arg9[%c0_10, %c0_11] : memref<8x256xf32, #tpu.memory_space<vmem>>, vector<8x256xf32>
    tpu.vector_store %arg9[%c0_10, %c0_11], %15 {strides = array<i32>} : memref<8x256xf32, #tpu.memory_space<vmem>>, vector<8x256xf32>,
    %c0_i32_12 = arith.constant 0 : i32
    %17 = arith.cmpi eq, %arg0, %c0_i32_12 : i32
    %18 = arith.extui %17 : i1 to i32
    %c0_i32_13 = arith.constant 0 : i32
    %19 = arith.cmpi ne, %18, %c0_i32_13 : i32
    scf.if %19 {
      %c0_14 = arith.constant 0 : index
      %c0_15 = arith.constant 0 : index
      %20 = vector.load %arg9[%c0_14, %c0_15] : memref<8x256xf32, #tpu.memory_space<vmem>>, vector<8x256xf32>
      %cst_16 = arith.constant dense<0.000000e+00> : vector<256xf32>
      %21 = vector.multi_reduction <add>, %20, %cst_16 [0] : vector<8x256xf32> to vector<256xf32>
      %22 = vector.shape_cast %21 : vector<256xf32> to vector<1x256xf32>
      %cst_17 = arith.constant 8.000000e+00 : f32
      %23 = vector.broadcast %cst_17 : f32 to vector<1x256xf32>
      %24 = arith.divf %22, %23 : vector<1x256xf32>
      %25 = vector.broadcast %24 : vector<1x256xf32> to vector<8x256xf32>
      %26 = arith.subf %20, %25 : vector<8x256xf32>
      %27 = arith.mulf %26, %26 : vector<8x256xf32>
      %cst_18 = arith.constant dense<0.000000e+00> : vector<256xf32>
      %28 = vector.multi_reduction <add>, %27, %cst_18 [0] : vector<8x256xf32> to vector<256xf32>
      %29 = vector.shape_cast %28 : vector<256xf32> to vector<1x256xf32>
      %cst_19 = arith.constant 8.000000e+00 : f32
      %30 = vector.broadcast %cst_19 : f32 to vector<1x256xf32>
      %31 = arith.divf %29, %30 : vector<1x256xf32>
      %cst_20 = arith.constant 9.99999974E-6 : f32
      %32 = vector.broadcast %cst_20 : f32 to vector<1x256xf32>
      %33 = arith.addf %31, %32 : vector<1x256xf32>
      %34 = math.rsqrt %33 : vector<1x256xf32>
      %35 = vector.broadcast %34 : vector<1x256xf32> to vector<8x256xf32>
      %36 = arith.mulf %26, %35 : vector<8x256xf32>
      %c0_21 = arith.constant 0 : index
      %c0_22 = arith.constant 0 : index
      %37 = vector.load %arg3[%c0_21, %c0_22] : memref<1x256xf32, #tpu.memory_space<vmem>>, vector<1x256xf32>
      %38 = vector.broadcast %37 : vector<1x256xf32> to vector<8x256xf32>
      %39 = arith.mulf %36, %38 : vector<8x256xf32>
      %c0_23 = arith.constant 0 : index
      %c0_24 = arith.constant 0 : index
      %40 = vector.load %arg4[%c0_23, %c0_24] : memref<1x256xf32, #tpu.memory_space<vmem>>, vector<1x256xf32>
      %41 = vector.broadcast %40 : vector<1x256xf32> to vector<8x256xf32>
      %42 = arith.addf %39, %41 : vector<8x256xf32>
      %cst_25 = arith.constant 0.000000e+00 : f32
      %43 = vector.broadcast %cst_25 : f32 to vector<8x256xf32>
      %44 = arith.maximumf %42, %43 : vector<8x256xf32>
      %c0_26 = arith.constant 0 : index
      %c0_27 = arith.constant 0 : index
      %45 = vector.load %arg7[%c0_26, %c0_27] : memref<8x256xf32, #tpu.memory_space<vmem>>, vector<8x256xf32>
      tpu.vector_store %arg7[%c0_26, %c0_27], %44 {strides = array<i32>} : memref<8x256xf32, #tpu.memory_space<vmem>>, vector<8x256xf32>,
      %c0_28 = arith.constant 0 : index
      %c0_29 = arith.constant 0 : index
      %46 = vector.load %arg5[%c0_28, %c0_29] : memref<256x128xf32, #tpu.memory_space<vmem>>, vector<256x128xf32>
      %cst_30 = arith.constant dense<0.000000e+00> : vector<8x128xf32>
      %47 = tpu.matmul %44, %46, %cst_30 {dimension_numbers = #tpu.dot_dimension_numbers<[1], [0], [0], [1], [0, 0, 1, 1], [], []>} : vector<8x256xf32>, vector<256x128xf32>, vector<8x128xf32> -> vector<8x128xf32>
      %c0_31 = arith.constant 0 : index
      %c0_32 = arith.constant 0 : index
      %48 = vector.load %arg6[%c0_31, %c0_32] : memref<1x128xf32, #tpu.memory_space<vmem>>, vector<1x128xf32>
      %49 = vector.broadcast %48 : vector<1x128xf32> to vector<8x128xf32>
      %50 = arith.addf %47, %49 : vector<8x128xf32>
      %c0_33 = arith.constant 0 : index
      %c0_34 = arith.constant 0 : index
      %51 = vector.load %arg8[%c0_33, %c0_34] : memref<8x128xf32, #tpu.memory_space<vmem>>, vector<8x128xf32>
      tpu.vector_store %arg8[%c0_33, %c0_34], %50 {strides = array<i32>} : memref<8x128xf32, #tpu.memory_space<vmem>>, vector<8x128xf32>,
    } else {
    }
    return
  }
  func.func @transform_0(%arg0: i32) -> (i32, i32, i32) {
    %c0_i32 = arith.constant 0 : i32
    %c0_i32_0 = arith.constant 0 : i32
    %c0_i32_1 = arith.constant 0 : i32
    return %c0_i32, %c0_i32_0, %arg0 : i32, i32, i32
  }
  func.func @transform_1(%arg0: i32) -> (i32, i32) {
    %c0_i32 = arith.constant 0 : i32
    %c0_i32_0 = arith.constant 0 : i32
    return %arg0, %c0_i32 : i32, i32
  }
  func.func @transform_2(%arg0: i32) -> (i32, i32) {
    %c0_i32 = arith.constant 0 : i32
    %c0_i32_0 = arith.constant 0 : i32
    %c0_i32_1 = arith.constant 0 : i32
    return %c0_i32, %c0_i32_0 : i32, i32
  }
  func.func @transform_3(%arg0: i32) -> (i32, i32) {
    %c0_i32 = arith.constant 0 : i32
    %c0_i32_0 = arith.constant 0 : i32
    %c0_i32_1 = arith.constant 0 : i32
    return %c0_i32, %c0_i32_0 : i32, i32
  }
  func.func @transform_4(%arg0: i32) -> (i32, i32) {
    %c0_i32 = arith.constant 0 : i32
    %c0_i32_0 = arith.constant 0 : i32
    %c0_i32_1 = arith.constant 0 : i32
    return %c0_i32, %c0_i32_0 : i32, i32
  }
  func.func @transform_5(%arg0: i32) -> (i32, i32) {
    %c0_i32 = arith.constant 0 : i32
    %c0_i32_0 = arith.constant 0 : i32
    %c0_i32_1 = arith.constant 0 : i32
    return %c0_i32, %c0_i32_0 : i32, i32
  }
  func.func @transform_6(%arg0: i32) -> (i32, i32) {
    %c0_i32 = arith.constant 0 : i32
    %c0_i32_0 = arith.constant 0 : i32
    %c0_i32_1 = arith.constant 0 : i32
    return %c0_i32, %c0_i32_0 : i32, i32
  }
  func.func @transform_7(%arg0: i32) -> (i32, i32) {
    %c0_i32 = arith.constant 0 : i32
    %c0_i32_0 = arith.constant 0 : i32
    %c0_i32_1 = arith.constant 0 : i32
    return %c0_i32, %c0_i32_0 : i32, i32
  }
}

</mosaic_0001>

<bundles_post_ra>
// kernel: tpu_custom_call.1
= control target key start
LH: loop header
LB: loop body
LE: loop exit
PB: predicated region body
PF: predicated region fallthrough
CT: control target
= control target key end

     0   :  { %13 = vsyncpa [#allocation4], 0  ;;  %s8800_s0 = inlined_call_operand.hbm [shape: bf16[8,16,2048], index: 0, kind: input, shape index: {}]   ;;  %s8801_s1 = inlined_call_operand.hbm [shape: bf16[2048,256], index: 1, kind: input, shape index: {}]   ;;  %s8802_s2 = inlined_call_operand.vmem [shape: f32[1,256], index: 2, kind: input, shape index: {}]   ;;  %s8803_s3 = inlined_call_operand.vmem [shape: f32[1,256], index: 3, kind: input, shape index: {}]   ;;  %s8804_s4 = inlined_call_operand.hbm [shape: f32[256,128], index: 4, kind: input, shape index: {}]   ;;  %s8805_s5 = inlined_call_operand.vmem [shape: f32[1,128], index: 5, kind: input, shape index: {}]   ;;  %s8806_s6 = inlined_call_operand.hbm [shape: f32[8,256], index: 6, kind: output, shape index: {0}]   ;;  %s8807_s7 = inlined_call_operand.hbm [shape: f32[8,128], index: 7, kind: output, shape index: {1}]  }
   0x1   :  { %14 = vsyncpa [#allocation7], 0 }
   0x2   :  { %15 = vsyncpa [#allocation5], 0 }
   0x3   :  { %16 = vsyncpa [#allocation11], 0  ;;  %s7332_s24 = smov [#allocation6]  }
   0x4   :  { %s34_s25 = sshll.u32 %s7332_s24, 4  ;;  %s35_s25 = int_to_ptr.vmem [resolvable:$true] %s34_s25 }
   0x5   :  { %s7232_s26 = scalar_lea.vmem %s35_s25, 32768  ;;  %p7237_p1 = scmp.lt.s32.totalorder %s35_s25, %s35_s25 }
   0x6   :  { %p7233_p0 = scmp.ne.s32.totalorder %s35_s25, %s7232_s26  ;;  %p7238_p2 = scmp.lt.s32.totalorder %s7232_s26, %s7232_s26 }
   0x8   :  { %p7239_p3 = por %p7238_p2, %p7237_p1 }
   0xa   :  { %p7240_p4 = pnand %p7239_p3, %p7233_p0 }
   0xc   :  { %7243 = shalt.err (!%p7240_p4)
}
   0xd   :  { %s7333_s27 = smov 128   ;;  %s7334_s28 = smov 8  }
   0xe   :  { %40 = dma.hbm_to_vmem [thread:$0]  %s8801_s1, 32768, %s35_s25, [#allocation7], %s7333_s27, %s7333_s27, %s7334_s28  }
   0xf   :  { %s7335_s8 = smov [#allocation3]  }
  0x10   :  { %s22_s9 = sshll.u32 %s7335_s8, 4  ;;  %s23_s9 = int_to_ptr.vmem [resolvable:$true] %s22_s9 }
  0x11   :  { %s7252_s10 = scalar_lea.vmem %s23_s9, 16384  ;;  %p7257_p6 = scmp.lt.s32.totalorder %s23_s9, %s23_s9 }
  0x12   :  { %p7253_p5 = scmp.ne.s32.totalorder %s23_s9, %s7252_s10  ;;  %p7258_p7 = scmp.lt.s32.totalorder %s7252_s10, %s7252_s10 }
  0x14   :  { %p7259_p8 = por %p7258_p7, %p7257_p6 }
  0x16   :  { %p7260_p9 = pnand %p7259_p8, %p7253_p5 }
  0x18   :  { %7263 = shalt.err (!%p7260_p9)
}
  0x19   :  { %s7336_s11 = smov 1024   ;;  %s7337_s12 = smov 64  }
  0x1a   :  { %28 = dma.hbm_to_vmem [thread:$0]  %s8800_s0, 16384, %s23_s9, [#allocation4], %s7336_s11, %s7336_s11, %s7337_s12  }
  0x1b   :  { %s7338_s15 = smov [#allocation8]  }
  0x1c   :  { %s50_s16 = sshll.u32 %s7338_s15, 4  ;;  %s51_s16 = int_to_ptr.vmem [resolvable:$true] %s50_s16 }
  0x1d   :  { %s7272_s1 = scalar_lea.vmem %s51_s16, 4096  ;;  %p7277_p11 = scmp.lt.s32.totalorder %s51_s16, %s51_s16 }
  0x1e   :  { %p7273_p10 = scmp.ne.s32.totalorder %s51_s16, %s7272_s1  ;;  %p7278_p12 = scmp.lt.s32.totalorder %s7272_s1, %s7272_s1 }
  0x20   :  { %p7279_p13 = por %p7278_p12, %p7277_p11 }
  0x22   :  { %p7280_p0 = pnand %p7279_p13, %p7273_p10 }
  0x24   :  { %7283 = shalt.err (!%p7280_p0)
}
  0x25   :  { %56 = dma.hbm_to_vmem [thread:$0]  %s8804_s4, 4096, %s51_s16, [#allocation7], %s7333_s27, %s7333_s27, %s7334_s28  }
  0x26   :  { %7324 = dma.done.wait [#allocation4], 16384  }
  0x27   :  { %7325 = vsyncadd [#allocation4], 4294950912 }
  0x28   :  { %7326 = dma.done.wait [#allocation7], 36864  }
  0x29   :  { %7327 = vsyncadd [#allocation7], 4294930432  ;;  %v6708_v0 = vld [vmem:[#allocation6 + $0x74] ss:$8 sps:$4 sm:$0xff]   ;;  %v6712_v2 = vld [vmem:[#allocation6 + $0x70] ss:$8 sps:$4 sm:$0xff]  }
  0x2a   :  { %v6710_v1 = vld [vmem:[#allocation6 + $0x174] ss:$8 sps:$4 sm:$0xff]   ;;  %5723 = vmatprep.subr.bf16.mxu0 %v6708_v0  ;;  %v6713_v3 = vld [vmem:[#allocation6 + $0x170] ss:$8 sps:$4 sm:$0xff]   ;;  %v6714_v4 = vld [vmem:[#allocation6 + $0x64] ss:$8 sps:$4 sm:$0xff]  }
  0x2b   :  { %5764 = vmatprep.subr.bf16.mxu1 %v6710_v1  ;;  %5724 = vmatpush1.bf16.msra.mxu0 %v6712_v2  ;;  %v6716_v5 = vld [vmem:[#allocation6 + $0x164] ss:$8 sps:$4 sm:$0xff]   ;;  %v6718_v6 = vld [vmem:[#allocation6 + $0x60] ss:$8 sps:$4 sm:$0xff]   ;;  %v6720_v8 = vld [vmem:[#allocation6 + $0x54] ss:$8 sps:$4 sm:$0xff]  }
  0x2c   :  { %5765 = vmatpush1.bf16.msra.mxu1 %v6713_v3  ;;  %5725 = vmatprep.subr.bf16.mxu0 %v6714_v4  ;;  %v6719_v7 = vld [vmem:[#allocation6 + $0x160] ss:$8 sps:$4 sm:$0xff]   ;;  %v6722_v9 = vld [vmem:[#allocation6 + $0x154] ss:$8 sps:$4 sm:$0xff]   ;;  %v6724_v10 = vld [vmem:[#allocation6 + $0x50] ss:$8 sps:$4 sm:$0xff]  }
  0x2d   :  { %5766 = vmatprep.subr.bf16.mxu1 %v6716_v5  ;;  %v6725_v11 = vld [vmem:[#allocation6 + $0x150] ss:$8 sps:$4 sm:$0xff]   ;;  %v6726_v12 = vld [vmem:[#allocation6 + $0x44] ss:$8 sps:$4 sm:$0xff]   ;;  %v6730_v14 = vld [vmem:[#allocation6 + $0x40] ss:$8 sps:$4 sm:$0xff]  }
  0x2e   :  { %v6728_v13 = vld [vmem:[#allocation6 + $0x144] ss:$8 sps:$4 sm:$0xff]   ;;  %v6731_v15 = vld [vmem:[#allocation6 + $0x140] ss:$8 sps:$4 sm:$0xff]   ;;  %v6732_v16 = vld [vmem:[#allocation6 + $0x34] ss:$8 sps:$4 sm:$0xff]  }
  0x2f   :  { %5726 = vmatpush1.bf16.msra.mxu0 %v6718_v6  ;;  %v6734_v17 = vld [vmem:[#allocation6 + $0x134] ss:$8 sps:$4 sm:$0xff]   ;;  %v6736_v18 = vld [vmem:[#allocation6 + $0x30] ss:$8 sps:$4 sm:$0xff]   ;;  %v6738_v20 = vld [vmem:[#allocation6 + $0x24] ss:$8 sps:$4 sm:$0xff]  }
  0x30   :  { %5767 = vmatpush1.bf16.msra.mxu1 %v6719_v7  ;;  %5727 = vmatprep.subr.bf16.mxu0 %v6720_v8  ;;  %v6737_v19 = vld [vmem:[#allocation6 + $0x130] ss:$8 sps:$4 sm:$0xff]   ;;  %v6740_v21 = vld [vmem:[#allocation6 + $0x124] ss:$8 sps:$4 sm:$0xff]   ;;  %v6742_v22 = vld [vmem:[#allocation6 + $0x20] ss:$8 sps:$4 sm:$0xff]  }
  0x31   :  { %5768 = vmatprep.subr.bf16.mxu1 %v6722_v9  ;;  %v6743_v23 = vld [vmem:[#allocation6 + $0x120] ss:$8 sps:$4 sm:$0xff]   ;;  %v6744_v24 = vld [vmem:[#allocation6 + $0x14] ss:$8 sps:$4 sm:$0xff]   ;;  %v6748_v26 = vld [vmem:[#allocation6 + $0x10] ss:$8 sps:$4 sm:$0xff]  }
  0x32   :  { %v6746_v25 = vld [vmem:[#allocation6 + $0x114] ss:$8 sps:$4 sm:$0xff]   ;;  %v6749_v27 = vld [vmem:[#allocation6 + $0x110] ss:$8 sps:$4 sm:$0xff]   ;;  %v6750_v28 = vld [vmem:[#allocation6 + $0x4] ss:$8 sps:$4 sm:$0xff]  }
  0x33   :  { %5728 = vmatpush1.bf16.msra.mxu0 %v6724_v10  ;;  %v6752_v29 = vld [vmem:[#allocation6 + $0x104] ss:$8 sps:$4 sm:$0xff]   ;;  %v6754_v30 = vld [vmem:[#allocation6] ss:$8 sps:$4 sm:$0xff]   ;;  %v6756_v32 = vld [vmem:[#allocation6 + $0xf4] ss:$8 sps:$4 sm:$0xff]  }
  0x34   :  { %5769 = vmatpush1.bf16.msra.mxu1 %v6725_v11  ;;  %5729 = vmatprep.subr.bf16.mxu0 %v6726_v12  ;;  %v6755_v31 = vld [vmem:[#allocation6 + $0x100] ss:$8 sps:$4 sm:$0xff]   ;;  %v6758_v33 = vld [vmem:[#allocation6 + $0x1f4] ss:$8 sps:$4 sm:$0xff]   ;;  %v6760_v34 = vld [vmem:[#allocation6 + $0xf0] ss:$8 sps:$4 sm:$0xff]  }
  0x35   :  { %5770 = vmatprep.subr.bf16.mxu1 %v6728_v13  ;;  %v6761_v35 = vld [vmem:[#allocation6 + $0x1f0] ss:$8 sps:$4 sm:$0xff]   ;;  %v6762_v36 = vld [vmem:[#allocation6 + $0xe4] ss:$8 sps:$4 sm:$0xff]   ;;  %v6766_v38 = vld [vmem:[#allocation6 + $0xe0] ss:$8 sps:$4 sm:$0xff]  }
  0x36   :  { %v6764_v37 = vld [vmem:[#allocation6 + $0x1e4] ss:$8 sps:$4 sm:$0xff]   ;;  %v6767_v39 = vld [vmem:[#allocation6 + $0x1e0] ss:$8 sps:$4 sm:$0xff]   ;;  %v6768_v40 = vld [vmem:[#allocation6 + $0xd4] ss:$8 sps:$4 sm:$0xff]  }
  0x37   :  { %5730 = vmatpush1.bf16.msra.mxu0 %v6730_v14  ;;  %v6770_v41 = vld [vmem:[#allocation6 + $0x1d4] ss:$8 sps:$4 sm:$0xff]   ;;  %v6772_v42 = vld [vmem:[#allocation6 + $0xd0] ss:$8 sps:$4 sm:$0xff]   ;;  %v6774_v44 = vld [vmem:[#allocation6 + $0xc4] ss:$8 sps:$4 sm:$0xff]  }
  0x38   :  { %5771 = vmatpush1.bf16.msra.mxu1 %v6731_v15  ;;  %5731 = vmatprep.subr.bf16.mxu0 %v6732_v16  ;;  %v6773_v43 = vld [vmem:[#allocation6 + $0x1d0] ss:$8 sps:$4 sm:$0xff]   ;;  %v6776_v45 = vld [vmem:[#allocation6 + $0x1c4] ss:$8 sps:$4 sm:$0xff]   ;;  %v6778_v46 = vld [vmem:[#allocation6 + $0xc0] ss:$8 sps:$4 sm:$0xff]  }
  0x39   :  { %5772 = vmatprep.subr.bf16.mxu1 %v6734_v17  ;;  %v6779_v47 = vld [vmem:[#allocation6 + $0x1c0] ss:$8 sps:$4 sm:$0xff]   ;;  %v6780_v49 = vld [vmem:[#allocation6 + $0xb4] ss:$8 sps:$4 sm:$0xff]   ;;  %vm4292_vm0 = vcmask 1041409   ;;  %vm4294_vm1 = vcmask 1042434  }
  0x3a   :  { %v7390_v48 = vld [vmem:[#allocation3] sm:$0xff]  ;;  %v6782_v50 = vld [vmem:[#allocation6 + $0x1b4] ss:$8 sps:$4 sm:$0xff]   ;;  %vm4296_vm2 = vcmask 1043459   ;;  %vm4298_vm3 = vcmask 1044484   ;;  %vm4300_vm4 = vcmask 1045509  }
  0x3b   :  { %5732 = vmatpush1.bf16.msra.mxu0 %v6736_v18  ;;  %v76_v51 = vld [vmem:[#allocation3 + $0x40] sm:$0xff]  ;;  %v197_v54 = vunpack.c.h.bf16 %v7390_v48  ;;  %v196_v55 = vunpack.c.l.bf16 %v7390_v48  ;;  %vm4302_vm5 = vcmask 1046534   ;;  %vm4304_vm6 = vcmask 1047559  }
  0x3c   :  { %5773 = vmatpush1.bf16.msra.mxu1 %v6737_v19  ;;  %5733 = vmatprep.subr.bf16.mxu0 %v6738_v20  ;;  %v84_v52 = vld [vmem:[#allocation3 + $0x80] sm:$0xff]  ;;  %v213_v59 = vunpack.c.h.bf16 %v76_v51  ;;  %v7401_v62 = vcombine.high %v7390_v48, %v76_v51  ;;  %v6784_v20 = vld [vmem:[#allocation6 + $0xb0] ss:$8 sps:$4 sm:$0xff]  }
  0x3d   :  { %5774 = vmatprep.subr.bf16.mxu1 %v6740_v21  ;;  %v92_v53 = vld [vmem:[#allocation3 + $0xc0] sm:$0xff]  ;;  %v229_v60 = vunpack.c.h.bf16 %v84_v52  ;;  %v6785_v21 = vld [vmem:[#allocation6 + $0x1b0] ss:$8 sps:$4 sm:$0xff]  }
  0x3e   :  { %v7394_v56 = vld [vmem:[#allocation3 + $0x100] sm:$0xff]  ;;  %v245_v61 = vunpack.c.h.bf16 %v92_v53  ;;  %v7412_v5 = vcombine.high %v84_v52, %v92_v53  ;;  %v459_v12 = vadd.f32 %v213_v59, %v197_v54  ;;  %v6796_v53 = vld [vmem:[#allocation6 + $0x90] ss:$8 sps:$4 sm:$0xff]  }
  0x3f   :  { %5734 = vmatpush1.bf16.msra.mxu0 %v6742_v22  ;;  %v7396_v57 = vld [vmem:[#allocation3 + $0x140] sm:$0xff]  ;;  %v261_v2 = vunpack.c.h.bf16 %v7394_v56  ;;  %v6797_v54 = vld [vmem:[#allocation6 + $0x190] ss:$8 sps:$4 sm:$0xff]  }
  0x40   :  { %5775 = vmatpush1.bf16.msra.mxu1 %v6743_v23  ;;  %5735 = vmatprep.subr.bf16.mxu0 %v6744_v24  ;;  %v7398_v58 = vld [vmem:[#allocation3 + $0x180] sm:$0xff]  ;;  %v277_v3 = vunpack.c.h.bf16 %v7396_v57  ;;  %v571_v19 = vadd.f32 %v245_v61, %v229_v60 }
  0x41   :  { %5776 = vmatprep.subr.bf16.mxu1 %v6746_v25  ;;  %v7403_v63 = vld [vmem:[#allocation3 + $0x1c0] sm:$0xff]  ;;  %v293_v4 = vunpack.c.h.bf16 %v7398_v58  ;;  %v460_v25 = vrot.slane %v459_v12, 4 }
  0x42   :  { %v7405_v0 = vld [vmem:[#allocation3 + $0x200] sm:$0xff]  ;;  %v309_v9 = vunpack.c.h.bf16 %v7403_v63 }
  0x43   :  { %5736 = vmatpush1.bf16.msra.mxu0 %v6748_v26  ;;  %v7407_v1 = vld [vmem:[#allocation3 + $0x240] sm:$0xff]  ;;  %v325_v10 = vunpack.c.h.bf16 %v7405_v0 }
  0x44   :  { %5777 = vmatpush1.bf16.msra.mxu1 %v6749_v27  ;;  %5737 = vmatprep.subr.bf16.mxu0 %v6750_v28  ;;  %v7414_v6 = vld [vmem:[#allocation3 + $0x280] sm:$0xff]  ;;  %v341_v11 = vunpack.c.h.bf16 %v7407_v1  ;;  %v572_v28 = vrot.slane %v571_v19, 4 }
  0x45   :  { %5778 = vmatprep.subr.bf16.mxu1 %v6752_v29  ;;  %v7416_v7 = vld [vmem:[#allocation3 + $0x2c0] sm:$0xff]  ;;  %v357_v16 = vunpack.c.h.bf16 %v7414_v6  ;;  %v683_v29 = vadd.f32 %v277_v3, %v261_v2 }
  0x46   :  { %v7418_v8 = vld [vmem:[#allocation3 + $0x300] sm:$0xff]  ;;  %v373_v17 = vunpack.c.h.bf16 %v7416_v7 }
  0x47   :  { %5738 = vmatpush1.bf16.msra.mxu0 %v6754_v30  ;;  %v7423_v13 = vld [vmem:[#allocation3 + $0x340] sm:$0xff]  ;;  %v389_v18 = vunpack.c.h.bf16 %v7418_v8  ;;  %v795_v30 = vadd.f32 %v309_v9, %v293_v4 }
  0x48   :  { %5779 = vmatpush1.bf16.msra.mxu1 %v6755_v31  ;;  %5739 = vmatprep.subr.bf16.mxu0 %v6756_v32  ;;  %v7425_v14 = vld [vmem:[#allocation3 + $0x380] sm:$0xff]  ;;  %v405_v22 = vunpack.c.h.bf16 %v7423_v13  ;;  %v907_v31 = vadd.f32 %v341_v11, %v325_v10  ;;  %v461_v32 = vadd.f32 %v460_v25, %v459_v12 }
  0x49   :  { %5780 = vmatprep.subr.bf16.mxu1 %v6758_v33  ;;  %v7427_v15 = vld [vmem:[#allocation3 + $0x3c0] sm:$0xff]  ;;  %v421_v23 = vunpack.c.h.bf16 %v7425_v14  ;;  %v1019_v33 = vadd.f32 %v373_v17, %v357_v16 }
  0x4a   :  { %v437_v24 = vunpack.c.h.bf16 %v7427_v15  ;;  %v6786_v26 = vld [vmem:[#allocation6 + $0xa4] ss:$8 sps:$4 sm:$0xff]   ;;  %v6803_v25 = vld [vmem:[#allocation6 + $0x180] ss:$8 sps:$4 sm:$0xff]  }
  0x4b   :  { %5740 = vmatpush2.bf16.msra.mxu0 %v6760_v34  ;;  %v6788_v27 = vld [vmem:[#allocation6 + $0x1a4] ss:$8 sps:$4 sm:$0xff]   ;;  %v1131_v34 = vadd.f32 %v405_v22, %v389_v18 }
  0x4c   :  { %5781 = vmatpush2.bf16.msra.mxu1 %v6761_v35  ;;  %5741 = vmatprep.subr.bf16.mxu0 %v6762_v36  ;;  %v1243_v35 = vadd.f32 %v437_v24, %v421_v23  ;;  %v6790_v36 = vld [vmem:[#allocation6 + $0xa0] ss:$8 sps:$4 sm:$0xff]   ;;  %v6798_v3 = vld [vmem:[#allocation6 + $0x84] ss:$8 sps:$4 sm:$0xff]  }
  0x4d   :  { %5782 = vmatprep.subr.bf16.mxu1 %v6764_v37  ;;  %v573_v37 = vadd.f32 %v572_v28, %v571_v19  ;;  %v6800_v4 = vld [vmem:[#allocation6 + $0x184] ss:$8 sps:$4 sm:$0xff]   ;;  %v6802_v24 = vld [vmem:[#allocation6 + $0x80] ss:$8 sps:$4 sm:$0xff]  }
  0x4f   :  { %5742 = vmatpush2.bf16.msra.mxu0 %v6766_v38  ;;  %v684_v38 = vrot.slane %v683_v29, 4 }
  0x50   :  { %5783 = vmatpush2.bf16.msra.mxu1 %v6767_v39  ;;  %5743 = vmatprep.subr.bf16.mxu0 %v6768_v40  ;;  %v796_v39 = vrot.slane %v795_v30, 4  ;;  %v908_v40 = vrot.slane %v907_v31, 4 }
  0x51   :  { %5784 = vmatprep.subr.bf16.mxu1 %v6770_v41  ;;  %v6791_v41 = vld [vmem:[#allocation6 + $0x1a0] ss:$8 sps:$4 sm:$0xff]  }
  0x52   :  { %v797_v51 = vadd.f32 %v796_v39, %v795_v30  ;;  %v909_v52 = vadd.f32 %v908_v40, %v907_v31 }
  0x53   :  { %5744 = vmatpush2.bf16.msra.mxu0 %v6772_v42  ;;  %v462_v42 = vrot.slane %v461_v32, 2 }
  0x54   :  { %5785 = vmatpush2.bf16.msra.mxu1 %v6773_v43  ;;  %5745 = vmatprep.subr.bf16.mxu0 %v6774_v44  ;;  %v1020_v43 = vrot.slane %v1019_v33, 4  ;;  %v1132_v44 = vrot.slane %v1131_v34, 4  ;;  %v798_v11 = vrot.slane %v797_v51, 2  ;;  %v910_v12 = vrot.slane %v909_v52, 2 }
  0x55   :  { %5786 = vmatprep.subr.bf16.mxu1 %v6776_v45  ;;  %v1244_v45 = vrot.slane %v1243_v35, 4  ;;  %v463_v59 = vadd.f32 %v462_v42, %v461_v32 }
  0x56   :  { %v1021_v60 = vadd.f32 %v1020_v43, %v1019_v33  ;;  %v1133_v61 = vadd.f32 %v1132_v44, %v1131_v34  ;;  %v799_v22 = vadd.f32 %v798_v11, %v797_v51  ;;  %v911_v23 = vadd.f32 %v910_v12, %v909_v52 }
  0x57   :  { %5746 = vmatpush2.bf16.msra.mxu0 %v6778_v46  ;;  %v6792_v46 = vld [vmem:[#allocation6 + $0x94] ss:$8 sps:$4 sm:$0xff]   ;;  %v1245_v2 = vadd.f32 %v1244_v45, %v1243_v35  ;;  %v464_v16 = vrot.slane %v463_v59, 1  ;;  %v6328_v45 = vcombine.high %v7398_v58, %v7403_v63  ;;  %v2159_v58 = vunpack.i.h.bf16 %v7412_v5 }
  0x58   :  { %5787 = vmatpush2.bf16.msra.mxu1 %v6779_v47  ;;  %5747 = vmatprep.subr.bf16.mxu0 %v6780_v49  ;;  %v6794_v47 = vld [vmem:[#allocation6 + $0x194] ss:$8 sps:$4 sm:$0xff]   ;;  %v574_v49 = vrot.slane %v573_v37, 2  ;;  %v1022_v17 = vrot.slane %v1021_v60, 2  ;;  %v1134_v18 = vrot.slane %v1133_v61, 2  ;;  %v800_v32 = vrot.slane %v799_v22, 1 }
  0x59   :  { %5788 = vmatprep.subr.bf16.mxu1 %v6782_v50  ;;  %v685_v50 = vadd.f32 %v684_v38, %v683_v29  ;;  %v1246_v19 = vrot.slane %v1245_v2, 2  ;;  %v912_v33 = vrot.slane %v911_v23, 1 }
  0x5a   :  { %v575_v9 = vadd.f32 %v574_v49, %v573_v37  ;;  %v1135_v28 = vadd.f32 %v1134_v18, %v1133_v61  ;;  %v6312_v37 = vcombine.high %v7394_v56, %v7396_v57  ;;  %v7443_v39 = vadd.f32 %v800_v32, %v799_v22 }
  0x5b   :  { %5748 = vmatpush2.bf16.msra.mxu0 %v6784_v20  ;;  %v686_v10 = vrot.slane %v685_v50, 2  ;;  %v1247_v29 = vadd.f32 %v1246_v19, %v1245_v2  ;;  %v7445_v40 = vadd.f32 %v912_v33, %v911_v23  ;;  %v6344_v56 = vcombine.high %v7405_v0, %v7407_v1 }
  0x5c   :  { %5789 = vmatpush2.bf16.msra.mxu1 %v6785_v21  ;;  %5749 = vmatprep.subr.bf16.mxu0 %v6786_v26  ;;  %v576_v20 = vrot.slane %v575_v9, 1  ;;  %v7435_v26 = vadd.f32 %v464_v16, %v463_v59  ;;  %v1136_v35 = vrot.slane %v1135_v28, 1  ;;  %v6360_v57 = vcombine.high %v7414_v6, %v7416_v7 }
  0x5d   :  { %5790 = vmatprep.subr.bf16.mxu1 %v6788_v27  ;;  %v687_v21 = vadd.f32 %v686_v10, %v685_v50  ;;  %v1023_v27 = vadd.f32 %v1022_v17, %v1021_v60  ;;  %v1999_v49 = vunpack.i.h.bf16 %v7401_v62  ;;  %v2158_v50 = vunpack.i.l.bf16 %v7412_v5 }
  0x5e   :  { %v7437_v30 = vadd.f32 %v576_v20, %v575_v9  ;;  %v7450_v43 = vadd.f32 %v1136_v35, %v1135_v28  ;;  %v2318_v63 = vunpack.i.l.bf16 %v6312_v37  ;;  %v2319_v51 = vunpack.i.h.bf16 %v6312_v37 }
  0x5f   :  { %5750 = vmatpush2.bf16.msra.mxu0 %v6790_v36  ;;  %v688_v31 = vrot.slane %v687_v21, 1  ;;  %v1024_v34 = vrot.slane %v1023_v27, 1  ;;  %v1248_v36 = vrot.slane %v1247_v29, 1  ;;  %v2478_v0 = vunpack.i.l.bf16 %v6328_v45 }
  0x60   :  { %5791 = vmatpush2.bf16.msra.mxu1 %v6791_v41  ;;  %5751 = vmatprep.subr.bf16.mxu0 %v6792_v46  ;;  %v1998_v41 = vunpack.i.l.bf16 %v7401_v62  ;;  %v6376_v46 = vcombine.high %v7418_v8, %v7423_v13  ;;  %v2479_v1 = vunpack.i.h.bf16 %v6328_v45  ;;  %v2638_v52 = vunpack.i.l.bf16 %v6344_v56 }
  0x61   :  { %5792 = vmatprep.subr.bf16.mxu1 %v6794_v47  ;;  %v7441_v38 = vadd.f32 %v688_v31, %v687_v21  ;;  %v7448_v42 = vadd.f32 %v1024_v34, %v1023_v27  ;;  %v7452_v44 = vadd.f32 %v1248_v36, %v1247_v29  ;;  %v6392_v47 = vcombine.high %v7425_v14, %v7427_v15 }
  0x62   :  { %v2000_v6 = vmax.f32 %v1998_v41, %v1999_v49  ;;  %v2160_v7 = vmax.f32 %v2158_v50, %v2159_v58  ;;  %v2798_v8 = vunpack.i.l.bf16 %v6360_v57  ;;  %v2320_v13 = vmax.f32 %v2318_v63, %v2319_v51 }
  0x63   :  { %5752 = vmatpush2.bf16.msra.mxu0 %v6796_v53  ;;  %v2639_v53 = vunpack.i.h.bf16 %v6344_v56  ;;  %v2799_v14 = vunpack.i.h.bf16 %v6360_v57  ;;  %v2958_v15 = vunpack.i.l.bf16 %v6376_v46  ;;  %v2959_v61 = vunpack.i.h.bf16 %v6376_v46 }
  0x64   :  { %5793 = vmatpush2.bf16.msra.mxu1 %v6797_v54  ;;  %5753 = vmatprep.subr.bf16.mxu0 %v6798_v3  ;;  %v2480_v54 = vmax.f32 %v2478_v0, %v2479_v1  ;;  %v2001_v59 = vrot.slane %v2000_v6, 4  ;;  %v2161_v60 = vrot.slane %v2160_v7, 4  ;;  %v2321_v2 = vrot.slane %v2320_v13, 4 }
  0x65   :  { %5794 = vmatprep.subr.bf16.mxu1 %v6800_v4  ;;  %v2640_v62 = vmax.f32 %v2638_v52, %v2639_v53  ;;  %v2800_v5 = vmax.f32 %v2798_v8, %v2799_v14  ;;  %v3118_v4 = vunpack.i.l.bf16 %v6392_v47  ;;  %v2960_v12 = vmax.f32 %v2958_v15, %v2959_v61 }
  0x66   :  { %v2481_v3 = vrot.slane %v2480_v54, 4  ;;  %v2002_v9 = vmax.f32 %v2000_v6, %v2001_v59  ;;  %v2162_v10 = vmax.f32 %v2160_v7, %v2161_v60  ;;  %v2322_v16 = vmax.f32 %v2320_v13, %v2321_v2 }
  0x67   :  { %5754 = vmatpush2.bf16.msra.mxu0 %v6802_v24  ;;  %v2641_v11 = vrot.slane %v2640_v62, 4  ;;  %v2801_v18 = vrot.slane %v2800_v5, 4  ;;  %v3119_v19 = vunpack.i.h.bf16 %v6392_v47  ;;  %v2961_v23 = vrot.slane %v2960_v12, 4 }
  0x68   :  { %5795 = vmatpush2.bf16.msra.mxu1 %v6803_v25  ;;  %v2482_v17 = vmax.f32 %v2480_v54, %v2481_v3  ;;  %v2003_v20 = vrot.slane %v2002_v9, 2  ;;  %v2163_v21 = vrot.slane %v2162_v10, 2  ;;  %v2323_v24 = vrot.slane %v2322_v16, 2 }
  0x69   :  { %v2642_v22 = vmax.f32 %v2640_v62, %v2641_v11  ;;  %v2802_v27 = vmax.f32 %v2800_v5, %v2801_v18  ;;  %v3120_v28 = vmax.f32 %v3118_v4, %v3119_v19  ;;  %v2962_v33 = vmax.f32 %v2960_v12, %v2961_v23 }
  0x6a   :  { %v2483_v25 = vrot.slane %v2482_v17, 2  ;;  %v2004_v29 = vmax.f32 %v2002_v9, %v2003_v20  ;;  %v2164_v31 = vmax.f32 %v2162_v10, %v2163_v21  ;;  %v2324_v34 = vmax.f32 %v2322_v16, %v2323_v24 }
  0x6b   :  { %v2643_v32 = vrot.slane %v2642_v22, 2  ;;  %v2803_v36 = vrot.slane %v2802_v27, 2  ;;  %v3121_v37 = vrot.slane %v3120_v28, 4  ;;  %v2963_v57 = vrot.slane %v2962_v33, 2 }
  0x6c   :  { %v2484_v35 = vmax.f32 %v2482_v17, %v2483_v25  ;;  %v2005_v41 = vrot.slane %v2004_v29, 1  ;;  %v2165_v45 = vrot.slane %v2164_v31, 1  ;;  %v2325_v46 = vrot.slane %v2324_v34, 1 }
  0x6d   :  { %v2644_v56 = vmax.f32 %v2642_v22, %v2643_v32  ;;  %v2804_v49 = vmax.f32 %v2802_v27, %v2803_v36  ;;  %v3122_v50 = vmax.f32 %v3120_v28, %v3121_v37  ;;  %v2964_v0 = vmax.f32 %v2962_v33, %v2963_v57  ;;  %v7475_v37 = vld [vmem:[#allocation3 + $0x8] sm:$0xff] }
  0x6e   :  { %v2485_v47 = vrot.slane %v2484_v35, 1  ;;  %v2006_v58 = vmax.f32 %v2004_v29, %v2005_v41  ;;  %v2166_v63 = vmax.f32 %v2164_v31, %v2165_v45  ;;  %v2326_v1 = vmax.f32 %v2324_v34, %v2325_v46  ;;  %v7477_v57 = vld [vmem:[#allocation3 + $0x48] sm:$0xff] }
  0x6f   :  { %v2645_v51 = vrot.slane %v2644_v56, 1  ;;  %v2805_v6 = vrot.slane %v2804_v49, 1  ;;  %v3123_v7 = vrot.slane %v3122_v50, 2  ;;  %v2965_v54 = vrot.slane %v2964_v0, 1  ;;  %v7479_v46 = vld [vmem:[#allocation3 + $0x88] sm:$0xff] }
  0x70   :  { %v2486_v52 = vmax.f32 %v2484_v35, %v2485_v47  ;;  %v2007_v53 = vpack.i.bf16 %v2006_v58, %v2006_v58  ;;  %v2167_v8 = vpack.i.bf16 %v2166_v63, %v2166_v63  ;;  %v2327_v14 = vpack.i.bf16 %v2326_v1, %v2326_v1  ;;  %v7481_v47 = vld [vmem:[#allocation3 + $0xc8] sm:$0xff] }
  0x71   :  { %v2646_v13 = vmax.f32 %v2644_v56, %v2645_v51  ;;  %v2806_v59 = vmax.f32 %v2804_v49, %v2805_v6  ;;  %v3124_v60 = vmax.f32 %v3122_v50, %v3123_v7  ;;  %v2966_v61 = vmax.f32 %v2964_v0, %v2965_v54  ;;  %v7483_v51 = vld [vmem:[#allocation3 + $0x108] sm:$0xff] }
  0x72   :  { %v2487_v15 = vpack.i.bf16 %v2486_v52, %v2486_v52  ;;  %v3269_v2 = vunpack.c.l.bf16 %v2007_v53  ;;  %v3285_v3 = vunpack.c.l.bf16 %v2167_v8  ;;  %v3301_v9 = vunpack.c.l.bf16 %v2327_v14  ;;  %v7485_v0 = vld [vmem:[#allocation3 + $0x148] sm:$0xff] }
  0x73   :  { %v2647_v62 = vpack.i.bf16 %v2646_v13, %v2646_v13  ;;  %v2807_v5 = vpack.i.bf16 %v2806_v59, %v2806_v59  ;;  %v3125_v4 = vrot.slane %v3124_v60, 1  ;;  %v2967_v11 = vpack.i.bf16 %v2966_v61, %v2966_v61  ;;  %v7488_v7 = vld [vmem:[#allocation3 + $0x188] sm:$0xff] }
  0x74   :  { %v3317_v10 = vunpack.c.l.bf16 %v2487_v15  ;;  %v3397_v16 = vmul.f32 0.0625, %v7435_v26  ;;  %v3413_v17 = vmul.f32 0.0625, %v7437_v30  ;;  %v3429_v20 = vmul.f32 0.0625, %v7441_v38  ;;  %v7490_v53 = vld [vmem:[#allocation3 + $0x1c8] sm:$0xff] }
  0x75   :  { %v3333_v12 = vunpack.c.l.bf16 %v2647_v62  ;;  %v3126_v18 = vmax.f32 %v3124_v60, %v3125_v4  ;;  %v3349_v19 = vunpack.c.l.bf16 %v2807_v5  ;;  %v3445_v21 = vmul.f32 0.0625, %v7443_v39  ;;  %v7492_v8 = vld [vmem:[#allocation3 + $0x208] sm:$0xff] }
  0x76   :  { %v3365_v22 = vunpack.c.l.bf16 %v2967_v11  ;;  %v3461_v23 = vmul.f32 0.0625, %v7445_v40  ;;  %v3477_v24 = vmul.f32 0.0625, %v7448_v42  ;;  %v3493_v25 = vmul.f32 0.0625, %v7450_v43  ;;  %v7496_v14 = vld [vmem:[#allocation3 + $0x248] sm:$0xff] }
  0x77   :  { %v3127_v27 = vpack.i.bf16 %v3126_v18, %v3126_v18  ;;  %v3509_v26 = vmul.f32 0.0625, %v7452_v44  ;;  %v3525_v30 = vadd.f32 %v3397_v16, %v3269_v2  ;;  %v3541_v28 = vadd.f32 %v3413_v17, %v3285_v3  ;;  %v7498_v15 = vld [vmem:[#allocation3 + $0x288] sm:$0xff] }
  0x78   :  { %v3557_v29 = vadd.f32 %v3429_v20, %v3301_v9  ;;  %v3573_v31 = vadd.f32 %v3445_v21, %v3317_v10  ;;  %v3589_v38 = vadd.f32 %v3461_v23, %v3333_v12  ;;  %v3605_v32 = vadd.f32 %v3477_v24, %v3349_v19  ;;  %v7500_v59 = vld [vmem:[#allocation3 + $0x2c8] sm:$0xff] }
  0x79   :  { %v3381_v39 = vunpack.c.l.bf16 %v3127_v27  ;;  %v3621_v33 = vadd.f32 %v3493_v25, %v3365_v22  ;;  %v3653_v34 = vpack.c.bf16 %v3525_v30, %v3525_v30  ;;  %v3669_v40 = vpack.c.bf16 %v3541_v28, %v3541_v28  ;;  %v7506_v5 = vld [vmem:[#allocation3 + $0x308] sm:$0xff] }
  0x7a   :  { %v3685_v35 = vpack.c.bf16 %v3557_v29, %v3557_v29  ;;  %v3701_v42 = vpack.c.bf16 %v3573_v31, %v3573_v31  ;;  %v3717_v36 = vpack.c.bf16 %v3589_v38, %v3589_v38  ;;  %v3733_v43 = vpack.c.bf16 %v3605_v32, %v3605_v32  ;;  %v7508_v4 = vld [vmem:[#allocation3 + $0x348] sm:$0xff] }
  0x7b   :  { %v3637_v41 = vadd.f32 %v3509_v26, %v3381_v39  ;;  %v3749_v44 = vpack.c.bf16 %v3621_v33, %v3621_v33  ;;  %v4165_v45 = vunpack.c.l.b16 %v3653_v34  ;;  %v4181_v56 = vunpack.c.l.b16 %v3669_v40  ;;  %v7510_v9 = vld [vmem:[#allocation3 + $0x388] sm:$0xff] }
  0x7c   :  { %v4197_v49 = vunpack.c.l.b16 %v3685_v35  ;;  %v4213_v50 = vunpack.c.l.b16 %v3701_v42  ;;  %v4229_v58 = vunpack.c.l.b16 %v3717_v36  ;;  %v4245_v63 = vunpack.c.l.b16 %v3733_v43  ;;  %v7515_v16 = vld [vmem:[#allocation3 + $0x3c8] sm:$0xff] }
  0x7d   :  { %v3765_v1 = vpack.c.bf16 %v3637_v41, %v3637_v41  ;;  %v4261_v52 = vunpack.c.l.b16 %v3749_v44  ;;  %v4306_v6 = vsel %vm4292_vm0, %v4181_v56, %v4165_v45  ;;  %v199_v13 = vunpack.c.h.bf16 %v7475_v37 }
  0x7e   :  { %v4307_v54 = vsel %vm4294_vm1, %v4197_v49, %v4306_v6  ;;  %v215_v60 = vunpack.c.h.bf16 %v7477_v57  ;;  %v231_v62 = vunpack.c.h.bf16 %v7479_v46  ;;  %v247_v61 = vunpack.c.h.bf16 %v7481_v47 }
  0x7f   :  { %v4277_v2 = vunpack.c.l.b16 %v3765_v1  ;;  %v4308_v3 = vsel %vm4296_vm2, %v4213_v50, %v4307_v54  ;;  %v263_v10 = vunpack.c.h.bf16 %v7483_v51  ;;  %v279_v11 = vunpack.c.h.bf16 %v7485_v0 }
  0x80   :  { %v4309_v12 = vsel %vm4298_vm3, %v4229_v58, %v4308_v3  ;;  %v295_v17 = vunpack.c.h.bf16 %v7488_v7  ;;  %v311_v18 = vunpack.c.h.bf16 %v7490_v53  ;;  %v327_v19 = vunpack.c.h.bf16 %v7492_v8 }
  0x81   :  { %v4310_v20 = vsel %vm4300_vm4, %v4245_v63, %v4309_v12  ;;  %v343_v21 = vunpack.c.h.bf16 %v7496_v14  ;;  %v359_v22 = vunpack.c.h.bf16 %v7498_v15  ;;  %v375_v23 = vunpack.c.h.bf16 %v7500_v59 }
  0x82   :  { %v4311_v24 = vsel %vm4302_vm5, %v4261_v52, %v4310_v20  ;;  %v391_v25 = vunpack.c.h.bf16 %v7506_v5  ;;  %v407_v27 = vunpack.c.h.bf16 %v7508_v4  ;;  %v423_v26 = vunpack.c.h.bf16 %v7510_v9 }
  0x83   :  { %v4312_v30 = vsel %vm4304_vm6, %v4277_v2, %v4311_v24  ;;  %v439_v28 = vunpack.c.h.bf16 %v7515_v16  ;;  %v473_v29 = vadd.f32 %v215_v60, %v199_v13  ;;  %v585_v31 = vadd.f32 %v247_v61, %v231_v62 }
  0x84   :  { %v4412_v38 = vpack.c.b16 %v4312_v30, %v4312_v30  ;;  %v697_v32 = vadd.f32 %v279_v11, %v263_v10  ;;  %v809_v39 = vadd.f32 %v311_v18, %v295_v17  ;;  %v921_v33 = vadd.f32 %v343_v21, %v327_v19 }
  0x85   :  { %v474_v34 = vrot.slane %v473_v29, 4  ;;  %v586_v40 = vrot.slane %v585_v31, 4  ;;  %v1033_v35 = vadd.f32 %v375_v23, %v359_v22  ;;  %v1145_v42 = vadd.f32 %v407_v27, %v391_v25 }
  0x86   :  { %5755 = vmatprep.mubr.bf16.mxu0 %v4412_v38  ;;  %v698_v36 = vrot.slane %v697_v32, 4  ;;  %v810_v43 = vrot.slane %v809_v39, 4  ;;  %v922_v41 = vrot.slane %v921_v33, 4  ;;  %v1257_v44 = vadd.f32 %v439_v28, %v423_v26 }
  0x87   :  { %v475_v45 = vadd.f32 %v474_v34, %v473_v29  ;;  %v587_v56 = vadd.f32 %v586_v40, %v585_v31  ;;  %v1034_v49 = vrot.slane %v1033_v35, 4  ;;  %v1146_v50 = vrot.slane %v1145_v42, 4 }
  0x88   :  { %v699_v58 = vadd.f32 %v698_v36, %v697_v32  ;;  %v811_v63 = vadd.f32 %v810_v43, %v809_v39  ;;  %v923_v1 = vadd.f32 %v922_v41, %v921_v33  ;;  %v1258_v52 = vrot.slane %v1257_v44, 4 }
  0x89   :  { %v476_v6 = vrot.slane %v475_v45, 2  ;;  %v588_v13 = vrot.slane %v587_v56, 2  ;;  %v1035_v54 = vadd.f32 %v1034_v49, %v1033_v35  ;;  %v1147_v60 = vadd.f32 %v1146_v50, %v1145_v42 }
  0x8a   :  { %v700_v62 = vrot.slane %v699_v58, 2  ;;  %v812_v61 = vrot.slane %v811_v63, 2  ;;  %v924_v2 = vrot.slane %v923_v1, 2  ;;  %v1259_v3 = vadd.f32 %v1258_v52, %v1257_v44 }
  0x8b   :  { %v477_v10 = vadd.f32 %v476_v6, %v475_v45  ;;  %v589_v11 = vadd.f32 %v588_v13, %v587_v56  ;;  %v1036_v12 = vrot.slane %v1035_v54, 2  ;;  %v1148_v17 = vrot.slane %v1147_v60, 2 }
  0x8c   :  { %v701_v18 = vadd.f32 %v700_v62, %v699_v58  ;;  %v813_v19 = vadd.f32 %v812_v61, %v811_v63  ;;  %v925_v20 = vadd.f32 %v924_v2, %v923_v1  ;;  %v1260_v21 = vrot.slane %v1259_v3, 2 }
  0x8d   :  { %v478_v22 = vrot.slane %v477_v10, 1  ;;  %v590_v23 = vrot.slane %v589_v11, 1  ;;  %v1037_v24 = vadd.f32 %v1036_v12, %v1035_v54  ;;  %v1149_v25 = vadd.f32 %v1148_v17, %v1147_v60 }
  0x8e   :  { %v702_v27 = vrot.slane %v701_v18, 1  ;;  %v814_v26 = vrot.slane %v813_v19, 1  ;;  %v926_v30 = vrot.slane %v925_v20, 1  ;;  %v1261_v28 = vadd.f32 %v1260_v21, %v1259_v3 }
  0x8f   :  { %v7530_v29 = vadd.f32 %v478_v22, %v477_v10  ;;  %v7532_v31 = vadd.f32 %v590_v23, %v589_v11  ;;  %v1038_v38 = vrot.slane %v1037_v24, 1  ;;  %v1150_v32 = vrot.slane %v1149_v25, 1 }
  0x90   :  { %v7534_v39 = vadd.f32 %v702_v27, %v701_v18  ;;  %v7536_v33 = vadd.f32 %v814_v26, %v813_v19  ;;  %v7538_v34 = vadd.f32 %v926_v30, %v925_v20  ;;  %v1262_v40 = vrot.slane %v1261_v28, 1 }
  0x91   :  { %v7540_v35 = vadd.f32 %v1038_v38, %v1037_v24  ;;  %v7542_v42 = vadd.f32 %v1150_v32, %v1149_v25  ;;  %v6282_v36 = vcombine.high %v7475_v37, %v7477_v57  ;;  %v6298_v43 = vcombine.high %v7479_v46, %v7481_v47 }
  0x92   :  { %v7548_v41 = vadd.f32 %v1262_v40, %v1261_v28  ;;  %v6314_v44 = vcombine.high %v7483_v51, %v7485_v0  ;;  %v6330_v45 = vcombine.high %v7488_v7, %v7490_v53  ;;  %v6346_v56 = vcombine.high %v7492_v8, %v7496_v14 }
  0x93   :  { %v6362_v49 = vcombine.high %v7498_v15, %v7500_v59  ;;  %v6378_v37 = vcombine.high %v7506_v5, %v7508_v4  ;;  %v6394_v57 = vcombine.high %v7510_v9, %v7515_v16  ;;  %v2018_v46 = vunpack.i.l.bf16 %v6282_v36 }
  0x94   :  { %v2019_v47 = vunpack.i.h.bf16 %v6282_v36  ;;  %v2178_v50 = vunpack.i.l.bf16 %v6298_v43  ;;  %v2179_v58 = vunpack.i.h.bf16 %v6298_v43  ;;  %v2338_v51 = vunpack.i.l.bf16 %v6314_v44 }
  0x95   :  { %v2339_v0 = vunpack.i.h.bf16 %v6314_v44  ;;  %v2498_v63 = vunpack.i.l.bf16 %v6330_v45  ;;  %v2499_v7 = vunpack.i.h.bf16 %v6330_v45  ;;  %v2658_v53 = vunpack.i.l.bf16 %v6346_v56 }
  0x96   :  { %v2020_v1 = vmax.f32 %v2018_v46, %v2019_v47  ;;  %v2180_v8 = vmax.f32 %v2178_v50, %v2179_v58  ;;  %v2659_v52 = vunpack.i.h.bf16 %v6346_v56  ;;  %v2818_v6 = vunpack.i.l.bf16 %v6362_v49 }
  0x97   :  { %v2340_v15 = vmax.f32 %v2338_v51, %v2339_v0  ;;  %v2500_v59 = vmax.f32 %v2498_v63, %v2499_v7  ;;  %v2819_v13 = vunpack.i.h.bf16 %v6362_v49  ;;  %v2978_v54 = vunpack.i.l.bf16 %v6378_v37  ;;  %v6806_v51 = vld [vmem:[#allocation6 + $0x274] ss:$8 sps:$4 sm:$0xff]  }
  0x98   :  { %v2021_v60 = vrot.slane %v2020_v1, 4  ;;  %v2181_v62 = vrot.slane %v2180_v8, 4  ;;  %v2660_v61 = vmax.f32 %v2658_v53, %v2659_v52  ;;  %v2979_v2 = vunpack.i.h.bf16 %v6378_v37  ;;  %5805 = vmatprep.subr.bf16.mxu0 %v6806_v51 }
  0x99   :  { %v2341_v3 = vrot.slane %v2340_v15, 4  ;;  %v2501_v10 = vrot.slane %v2500_v59, 4  ;;  %v2820_v11 = vmax.f32 %v2818_v6, %v2819_v13  ;;  %v3138_v12 = vunpack.i.l.bf16 %v6394_v57 }
  0x9a   :  { %v2022_v17 = vmax.f32 %v2020_v1, %v2021_v60  ;;  %v2182_v18 = vmax.f32 %v2180_v8, %v2181_v62  ;;  %v2661_v19 = vrot.slane %v2660_v61, 4  ;;  %v2980_v20 = vmax.f32 %v2978_v54, %v2979_v2 }
  0x9b   :  { %v2342_v21 = vmax.f32 %v2340_v15, %v2341_v3  ;;  %v2502_v22 = vmax.f32 %v2500_v59, %v2501_v10  ;;  %v2821_v23 = vrot.slane %v2820_v11, 4  ;;  %v3139_v24 = vunpack.i.h.bf16 %v6394_v57  ;;  %v6809_v15 = vld [vmem:[#allocation6 + $0x374] ss:$8 sps:$4 sm:$0xff]  }
  0x9c   :  { %v2023_v25 = vrot.slane %v2022_v17, 2  ;;  %v2183_v27 = vrot.slane %v2182_v18, 2  ;;  %v2662_v26 = vmax.f32 %v2660_v61, %v2661_v19  ;;  %v2981_v30 = vrot.slane %v2980_v20, 4  ;;  %5846 = vmatprep.subr.bf16.mxu1 %v6809_v15 }
  0x9d   :  { %v2343_v28 = vrot.slane %v2342_v21, 2  ;;  %v2503_v38 = vrot.slane %v2502_v22, 2  ;;  %v2822_v32 = vmax.f32 %v2820_v11, %v2821_v23  ;;  %v3140_v40 = vmax.f32 %v3138_v12, %v3139_v24 }
  0x9e   :  { %v2024_v36 = vmax.f32 %v2022_v17, %v2023_v25  ;;  %v2184_v43 = vmax.f32 %v2182_v18, %v2183_v27  ;;  %v2663_v44 = vrot.slane %v2662_v26, 2  ;;  %v2982_v45 = vmax.f32 %v2980_v20, %v2981_v30 }
  0x9f   :  { %v2344_v56 = vmax.f32 %v2342_v21, %v2343_v28  ;;  %v2504_v49 = vmax.f32 %v2502_v22, %v2503_v38  ;;  %v2823_v37 = vrot.slane %v2822_v32, 2  ;;  %v3141_v46 = vrot.slane %v3140_v40, 4 }
  0xa0   :  { %v2025_v47 = vrot.slane %v2024_v36, 1  ;;  %v2185_v50 = vrot.slane %v2184_v43, 1  ;;  %v2664_v58 = vmax.f32 %v2662_v26, %v2663_v44  ;;  %v2983_v57 = vrot.slane %v2982_v45, 2 }
  0xa1   :  { %v2345_v0 = vrot.slane %v2344_v56, 1  ;;  %v2505_v63 = vrot.slane %v2504_v49, 1  ;;  %v2824_v7 = vmax.f32 %v2822_v32, %v2823_v37  ;;  %v3142_v53 = vmax.f32 %v3140_v40, %v3141_v46 }
  0xa2   :  { %v2026_v1 = vmax.f32 %v2024_v36, %v2025_v47  ;;  %v2186_v8 = vmax.f32 %v2184_v43, %v2185_v50  ;;  %v2665_v52 = vrot.slane %v2664_v58, 1  ;;  %v2984_v6 = vmax.f32 %v2982_v45, %v2983_v57 }
  0xa3   :  { %v2346_v59 = vmax.f32 %v2344_v56, %v2345_v0  ;;  %v2506_v13 = vmax.f32 %v2504_v49, %v2505_v63  ;;  %v2825_v54 = vrot.slane %v2824_v7, 1  ;;  %v3143_v60 = vrot.slane %v3142_v53, 2 }
  0xa4   :  { %v2027_v62 = vpack.i.bf16 %v2026_v1, %v2026_v1  ;;  %v2187_v61 = vpack.i.bf16 %v2186_v8, %v2186_v8  ;;  %v2666_v2 = vmax.f32 %v2664_v58, %v2665_v52  ;;  %v2985_v3 = vrot.slane %v2984_v6, 1 }
  0xa5   :  { %v2347_v10 = vpack.i.bf16 %v2346_v59, %v2346_v59  ;;  %v2507_v11 = vpack.i.bf16 %v2506_v13, %v2506_v13  ;;  %v2826_v12 = vmax.f32 %v2824_v7, %v2825_v54  ;;  %v3144_v17 = vmax.f32 %v3142_v53, %v3143_v60  ;;  %v7571_v54 = vld [vmem:[#allocation3 + $0x40] sm:$0xff] }
  0xa6   :  { %v2667_v18 = vpack.i.bf16 %v2666_v2, %v2666_v2  ;;  %v2986_v19 = vmax.f32 %v2984_v6, %v2985_v3  ;;  %v3271_v20 = vunpack.c.l.bf16 %v2027_v62  ;;  %v3287_v21 = vunpack.c.l.bf16 %v2187_v61  ;;  %v7575_v61 = vld [vmem:[#allocation3 + $0x80] sm:$0xff] }
  0xa7   :  { %v2827_v22 = vpack.i.bf16 %v2826_v12, %v2826_v12  ;;  %v3145_v23 = vrot.slane %v3144_v17, 1  ;;  %v3303_v24 = vunpack.c.l.bf16 %v2347_v10  ;;  %v3319_v25 = vunpack.c.l.bf16 %v2507_v11  ;;  %v7578_v3 = vld [vmem:[#allocation3 + $0xc0] sm:$0xff] }
  0xa8   :  { %v2987_v27 = vpack.i.bf16 %v2986_v19, %v2986_v19  ;;  %v3335_v26 = vunpack.c.l.bf16 %v2667_v18  ;;  %v3399_v30 = vmul.f32 0.0625, %v7530_v29  ;;  %v3415_v28 = vmul.f32 0.0625, %v7532_v31  ;;  %v7581_v11 = vld [vmem:[#allocation3 + $0x100] sm:$0xff] }
  0xa9   :  { %v3146_v38 = vmax.f32 %v3144_v17, %v3145_v23  ;;  %v3351_v32 = vunpack.c.l.bf16 %v2827_v22  ;;  %v3431_v40 = vmul.f32 0.0625, %v7534_v39  ;;  %v3447_v36 = vmul.f32 0.0625, %v7536_v33  ;;  %v7585_v19 = vld [vmem:[#allocation3 + $0x140] sm:$0xff] }
  0xaa   :  { %v3367_v43 = vunpack.c.l.bf16 %v2987_v27  ;;  %v3463_v44 = vmul.f32 0.0625, %v7538_v34  ;;  %v3479_v45 = vmul.f32 0.0625, %v7540_v35  ;;  %v3495_v56 = vmul.f32 0.0625, %v7542_v42  ;;  %v7595_v27 = vld [vmem:[#allocation3 + $0x200] sm:$0xff] }
  0xab   :  { %v3147_v49 = vpack.i.bf16 %v3146_v38, %v3146_v38  ;;  %v3511_v37 = vmul.f32 0.0625, %v7548_v41  ;;  %v3527_v46 = vadd.f32 %v3399_v30, %v3271_v20  ;;  %v3543_v29 = vadd.f32 %v3415_v28, %v3287_v21  ;;  %v7588_v21 = vld [vmem:[#allocation3 + $0x180] sm:$0xff] }
  0xac   :  { %v3559_v47 = vadd.f32 %v3431_v40, %v3303_v24  ;;  %v3575_v31 = vadd.f32 %v3447_v36, %v3319_v25  ;;  %v3591_v50 = vadd.f32 %v3463_v44, %v3335_v26  ;;  %v3607_v58 = vadd.f32 %v3479_v45, %v3351_v32  ;;  %v7592_v24 = vld [vmem:[#allocation3 + $0x1c0] sm:$0xff] }
  0xad   :  { %v3383_v57 = vunpack.c.l.bf16 %v3147_v49  ;;  %v3623_v39 = vadd.f32 %v3495_v56, %v3367_v43  ;;  %v3655_v51 = vpack.c.bf16 %v3527_v46, %v3527_v46  ;;  %v3671_v33 = vpack.c.bf16 %v3543_v29, %v3543_v29  ;;  %v7598_v30 = vld [vmem:[#allocation3 + $0x240] sm:$0xff] }
  0xae   :  { %v3687_v0 = vpack.c.bf16 %v3559_v47, %v3559_v47  ;;  %v3703_v63 = vpack.c.bf16 %v3575_v31, %v3575_v31  ;;  %v3719_v34 = vpack.c.bf16 %v3591_v50, %v3591_v50  ;;  %v3735_v7 = vpack.c.bf16 %v3607_v58, %v3607_v58  ;;  %v7602_v32 = vld [vmem:[#allocation3 + $0x280] sm:$0xff] }
  0xaf   :  { %v3639_v35 = vadd.f32 %v3511_v37, %v3383_v57  ;;  %v3751_v53 = vpack.c.bf16 %v3623_v39, %v3623_v39  ;;  %v4167_v42 = vunpack.c.l.b16 %v3655_v51  ;;  %v4183_v1 = vunpack.c.l.b16 %v3671_v33  ;;  %v7605_v36 = vld [vmem:[#allocation3 + $0x2c0] sm:$0xff] }
  0xb0   :  { %v4199_v8 = vunpack.c.l.b16 %v3687_v0  ;;  %v4215_v41 = vunpack.c.l.b16 %v3703_v63  ;;  %v4231_v52 = vunpack.c.l.b16 %v3719_v34  ;;  %v4247_v6 = vunpack.c.l.b16 %v3735_v7  ;;  %v7608_v44 = vld [vmem:[#allocation3 + $0x300] sm:$0xff] }
  0xb1   :  { %v3767_v15 = vpack.c.bf16 %v3639_v35, %v3639_v35  ;;  %v4263_v59 = vunpack.c.l.b16 %v3751_v53  ;;  %v4320_v13 = vsel %vm4292_vm0, %v4183_v1, %v4167_v42  ;;  %v212_v60 = vunpack.c.l.bf16 %v7571_v54  ;;  %v7612_v49 = vld [vmem:[#allocation3 + $0x340] sm:$0xff] }
  0xb2   :  { %v4321_v62 = vsel %vm4294_vm1, %v4199_v8, %v4320_v13  ;;  %v228_v2 = vunpack.c.l.bf16 %v7575_v61  ;;  %v244_v10 = vunpack.c.l.bf16 %v7578_v3  ;;  %v260_v12 = vunpack.c.l.bf16 %v7581_v11  ;;  %v7615_v46 = vld [vmem:[#allocation3 + $0x380] sm:$0xff] }
  0xb3   :  { %v4279_v17 = vunpack.c.l.b16 %v3767_v15  ;;  %v4322_v18 = vsel %vm4296_vm2, %v4215_v41, %v4321_v62  ;;  %v276_v20 = vunpack.c.l.bf16 %v7585_v19  ;;  %v292_v22 = vunpack.c.l.bf16 %v7588_v21  ;;  %v7618_v47 = vld [vmem:[#allocation3 + $0x3c0] sm:$0xff] }
  0xb4   :  { %v4323_v23 = vsel %vm4298_vm3, %v4231_v52, %v4322_v18  ;;  %v308_v25 = vunpack.c.l.bf16 %v7592_v24  ;;  %v324_v26 = vunpack.c.l.bf16 %v7595_v27  ;;  %v340_v28 = vunpack.c.l.bf16 %v7598_v30 }
  0xb5   :  { %v4324_v38 = vsel %vm4300_vm4, %v4247_v6, %v4323_v23  ;;  %v356_v40 = vunpack.c.l.bf16 %v7602_v32  ;;  %v372_v43 = vunpack.c.l.bf16 %v7605_v36  ;;  %v388_v45 = vunpack.c.l.bf16 %v7608_v44 }
  0xb6   :  { %v4325_v56 = vsel %vm4302_vm5, %v4263_v59, %v4324_v38  ;;  %v404_v37 = vunpack.c.l.bf16 %v7612_v49  ;;  %v420_v29 = vunpack.c.l.bf16 %v7615_v46  ;;  %v436_v31 = vunpack.c.l.bf16 %v7618_v47 }
  0xb7   :  { %v4326_v50 = vsel %vm4304_vm6, %v4279_v17, %v4325_v56  ;;  %v452_v58 = vadd.f32 %v212_v60, %v196_v55  ;;  %v564_v57 = vadd.f32 %v244_v10, %v228_v2  ;;  %v676_v39 = vadd.f32 %v276_v20, %v260_v12 }
  0xb8   :  { %v4414_v51 = vpack.c.b16 %v4326_v50, %v4326_v50  ;;  %v788_v33 = vadd.f32 %v308_v25, %v292_v22  ;;  %v900_v0 = vadd.f32 %v340_v28, %v324_v26  ;;  %v1012_v63 = vadd.f32 %v372_v43, %v356_v40 }
  0xb9   :  { %v453_v34 = vrot.slane %v452_v58, 4  ;;  %v565_v7 = vrot.slane %v564_v57, 4  ;;  %v677_v35 = vrot.slane %v676_v39, 4  ;;  %v1124_v53 = vadd.f32 %v404_v37, %v388_v45 }
  0xba   :  { %5796 = vmatprep.mubr.bf16.mxu1 %v4414_v51  ;;  %v789_v42 = vrot.slane %v788_v33, 4  ;;  %v901_v1 = vrot.slane %v900_v0, 4  ;;  %v1013_v8 = vrot.slane %v1012_v63, 4  ;;  %v1236_v41 = vadd.f32 %v436_v31, %v420_v29 }
  0xbb   :  { %v454_v52 = vadd.f32 %v453_v34, %v452_v58  ;;  %v566_v6 = vadd.f32 %v565_v7, %v564_v57  ;;  %v678_v15 = vadd.f32 %v677_v35, %v676_v39  ;;  %v1125_v48 = vrot.slane %v1124_v53, 4 }
  0xbc   :  { %v790_v55 = vadd.f32 %v789_v42, %v788_v33  ;;  %v902_v59 = vadd.f32 %v901_v1, %v900_v0  ;;  %v1014_v13 = vadd.f32 %v1013_v8, %v1012_v63  ;;  %v1237_v60 = vrot.slane %v1236_v41, 4  ;;  %v7111_v1 = vld [vmem:[#allocation3] sm:$0xff] }
  0xbd   :  { %v455_v62 = vrot.slane %v454_v52, 2  ;;  %v567_v2 = vrot.slane %v566_v6, 2  ;;  %v679_v10 = vrot.slane %v678_v15, 2  ;;  %v1126_v12 = vadd.f32 %v1125_v48, %v1124_v53 }
  0xbe   :  { %v791_v17 = vrot.slane %v790_v55, 2  ;;  %v903_v18 = vrot.slane %v902_v59, 2  ;;  %v1015_v20 = vrot.slane %v1014_v13, 2  ;;  %v1238_v22 = vadd.f32 %v1237_v60, %v1236_v41 }
  0xbf   :  { %v456_v23 = vadd.f32 %v455_v62, %v454_v52  ;;  %v568_v25 = vadd.f32 %v567_v2, %v566_v6  ;;  %v680_v26 = vadd.f32 %v679_v10, %v678_v15  ;;  %v1127_v28 = vrot.slane %v1126_v12, 2 }
  0xc0   :  { %v792_v38 = vadd.f32 %v791_v17, %v790_v55  ;;  %v904_v40 = vadd.f32 %v903_v18, %v902_v59  ;;  %v1016_v43 = vadd.f32 %v1015_v20, %v1014_v13  ;;  %v1239_v45 = vrot.slane %v1238_v22, 2 }
  0xc1   :  { %v457_v56 = vrot.slane %v456_v23, 1  ;;  %v569_v37 = vrot.slane %v568_v25, 1  ;;  %v681_v29 = vrot.slane %v680_v26, 1  ;;  %v1128_v31 = vadd.f32 %v1127_v28, %v1126_v12 }
  0xc2   :  { %v793_v50 = vrot.slane %v792_v38, 1  ;;  %v905_v58 = vrot.slane %v904_v40, 1  ;;  %v1017_v57 = vrot.slane %v1016_v43, 1  ;;  %v1240_v39 = vadd.f32 %v1239_v45, %v1238_v22 }
  0xc3   :  { %v7624_v51 = vadd.f32 %v457_v56, %v456_v23  ;;  %v7626_v33 = vadd.f32 %v569_v37, %v568_v25  ;;  %v7628_v0 = vadd.f32 %v681_v29, %v680_v26  ;;  %v1129_v63 = vrot.slane %v1128_v31, 1 }
  0xc4   :  { %v7630_v34 = vadd.f32 %v793_v50, %v792_v38  ;;  %v7632_v7 = vadd.f32 %v905_v58, %v904_v40  ;;  %v7634_v35 = vadd.f32 %v1017_v57, %v1016_v43  ;;  %v1241_v53 = vrot.slane %v1240_v39, 1 }
  0xc5   :  { %v7636_v42 = vadd.f32 %v1129_v63, %v1128_v31  ;;  %v6279_v8 = vcombine.low %v7111_v1, %v7571_v54  ;;  %v6295_v41 = vcombine.low %v7575_v61, %v7578_v3  ;;  %v6311_v52 = vcombine.low %v7581_v11, %v7585_v19 }
  0xc6   :  { %v7643_v6 = vadd.f32 %v1241_v53, %v1240_v39  ;;  %v6327_v15 = vcombine.low %v7588_v21, %v7592_v24  ;;  %v6343_v48 = vcombine.low %v7595_v27, %v7598_v30  ;;  %v6359_v55 = vcombine.low %v7602_v32, %v7605_v36 }
  0xc7   :  { %v6375_v54 = vcombine.low %v7608_v44, %v7612_v49  ;;  %v6391_v61 = vcombine.low %v7615_v46, %v7618_v47  ;;  %v1988_v3 = vunpack.i.l.bf16 %v6279_v8  ;;  %v1989_v59 = vunpack.i.h.bf16 %v6279_v8 }
  0xc8   :  { %v2148_v11 = vunpack.i.l.bf16 %v6295_v41  ;;  %v2149_v19 = vunpack.i.h.bf16 %v6295_v41  ;;  %v2308_v13 = vunpack.i.l.bf16 %v6311_v52  ;;  %v2309_v60 = vunpack.i.h.bf16 %v6311_v52 }
  0xc9   :  { %v1990_v62 = vmax.f32 %v1988_v3, %v1989_v59  ;;  %v2468_v21 = vunpack.i.l.bf16 %v6327_v15  ;;  %v2469_v24 = vunpack.i.h.bf16 %v6327_v15  ;;  %v2628_v2 = vunpack.i.l.bf16 %v6343_v48 }
  0xca   :  { %v2150_v27 = vmax.f32 %v2148_v11, %v2149_v19  ;;  %v2310_v30 = vmax.f32 %v2308_v13, %v2309_v60  ;;  %v2629_v10 = vunpack.i.h.bf16 %v6343_v48  ;;  %v2788_v32 = vunpack.i.l.bf16 %v6359_v55 }
  0xcb   :  { %v1991_v36 = vrot.slane %v1990_v62, 4  ;;  %v2470_v12 = vmax.f32 %v2468_v21, %v2469_v24  ;;  %v2789_v44 = vunpack.i.h.bf16 %v6359_v55  ;;  %v2948_v49 = vunpack.i.l.bf16 %v6375_v54 }
  0xcc   :  { %v2151_v17 = vrot.slane %v2150_v27, 4  ;;  %v2311_v46 = vrot.slane %v2310_v30, 4  ;;  %v2630_v47 = vmax.f32 %v2628_v2, %v2629_v10  ;;  %v2949_v18 = vunpack.i.h.bf16 %v6375_v54 }
  0xcd   :  { %v1992_v20 = vmax.f32 %v1990_v62, %v1991_v36  ;;  %v2471_v22 = vrot.slane %v2470_v12, 4  ;;  %v2790_v23 = vmax.f32 %v2788_v32, %v2789_v44  ;;  %v3108_v25 = vunpack.i.l.bf16 %v6391_v61 }
  0xce   :  { %v2152_v26 = vmax.f32 %v2150_v27, %v2151_v17  ;;  %v2312_v28 = vmax.f32 %v2310_v30, %v2311_v46  ;;  %v2631_v38 = vrot.slane %v2630_v47, 4  ;;  %v2950_v40 = vmax.f32 %v2948_v49, %v2949_v18 }
  0xcf   :  { %v1993_v43 = vrot.slane %v1992_v20, 2  ;;  %v2472_v45 = vmax.f32 %v2470_v12, %v2471_v22  ;;  %v2791_v56 = vrot.slane %v2790_v23, 4  ;;  %v3109_v37 = vunpack.i.h.bf16 %v6391_v61 }
  0xd0   :  { %v2153_v29 = vrot.slane %v2152_v26, 2  ;;  %v2313_v31 = vrot.slane %v2312_v28, 2  ;;  %v2632_v50 = vmax.f32 %v2630_v47, %v2631_v38  ;;  %v2951_v58 = vrot.slane %v2950_v40, 4 }
  0xd1   :  { %v1994_v57 = vmax.f32 %v1992_v20, %v1993_v43  ;;  %v2473_v39 = vrot.slane %v2472_v45, 2  ;;  %v2792_v63 = vmax.f32 %v2790_v23, %v2791_v56  ;;  %v3110_v53 = vmax.f32 %v3108_v25, %v3109_v37 }
  0xd2   :  { %v2154_v1 = vmax.f32 %v2152_v26, %v2153_v29  ;;  %v2314_v8 = vmax.f32 %v2312_v28, %v2313_v31  ;;  %v2633_v41 = vrot.slane %v2632_v50, 2  ;;  %v2952_v52 = vmax.f32 %v2950_v40, %v2951_v58 }
  0xd3   :  { %v1995_v15 = vrot.slane %v1994_v57, 1  ;;  %v2474_v48 = vmax.f32 %v2472_v45, %v2473_v39  ;;  %v2793_v55 = vrot.slane %v2792_v63, 2  ;;  %v3111_v54 = vrot.slane %v3110_v53, 4 }
  0xd4   :  { %v2155_v3 = vrot.slane %v2154_v1, 1  ;;  %v2315_v59 = vrot.slane %v2314_v8, 1  ;;  %v2634_v11 = vmax.f32 %v2632_v50, %v2633_v41  ;;  %v2953_v61 = vrot.slane %v2952_v52, 2 }
  0xd5   :  { %v1996_v19 = vmax.f32 %v1994_v57, %v1995_v15  ;;  %v2475_v13 = vrot.slane %v2474_v48, 1  ;;  %v2794_v60 = vmax.f32 %v2792_v63, %v2793_v55  ;;  %v3112_v62 = vmax.f32 %v3110_v53, %v3111_v54 }
  0xd6   :  { %v2156_v21 = vmax.f32 %v2154_v1, %v2155_v3  ;;  %v2316_v24 = vmax.f32 %v2314_v8, %v2315_v59  ;;  %v2635_v2 = vrot.slane %v2634_v11, 1  ;;  %v2954_v27 = vmax.f32 %v2952_v52, %v2953_v61 }
  0xd7   :  { %v1997_v30 = vpack.i.bf16 %v1996_v19, %v1996_v19  ;;  %v2476_v10 = vmax.f32 %v2474_v48, %v2475_v13  ;;  %v2795_v32 = vrot.slane %v2794_v60, 1  ;;  %v3113_v36 = vrot.slane %v3112_v62, 2 }
  0xd8   :  { %v2157_v12 = vpack.i.bf16 %v2156_v21, %v2156_v21  ;;  %v2317_v44 = vpack.i.bf16 %v2316_v24, %v2316_v24  ;;  %v2636_v49 = vmax.f32 %v2634_v11, %v2635_v2  ;;  %v2955_v17 = vrot.slane %v2954_v27, 1 }
  0xd9   :  { %v2477_v46 = vpack.i.bf16 %v2476_v10, %v2476_v10  ;;  %v2796_v47 = vmax.f32 %v2794_v60, %v2795_v32  ;;  %v3114_v18 = vmax.f32 %v3112_v62, %v3113_v36  ;;  %v3268_v20 = vunpack.c.l.bf16 %v1997_v30  ;;  %v7667_v10 = vld [vmem:[#allocation3 + $0x48] sm:$0xff] }
  0xda   :  { %v2637_v22 = vpack.i.bf16 %v2636_v49, %v2636_v49  ;;  %v2956_v23 = vmax.f32 %v2954_v27, %v2955_v17  ;;  %v3284_v25 = vunpack.c.l.bf16 %v2157_v12  ;;  %v3300_v26 = vunpack.c.l.bf16 %v2317_v44  ;;  %v7664_v27 = vld [vmem:[#allocation3 + $0x8] sm:$0xff] }
  0xdb   :  { %v2797_v28 = vpack.i.bf16 %v2796_v47, %v2796_v47  ;;  %v3115_v38 = vrot.slane %v3114_v18, 1  ;;  %v3316_v40 = vunpack.c.l.bf16 %v2477_v46  ;;  %v3396_v43 = vmul.f32 0.0625, %v7624_v51  ;;  %v7671_v12 = vld [vmem:[#allocation3 + $0x88] sm:$0xff] }
  0xdc   :  { %v2957_v45 = vpack.i.bf16 %v2956_v23, %v2956_v23  ;;  %v3332_v56 = vunpack.c.l.bf16 %v2637_v22  ;;  %v3412_v37 = vmul.f32 0.0625, %v7626_v33  ;;  %v3428_v29 = vmul.f32 0.0625, %v7628_v0  ;;  %v7674_v49 = vld [vmem:[#allocation3 + $0xc8] sm:$0xff] }
  0xdd   :  { %v3116_v31 = vmax.f32 %v3114_v18, %v3115_v38  ;;  %v3348_v50 = vunpack.c.l.bf16 %v2797_v28  ;;  %v3444_v58 = vmul.f32 0.0625, %v7630_v34  ;;  %v3460_v57 = vmul.f32 0.0625, %v7632_v7  ;;  %v7677_v46 = vld [vmem:[#allocation3 + $0x108] sm:$0xff] }
  0xde   :  { %v3364_v39 = vunpack.c.l.bf16 %v2957_v45  ;;  %v3476_v63 = vmul.f32 0.0625, %v7634_v35  ;;  %v3492_v53 = vmul.f32 0.0625, %v7636_v42  ;;  %v3508_v1 = vmul.f32 0.0625, %v7643_v6  ;;  %v7681_v22 = vld [vmem:[#allocation3 + $0x148] sm:$0xff] }
  0xdf   :  { %v3117_v51 = vpack.i.bf16 %v3116_v31, %v3116_v31  ;;  %v3524_v8 = vadd.f32 %v3396_v43, %v3268_v20  ;;  %v3540_v41 = vadd.f32 %v3412_v37, %v3284_v25  ;;  %v3556_v52 = vadd.f32 %v3428_v29, %v3300_v26  ;;  %v7684_v25 = vld [vmem:[#allocation3 + $0x188] sm:$0xff] }
  0xe0   :  { %v3572_v33 = vadd.f32 %v3444_v58, %v3316_v40  ;;  %v3588_v15 = vadd.f32 %v3460_v57, %v3332_v56  ;;  %v3604_v0 = vadd.f32 %v3476_v63, %v3348_v50  ;;  %v3620_v48 = vadd.f32 %v3492_v53, %v3364_v39  ;;  %v7688_v38 = vld [vmem:[#allocation3 + $0x1c8] sm:$0xff] }
  0xe1   :  { %v3380_v55 = vunpack.c.l.bf16 %v3117_v51  ;;  %v3652_v54 = vpack.c.bf16 %v3524_v8, %v3524_v8  ;;  %v3668_v34 = vpack.c.bf16 %v3540_v41, %v3540_v41  ;;  %v3684_v3 = vpack.c.bf16 %v3556_v52, %v3556_v52  ;;  %v7691_v43 = vld [vmem:[#allocation3 + $0x208] sm:$0xff]  ;;  %v6804_v52 = vld [vmem:[#allocation6 + $0x270] ss:$8 sps:$4 sm:$0xff]  }
  0xe2   :  { %v3700_v7 = vpack.c.bf16 %v3572_v33, %v3572_v33  ;;  %v3716_v59 = vpack.c.bf16 %v3588_v15, %v3588_v15  ;;  %v3732_v11 = vpack.c.bf16 %v3604_v0, %v3604_v0  ;;  %v3748_v35 = vpack.c.bf16 %v3620_v48, %v3620_v48  ;;  %v7696_v29 = vld [vmem:[#allocation3 + $0x288] sm:$0xff] }
  0xe3   :  { %v3636_v61 = vadd.f32 %v3508_v1, %v3380_v55  ;;  %v4164_v42 = vunpack.c.l.b16 %v3652_v54  ;;  %v4180_v19 = vunpack.c.l.b16 %v3668_v34  ;;  %v4196_v6 = vunpack.c.l.b16 %v3684_v3  ;;  %v7699_v50 = vld [vmem:[#allocation3 + $0x2c8] sm:$0xff] }
  0xe4   :  { %v4212_v13 = vunpack.c.l.b16 %v3700_v7  ;;  %v4228_v60 = vunpack.c.l.b16 %v3716_v59  ;;  %v4244_v62 = vunpack.c.l.b16 %v3732_v11  ;;  %v4260_v21 = vunpack.c.l.b16 %v3748_v35  ;;  %v6812_v55 = vld [vmem:[#allocation6 + $0x264] ss:$8 sps:$4 sm:$0xff]  }
  0xe5   :  { %v3764_v24 = vpack.c.bf16 %v3636_v61, %v3636_v61  ;;  %v4293_v2 = vsel %vm4292_vm0, %v4180_v19, %v4164_v42  ;;  %v198_v30 = vunpack.c.l.bf16 %v7664_v27  ;;  %v214_v32 = vunpack.c.l.bf16 %v7667_v10  ;;  %v6810_v42 = vld [vmem:[#allocation6 + $0x260] ss:$8 sps:$4 sm:$0xff]  }
  0xe6   :  { %v4295_v36 = vsel %vm4294_vm1, %v4196_v6, %v4293_v2  ;;  %v230_v44 = vunpack.c.l.bf16 %v7671_v12  ;;  %v246_v17 = vunpack.c.l.bf16 %v7674_v49  ;;  %v262_v47 = vunpack.c.l.bf16 %v7677_v46 }
  0xe7   :  { %v4276_v18 = vunpack.c.l.b16 %v3764_v24  ;;  %v4297_v20 = vsel %vm4296_vm2, %v4212_v13, %v4295_v36  ;;  %v278_v23 = vunpack.c.l.bf16 %v7681_v22  ;;  %v294_v26 = vunpack.c.l.bf16 %v7684_v25 }
  0xe8   :  { %v4299_v28 = vsel %vm4298_vm3, %v4228_v60, %v4297_v20  ;;  %v310_v40 = vunpack.c.l.bf16 %v7688_v38  ;;  %v326_v45 = vunpack.c.l.bf16 %v7691_v43  ;;  %v342_v56 = vunpack.c.l.bf16 %v7496_v14 }
  0xe9   :  { %v4301_v37 = vsel %vm4300_vm4, %v4244_v62, %v4299_v28  ;;  %v358_v31 = vunpack.c.l.bf16 %v7696_v29  ;;  %v374_v58 = vunpack.c.l.bf16 %v7699_v50  ;;  %v390_v57 = vunpack.c.l.bf16 %v7506_v5  ;;  %v6818_v62 = vld [vmem:[#allocation6 + $0x254] ss:$8 sps:$4 sm:$0xff]  }
  0xea   :  { %v4303_v39 = vsel %vm4302_vm5, %v4260_v21, %v4301_v37  ;;  %v406_v63 = vunpack.c.l.bf16 %v7508_v4  ;;  %v422_v53 = vunpack.c.l.bf16 %v7510_v9  ;;  %v438_v14 = vunpack.c.l.bf16 %v7515_v16  ;;  %v6824_v37 = vld [vmem:[#allocation6 + $0x244] ss:$8 sps:$4 sm:$0xff]  }
  0xeb   :  { %v4305_v1 = vsel %vm4304_vm6, %v4276_v18, %v4303_v39  ;;  %v466_v51 = vadd.f32 %v214_v32, %v198_v30  ;;  %v578_v8 = vadd.f32 %v246_v17, %v230_v44  ;;  %v690_v41 = vadd.f32 %v278_v23, %v262_v47 }
  0xec   :  { %v4411_v33 = vpack.c.b16 %v4305_v1, %v4305_v1  ;;  %v802_v15 = vadd.f32 %v310_v40, %v294_v26  ;;  %v914_v0 = vadd.f32 %v342_v56, %v326_v45  ;;  %v1026_v48 = vadd.f32 %v374_v58, %v358_v31  ;;  %v6816_v26 = vld [vmem:[#allocation6 + $0x250] ss:$8 sps:$4 sm:$0xff]  }
  0xed   :  { %v467_v5 = vrot.slane %v466_v51, 4  ;;  %v579_v54 = vrot.slane %v578_v8, 4  ;;  %v691_v34 = vrot.slane %v690_v41, 4  ;;  %v1138_v3 = vadd.f32 %v406_v63, %v390_v57 }
  0xee   :  { %5756 = vmatmul.mubr.bf16.vlgmr.msra.gmra.mxu0 %v4411_v33  ;;  %v803_v4 = vrot.slane %v802_v15, 4  ;;  %v915_v9 = vrot.slane %v914_v0, 4  ;;  %v1027_v7 = vrot.slane %v1026_v48, 4  ;;  %v1250_v16 = vadd.f32 %v438_v14, %v422_v53  ;;  %v6822_v33 = vld [vmem:[#allocation6 + $0x240] ss:$8 sps:$4 sm:$0xff]  }
  0xef   :  { %v468_v59 = vadd.f32 %v467_v5, %v466_v51  ;;  %v580_v11 = vadd.f32 %v579_v54, %v578_v8  ;;  %v692_v35 = vadd.f32 %v691_v34, %v690_v41  ;;  %v1139_v61 = vrot.slane %v1138_v3, 4  ;;  %5806 = vmatpush1.bf16.msra.mxu0 %v6804_v52  ;;  %v6830_v5 = vld [vmem:[#allocation6 + $0x234] ss:$8 sps:$4 sm:$0xff]  }
  0xf0   :  { %v804_v19 = vadd.f32 %v803_v4, %v802_v15  ;;  %v916_v6 = vadd.f32 %v915_v9, %v914_v0  ;;  %v1028_v13 = vadd.f32 %v1027_v7, %v1026_v48  ;;  %v1251_v60 = vrot.slane %v1250_v16, 4  ;;  %5807 = vmatprep.subr.bf16.mxu0 %v6812_v55 }
  0xf1   :  { %v469_v21 = vrot.slane %v468_v59, 2  ;;  %v581_v24 = vrot.slane %v580_v11, 2  ;;  %v693_v2 = vrot.slane %v692_v35, 2  ;;  %v1140_v30 = vadd.f32 %v1139_v61, %v1138_v3  ;;  %v7125_v61 = vld [vmem:[#allocation3 + $0x348] sm:$0xff] }
  0xf2   :  { %v805_v32 = vrot.slane %v804_v19, 2  ;;  %v917_v36 = vrot.slane %v916_v6, 2  ;;  %v1029_v44 = vrot.slane %v1028_v13, 2  ;;  %v1252_v17 = vadd.f32 %v1251_v60, %v1250_v16  ;;  %v7123_v16 = vld [vmem:[#allocation3 + $0x248] sm:$0xff] }
  0xf3   :  { %v470_v47 = vadd.f32 %v469_v21, %v468_v59  ;;  %v582_v18 = vadd.f32 %v581_v24, %v580_v11  ;;  %v694_v20 = vadd.f32 %v693_v2, %v692_v35  ;;  %v1141_v23 = vrot.slane %v1140_v30, 2  ;;  %5808 = vmatpush1.bf16.msra.mxu0 %v6810_v42  ;;  %v7124_v35 = vld [vmem:[#allocation3 + $0x308] sm:$0xff] }
  0xf4   :  { %v806_v28 = vadd.f32 %v805_v32, %v804_v19  ;;  %v918_v40 = vadd.f32 %v917_v36, %v916_v6  ;;  %v1030_v45 = vadd.f32 %v1029_v44, %v1028_v13  ;;  %v1253_v56 = vrot.slane %v1252_v17, 2  ;;  %5809 = vmatprep.subr.bf16.mxu0 %v6818_v62  ;;  %v7127_v42 = vld [vmem:[#allocation3 + $0x3c8] sm:$0xff] }
  0xf5   :  { %v471_v31 = vrot.slane %v470_v47, 1  ;;  %v583_v58 = vrot.slane %v582_v18, 1  ;;  %v695_v57 = vrot.slane %v694_v20, 1  ;;  %v1142_v39 = vadd.f32 %v1141_v23, %v1140_v30 }
  0xf6   :  { %v807_v63 = vrot.slane %v806_v28, 1  ;;  %v919_v53 = vrot.slane %v918_v40, 1  ;;  %v1031_v14 = vrot.slane %v1030_v45, 1  ;;  %v1254_v1 = vadd.f32 %v1253_v56, %v1252_v17  ;;  %v6834_v17 = vld [vmem:[#allocation6 + $0x220] ss:$8 sps:$4 sm:$0xff]  }
  0xf7   :  { %v7708_v51 = vadd.f32 %v471_v31, %v470_v47  ;;  %v7710_v8 = vadd.f32 %v583_v58, %v582_v18  ;;  %v7712_v41 = vadd.f32 %v695_v57, %v694_v20  ;;  %v1143_v52 = vrot.slane %v1142_v39, 1  ;;  %5810 = vmatpush1.bf16.msra.mxu0 %v6816_v26  ;;  %v6842_v26 = vld [vmem:[#allocation6 + $0x214] ss:$8 sps:$4 sm:$0xff]  }
  0xf8   :  { %v7714_v15 = vadd.f32 %v807_v63, %v806_v28  ;;  %v7716_v0 = vadd.f32 %v919_v53, %v918_v40  ;;  %v7718_v48 = vadd.f32 %v1031_v14, %v1030_v45  ;;  %v1255_v55 = vrot.slane %v1254_v1, 1  ;;  %5811 = vmatprep.subr.bf16.mxu0 %v6824_v37 }
  0xf9   :  { %v7720_v54 = vadd.f32 %v1143_v52, %v1142_v39  ;;  %v6281_v34 = vcombine.low %v7664_v27, %v7667_v10  ;;  %v6297_v3 = vcombine.low %v7671_v12, %v7674_v49  ;;  %v6313_v4 = vcombine.low %v7677_v46, %v7681_v22  ;;  %v7126_v10 = vld [vmem:[#allocation3 + $0x388] sm:$0xff]  ;;  %v6828_v46 = vld [vmem:[#allocation6 + $0x230] ss:$8 sps:$4 sm:$0xff]  }
  0xfa   :  { %v7728_v9 = vadd.f32 %v1255_v55, %v1254_v1  ;;  %v6329_v7 = vcombine.low %v7684_v25, %v7688_v38  ;;  %v6345_v59 = vcombine.low %v7691_v43, %v7123_v16  ;;  %v6361_v11 = vcombine.low %v7696_v29, %v7699_v50  ;;  %v6836_v38 = vld [vmem:[#allocation6 + $0x224] ss:$8 sps:$4 sm:$0xff]   ;;  %v6840_v1 = vld [vmem:[#allocation6 + $0x210] ss:$8 sps:$4 sm:$0xff]  }
  0xfb   :  { %v6377_v27 = vcombine.low %v7124_v35, %v7125_v61  ;;  %v6393_v12 = vcombine.low %v7126_v10, %v7127_v42  ;;  %v2008_v49 = vunpack.i.l.bf16 %v6281_v34  ;;  %v2009_v19 = vunpack.i.h.bf16 %v6281_v34  ;;  %5812 = vmatpush1.bf16.msra.mxu0 %v6822_v33  ;;  %v6848_v34 = vld [vmem:[#allocation6 + $0x204] ss:$8 sps:$4 sm:$0xff]  }
  0xfc   :  { %v2168_v22 = vunpack.i.l.bf16 %v6297_v3  ;;  %v2169_v6 = vunpack.i.h.bf16 %v6297_v3  ;;  %v2328_v13 = vunpack.i.l.bf16 %v6313_v4  ;;  %v2329_v25 = vunpack.i.h.bf16 %v6313_v4  ;;  %5813 = vmatprep.subr.bf16.mxu0 %v6830_v5 }
  0xfd   :  { %v2010_v43 = vmax.f32 %v2008_v49, %v2009_v19  ;;  %v2488_v60 = vunpack.i.l.bf16 %v6329_v7  ;;  %v2489_v62 = vunpack.i.h.bf16 %v6329_v7  ;;  %v2648_v29 = vunpack.i.l.bf16 %v6345_v59  ;;  %v6846_v49 = vld [vmem:[#allocation6 + $0x200] ss:$8 sps:$4 sm:$0xff]  }
  0xfe   :  { %v2170_v50 = vmax.f32 %v2168_v22, %v2169_v6  ;;  %v2330_v21 = vmax.f32 %v2328_v13, %v2329_v25  ;;  %v2649_v24 = vunpack.i.h.bf16 %v6345_v59  ;;  %v2808_v2 = vunpack.i.l.bf16 %v6361_v11  ;;  %v6854_v13 = vld [vmem:[#allocation6 + $0x2f4] ss:$8 sps:$4 sm:$0xff]  }
  0xff   :  { %v2011_v30 = vrot.slane %v2010_v43, 4  ;;  %v2490_v32 = vmax.f32 %v2488_v60, %v2489_v62  ;;  %v2809_v36 = vunpack.i.h.bf16 %v6361_v11  ;;  %v2968_v44 = vunpack.i.l.bf16 %v6377_v27  ;;  %5814 = vmatpush1.bf16.msra.mxu0 %v6828_v46 }
 0x100   :  { %v2171_v47 = vrot.slane %v2170_v50, 4  ;;  %v2331_v18 = vrot.slane %v2330_v21, 4  ;;  %v2650_v20 = vmax.f32 %v2648_v29, %v2649_v24  ;;  %v2969_v23 = vunpack.i.h.bf16 %v6377_v27  ;;  %5815 = vmatprep.subr.bf16.mxu0 %v6836_v38 }
 0x101   :  { %v2012_v28 = vmax.f32 %v2010_v43, %v2011_v30  ;;  %v2491_v40 = vrot.slane %v2490_v32, 4  ;;  %v2810_v45 = vmax.f32 %v2808_v2, %v2809_v36  ;;  %v3128_v56 = vunpack.i.l.bf16 %v6393_v12  ;;  %v6852_v36 = vld [vmem:[#allocation6 + $0x2f0] ss:$8 sps:$4 sm:$0xff]  }
 0x102   :  { %v2172_v37 = vmax.f32 %v2170_v50, %v2171_v47  ;;  %v2332_v31 = vmax.f32 %v2330_v21, %v2331_v18  ;;  %v2651_v58 = vrot.slane %v2650_v20, 4  ;;  %v2970_v57 = vmax.f32 %v2968_v44, %v2969_v23 }
 0x103   :  { %v2013_v39 = vrot.slane %v2012_v28, 2  ;;  %v2492_v63 = vmax.f32 %v2490_v32, %v2491_v40  ;;  %v2811_v53 = vrot.slane %v2810_v45, 4  ;;  %v3129_v14 = vunpack.i.h.bf16 %v6393_v12  ;;  %5816 = vmatpush1.bf16.msra.mxu0 %v6834_v17 }
 0x104   :  { %v2173_v52 = vrot.slane %v2172_v37, 2  ;;  %v2333_v33 = vrot.slane %v2332_v31, 2  ;;  %v2652_v55 = vmax.f32 %v2650_v20, %v2651_v58  ;;  %v2971_v5 = vrot.slane %v2970_v57, 4  ;;  %5817 = vmatprep.subr.bf16.mxu0 %v6842_v26  ;;  %v6860_v20 = vld [vmem:[#allocation6 + $0x2e4] ss:$8 sps:$4 sm:$0xff]  }
 0x105   :  { %v2014_v3 = vmax.f32 %v2012_v28, %v2013_v39  ;;  %v2493_v4 = vrot.slane %v2492_v63, 2  ;;  %v2812_v7 = vmax.f32 %v2810_v45, %v2811_v53  ;;  %v3130_v16 = vmax.f32 %v3128_v56, %v3129_v14  ;;  %v6858_v53 = vld [vmem:[#allocation6 + $0x2e0] ss:$8 sps:$4 sm:$0xff]  }
 0x106   :  { %v2174_v59 = vmax.f32 %v2172_v37, %v2173_v52  ;;  %v2334_v11 = vmax.f32 %v2332_v31, %v2333_v33  ;;  %v2653_v35 = vrot.slane %v2652_v55, 2  ;;  %v2972_v61 = vmax.f32 %v2970_v57, %v2971_v5 }
 0x107   :  { %v2015_v27 = vrot.slane %v2014_v3, 1  ;;  %v2494_v10 = vmax.f32 %v2492_v63, %v2493_v4  ;;  %v2813_v42 = vrot.slane %v2812_v7, 2  ;;  %v3131_v12 = vrot.slane %v3130_v16, 4  ;;  %5818 = vmatpush1.bf16.msra.mxu0 %v6840_v1 }
 0x108   :  { %v2175_v19 = vrot.slane %v2174_v59, 1  ;;  %v2335_v46 = vrot.slane %v2334_v11, 1  ;;  %v2654_v22 = vmax.f32 %v2652_v55, %v2653_v35  ;;  %v2973_v6 = vrot.slane %v2972_v61, 2  ;;  %5819 = vmatprep.subr.bf16.mxu0 %v6848_v34  ;;  %v6866_v55 = vld [vmem:[#allocation6 + $0x2d4] ss:$8 sps:$4 sm:$0xff]  }
 0x109   :  { %v2016_v25 = vmax.f32 %v2014_v3, %v2015_v27  ;;  %v2495_v38 = vrot.slane %v2494_v10, 1  ;;  %v2814_v43 = vmax.f32 %v2812_v7, %v2813_v42  ;;  %v3132_v60 = vmax.f32 %v3130_v16, %v3131_v12 }
 0x10a   :  { %v2176_v62 = vmax.f32 %v2174_v59, %v2175_v19  ;;  %v2336_v29 = vmax.f32 %v2334_v11, %v2335_v46  ;;  %v2655_v50 = vrot.slane %v2654_v22, 1  ;;  %v2974_v21 = vmax.f32 %v2972_v61, %v2973_v6 }
 0x10b   :  { %v2017_v24 = vpack.i.bf16 %v2016_v25, %v2016_v25  ;;  %v2496_v2 = vmax.f32 %v2494_v10, %v2495_v38  ;;  %v2815_v30 = vrot.slane %v2814_v43, 1  ;;  %v3133_v32 = vrot.slane %v3132_v60, 2  ;;  %5820 = vmatpush1.bf16.msra.mxu0 %v6846_v49 }
 0x10c   :  { %v2177_v44 = vpack.i.bf16 %v2176_v62, %v2176_v62  ;;  %v2337_v17 = vpack.i.bf16 %v2336_v29, %v2336_v29  ;;  %v2656_v47 = vmax.f32 %v2654_v22, %v2655_v50  ;;  %v2975_v18 = vrot.slane %v2974_v21, 1  ;;  %5821 = vmatprep.subr.bf16.mxu0 %v6854_v13 }
 0x10d   :  { %v2497_v23 = vpack.i.bf16 %v2496_v2, %v2496_v2  ;;  %v2816_v26 = vmax.f32 %v2814_v43, %v2815_v30  ;;  %v3134_v28 = vmax.f32 %v3132_v60, %v3133_v32  ;;  %v3270_v40 = vunpack.c.l.bf16 %v2017_v24  ;;  %v6870_v43 = vld [vmem:[#allocation6 + $0x2c0] ss:$8 sps:$4 sm:$0xff]   ;;  %v7743_v60 = vld [vmem:[#allocation3 + $0x10] sm:$0xff] }
 0x10e   :  { %v2657_v45 = vpack.i.bf16 %v2656_v47, %v2656_v47  ;;  %v2976_v56 = vmax.f32 %v2974_v21, %v2975_v18  ;;  %v3286_v37 = vunpack.c.l.bf16 %v2177_v44  ;;  %v3302_v31 = vunpack.c.l.bf16 %v2337_v17  ;;  %v6878_v24 = vld [vmem:[#allocation6 + $0x2b4] ss:$8 sps:$4 sm:$0xff]  }
 0x10f   :  { %v2817_v58 = vpack.i.bf16 %v2816_v26, %v2816_v26  ;;  %v3135_v57 = vrot.slane %v3134_v28, 1  ;;  %v3318_v39 = vunpack.c.l.bf16 %v2497_v23  ;;  %v3398_v63 = vmul.f32 0.0625, %v7708_v51  ;;  %5822 = vmatpush2.bf16.msra.mxu0 %v6852_v36  ;;  %v7745_v2 = vld [vmem:[#allocation3 + $0x50] sm:$0xff] }
 0x110   :  { %v2977_v14 = vpack.i.bf16 %v2976_v56, %v2976_v56  ;;  %v3334_v1 = vunpack.c.l.bf16 %v2657_v45  ;;  %v3414_v52 = vmul.f32 0.0625, %v7710_v8  ;;  %v3430_v33 = vmul.f32 0.0625, %v7712_v41  ;;  %5823 = vmatprep.subr.bf16.mxu0 %v6860_v20  ;;  %v6864_v41 = vld [vmem:[#allocation6 + $0x2d0] ss:$8 sps:$4 sm:$0xff]  }
 0x111   :  { %v3136_v5 = vmax.f32 %v3134_v28, %v3135_v57  ;;  %v3350_v34 = vunpack.c.l.bf16 %v2817_v58  ;;  %v3446_v3 = vmul.f32 0.0625, %v7714_v15  ;;  %v3462_v4 = vmul.f32 0.0625, %v7716_v0  ;;  %v6872_v15 = vld [vmem:[#allocation6 + $0x2c4] ss:$8 sps:$4 sm:$0xff]   ;;  %v7747_v30 = vld [vmem:[#allocation3 + $0x90] sm:$0xff] }
 0x112   :  { %v3366_v7 = vunpack.c.l.bf16 %v2977_v14  ;;  %v3478_v16 = vmul.f32 0.0625, %v7718_v48  ;;  %v3494_v51 = vmul.f32 0.0625, %v7720_v54  ;;  %v3510_v59 = vmul.f32 0.0625, %v7728_v9  ;;  %v7750_v44 = vld [vmem:[#allocation3 + $0xd0] sm:$0xff] }
 0x113   :  { %v3137_v11 = vpack.i.bf16 %v3136_v5, %v3136_v5  ;;  %v3526_v35 = vadd.f32 %v3398_v63, %v3270_v40  ;;  %v3542_v8 = vadd.f32 %v3414_v52, %v3286_v37  ;;  %v3558_v61 = vadd.f32 %v3430_v33, %v3302_v31  ;;  %5824 = vmatpush2.bf16.msra.mxu0 %v6858_v53  ;;  %v7752_v17 = vld [vmem:[#allocation3 + $0x110] sm:$0xff]  ;;  %v6884_v52 = vld [vmem:[#allocation6 + $0x2a4] ss:$8 sps:$4 sm:$0xff]  }
 0x114   :  { %v3574_v27 = vadd.f32 %v3446_v3, %v3318_v39  ;;  %v3590_v10 = vadd.f32 %v3462_v4, %v3334_v1  ;;  %v3606_v42 = vadd.f32 %v3478_v16, %v3350_v34  ;;  %v3622_v12 = vadd.f32 %v3494_v51, %v3366_v7  ;;  %5825 = vmatprep.subr.bf16.mxu0 %v6866_v55  ;;  %v7754_v47 = vld [vmem:[#allocation3 + $0x150] sm:$0xff] }
 0x115   :  { %v3382_v0 = vunpack.c.l.bf16 %v3137_v11  ;;  %v3654_v49 = vpack.c.bf16 %v3526_v35, %v3526_v35  ;;  %v3670_v19 = vpack.c.bf16 %v3542_v8, %v3542_v8  ;;  %v3686_v48 = vpack.c.bf16 %v3558_v61, %v3558_v61  ;;  %v7759_v26 = vld [vmem:[#allocation3 + $0x190] sm:$0xff] }
 0x116   :  { %v3702_v46 = vpack.c.bf16 %v3574_v27, %v3574_v27  ;;  %v3718_v54 = vpack.c.bf16 %v3590_v10, %v3590_v10  ;;  %v3734_v22 = vpack.c.bf16 %v3606_v42, %v3606_v42  ;;  %v3750_v9 = vpack.c.bf16 %v3622_v12, %v3622_v12  ;;  %v7761_v28 = vld [vmem:[#allocation3 + $0x1d0] sm:$0xff]  ;;  %v6882_v12 = vld [vmem:[#allocation6 + $0x2a0] ss:$8 sps:$4 sm:$0xff]  }
 0x117   :  { %v3638_v6 = vadd.f32 %v3510_v59, %v3382_v0  ;;  %v4166_v13 = vunpack.c.l.b16 %v3654_v49  ;;  %v4182_v25 = vunpack.c.l.b16 %v3670_v19  ;;  %v4198_v38 = vunpack.c.l.b16 %v3686_v48  ;;  %5826 = vmatpush2.bf16.msra.mxu0 %v6864_v41  ;;  %v7763_v40 = vld [vmem:[#allocation3 + $0x210] sm:$0xff]  ;;  %v6815_v48 = vld [vmem:[#allocation6 + $0x364] ss:$8 sps:$4 sm:$0xff]  }
 0x118   :  { %v4214_v62 = vunpack.c.l.b16 %v3702_v46  ;;  %v4230_v29 = vunpack.c.l.b16 %v3718_v54  ;;  %v4246_v50 = vunpack.c.l.b16 %v3734_v22  ;;  %v4262_v21 = vunpack.c.l.b16 %v3750_v9  ;;  %5827 = vmatprep.subr.bf16.mxu0 %v6872_v15  ;;  %v6876_v57 = vld [vmem:[#allocation6 + $0x2b0] ss:$8 sps:$4 sm:$0xff]   ;;  %v6890_v46 = vld [vmem:[#allocation6 + $0x294] ss:$8 sps:$4 sm:$0xff]  }
 0x119   :  { %v3766_v32 = vpack.c.bf16 %v3638_v6, %v3638_v6  ;;  %v4313_v36 = vsel %vm4292_vm0, %v4182_v25, %v4166_v13  ;;  %v201_v18 = vunpack.c.h.bf16 %v7743_v60  ;;  %v217_v20 = vunpack.c.h.bf16 %v7745_v2  ;;  %v7769_v39 = vld [vmem:[#allocation3 + $0x250] sm:$0xff] }
 0x11a   :  { %v4314_v23 = vsel %vm4294_vm1, %v4198_v38, %v4313_v36  ;;  %v233_v45 = vunpack.c.h.bf16 %v7747_v30  ;;  %v249_v56 = vunpack.c.h.bf16 %v7750_v44  ;;  %v265_v37 = vunpack.c.h.bf16 %v7752_v17  ;;  %v7771_v63 = vld [vmem:[#allocation3 + $0x290] sm:$0xff] }
 0x11b   :  { %v4278_v31 = vunpack.c.l.b16 %v3766_v32  ;;  %v4315_v58 = vsel %vm4296_vm2, %v4214_v62, %v4314_v23  ;;  %5828 = vmatpush2.bf16.msra.mxu0 %v6870_v43  ;;  %v281_v53 = vunpack.c.h.bf16 %v7754_v47  ;;  %v297_v14 = vunpack.c.h.bf16 %v7759_v26  ;;  %v7776_v33 = vld [vmem:[#allocation3 + $0x2d0] sm:$0xff] }
 0x11c   :  { %v4316_v1 = vsel %vm4298_vm3, %v4230_v29, %v4315_v58  ;;  %5829 = vmatprep.subr.bf16.mxu0 %v6878_v24  ;;  %v7778_v55 = vld [vmem:[#allocation3 + $0x310] sm:$0xff]  ;;  %v313_v5 = vunpack.c.h.bf16 %v7761_v28  ;;  %v329_v34 = vunpack.c.h.bf16 %v7763_v40  ;;  %v345_v3 = vunpack.c.h.bf16 %v7769_v39 }
 0x11d   :  { %v4317_v4 = vsel %vm4300_vm4, %v4246_v50, %v4316_v1  ;;  %v7784_v7 = vld [vmem:[#allocation3 + $0x350] sm:$0xff]  ;;  %v361_v59 = vunpack.c.h.bf16 %v7771_v63  ;;  %v377_v11 = vunpack.c.h.bf16 %v7776_v33  ;;  %v393_v35 = vunpack.c.h.bf16 %v7778_v55 }
 0x11e   :  { %v7786_v16 = vld [vmem:[#allocation3 + $0x390] sm:$0xff]  ;;  %v4318_v8 = vsel %vm4302_vm5, %v4262_v21, %v4317_v4  ;;  %v409_v61 = vunpack.c.h.bf16 %v7784_v7  ;;  %v487_v15 = vadd.f32 %v217_v20, %v201_v18  ;;  %v599_v0 = vadd.f32 %v249_v56, %v233_v45  ;;  %v6813_v21 = vld [vmem:[#allocation6 + $0x360] ss:$8 sps:$4 sm:$0xff]   ;;  %v6896_v45 = vld [vmem:[#allocation6 + $0x284] ss:$8 sps:$4 sm:$0xff]  }
 0x11f   :  { %v7788_v51 = vld [vmem:[#allocation3 + $0x3d0] sm:$0xff]  ;;  %v425_v41 = vunpack.c.h.bf16 %v7786_v16  ;;  %v4319_v10 = vsel %vm4304_vm6, %v4278_v31, %v4318_v8  ;;  %5830 = vmatpush2.bf16.msra.mxu0 %v6876_v57  ;;  %v711_v49 = vadd.f32 %v281_v53, %v265_v37  ;;  %v823_v54 = vadd.f32 %v313_v5, %v297_v14 }
 0x120   :  { %v441_v27 = vunpack.c.h.bf16 %v7788_v51  ;;  %v6807_v42 = vld [vmem:[#allocation6 + $0x370] ss:$8 sps:$4 sm:$0xff]   ;;  %v4413_v19 = vpack.c.b16 %v4319_v10, %v4319_v10  ;;  %5831 = vmatprep.subr.bf16.mxu0 %v6884_v52  ;;  %v935_v22 = vadd.f32 %v345_v3, %v329_v34  ;;  %v1047_v9 = vadd.f32 %v377_v11, %v361_v59  ;;  %v6821_v23 = vld [vmem:[#allocation6 + $0x354] ss:$8 sps:$4 sm:$0xff]   ;;  %v6894_v59 = vld [vmem:[#allocation6 + $0x280] ss:$8 sps:$4 sm:$0xff]  }
 0x121   :  { %v488_v6 = vrot.slane %v487_v15, 4  ;;  %v600_v13 = vrot.slane %v599_v0, 4  ;;  %v712_v25 = vrot.slane %v711_v49, 4  ;;  %v1159_v38 = vadd.f32 %v409_v61, %v393_v35  ;;  %v6888_v24 = vld [vmem:[#allocation6 + $0x290] ss:$8 sps:$4 sm:$0xff]  }
 0x122   :  { %5797 = vmatmul.mubr.bf16.vlgmr.msra.gmra.mxu1 %v4413_v19  ;;  %v824_v43 = vrot.slane %v823_v54, 4  ;;  %v936_v62 = vrot.slane %v935_v22, 4  ;;  %v1048_v29 = vrot.slane %v1047_v9, 4  ;;  %v1271_v50 = vadd.f32 %v441_v27, %v425_v41  ;;  %v6819_v4 = vld [vmem:[#allocation6 + $0x350] ss:$8 sps:$4 sm:$0xff]  }
 0x123   :  { %5847 = vmatpush1.bf16.msra.mxu1 %v6807_v42  ;;  %5832 = vmatpush2.bf16.msra.mxu0 %v6882_v12  ;;  %v489_v32 = vadd.f32 %v488_v6, %v487_v15  ;;  %v601_v36 = vadd.f32 %v600_v13, %v599_v0  ;;  %v713_v18 = vadd.f32 %v712_v25, %v711_v49  ;;  %v1160_v20 = vrot.slane %v1159_v38, 4  ;;  %v6827_v41 = vld [vmem:[#allocation6 + $0x344] ss:$8 sps:$4 sm:$0xff]  }
 0x124   :  { %5848 = vmatprep.subr.bf16.mxu1 %v6815_v48  ;;  %5833 = vmatprep.subr.bf16.mxu0 %v6890_v46  ;;  %v825_v56 = vadd.f32 %v824_v43, %v823_v54  ;;  %v937_v37 = vadd.f32 %v936_v62, %v935_v22  ;;  %v1049_v31 = vadd.f32 %v1048_v29, %v1047_v9  ;;  %v1272_v58 = vrot.slane %v1271_v50, 4  ;;  %v6825_v9 = vld [vmem:[#allocation6 + $0x340] ss:$8 sps:$4 sm:$0xff]   ;;  %v6833_v43 = vld [vmem:[#allocation6 + $0x334] ss:$8 sps:$4 sm:$0xff]  }
 0x125   :  { %v490_v57 = vrot.slane %v489_v32, 2  ;;  %v602_v53 = vrot.slane %v601_v36, 2  ;;  %v714_v14 = vrot.slane %v713_v18, 2  ;;  %v1161_v1 = vadd.f32 %v1160_v20, %v1159_v38 }
 0x126   :  { %v826_v52 = vrot.slane %v825_v56, 2  ;;  %v938_v5 = vrot.slane %v937_v37, 2  ;;  %v1050_v34 = vrot.slane %v1049_v31, 2  ;;  %v1273_v3 = vadd.f32 %v1272_v58, %v1271_v50 }
 0x127   :  { %5849 = vmatpush1.bf16.msra.mxu1 %v6813_v21  ;;  %5834 = vmatpush2.bf16.msra.mxu0 %v6888_v24  ;;  %v491_v11 = vadd.f32 %v490_v57, %v489_v32  ;;  %v603_v35 = vadd.f32 %v602_v53, %v601_v36  ;;  %v715_v8 = vadd.f32 %v714_v14, %v713_v18  ;;  %v1162_v61 = vrot.slane %v1161_v1, 2 }
 0x128   :  { %5850 = vmatprep.subr.bf16.mxu1 %v6821_v23  ;;  %5835 = vmatprep.subr.bf16.mxu0 %v6896_v45  ;;  %v827_v27 = vadd.f32 %v826_v52, %v825_v56  ;;  %v939_v10 = vadd.f32 %v938_v5, %v937_v37  ;;  %v1051_v42 = vadd.f32 %v1050_v34, %v1049_v31  ;;  %v1274_v12 = vrot.slane %v1273_v3, 2  ;;  %v6831_v37 = vld [vmem:[#allocation6 + $0x330] ss:$8 sps:$4 sm:$0xff]   ;;  %v6845_v52 = vld [vmem:[#allocation6 + $0x314] ss:$8 sps:$4 sm:$0xff]  }
 0x129   :  { %v492_v15 = vrot.slane %v491_v11, 1  ;;  %v604_v0 = vrot.slane %v603_v35, 1  ;;  %v716_v49 = vrot.slane %v715_v8, 1  ;;  %v1163_v19 = vadd.f32 %v1162_v61, %v1161_v1 }
 0x12a   :  { %v828_v48 = vrot.slane %v827_v27, 1  ;;  %v940_v46 = vrot.slane %v939_v10, 1  ;;  %v1052_v54 = vrot.slane %v1051_v42, 1  ;;  %v1275_v22 = vadd.f32 %v1274_v12, %v1273_v3 }
 0x12b   :  { %5851 = vmatpush1.bf16.msra.mxu1 %v6819_v4  ;;  %5836 = vmatpush2.bf16.msra.mxu0 %v6894_v59  ;;  %v7798_v6 = vadd.f32 %v492_v15, %v491_v11  ;;  %v7800_v13 = vadd.f32 %v604_v0, %v603_v35  ;;  %v7802_v25 = vadd.f32 %v716_v49, %v715_v8  ;;  %v1164_v38 = vrot.slane %v1163_v19, 1 }
 0x12c   :  { %5852 = vmatprep.subr.bf16.mxu1 %v6827_v41  ;;  %v7804_v62 = vadd.f32 %v828_v48, %v827_v27  ;;  %v7806_v29 = vadd.f32 %v940_v46, %v939_v10  ;;  %v7808_v50 = vadd.f32 %v1052_v54, %v1051_v42  ;;  %v1276_v21 = vrot.slane %v1275_v22, 1  ;;  %v6843_v42 = vld [vmem:[#allocation6 + $0x310] ss:$8 sps:$4 sm:$0xff]  }
 0x12d   :  { %v7810_v24 = vadd.f32 %v1164_v38, %v1163_v19  ;;  %v6284_v32 = vcombine.high %v7743_v60, %v7745_v2  ;;  %v6300_v36 = vcombine.high %v7747_v30, %v7750_v44  ;;  %v6316_v18 = vcombine.high %v7752_v17, %v7754_v47  ;;  %v6839_v17 = vld [vmem:[#allocation6 + $0x324] ss:$8 sps:$4 sm:$0xff]  }
 0x12e   :  { %v7818_v20 = vadd.f32 %v1276_v21, %v1275_v22  ;;  %v6332_v23 = vcombine.high %v7759_v26, %v7761_v28  ;;  %v6348_v45 = vcombine.high %v7763_v40, %v7769_v39  ;;  %v6364_v56 = vcombine.high %v7771_v63, %v7776_v33  ;;  %v6851_v19 = vld [vmem:[#allocation6 + $0x304] ss:$8 sps:$4 sm:$0xff]  }
 0x12f   :  { %5853 = vmatpush1.bf16.msra.mxu1 %v6825_v9  ;;  %v6380_v60 = vcombine.high %v7778_v55, %v7784_v7  ;;  %v6396_v2 = vcombine.high %v7786_v16, %v7788_v51  ;;  %v2038_v30 = vunpack.i.l.bf16 %v6284_v32  ;;  %v2039_v44 = vunpack.i.h.bf16 %v6284_v32  ;;  %v6837_v55 = vld [vmem:[#allocation6 + $0x320] ss:$8 sps:$4 sm:$0xff]  }
 0x130   :  { %5854 = vmatprep.subr.bf16.mxu1 %v6833_v43  ;;  %v2198_v47 = vunpack.i.l.bf16 %v6300_v36  ;;  %v2199_v26 = vunpack.i.h.bf16 %v6300_v36  ;;  %v2358_v28 = vunpack.i.l.bf16 %v6316_v18  ;;  %v2359_v31 = vunpack.i.h.bf16 %v6316_v18 }
 0x131   :  { %v2040_v40 = vmax.f32 %v2038_v30, %v2039_v44  ;;  %v2518_v39 = vunpack.i.l.bf16 %v6332_v23  ;;  %v2519_v58 = vunpack.i.h.bf16 %v6332_v23  ;;  %v2678_v63 = vunpack.i.l.bf16 %v6348_v45  ;;  %v6857_v30 = vld [vmem:[#allocation6 + $0x3f4] ss:$8 sps:$4 sm:$0xff]  }
 0x132   :  { %v2200_v33 = vmax.f32 %v2198_v47, %v2199_v26  ;;  %v2360_v57 = vmax.f32 %v2358_v28, %v2359_v31  ;;  %v2679_v53 = vunpack.i.h.bf16 %v6348_v45  ;;  %v2838_v14 = vunpack.i.l.bf16 %v6364_v56  ;;  %v6849_v45 = vld [vmem:[#allocation6 + $0x300] ss:$8 sps:$4 sm:$0xff]  }
 0x133   :  { %5855 = vmatpush1.bf16.msra.mxu1 %v6831_v37  ;;  %v2041_v7 = vrot.slane %v2040_v40, 4  ;;  %v2520_v16 = vmax.f32 %v2518_v39, %v2519_v58  ;;  %v2839_v51 = vunpack.i.h.bf16 %v6364_v56  ;;  %v2998_v1 = vunpack.i.l.bf16 %v6380_v60 }
 0x134   :  { %5856 = vmatprep.subr.bf16.mxu1 %v6839_v17  ;;  %v2201_v5 = vrot.slane %v2200_v33, 4  ;;  %v2361_v34 = vrot.slane %v2360_v57, 4  ;;  %v2680_v3 = vmax.f32 %v2678_v63, %v2679_v53  ;;  %v2999_v4 = vunpack.i.h.bf16 %v6380_v60  ;;  %v6855_v53 = vld [vmem:[#allocation6 + $0x3f0] ss:$8 sps:$4 sm:$0xff]  }
 0x135   :  { %v2042_v59 = vmax.f32 %v2040_v40, %v2041_v7  ;;  %v2521_v11 = vrot.slane %v2520_v16, 4  ;;  %v2840_v35 = vmax.f32 %v2838_v14, %v2839_v51  ;;  %v3158_v8 = vunpack.i.l.bf16 %v6396_v2  ;;  %v6863_v51 = vld [vmem:[#allocation6 + $0x3e4] ss:$8 sps:$4 sm:$0xff]  }
 0x136   :  { %v2202_v61 = vmax.f32 %v2200_v33, %v2201_v5  ;;  %v2362_v41 = vmax.f32 %v2360_v57, %v2361_v34  ;;  %v2681_v27 = vrot.slane %v2680_v3, 4  ;;  %v3000_v10 = vmax.f32 %v2998_v1, %v2999_v4 }
 0x137   :  { %5857 = vmatpush1.bf16.msra.mxu1 %v6837_v55  ;;  %v2043_v12 = vrot.slane %v2042_v59, 2  ;;  %v2522_v15 = vmax.f32 %v2520_v16, %v2521_v11  ;;  %v2841_v0 = vrot.slane %v2840_v35, 4  ;;  %v3159_v49 = vunpack.i.h.bf16 %v6396_v2 }
 0x138   :  { %5858 = vmatprep.subr.bf16.mxu1 %v6845_v52  ;;  %v2203_v48 = vrot.slane %v2202_v61, 2  ;;  %v2363_v46 = vrot.slane %v2362_v41, 2  ;;  %v2682_v54 = vmax.f32 %v2680_v3, %v2681_v27  ;;  %v3001_v22 = vrot.slane %v3000_v10, 4  ;;  %v6861_v27 = vld [vmem:[#allocation6 + $0x3e0] ss:$8 sps:$4 sm:$0xff]  }
 0x139   :  { %v2044_v9 = vmax.f32 %v2042_v59, %v2043_v12  ;;  %v2523_v38 = vrot.slane %v2522_v15, 2  ;;  %v2842_v43 = vmax.f32 %v2840_v35, %v2841_v0  ;;  %v3160_v21 = vmax.f32 %v3158_v8, %v3159_v49  ;;  %v6869_v0 = vld [vmem:[#allocation6 + $0x3d4] ss:$8 sps:$4 sm:$0xff]  }
 0x13a   :  { %v2204_v32 = vmax.f32 %v2202_v61, %v2203_v48  ;;  %v2364_v36 = vmax.f32 %v2362_v41, %v2363_v46  ;;  %v2683_v18 = vrot.slane %v2682_v54, 2  ;;  %v3002_v23 = vmax.f32 %v3000_v10, %v3001_v22 }
 0x13b   :  { %5859 = vmatpush1.bf16.msra.mxu1 %v6843_v42  ;;  %v2045_v56 = vrot.slane %v2044_v9, 1  ;;  %v2524_v37 = vmax.f32 %v2522_v15, %v2523_v38  ;;  %v2843_v60 = vrot.slane %v2842_v43, 2  ;;  %v3161_v2 = vrot.slane %v3160_v21, 4 }
 0x13c   :  { %5860 = vmatprep.subr.bf16.mxu1 %v6851_v19  ;;  %v2205_v44 = vrot.slane %v2204_v32, 1  ;;  %v2365_v17 = vrot.slane %v2364_v36, 1  ;;  %v2684_v47 = vmax.f32 %v2682_v54, %v2683_v18  ;;  %v3003_v26 = vrot.slane %v3002_v23, 2 }
 0x13d   :  { %v2046_v28 = vmax.f32 %v2044_v9, %v2045_v56  ;;  %v2525_v31 = vrot.slane %v2524_v37, 1  ;;  %v2844_v40 = vmax.f32 %v2842_v43, %v2843_v60  ;;  %v3162_v39 = vmax.f32 %v3160_v21, %v3161_v2 }
 0x13e   :  { %v2206_v58 = vmax.f32 %v2204_v32, %v2205_v44  ;;  %v2366_v63 = vmax.f32 %v2364_v36, %v2365_v17  ;;  %v2685_v33 = vrot.slane %v2684_v47, 1  ;;  %v3004_v57 = vmax.f32 %v3002_v23, %v3003_v26  ;;  %v6867_v36 = vld [vmem:[#allocation6 + $0x3d0] ss:$8 sps:$4 sm:$0xff]  }
 0x13f   :  { %5861 = vmatpush1.bf16.msra.mxu1 %v6849_v45  ;;  %v2047_v14 = vpack.i.bf16 %v2046_v28, %v2046_v28  ;;  %v2526_v55 = vmax.f32 %v2524_v37, %v2525_v31  ;;  %v2845_v7 = vrot.slane %v2844_v40, 1  ;;  %v3163_v16 = vrot.slane %v3162_v39, 2 }
 0x140   :  { %5862 = vmatprep.subr.bf16.mxu1 %v6857_v30  ;;  %v2207_v1 = vpack.i.bf16 %v2206_v58, %v2206_v58  ;;  %v2367_v52 = vpack.i.bf16 %v2366_v63, %v2366_v63  ;;  %v2686_v5 = vmax.f32 %v2684_v47, %v2685_v33  ;;  %v3005_v34 = vrot.slane %v3004_v57, 1  ;;  %v6873_v47 = vld [vmem:[#allocation6 + $0x3c0] ss:$8 sps:$4 sm:$0xff]   ;;  %v6881_v58 = vld [vmem:[#allocation6 + $0x3b4] ss:$8 sps:$4 sm:$0xff]  }
 0x141   :  { %v2527_v3 = vpack.i.bf16 %v2526_v55, %v2526_v55  ;;  %v2846_v4 = vmax.f32 %v2844_v40, %v2845_v7  ;;  %v3164_v59 = vmax.f32 %v3162_v39, %v3163_v16  ;;  %v3273_v11 = vunpack.c.l.bf16 %v2047_v14  ;;  %v7838_v39 = vld [vmem:[#allocation3 + $0x18] sm:$0xff] }
 0x142   :  { %v2687_v35 = vpack.i.bf16 %v2686_v5, %v2686_v5  ;;  %v3006_v8 = vmax.f32 %v3004_v57, %v3005_v34  ;;  %v3289_v61 = vunpack.c.l.bf16 %v2207_v1  ;;  %v3305_v41 = vunpack.c.l.bf16 %v2367_v52  ;;  %v7840_v14 = vld [vmem:[#allocation3 + $0x58] sm:$0xff] }
 0x143   :  { %5863 = vmatpush2.bf16.msra.mxu1 %v6855_v53  ;;  %v2847_v10 = vpack.i.bf16 %v2846_v4, %v2846_v4  ;;  %v3165_v42 = vrot.slane %v3164_v59, 1  ;;  %v3321_v12 = vunpack.c.l.bf16 %v2527_v3  ;;  %v3401_v15 = vmul.f32 0.0625, %v7798_v6  ;;  %v7842_v55 = vld [vmem:[#allocation3 + $0x98] sm:$0xff] }
 0x144   :  { %5864 = vmatprep.subr.bf16.mxu1 %v6863_v51  ;;  %v3007_v49 = vpack.i.bf16 %v3006_v8, %v3006_v8  ;;  %v3337_v19 = vunpack.c.l.bf16 %v2687_v35  ;;  %v3417_v48 = vmul.f32 0.0625, %v7800_v13  ;;  %v3433_v46 = vmul.f32 0.0625, %v7802_v25  ;;  %v6875_v25 = vld [vmem:[#allocation6 + $0x3c4] ss:$8 sps:$4 sm:$0xff]   ;;  %v7845_v51 = vld [vmem:[#allocation3 + $0xd8] sm:$0xff] }
 0x145   :  { %v3166_v54 = vmax.f32 %v3164_v59, %v3165_v42  ;;  %v3353_v22 = vunpack.c.l.bf16 %v2847_v10  ;;  %v3449_v9 = vmul.f32 0.0625, %v7804_v62  ;;  %v3465_v38 = vmul.f32 0.0625, %v7806_v29  ;;  %v7847_v1 = vld [vmem:[#allocation3 + $0x118] sm:$0xff] }
 0x146   :  { %v3369_v43 = vunpack.c.l.bf16 %v3007_v49  ;;  %v3481_v21 = vmul.f32 0.0625, %v7808_v50  ;;  %v3497_v32 = vmul.f32 0.0625, %v7810_v24  ;;  %v3513_v6 = vmul.f32 0.0625, %v7818_v20  ;;  %v7849_v52 = vld [vmem:[#allocation3 + $0x158] sm:$0xff]  ;;  %v6887_v49 = vld [vmem:[#allocation6 + $0x3a4] ss:$8 sps:$4 sm:$0xff]  }
 0x147   :  { %5865 = vmatpush2.bf16.msra.mxu1 %v6861_v27  ;;  %v3167_v18 = vpack.i.bf16 %v3166_v54, %v3166_v54  ;;  %v3529_v23 = vadd.f32 %v3401_v15, %v3273_v11  ;;  %v3545_v13 = vadd.f32 %v3417_v48, %v3289_v61  ;;  %v3561_v45 = vadd.f32 %v3433_v46, %v3305_v41  ;;  %v7854_v4 = vld [vmem:[#allocation3 + $0x198] sm:$0xff] }
 0x148   :  { %5866 = vmatprep.subr.bf16.mxu1 %v6869_v0  ;;  %v3577_v56 = vadd.f32 %v3449_v9, %v3321_v12  ;;  %v3593_v37 = vadd.f32 %v3465_v38, %v3337_v19  ;;  %v3609_v62 = vadd.f32 %v3481_v21, %v3353_v22  ;;  %v3625_v60 = vadd.f32 %v3497_v32, %v3369_v43  ;;  %v7856_v59 = vld [vmem:[#allocation3 + $0x1d8] sm:$0xff] }
 0x149   :  { %v3385_v29 = vunpack.c.l.bf16 %v3167_v18  ;;  %v3657_v2 = vpack.c.bf16 %v3529_v23, %v3529_v23  ;;  %v3673_v30 = vpack.c.bf16 %v3545_v13, %v3545_v13  ;;  %v3689_v50 = vpack.c.bf16 %v3561_v45, %v3561_v45  ;;  %v7858_v11 = vld [vmem:[#allocation3 + $0x218] sm:$0xff] }
 0x14a   :  { %v3705_v44 = vpack.c.bf16 %v3577_v56, %v3577_v56  ;;  %v3721_v24 = vpack.c.bf16 %v3593_v37, %v3593_v37  ;;  %v3737_v17 = vpack.c.bf16 %v3609_v62, %v3609_v62  ;;  %v3753_v20 = vpack.c.bf16 %v3625_v60, %v3625_v60  ;;  %v6879_v41 = vld [vmem:[#allocation6 + $0x3b0] ss:$8 sps:$4 sm:$0xff]   ;;  %v6885_v56 = vld [vmem:[#allocation6 + $0x3a0] ss:$8 sps:$4 sm:$0xff]  }
 0x14b   :  { %5867 = vmatpush2.bf16.msra.mxu1 %v6867_v36  ;;  %v3641_v26 = vadd.f32 %v3513_v6, %v3385_v29  ;;  %v4169_v28 = vunpack.c.l.b16 %v3657_v2  ;;  %v4185_v31 = vunpack.c.l.b16 %v3673_v30  ;;  %v4201_v40 = vunpack.c.l.b16 %v3689_v50  ;;  %v7864_v42 = vld [vmem:[#allocation3 + $0x258] sm:$0xff] }
 0x14c   :  { %5868 = vmatprep.subr.bf16.mxu1 %v6875_v25  ;;  %v4217_v63 = vunpack.c.l.b16 %v3705_v44  ;;  %v4233_v33 = vunpack.c.l.b16 %v3721_v24  ;;  %v4249_v57 = vunpack.c.l.b16 %v3737_v17  ;;  %v4265_v53 = vunpack.c.l.b16 %v3753_v20  ;;  %v7866_v12 = vld [vmem:[#allocation3 + $0x298] sm:$0xff] }
 0x14d   :  { %v3769_v7 = vpack.c.bf16 %v3641_v26, %v3641_v26  ;;  %v4334_v16 = vsel %vm4292_vm0, %v4185_v31, %v4169_v28  ;;  %v203_v5 = vunpack.c.h.bf16 %v7838_v39  ;;  %v219_v34 = vunpack.c.h.bf16 %v7840_v14  ;;  %v7871_v48 = vld [vmem:[#allocation3 + $0x2d8] sm:$0xff] }
 0x14e   :  { %v4335_v3 = vsel %vm4294_vm1, %v4201_v40, %v4334_v16  ;;  %v235_v35 = vunpack.c.h.bf16 %v7842_v55  ;;  %v251_v8 = vunpack.c.h.bf16 %v7845_v51  ;;  %v267_v61 = vunpack.c.h.bf16 %v7847_v1  ;;  %8822 = vst [vmem:[#allocation16_spill] sm:$0xff] %v7871_v48  ;;  %v7873_v46 = vld [vmem:[#allocation3 + $0x318] sm:$0xff]  ;;  %v6899_v16 = vld [vmem:[#allocation6 + $0x384] ss:$8 sps:$4 sm:$0xff]  }
 0x14f   :  { %5869 = vmatpush2.bf16.msra.mxu1 %v6873_v47  ;;  %v4281_v27 = vunpack.c.l.b16 %v3769_v7  ;;  %v4336_v10 = vsel %vm4296_vm2, %v4217_v63, %v4335_v3  ;;  %v283_v15 = vunpack.c.h.bf16 %v7849_v52  ;;  %v299_v0 = vunpack.c.h.bf16 %v7854_v4  ;;  %8823 = vst [vmem:[#allocation17_spill] sm:$0xff] %v7873_v46  ;;  %v7879_v43 = vld [vmem:[#allocation3 + $0x358] sm:$0xff] }
 0x150   :  { %5870 = vmatprep.subr.bf16.mxu1 %v6881_v58  ;;  %v4337_v19 = vsel %vm4298_vm3, %v4233_v33, %v4336_v10  ;;  %v315_v54 = vunpack.c.h.bf16 %v7856_v59  ;;  %v331_v22 = vunpack.c.h.bf16 %v7858_v11  ;;  %v347_v9 = vunpack.c.h.bf16 %v7864_v42  ;;  %8824 = vst [vmem:[#allocation18_spill] sm:$0xff] %v7879_v43  ;;  %v7881_v21 = vld [vmem:[#allocation3 + $0x398] sm:$0xff] }
 0x151   :  { %v4338_v38 = vsel %vm4300_vm4, %v4249_v57, %v4337_v19  ;;  %8825 = vst [vmem:[#allocation19_spill] sm:$0xff] %v7881_v21  ;;  %v7883_v32 = vld [vmem:[#allocation3 + $0x3d8] sm:$0xff]  ;;  %v363_v6 = vunpack.c.h.bf16 %v7866_v12  ;;  %v379_v36 = vunpack.c.h.bf16 %v7871_v48  ;;  %v395_v18 = vunpack.c.h.bf16 %v7873_v46  ;;  %v6897_v19 = vld [vmem:[#allocation6 + $0x380] ss:$8 sps:$4 sm:$0xff]  }
 0x152   :  { %8826 = vst [vmem:[#allocation20_spill] sm:$0xff] %v7883_v32  ;;  %v4339_v23 = vsel %vm4302_vm5, %v4265_v53, %v4338_v38  ;;  %v411_v13 = vunpack.c.h.bf16 %v7879_v43  ;;  %v427_v45 = vunpack.c.h.bf16 %v7881_v21  ;;  %v443_v25 = vunpack.c.h.bf16 %v7883_v32  ;;  %v6893_v2 = vld [vmem:[#allocation6 + $0x394] ss:$8 sps:$4 sm:$0xff]   ;;  %v6891_v63 = vld [vmem:[#allocation6 + $0x390] ss:$8 sps:$4 sm:$0xff]  }
 0x153   :  { %5871 = vmatpush2.bf16.msra.mxu1 %v6879_v41  ;;  %v4340_v37 = vsel %vm4304_vm6, %v4281_v27, %v4339_v23  ;;  %v501_v62 = vadd.f32 %v219_v34, %v203_v5  ;;  %v613_v60 = vadd.f32 %v251_v8, %v235_v35  ;;  %v725_v29 = vadd.f32 %v283_v15, %v267_v61 }
 0x154   :  { %5872 = vmatprep.subr.bf16.mxu1 %v6887_v49  ;;  %v4416_v30 = vpack.c.b16 %v4340_v37, %v4340_v37  ;;  %v837_v50 = vadd.f32 %v315_v54, %v299_v0  ;;  %v949_v44 = vadd.f32 %v347_v9, %v331_v22  ;;  %v1061_v24 = vadd.f32 %v379_v36, %v363_v6 }
 0x155   :  { %v502_v17 = vrot.slane %v501_v62, 4  ;;  %v614_v20 = vrot.slane %v613_v60, 4  ;;  %v726_v47 = vrot.slane %v725_v29, 4  ;;  %v1173_v26 = vadd.f32 %v411_v13, %v395_v18 }
 0x156   :  { %5837 = vmatprep.mubr.bf16.mxu0 %v4416_v30  ;;  %v838_v28 = vrot.slane %v837_v50, 4  ;;  %v950_v31 = vrot.slane %v949_v44, 4  ;;  %v1062_v40 = vrot.slane %v1061_v24, 4  ;;  %v1285_v58 = vadd.f32 %v443_v25, %v427_v45 }
 0x157   :  { %5873 = vmatpush2.bf16.msra.mxu1 %v6885_v56  ;;  %v503_v33 = vadd.f32 %v502_v17, %v501_v62  ;;  %v615_v57 = vadd.f32 %v614_v20, %v613_v60  ;;  %v727_v53 = vadd.f32 %v726_v47, %v725_v29  ;;  %v1174_v7 = vrot.slane %v1173_v26, 4 }
 0x158   :  { %5874 = vmatprep.subr.bf16.mxu1 %v6893_v2  ;;  %v839_v5 = vadd.f32 %v838_v28, %v837_v50  ;;  %v951_v34 = vadd.f32 %v950_v31, %v949_v44  ;;  %v1063_v3 = vadd.f32 %v1062_v40, %v1061_v24  ;;  %v1286_v35 = vrot.slane %v1285_v58, 4 }
 0x159   :  { %v504_v8 = vrot.slane %v503_v33, 2  ;;  %v616_v61 = vrot.slane %v615_v57, 2  ;;  %v728_v41 = vrot.slane %v727_v53, 2  ;;  %v1175_v27 = vadd.f32 %v1174_v7, %v1173_v26 }
 0x15a   :  { %v840_v10 = vrot.slane %v839_v5, 2  ;;  %v952_v15 = vrot.slane %v951_v34, 2  ;;  %v1064_v0 = vrot.slane %v1063_v3, 2  ;;  %v1287_v49 = vadd.f32 %v1286_v35, %v1285_v58 }
 0x15b   :  { %5875 = vmatpush2.bf16.msra.mxu1 %v6891_v63  ;;  %v505_v54 = vadd.f32 %v504_v8, %v503_v33  ;;  %v617_v22 = vadd.f32 %v616_v61, %v615_v57  ;;  %v729_v9 = vadd.f32 %v728_v41, %v727_v53  ;;  %v1176_v38 = vrot.slane %v1175_v27, 2 }
 0x15c   :  { %5876 = vmatprep.subr.bf16.mxu1 %v6899_v16  ;;  %v841_v6 = vadd.f32 %v840_v10, %v839_v5  ;;  %v953_v36 = vadd.f32 %v952_v15, %v951_v34  ;;  %v1065_v18 = vadd.f32 %v1064_v0, %v1063_v3  ;;  %v1288_v23 = vrot.slane %v1287_v49, 2 }
 0x15d   :  { %v506_v13 = vrot.slane %v505_v54, 1  ;;  %v618_v45 = vrot.slane %v617_v22, 1  ;;  %v730_v25 = vrot.slane %v729_v9, 1  ;;  %v1177_v56 = vadd.f32 %v1176_v38, %v1175_v27 }
 0x15e   :  { %v842_v37 = vrot.slane %v841_v6, 1  ;;  %v954_v62 = vrot.slane %v953_v36, 1  ;;  %v1066_v60 = vrot.slane %v1065_v18, 1  ;;  %v1289_v29 = vadd.f32 %v1288_v23, %v1287_v49 }
 0x15f   :  { %5877 = vmatpush2.bf16.msra.mxu1 %v6897_v19  ;;  %v7893_v2 = vadd.f32 %v506_v13, %v505_v54  ;;  %v7895_v30 = vadd.f32 %v618_v45, %v617_v22  ;;  %v7897_v50 = vadd.f32 %v730_v25, %v729_v9  ;;  %v1178_v44 = vrot.slane %v1177_v56, 1 }
 0x160   :  { %v7899_v24 = vadd.f32 %v842_v37, %v841_v6  ;;  %v7901_v17 = vadd.f32 %v954_v62, %v953_v36  ;;  %v7903_v20 = vadd.f32 %v1066_v60, %v1065_v18  ;;  %v1290_v47 = vrot.slane %v1289_v29, 1 }
 0x161   :  { %v7905_v26 = vadd.f32 %v1178_v44, %v1177_v56  ;;  %v6286_v28 = vcombine.high %v7838_v39, %v7840_v14  ;;  %v6302_v31 = vcombine.high %v7842_v55, %v7845_v51  ;;  %v6318_v40 = vcombine.high %v7847_v1, %v7849_v52 }
 0x162   :  { %v7913_v58 = vadd.f32 %v1290_v47, %v1289_v29  ;;  %v6334_v63 = vcombine.high %v7854_v4, %v7856_v59  ;;  %v6350_v33 = vcombine.high %v7858_v11, %v7864_v42  ;;  %v6366_v57 = vcombine.high %v7866_v12, %v7871_v48 }
 0x163   :  { %v6382_v53 = vcombine.high %v7873_v46, %v7879_v43  ;;  %v6398_v7 = vcombine.high %v7881_v21, %v7883_v32  ;;  %v2058_v16 = vunpack.i.l.bf16 %v6286_v28  ;;  %v2059_v5 = vunpack.i.h.bf16 %v6286_v28 }
 0x164   :  { %v2218_v34 = vunpack.i.l.bf16 %v6302_v31  ;;  %v2219_v3 = vunpack.i.h.bf16 %v6302_v31  ;;  %v2378_v35 = vunpack.i.l.bf16 %v6318_v40  ;;  %v2379_v8 = vunpack.i.h.bf16 %v6318_v40 }
 0x165   :  { %v2060_v61 = vmax.f32 %v2058_v16, %v2059_v5  ;;  %v2538_v41 = vunpack.i.l.bf16 %v6334_v63  ;;  %v2539_v27 = vunpack.i.h.bf16 %v6334_v63  ;;  %v2698_v10 = vunpack.i.l.bf16 %v6350_v33 }
 0x166   :  { %v2220_v15 = vmax.f32 %v2218_v34, %v2219_v3  ;;  %v2380_v0 = vmax.f32 %v2378_v35, %v2379_v8  ;;  %v2699_v49 = vunpack.i.h.bf16 %v6350_v33  ;;  %v2858_v19 = vunpack.i.l.bf16 %v6366_v57 }
 0x167   :  { %v2061_v54 = vrot.slane %v2060_v61, 4  ;;  %v2540_v22 = vmax.f32 %v2538_v41, %v2539_v27  ;;  %v2859_v9 = vunpack.i.h.bf16 %v6366_v57  ;;  %v3018_v38 = vunpack.i.l.bf16 %v6382_v53 }
 0x168   :  { %v2221_v6 = vrot.slane %v2220_v15, 4  ;;  %v2381_v36 = vrot.slane %v2380_v0, 4  ;;  %v2700_v18 = vmax.f32 %v2698_v10, %v2699_v49  ;;  %v3019_v23 = vunpack.i.h.bf16 %v6382_v53 }
 0x169   :  { %v2062_v13 = vmax.f32 %v2060_v61, %v2061_v54  ;;  %v2541_v45 = vrot.slane %v2540_v22, 4  ;;  %v2860_v25 = vmax.f32 %v2858_v19, %v2859_v9  ;;  %v3178_v56 = vunpack.i.l.bf16 %v6398_v7  ;;  %v6902_v54 = vld [vmem:[#allocation6 + $0x474] ss:$8 sps:$4 sm:$0xff]  }
 0x16a   :  { %v2222_v37 = vmax.f32 %v2220_v15, %v2221_v6  ;;  %v2382_v62 = vmax.f32 %v2380_v0, %v2381_v36  ;;  %v2701_v60 = vrot.slane %v2700_v18, 4  ;;  %v3020_v29 = vmax.f32 %v3018_v38, %v3019_v23  ;;  %5887 = vmatprep.subr.bf16.mxu0 %v6902_v54 }
 0x16b   :  { %v2063_v44 = vrot.slane %v2062_v13, 2  ;;  %v2542_v47 = vmax.f32 %v2540_v22, %v2541_v45  ;;  %v2861_v28 = vrot.slane %v2860_v25, 4  ;;  %v3179_v31 = vunpack.i.h.bf16 %v6398_v7  ;;  %v6905_v45 = vld [vmem:[#allocation6 + $0x574] ss:$8 sps:$4 sm:$0xff]  }
 0x16c   :  { %v2223_v40 = vrot.slane %v2222_v37, 2  ;;  %v2383_v63 = vrot.slane %v2382_v62, 2  ;;  %v2702_v33 = vmax.f32 %v2700_v18, %v2701_v60  ;;  %v3021_v57 = vrot.slane %v3020_v29, 4  ;;  %5928 = vmatprep.subr.bf16.mxu1 %v6905_v45 }
 0x16d   :  { %v2064_v16 = vmax.f32 %v2062_v13, %v2063_v44  ;;  %v2543_v5 = vrot.slane %v2542_v47, 2  ;;  %v2862_v34 = vmax.f32 %v2860_v25, %v2861_v28  ;;  %v3180_v53 = vmax.f32 %v3178_v56, %v3179_v31 }
 0x16e   :  { %v2224_v3 = vmax.f32 %v2222_v37, %v2223_v40  ;;  %v2384_v35 = vmax.f32 %v2382_v62, %v2383_v63  ;;  %v2703_v8 = vrot.slane %v2702_v33, 2  ;;  %v3022_v61 = vmax.f32 %v3020_v29, %v3021_v57 }
 0x16f   :  { %v2065_v41 = vrot.slane %v2064_v16, 1  ;;  %v2544_v27 = vmax.f32 %v2542_v47, %v2543_v5  ;;  %v2863_v10 = vrot.slane %v2862_v34, 2  ;;  %v3181_v15 = vrot.slane %v3180_v53, 4 }
 0x170   :  { %v2225_v0 = vrot.slane %v2224_v3, 1  ;;  %v2385_v49 = vrot.slane %v2384_v35, 1  ;;  %v2704_v19 = vmax.f32 %v2702_v33, %v2703_v8  ;;  %v3023_v7 = vrot.slane %v3022_v61, 2 }
 0x171   :  { %v2066_v22 = vmax.f32 %v2064_v16, %v2065_v41  ;;  %v2545_v9 = vrot.slane %v2544_v27, 1  ;;  %v2864_v38 = vmax.f32 %v2862_v34, %v2863_v10  ;;  %v3182_v6 = vmax.f32 %v3180_v53, %v3181_v15 }
 0x172   :  { %v2226_v36 = vmax.f32 %v2224_v3, %v2225_v0  ;;  %v2386_v18 = vmax.f32 %v2384_v35, %v2385_v49  ;;  %v2705_v23 = vrot.slane %v2704_v19, 1  ;;  %v3024_v13 = vmax.f32 %v3022_v61, %v3023_v7 }
 0x173   :  { %v2067_v25 = vpack.i.bf16 %v2066_v22, %v2066_v22  ;;  %v2546_v56 = vmax.f32 %v2544_v27, %v2545_v9  ;;  %v2865_v37 = vrot.slane %v2864_v38, 1  ;;  %v3183_v62 = vrot.slane %v3182_v6, 2 }
 0x174   :  { %v2227_v60 = vpack.i.bf16 %v2226_v36, %v2226_v36  ;;  %v2387_v29 = vpack.i.bf16 %v2386_v18, %v2386_v18  ;;  %v2706_v44 = vmax.f32 %v2704_v19, %v2705_v23  ;;  %v3025_v47 = vrot.slane %v3024_v13, 1 }
 0x175   :  { %v2547_v28 = vpack.i.bf16 %v2546_v56, %v2546_v56  ;;  %v2866_v31 = vmax.f32 %v2864_v38, %v2865_v37  ;;  %v3184_v40 = vmax.f32 %v3182_v6, %v3183_v62  ;;  %v3275_v63 = vunpack.c.l.bf16 %v2067_v25 }
 0x176   :  { %v2707_v33 = vpack.i.bf16 %v2706_v44, %v2706_v44  ;;  %v3026_v57 = vmax.f32 %v3024_v13, %v3025_v47  ;;  %v3291_v16 = vunpack.c.l.bf16 %v2227_v60  ;;  %v3307_v5 = vunpack.c.l.bf16 %v2387_v29 }
 0x177   :  { %v2867_v34 = vpack.i.bf16 %v2866_v31, %v2866_v31  ;;  %v3185_v53 = vrot.slane %v3184_v40, 1  ;;  %v3323_v3 = vunpack.c.l.bf16 %v2547_v28  ;;  %v3403_v35 = vmul.f32 0.0625, %v7893_v2 }
 0x178   :  { %v3027_v8 = vpack.i.bf16 %v3026_v57, %v3026_v57  ;;  %v3339_v61 = vunpack.c.l.bf16 %v2707_v33  ;;  %v3419_v41 = vmul.f32 0.0625, %v7895_v30  ;;  %v3435_v27 = vmul.f32 0.0625, %v7897_v50  ;;  %v7937_v33 = vld [vmem:[#allocation3 + $0x50] sm:$0xff] }
 0x179   :  { %v3186_v10 = vmax.f32 %v3184_v40, %v3185_v53  ;;  %v3355_v15 = vunpack.c.l.bf16 %v2867_v34  ;;  %v3451_v0 = vmul.f32 0.0625, %v7899_v24  ;;  %v3467_v49 = vmul.f32 0.0625, %v7901_v17  ;;  %v7934_v40 = vld [vmem:[#allocation3 + $0x10] sm:$0xff] }
 0x17a   :  { %v3371_v19 = vunpack.c.l.bf16 %v3027_v8  ;;  %v3483_v7 = vmul.f32 0.0625, %v7903_v20  ;;  %v3499_v54 = vmul.f32 0.0625, %v7905_v26  ;;  %v3515_v22 = vmul.f32 0.0625, %v7913_v58  ;;  %v7944_v53 = vld [vmem:[#allocation3 + $0xd0] sm:$0xff] }
 0x17b   :  { %v3187_v2 = vpack.i.bf16 %v3186_v10, %v3186_v10  ;;  %v3531_v9 = vadd.f32 %v3403_v35, %v3275_v63  ;;  %v3547_v38 = vadd.f32 %v3419_v41, %v3291_v16  ;;  %v3563_v6 = vadd.f32 %v3435_v27, %v3307_v5  ;;  %v7941_v5 = vld [vmem:[#allocation3 + $0x90] sm:$0xff] }
 0x17c   :  { %v3579_v30 = vadd.f32 %v3451_v0, %v3323_v3  ;;  %v3595_v36 = vadd.f32 %v3467_v49, %v3339_v61  ;;  %v3611_v50 = vadd.f32 %v3483_v7, %v3355_v15  ;;  %v3627_v18 = vadd.f32 %v3499_v54, %v3371_v19  ;;  %v7947_v35 = vld [vmem:[#allocation3 + $0x110] sm:$0xff] }
 0x17d   :  { %v3387_v23 = vunpack.c.l.bf16 %v3187_v2  ;;  %v3659_v13 = vpack.c.bf16 %v3531_v9, %v3531_v9  ;;  %v3675_v24 = vpack.c.bf16 %v3547_v38, %v3547_v38  ;;  %v3691_v45 = vpack.c.bf16 %v3563_v6, %v3563_v6  ;;  %v7951_v27 = vld [vmem:[#allocation3 + $0x150] sm:$0xff] }
 0x17e   :  { %v3707_v17 = vpack.c.bf16 %v3579_v30, %v3579_v30  ;;  %v3723_v25 = vpack.c.bf16 %v3595_v36, %v3595_v36  ;;  %v3739_v56 = vpack.c.bf16 %v3611_v50, %v3611_v50  ;;  %v3755_v20 = vpack.c.bf16 %v3627_v18, %v3627_v18  ;;  %v7954_v15 = vld [vmem:[#allocation3 + $0x190] sm:$0xff] }
 0x17f   :  { %v3643_v37 = vadd.f32 %v3515_v22, %v3387_v23  ;;  %v4171_v26 = vunpack.c.l.b16 %v3659_v13  ;;  %v4187_v62 = vunpack.c.l.b16 %v3675_v24  ;;  %v4203_v58 = vunpack.c.l.b16 %v3691_v45  ;;  %v7958_v19 = vld [vmem:[#allocation3 + $0x1d0] sm:$0xff] }
 0x180   :  { %v4219_v60 = vunpack.c.l.b16 %v3707_v17  ;;  %v4235_v29 = vunpack.c.l.b16 %v3723_v25  ;;  %v4251_v44 = vunpack.c.l.b16 %v3739_v56  ;;  %v4267_v47 = vunpack.c.l.b16 %v3755_v20  ;;  %v7961_v54 = vld [vmem:[#allocation3 + $0x210] sm:$0xff] }
 0x181   :  { %v3771_v28 = vpack.c.bf16 %v3643_v37, %v3643_v37  ;;  %v4348_v31 = vsel %vm4292_vm0, %v4187_v62, %v4171_v26  ;;  %v200_v63 = vunpack.c.l.bf16 %v7934_v40  ;;  %v216_v57 = vunpack.c.l.bf16 %v7937_v33  ;;  %v7964_v2 = vld [vmem:[#allocation3 + $0x250] sm:$0xff] }
 0x182   :  { %v4349_v16 = vsel %vm4294_vm1, %v4203_v58, %v4348_v31  ;;  %v232_v34 = vunpack.c.l.bf16 %v7941_v5  ;;  %v248_v3 = vunpack.c.l.bf16 %v7944_v53  ;;  %v264_v8 = vunpack.c.l.bf16 %v7947_v35  ;;  %v7968_v6 = vld [vmem:[#allocation3 + $0x290] sm:$0xff] }
 0x183   :  { %v4283_v61 = vunpack.c.l.b16 %v3771_v28  ;;  %v4350_v41 = vsel %vm4296_vm2, %v4219_v60, %v4349_v16  ;;  %v280_v10 = vunpack.c.l.bf16 %v7951_v27  ;;  %v296_v0 = vunpack.c.l.bf16 %v7954_v15  ;;  %v7971_v36 = vld [vmem:[#allocation3 + $0x2d0] sm:$0xff] }
 0x184   :  { %v4351_v49 = vsel %vm4298_vm3, %v4235_v29, %v4350_v41  ;;  %v312_v7 = vunpack.c.l.bf16 %v7958_v19  ;;  %v328_v22 = vunpack.c.l.bf16 %v7961_v54  ;;  %v344_v9 = vunpack.c.l.bf16 %v7964_v2  ;;  %v7974_v18 = vld [vmem:[#allocation3 + $0x310] sm:$0xff] }
 0x185   :  { %v4352_v38 = vsel %vm4300_vm4, %v4251_v44, %v4351_v49  ;;  %v360_v30 = vunpack.c.l.bf16 %v7968_v6  ;;  %v376_v50 = vunpack.c.l.bf16 %v7971_v36  ;;  %v392_v23 = vunpack.c.l.bf16 %v7974_v18  ;;  %v7978_v24 = vld [vmem:[#allocation3 + $0x350] sm:$0xff] }
 0x186   :  { %v4353_v13 = vsel %vm4302_vm5, %v4267_v47, %v4352_v38  ;;  %v408_v45 = vunpack.c.l.bf16 %v7978_v24  ;;  %v7981_v17 = vld [vmem:[#allocation3 + $0x390] sm:$0xff]  ;;  %v480_v26 = vadd.f32 %v216_v57, %v200_v63  ;;  %v592_v62 = vadd.f32 %v248_v3, %v232_v34 }
 0x187   :  { %v424_v25 = vunpack.c.l.bf16 %v7981_v17  ;;  %v7984_v56 = vld [vmem:[#allocation3 + $0x3d0] sm:$0xff]  ;;  %v4354_v37 = vsel %vm4304_vm6, %v4283_v61, %v4353_v13  ;;  %v704_v58 = vadd.f32 %v280_v10, %v264_v8  ;;  %v816_v29 = vadd.f32 %v312_v7, %v296_v0 }
 0x188   :  { %v440_v20 = vunpack.c.l.bf16 %v7984_v56  ;;  %v4418_v60 = vpack.c.b16 %v4354_v37, %v4354_v37  ;;  %v928_v44 = vadd.f32 %v344_v9, %v328_v22  ;;  %v1040_v47 = vadd.f32 %v376_v50, %v360_v30 }
 0x189   :  { %v481_v28 = vrot.slane %v480_v26, 4  ;;  %v593_v31 = vrot.slane %v592_v62, 4  ;;  %v705_v16 = vrot.slane %v704_v58, 4  ;;  %v1152_v41 = vadd.f32 %v408_v45, %v392_v23 }
 0x18a   :  { %5878 = vmatprep.mubr.bf16.mxu1 %v4418_v60  ;;  %v817_v49 = vrot.slane %v816_v29, 4  ;;  %v929_v38 = vrot.slane %v928_v44, 4  ;;  %v1041_v32 = vrot.slane %v1040_v47, 4  ;;  %v1264_v21 = vadd.f32 %v440_v20, %v424_v25 }
 0x18b   :  { %v482_v43 = vadd.f32 %v481_v28, %v480_v26  ;;  %v594_v46 = vadd.f32 %v593_v31, %v592_v62  ;;  %v706_v48 = vadd.f32 %v705_v16, %v704_v58  ;;  %v1153_v61 = vrot.slane %v1152_v41, 4 }
 0x18c   :  { %v818_v63 = vadd.f32 %v817_v49, %v816_v29  ;;  %v930_v57 = vadd.f32 %v929_v38, %v928_v44  ;;  %v1042_v34 = vadd.f32 %v1041_v32, %v1040_v47  ;;  %v1265_v3 = vrot.slane %v1264_v21, 4 }
 0x18d   :  { %v483_v8 = vrot.slane %v482_v43, 2  ;;  %v595_v10 = vrot.slane %v594_v46, 2  ;;  %v707_v0 = vrot.slane %v706_v48, 2  ;;  %v1154_v7 = vadd.f32 %v1153_v61, %v1152_v41 }
 0x18e   :  { %v819_v22 = vrot.slane %v818_v63, 2  ;;  %v931_v9 = vrot.slane %v930_v57, 2  ;;  %v1043_v30 = vrot.slane %v1042_v34, 2  ;;  %v1266_v50 = vadd.f32 %v1265_v3, %v1264_v21 }
 0x18f   :  { %v484_v23 = vadd.f32 %v483_v8, %v482_v43  ;;  %v596_v13 = vadd.f32 %v595_v10, %v594_v46  ;;  %v708_v45 = vadd.f32 %v707_v0, %v706_v48  ;;  %v1155_v25 = vrot.slane %v1154_v7, 2 }
 0x190   :  { %v820_v20 = vadd.f32 %v819_v22, %v818_v63  ;;  %v932_v37 = vadd.f32 %v931_v9, %v930_v57  ;;  %v1044_v26 = vadd.f32 %v1043_v30, %v1042_v34  ;;  %v1267_v62 = vrot.slane %v1266_v50, 2 }
 0x191   :  { %v485_v58 = vrot.slane %v484_v23, 1  ;;  %v597_v60 = vrot.slane %v596_v13, 1  ;;  %v709_v32 = vrot.slane %v708_v45, 1  ;;  %v1156_v29 = vadd.f32 %v1155_v25, %v1154_v7 }
 0x192   :  { %v821_v44 = vrot.slane %v820_v20, 1  ;;  %v933_v47 = vrot.slane %v932_v37, 1  ;;  %v1045_v28 = vrot.slane %v1044_v26, 1  ;;  %v1268_v31 = vadd.f32 %v1267_v62, %v1266_v50 }
 0x193   :  { %v7988_v16 = vadd.f32 %v485_v58, %v484_v23  ;;  %v7990_v41 = vadd.f32 %v597_v60, %v596_v13  ;;  %v7992_v43 = vadd.f32 %v709_v32, %v708_v45  ;;  %v1157_v48 = vrot.slane %v1156_v29, 1 }
 0x194   :  { %v7994_v46 = vadd.f32 %v821_v44, %v820_v20  ;;  %v7996_v21 = vadd.f32 %v933_v47, %v932_v37  ;;  %v7998_v49 = vadd.f32 %v1045_v28, %v1044_v26  ;;  %v1269_v38 = vrot.slane %v1268_v31, 1 }
 0x195   :  { %v8000_v61 = vadd.f32 %v1157_v48, %v1156_v29  ;;  %v6283_v63 = vcombine.low %v7934_v40, %v7937_v33  ;;  %v6299_v57 = vcombine.low %v7941_v5, %v7944_v53  ;;  %v6315_v34 = vcombine.low %v7947_v35, %v7951_v27 }
 0x196   :  { %v8008_v3 = vadd.f32 %v1269_v38, %v1268_v31  ;;  %v6331_v8 = vcombine.low %v7954_v15, %v7958_v19  ;;  %v6347_v10 = vcombine.low %v7961_v54, %v7964_v2  ;;  %v6363_v0 = vcombine.low %v7968_v6, %v7971_v36 }
 0x197   :  { %v6379_v40 = vcombine.low %v7974_v18, %v7978_v24  ;;  %v6395_v33 = vcombine.low %v7981_v17, %v7984_v56  ;;  %v2028_v5 = vunpack.i.l.bf16 %v6283_v63  ;;  %v2029_v53 = vunpack.i.h.bf16 %v6283_v63 }
 0x198   :  { %v2188_v35 = vunpack.i.l.bf16 %v6299_v57  ;;  %v2189_v27 = vunpack.i.h.bf16 %v6299_v57  ;;  %v2348_v7 = vunpack.i.l.bf16 %v6315_v34  ;;  %v2349_v22 = vunpack.i.h.bf16 %v6315_v34 }
 0x199   :  { %v2030_v9 = vmax.f32 %v2028_v5, %v2029_v53  ;;  %v2508_v15 = vunpack.i.l.bf16 %v6331_v8  ;;  %v2509_v19 = vunpack.i.h.bf16 %v6331_v8  ;;  %v2668_v30 = vunpack.i.l.bf16 %v6347_v10 }
 0x19a   :  { %v2190_v54 = vmax.f32 %v2188_v35, %v2189_v27  ;;  %v2350_v2 = vmax.f32 %v2348_v7, %v2349_v22  ;;  %v2669_v50 = vunpack.i.h.bf16 %v6347_v10  ;;  %v2828_v6 = vunpack.i.l.bf16 %v6363_v0 }
 0x19b   :  { %v2031_v36 = vrot.slane %v2030_v9, 4  ;;  %v2510_v23 = vmax.f32 %v2508_v15, %v2509_v19  ;;  %v2829_v18 = vunpack.i.h.bf16 %v6363_v0  ;;  %v2988_v24 = vunpack.i.l.bf16 %v6379_v40 }
 0x19c   :  { %v2191_v13 = vrot.slane %v2190_v54, 4  ;;  %v2351_v17 = vrot.slane %v2350_v2, 4  ;;  %v2670_v56 = vmax.f32 %v2668_v30, %v2669_v50  ;;  %v2989_v45 = vunpack.i.h.bf16 %v6379_v40 }
 0x19d   :  { %v2032_v25 = vmax.f32 %v2030_v9, %v2031_v36  ;;  %v2511_v20 = vrot.slane %v2510_v23, 4  ;;  %v2830_v37 = vmax.f32 %v2828_v6, %v2829_v18  ;;  %v3148_v26 = vunpack.i.l.bf16 %v6395_v33 }
 0x19e   :  { %v2192_v62 = vmax.f32 %v2190_v54, %v2191_v13  ;;  %v2352_v58 = vmax.f32 %v2350_v2, %v2351_v17  ;;  %v2671_v60 = vrot.slane %v2670_v56, 4  ;;  %v2990_v32 = vmax.f32 %v2988_v24, %v2989_v45 }
 0x19f   :  { %v2033_v29 = vrot.slane %v2032_v25, 2  ;;  %v2512_v44 = vmax.f32 %v2510_v23, %v2511_v20  ;;  %v2831_v47 = vrot.slane %v2830_v37, 4  ;;  %v3149_v28 = vunpack.i.h.bf16 %v6395_v33 }
 0x1a0   :  { %v2193_v31 = vrot.slane %v2192_v62, 2  ;;  %v2353_v48 = vrot.slane %v2352_v58, 2  ;;  %v2672_v38 = vmax.f32 %v2670_v56, %v2671_v60  ;;  %v2991_v63 = vrot.slane %v2990_v32, 4 }
 0x1a1   :  { %v2034_v57 = vmax.f32 %v2032_v25, %v2033_v29  ;;  %v2513_v34 = vrot.slane %v2512_v44, 2  ;;  %v2832_v8 = vmax.f32 %v2830_v37, %v2831_v47  ;;  %v3150_v10 = vmax.f32 %v3148_v26, %v3149_v28 }
 0x1a2   :  { %v2194_v0 = vmax.f32 %v2192_v62, %v2193_v31  ;;  %v2354_v40 = vmax.f32 %v2352_v58, %v2353_v48  ;;  %v2673_v5 = vrot.slane %v2672_v38, 2  ;;  %v2992_v53 = vmax.f32 %v2990_v32, %v2991_v63 }
 0x1a3   :  { %v2035_v35 = vrot.slane %v2034_v57, 1  ;;  %v2514_v27 = vmax.f32 %v2512_v44, %v2513_v34  ;;  %v2833_v7 = vrot.slane %v2832_v8, 2  ;;  %v3151_v22 = vrot.slane %v3150_v10, 4 }
 0x1a4   :  { %v2195_v9 = vrot.slane %v2194_v0, 1  ;;  %v2355_v15 = vrot.slane %v2354_v40, 1  ;;  %v2674_v19 = vmax.f32 %v2672_v38, %v2673_v5  ;;  %v2993_v33 = vrot.slane %v2992_v53, 2 }
 0x1a5   :  { %v2036_v30 = vmax.f32 %v2034_v57, %v2035_v35  ;;  %v2515_v54 = vrot.slane %v2514_v27, 1  ;;  %v2834_v2 = vmax.f32 %v2832_v8, %v2833_v7  ;;  %v3152_v50 = vmax.f32 %v3150_v10, %v3151_v22 }
 0x1a6   :  { %v2196_v6 = vmax.f32 %v2194_v0, %v2195_v9  ;;  %v2356_v36 = vmax.f32 %v2354_v40, %v2355_v15  ;;  %v2675_v23 = vrot.slane %v2674_v19, 1  ;;  %v2994_v18 = vmax.f32 %v2992_v53, %v2993_v33 }
 0x1a7   :  { %v2037_v24 = vpack.i.bf16 %v2036_v30, %v2036_v30  ;;  %v2516_v13 = vmax.f32 %v2514_v27, %v2515_v54  ;;  %v2835_v17 = vrot.slane %v2834_v2, 1  ;;  %v3153_v56 = vrot.slane %v3152_v50, 2 }
 0x1a8   :  { %v2197_v45 = vpack.i.bf16 %v2196_v6, %v2196_v6  ;;  %v2357_v25 = vpack.i.bf16 %v2356_v36, %v2356_v36  ;;  %v2676_v20 = vmax.f32 %v2674_v19, %v2675_v23  ;;  %v2995_v37 = vrot.slane %v2994_v18, 1 }
 0x1a9   :  { %v2517_v26 = vpack.i.bf16 %v2516_v13, %v2516_v13  ;;  %v2836_v62 = vmax.f32 %v2834_v2, %v2835_v17  ;;  %v3154_v58 = vmax.f32 %v3152_v50, %v3153_v56  ;;  %v3272_v60 = vunpack.c.l.bf16 %v2037_v24 }
 0x1aa   :  { %v2677_v32 = vpack.i.bf16 %v2676_v20, %v2676_v20  ;;  %v2996_v29 = vmax.f32 %v2994_v18, %v2995_v37  ;;  %v3288_v44 = vunpack.c.l.bf16 %v2197_v45  ;;  %v3304_v47 = vunpack.c.l.bf16 %v2357_v25 }
 0x1ab   :  { %v2837_v28 = vpack.i.bf16 %v2836_v62, %v2836_v62  ;;  %v3155_v31 = vrot.slane %v3154_v58, 1  ;;  %v3320_v48 = vunpack.c.l.bf16 %v2517_v26  ;;  %v3400_v38 = vmul.f32 0.0625, %v7988_v16 }
 0x1ac   :  { %v2997_v63 = vpack.i.bf16 %v2996_v29, %v2996_v29  ;;  %v3336_v57 = vunpack.c.l.bf16 %v2677_v32  ;;  %v3416_v34 = vmul.f32 0.0625, %v7990_v41  ;;  %v3432_v8 = vmul.f32 0.0625, %v7992_v43 }
 0x1ad   :  { %v3156_v10 = vmax.f32 %v3154_v58, %v3155_v31  ;;  %v3352_v0 = vunpack.c.l.bf16 %v2837_v28  ;;  %v3448_v40 = vmul.f32 0.0625, %v7994_v46  ;;  %v3464_v5 = vmul.f32 0.0625, %v7996_v21 }
 0x1ae   :  { %v3368_v53 = vunpack.c.l.bf16 %v2997_v63  ;;  %v3480_v35 = vmul.f32 0.0625, %v7998_v49  ;;  %v3496_v27 = vmul.f32 0.0625, %v8000_v61  ;;  %v3512_v7 = vmul.f32 0.0625, %v8008_v3  ;;  %v8829_v63 = vld [vmem:[#allocation18_spill] sm:$0xff] }
 0x1af   :  { %v3157_v16 = vpack.i.bf16 %v3156_v10, %v3156_v10  ;;  %v3528_v22 = vadd.f32 %v3400_v38, %v3272_v60  ;;  %v3544_v9 = vadd.f32 %v3416_v34, %v3288_v44  ;;  %v3560_v15 = vadd.f32 %v3432_v8, %v3304_v47  ;;  %v8831_v8 = vld [vmem:[#allocation20_spill] sm:$0xff] }
 0x1b0   :  { %v3576_v41 = vadd.f32 %v3448_v40, %v3320_v48  ;;  %v3592_v19 = vadd.f32 %v3464_v5, %v3336_v57  ;;  %v3608_v43 = vadd.f32 %v3480_v35, %v3352_v0  ;;  %v3624_v33 = vadd.f32 %v3496_v27, %v3368_v53  ;;  %v8828_v48 = vld [vmem:[#allocation17_spill] sm:$0xff]  ;;  %v8830_v57 = vld [vmem:[#allocation19_spill] sm:$0xff] }
 0x1b1   :  { %v3384_v30 = vunpack.c.l.bf16 %v3157_v16  ;;  %v3656_v54 = vpack.c.bf16 %v3528_v22, %v3528_v22  ;;  %v3672_v46 = vpack.c.bf16 %v3544_v9, %v3544_v9  ;;  %v3688_v2 = vpack.c.bf16 %v3560_v15, %v3560_v15  ;;  %v6900_v40 = vld [vmem:[#allocation6 + $0x470] ss:$8 sps:$4 sm:$0xff]   ;;  %v6908_v27 = vld [vmem:[#allocation6 + $0x464] ss:$8 sps:$4 sm:$0xff]  }
 0x1b2   :  { %v3704_v21 = vpack.c.bf16 %v3576_v41, %v3576_v41  ;;  %v3720_v50 = vpack.c.bf16 %v3592_v19, %v3592_v19  ;;  %v3736_v6 = vpack.c.bf16 %v3608_v43, %v3608_v43  ;;  %v3752_v49 = vpack.c.bf16 %v3624_v33, %v3624_v33 }
 0x1b3   :  { %v3640_v36 = vadd.f32 %v3512_v7, %v3384_v30  ;;  %v4168_v61 = vunpack.c.l.b16 %v3656_v54  ;;  %v4184_v23 = vunpack.c.l.b16 %v3672_v46  ;;  %v4200_v3 = vunpack.c.l.b16 %v3688_v2  ;;  %v6906_v2 = vld [vmem:[#allocation6 + $0x460] ss:$8 sps:$4 sm:$0xff]  }
 0x1b4   :  { %v4216_v18 = vunpack.c.l.b16 %v3704_v21  ;;  %v4232_v24 = vunpack.c.l.b16 %v3720_v50  ;;  %v4248_v13 = vunpack.c.l.b16 %v3736_v6  ;;  %v4264_v17 = vunpack.c.l.b16 %v3752_v49 }
 0x1b5   :  { %v3768_v56 = vpack.c.bf16 %v3640_v36, %v3640_v36  ;;  %v4327_v45 = vsel %vm4292_vm0, %v4184_v23, %v4168_v61  ;;  %v202_v25 = vunpack.c.l.bf16 %v7838_v39  ;;  %v218_v20 = vunpack.c.l.bf16 %v7840_v14  ;;  %v6914_v36 = vld [vmem:[#allocation6 + $0x454] ss:$8 sps:$4 sm:$0xff]  }
 0x1b6   :  { %v4328_v37 = vsel %vm4294_vm1, %v4200_v3, %v4327_v45  ;;  %v234_v26 = vunpack.c.l.bf16 %v7842_v55  ;;  %v250_v62 = vunpack.c.l.bf16 %v7845_v51  ;;  %v266_v58 = vunpack.c.l.bf16 %v7847_v1  ;;  %v8827_v1 = vld [vmem:[#allocation16_spill] sm:$0xff] }
 0x1b7   :  { %v4280_v60 = vunpack.c.l.b16 %v3768_v56  ;;  %v4329_v32 = vsel %vm4296_vm2, %v4216_v18, %v4328_v37  ;;  %v282_v29 = vunpack.c.l.bf16 %v7849_v52  ;;  %v298_v44 = vunpack.c.l.bf16 %v7854_v4 }
 0x1b8   :  { %v4330_v47 = vsel %vm4298_vm3, %v4232_v24, %v4329_v32  ;;  %v314_v39 = vunpack.c.l.bf16 %v7856_v59  ;;  %v330_v14 = vunpack.c.l.bf16 %v7858_v11  ;;  %v346_v28 = vunpack.c.l.bf16 %v7864_v42 }
 0x1b9   :  { %v4331_v55 = vsel %vm4300_vm4, %v4248_v13, %v4330_v47  ;;  %v362_v51 = vunpack.c.l.bf16 %v7866_v12  ;;  %v378_v31 = vunpack.c.l.bf16 %v8827_v1  ;;  %v394_v38 = vunpack.c.l.bf16 %v8828_v48 }
 0x1ba   :  { %v4332_v52 = vsel %vm4302_vm5, %v4264_v17, %v4331_v55  ;;  %v410_v4 = vunpack.c.l.bf16 %v8829_v63  ;;  %v426_v34 = vunpack.c.l.bf16 %v8830_v57  ;;  %v442_v59 = vunpack.c.l.bf16 %v8831_v8  ;;  %v6918_v63 = vld [vmem:[#allocation6 + $0x440] ss:$8 sps:$4 sm:$0xff]  }
 0x1bb   :  { %v4333_v11 = vsel %vm4304_vm6, %v4280_v60, %v4332_v52  ;;  %v494_v10 = vadd.f32 %v218_v20, %v202_v25  ;;  %v606_v42 = vadd.f32 %v250_v62, %v234_v26  ;;  %v718_v0 = vadd.f32 %v282_v29, %v266_v58  ;;  %v6912_v26 = vld [vmem:[#allocation6 + $0x450] ss:$8 sps:$4 sm:$0xff]   ;;  %v6920_v29 = vld [vmem:[#allocation6 + $0x444] ss:$8 sps:$4 sm:$0xff]  }
 0x1bc   :  { %v4415_v5 = vpack.c.b16 %v4333_v11, %v4333_v11  ;;  %v830_v12 = vadd.f32 %v314_v39, %v298_v44  ;;  %v942_v53 = vadd.f32 %v346_v28, %v330_v14  ;;  %v1054_v35 = vadd.f32 %v378_v31, %v362_v51 }
 0x1bd   :  { %v495_v7 = vrot.slane %v494_v10, 4  ;;  %v607_v16 = vrot.slane %v606_v42, 4  ;;  %v719_v22 = vrot.slane %v718_v0, 4  ;;  %v1166_v9 = vadd.f32 %v410_v4, %v394_v38 }
 0x1be   :  { %5838 = vmatmul.mubr.bf16.vlgmr.msra.gmra.mxu0 %v4415_v5  ;;  %v831_v15 = vrot.slane %v830_v12, 4  ;;  %v943_v41 = vrot.slane %v942_v53, 4  ;;  %v1055_v19 = vrot.slane %v1054_v35, 4  ;;  %v1278_v43 = vadd.f32 %v442_v59, %v426_v34  ;;  %v6926_v59 = vld [vmem:[#allocation6 + $0x434] ss:$8 sps:$4 sm:$0xff]  }
 0x1bf   :  { %v496_v33 = vadd.f32 %v495_v7, %v494_v10  ;;  %v608_v30 = vadd.f32 %v607_v16, %v606_v42  ;;  %v720_v54 = vadd.f32 %v719_v22, %v718_v0  ;;  %v1167_v46 = vrot.slane %v1166_v9, 4  ;;  %5888 = vmatpush1.bf16.msra.mxu0 %v6900_v40  ;;  %v7144_v10 = vld [vmem:[#allocation3 + $0x18] sm:$0xff] }
 0x1c0   :  { %v832_v21 = vadd.f32 %v831_v15, %v830_v12  ;;  %v944_v50 = vadd.f32 %v943_v41, %v942_v53  ;;  %v1056_v6 = vadd.f32 %v1055_v19, %v1054_v35  ;;  %v1279_v49 = vrot.slane %v1278_v43, 4  ;;  %5889 = vmatprep.subr.bf16.mxu0 %v6908_v27  ;;  %v7145_v42 = vld [vmem:[#allocation3 + $0x58] sm:$0xff] }
 0x1c1   :  { %v497_v61 = vrot.slane %v496_v33, 2  ;;  %v609_v23 = vrot.slane %v608_v30, 2  ;;  %v721_v3 = vrot.slane %v720_v54, 2  ;;  %v1168_v18 = vadd.f32 %v1167_v46, %v1166_v9  ;;  %v7146_v40 = vld [vmem:[#allocation3 + $0x98] sm:$0xff] }
 0x1c2   :  { %v833_v24 = vrot.slane %v832_v21, 2  ;;  %v945_v13 = vrot.slane %v944_v50, 2  ;;  %v1057_v17 = vrot.slane %v1056_v6, 2  ;;  %v1280_v56 = vadd.f32 %v1279_v49, %v1278_v43  ;;  %v7147_v5 = vld [vmem:[#allocation3 + $0xd8] sm:$0xff] }
 0x1c3   :  { %v498_v45 = vadd.f32 %v497_v61, %v496_v33  ;;  %v610_v25 = vadd.f32 %v609_v23, %v608_v30  ;;  %v722_v20 = vadd.f32 %v721_v3, %v720_v54  ;;  %v1169_v37 = vrot.slane %v1168_v18, 2  ;;  %5890 = vmatpush1.bf16.msra.mxu0 %v6906_v2  ;;  %v7148_v53 = vld [vmem:[#allocation3 + $0x118] sm:$0xff] }
 0x1c4   :  { %v834_v62 = vadd.f32 %v833_v24, %v832_v21  ;;  %v946_v58 = vadd.f32 %v945_v13, %v944_v50  ;;  %v1058_v60 = vadd.f32 %v1057_v17, %v1056_v6  ;;  %v1281_v32 = vrot.slane %v1280_v56, 2  ;;  %5891 = vmatprep.subr.bf16.mxu0 %v6914_v36  ;;  %v7149_v35 = vld [vmem:[#allocation3 + $0x158] sm:$0xff]  ;;  %v6932_v13 = vld [vmem:[#allocation6 + $0x424] ss:$8 sps:$4 sm:$0xff]  }
 0x1c5   :  { %v499_v44 = vrot.slane %v498_v45, 1  ;;  %v611_v47 = vrot.slane %v610_v25, 1  ;;  %v723_v39 = vrot.slane %v722_v20, 1  ;;  %v1170_v14 = vadd.f32 %v1169_v37, %v1168_v18  ;;  %v7150_v16 = vld [vmem:[#allocation3 + $0x198] sm:$0xff] }
 0x1c6   :  { %v835_v28 = vrot.slane %v834_v62, 1  ;;  %v947_v55 = vrot.slane %v946_v58, 1  ;;  %v1059_v51 = vrot.slane %v1058_v60, 1  ;;  %v1282_v1 = vadd.f32 %v1281_v32, %v1280_v56  ;;  %v7151_v22 = vld [vmem:[#allocation3 + $0x1d8] sm:$0xff] }
 0x1c7   :  { %v8051_v31 = vadd.f32 %v499_v44, %v498_v45  ;;  %v8053_v48 = vadd.f32 %v611_v47, %v610_v25  ;;  %v8055_v38 = vadd.f32 %v723_v39, %v722_v20  ;;  %v1171_v52 = vrot.slane %v1170_v14, 1  ;;  %5892 = vmatpush1.bf16.msra.mxu0 %v6912_v26  ;;  %v7152_v15 = vld [vmem:[#allocation3 + $0x218] sm:$0xff]  ;;  %v6930_v44 = vld [vmem:[#allocation6 + $0x420] ss:$8 sps:$4 sm:$0xff]  }
 0x1c8   :  { %v8057_v4 = vadd.f32 %v835_v28, %v834_v62  ;;  %v8059_v57 = vadd.f32 %v947_v55, %v946_v58  ;;  %v8061_v34 = vadd.f32 %v1059_v51, %v1058_v60  ;;  %v1283_v8 = vrot.slane %v1282_v1, 1  ;;  %5893 = vmatprep.subr.bf16.mxu0 %v6920_v29  ;;  %v7153_v41 = vld [vmem:[#allocation3 + $0x258] sm:$0xff] }
 0x1c9   :  { %v8063_v11 = vadd.f32 %v1171_v52, %v1170_v14  ;;  %v6285_v0 = vcombine.low %v7144_v10, %v7145_v42  ;;  %v6301_v12 = vcombine.low %v7146_v40, %v7147_v5  ;;  %v6317_v27 = vcombine.low %v7148_v53, %v7149_v35  ;;  %v7154_v43 = vld [vmem:[#allocation3 + $0x298] sm:$0xff] }
 0x1ca   :  { %v8065_v7 = vadd.f32 %v1283_v8, %v1282_v1  ;;  %v6333_v9 = vcombine.low %v7150_v16, %v7151_v22  ;;  %v6349_v19 = vcombine.low %v7152_v15, %v7153_v41  ;;  %v7155_v33 = vld [vmem:[#allocation3 + $0x2d8] sm:$0xff] }
 0x1cb   :  { %v6365_v30 = vcombine.low %v7154_v43, %v7155_v33  ;;  %v7156_v54 = vld [vmem:[#allocation3 + $0x318] sm:$0xff]  ;;  %v2048_v49 = vunpack.i.l.bf16 %v6285_v0  ;;  %v2049_v36 = vunpack.i.h.bf16 %v6285_v0  ;;  %5894 = vmatpush1.bf16.msra.mxu0 %v6918_v63  ;;  %v2208_v23 = vunpack.i.l.bf16 %v6301_v12 }
 0x1cc   :  { %v7157_v46 = vld [vmem:[#allocation3 + $0x358] sm:$0xff]  ;;  %v2209_v3 = vunpack.i.h.bf16 %v6301_v12  ;;  %v2368_v18 = vunpack.i.l.bf16 %v6317_v27  ;;  %v2369_v24 = vunpack.i.h.bf16 %v6317_v27  ;;  %5895 = vmatprep.subr.bf16.mxu0 %v6926_v59  ;;  %v2528_v56 = vunpack.i.l.bf16 %v6333_v9 }
 0x1cd   :  { %v6381_v2 = vcombine.low %v7156_v54, %v7157_v46  ;;  %v7158_v21 = vld [vmem:[#allocation3 + $0x398] sm:$0xff]  ;;  %v2050_v17 = vmax.f32 %v2048_v49, %v2049_v36  ;;  %v2529_v45 = vunpack.i.h.bf16 %v6333_v9  ;;  %v2688_v25 = vunpack.i.l.bf16 %v6349_v19  ;;  %v6944_v9 = vld [vmem:[#allocation6 + $0x404] ss:$8 sps:$4 sm:$0xff]   ;;  %v6942_v49 = vld [vmem:[#allocation6 + $0x400] ss:$8 sps:$4 sm:$0xff]  }
 0x1ce   :  { %v7159_v50 = vld [vmem:[#allocation3 + $0x3d8] sm:$0xff]  ;;  %v2210_v20 = vmax.f32 %v2208_v23, %v2209_v3  ;;  %v2370_v37 = vmax.f32 %v2368_v18, %v2369_v24  ;;  %v2689_v26 = vunpack.i.h.bf16 %v6349_v19  ;;  %v2848_v62 = vunpack.i.l.bf16 %v6365_v30 }
 0x1cf   :  { %v6397_v6 = vcombine.low %v7158_v21, %v7159_v50  ;;  %v6924_v61 = vld [vmem:[#allocation6 + $0x430] ss:$8 sps:$4 sm:$0xff]   ;;  %v2051_v58 = vrot.slane %v2050_v17, 4  ;;  %v2530_v60 = vmax.f32 %v2528_v56, %v2529_v45  ;;  %v2849_v32 = vunpack.i.h.bf16 %v6365_v30  ;;  %v6938_v55 = vld [vmem:[#allocation6 + $0x414] ss:$8 sps:$4 sm:$0xff]  }
 0x1d0   :  { %v3008_v29 = vunpack.i.l.bf16 %v6381_v2  ;;  %5896 = vmatpush1.bf16.msra.mxu0 %v6924_v61  ;;  %v2211_v47 = vrot.slane %v2210_v20, 4  ;;  %v2371_v39 = vrot.slane %v2370_v37, 4  ;;  %v2690_v14 = vmax.f32 %v2688_v25, %v2689_v26  ;;  %v6936_v53 = vld [vmem:[#allocation6 + $0x410] ss:$8 sps:$4 sm:$0xff]   ;;  %v6950_v18 = vld [vmem:[#allocation6 + $0x4f4] ss:$8 sps:$4 sm:$0xff]  }
 0x1d1   :  { %v3009_v28 = vunpack.i.h.bf16 %v6381_v2  ;;  %5897 = vmatprep.subr.bf16.mxu0 %v6932_v13  ;;  %v2052_v51 = vmax.f32 %v2050_v17, %v2051_v58  ;;  %v2531_v1 = vrot.slane %v2530_v60, 4  ;;  %v2850_v52 = vmax.f32 %v2848_v62, %v2849_v32  ;;  %v6948_v32 = vld [vmem:[#allocation6 + $0x4f0] ss:$8 sps:$4 sm:$0xff]  }
 0x1d2   :  { %v3168_v63 = vunpack.i.l.bf16 %v6397_v6  ;;  %v2212_v8 = vmax.f32 %v2210_v20, %v2211_v47  ;;  %v2372_v59 = vmax.f32 %v2370_v37, %v2371_v39  ;;  %v2691_v10 = vrot.slane %v2690_v14, 4 }
 0x1d3   :  { %v3010_v42 = vmax.f32 %v3008_v29, %v3009_v28  ;;  %v2053_v0 = vrot.slane %v2052_v51, 2  ;;  %v2532_v40 = vmax.f32 %v2530_v60, %v2531_v1  ;;  %v2851_v5 = vrot.slane %v2850_v52, 4 }
 0x1d4   :  { %v3169_v12 = vunpack.i.h.bf16 %v6397_v6  ;;  %5898 = vmatpush1.bf16.msra.mxu0 %v6930_v44  ;;  %v2213_v35 = vrot.slane %v2212_v8, 2  ;;  %v2373_v27 = vrot.slane %v2372_v59, 2  ;;  %v2692_v16 = vmax.f32 %v2690_v14, %v2691_v10  ;;  %v6956_v14 = vld [vmem:[#allocation6 + $0x4e4] ss:$8 sps:$4 sm:$0xff]  }
 0x1d5   :  { %v3011_v22 = vrot.slane %v3010_v42, 4  ;;  %5899 = vmatprep.subr.bf16.mxu0 %v6938_v55  ;;  %v2054_v15 = vmax.f32 %v2052_v51, %v2053_v0  ;;  %v2533_v41 = vrot.slane %v2532_v40, 2  ;;  %v2852_v19 = vmax.f32 %v2850_v52, %v2851_v5  ;;  %v6954_v5 = vld [vmem:[#allocation6 + $0x4e0] ss:$8 sps:$4 sm:$0xff]  }
 0x1d6   :  { %v3170_v43 = vmax.f32 %v3168_v63, %v3169_v12  ;;  %v2214_v33 = vmax.f32 %v2212_v8, %v2213_v35  ;;  %v2374_v30 = vmax.f32 %v2372_v59, %v2373_v27  ;;  %v2693_v54 = vrot.slane %v2692_v16, 2 }
 0x1d7   :  { %v3012_v46 = vmax.f32 %v3010_v42, %v3011_v22  ;;  %v2055_v2 = vrot.slane %v2054_v15, 1  ;;  %v2534_v21 = vmax.f32 %v2532_v40, %v2533_v41  ;;  %v2853_v50 = vrot.slane %v2852_v19, 2 }
 0x1d8   :  { %v3171_v6 = vrot.slane %v3170_v43, 4  ;;  %5900 = vmatpush1.bf16.msra.mxu0 %v6936_v53  ;;  %v2215_v36 = vrot.slane %v2214_v33, 1  ;;  %v2375_v61 = vrot.slane %v2374_v30, 1  ;;  %v2694_v23 = vmax.f32 %v2692_v16, %v2693_v54  ;;  %v6962_v16 = vld [vmem:[#allocation6 + $0x4d4] ss:$8 sps:$4 sm:$0xff]  }
 0x1d9   :  { %v3013_v3 = vrot.slane %v3012_v46, 2  ;;  %5901 = vmatprep.subr.bf16.mxu0 %v6944_v9  ;;  %v2056_v24 = vmax.f32 %v2054_v15, %v2055_v2  ;;  %v2535_v13 = vrot.slane %v2534_v21, 1  ;;  %v2854_v17 = vmax.f32 %v2852_v19, %v2853_v50 }
 0x1da   :  { %v3172_v56 = vmax.f32 %v3170_v43, %v3171_v6  ;;  %v2216_v45 = vmax.f32 %v2214_v33, %v2215_v36  ;;  %v2376_v25 = vmax.f32 %v2374_v30, %v2375_v61  ;;  %v2695_v20 = vrot.slane %v2694_v23, 1 }
 0x1db   :  { %v3014_v37 = vmax.f32 %v3012_v46, %v3013_v3  ;;  %v2057_v26 = vpack.i.bf16 %v2056_v24, %v2056_v24  ;;  %v2536_v62 = vmax.f32 %v2534_v21, %v2535_v13  ;;  %v2855_v58 = vrot.slane %v2854_v17, 1 }
 0x1dc   :  { %v3173_v60 = vrot.slane %v3172_v56, 2  ;;  %5902 = vmatpush1.bf16.msra.mxu0 %v6942_v49  ;;  %v2217_v29 = vpack.i.bf16 %v2216_v45, %v2216_v45  ;;  %v2377_v44 = vpack.i.bf16 %v2376_v25, %v2376_v25  ;;  %v2696_v47 = vmax.f32 %v2694_v23, %v2695_v20 }
 0x1dd   :  { %v3015_v39 = vrot.slane %v3014_v37, 1  ;;  %5903 = vmatprep.subr.bf16.mxu0 %v6950_v18  ;;  %v2537_v28 = vpack.i.bf16 %v2536_v62, %v2536_v62  ;;  %v2856_v55 = vmax.f32 %v2854_v17, %v2855_v58  ;;  %v3274_v1 = vunpack.c.l.bf16 %v2057_v26  ;;  %v6966_v17 = vld [vmem:[#allocation6 + $0x4c0] ss:$8 sps:$4 sm:$0xff]   ;;  %v6974_v26 = vld [vmem:[#allocation6 + $0x4b4] ss:$8 sps:$4 sm:$0xff]  }
 0x1de   :  { %v3174_v51 = vmax.f32 %v3172_v56, %v3173_v60  ;;  %v2697_v52 = vpack.i.bf16 %v2696_v47, %v2696_v47  ;;  %v3290_v8 = vunpack.c.l.bf16 %v2217_v29  ;;  %v3306_v59 = vunpack.c.l.bf16 %v2377_v44  ;;  %v8075_v56 = vld [vmem:[#allocation3 + $0x20] sm:$0xff] }
 0x1df   :  { %v3016_v63 = vmax.f32 %v3014_v37, %v3015_v39  ;;  %v2857_v10 = vpack.i.bf16 %v2856_v55, %v2856_v55  ;;  %v3322_v0 = vunpack.c.l.bf16 %v2537_v28  ;;  %v3402_v40 = vmul.f32 0.0625, %v8051_v31  ;;  %v8077_v62 = vld [vmem:[#allocation3 + $0x60] sm:$0xff] }
 0x1e0   :  { %v3175_v42 = vrot.slane %v3174_v51, 1  ;;  %5904 = vmatpush2.bf16.msra.mxu0 %v6948_v32  ;;  %v3338_v53 = vunpack.c.l.bf16 %v2697_v52  ;;  %v3418_v35 = vmul.f32 0.0625, %v8053_v48  ;;  %v3434_v27 = vmul.f32 0.0625, %v8055_v38  ;;  %v6960_v38 = vld [vmem:[#allocation6 + $0x4d0] ss:$8 sps:$4 sm:$0xff]   ;;  %v8079_v58 = vld [vmem:[#allocation3 + $0xa0] sm:$0xff] }
 0x1e1   :  { %v3017_v12 = vpack.i.bf16 %v3016_v63, %v3016_v63  ;;  %5905 = vmatprep.subr.bf16.mxu0 %v6956_v14  ;;  %v3354_v9 = vunpack.c.l.bf16 %v2857_v10  ;;  %v3450_v15 = vmul.f32 0.0625, %v8057_v4  ;;  %v3466_v41 = vmul.f32 0.0625, %v8059_v57  ;;  %v6968_v4 = vld [vmem:[#allocation6 + $0x4c4] ss:$8 sps:$4 sm:$0xff]  }
 0x1e2   :  { %v3176_v22 = vmax.f32 %v3174_v51, %v3175_v42  ;;  %v3482_v43 = vmul.f32 0.0625, %v8061_v34  ;;  %v3498_v31 = vmul.f32 0.0625, %v8063_v11  ;;  %v3514_v33 = vmul.f32 0.0625, %v8065_v7  ;;  %v8082_v29 = vld [vmem:[#allocation3 + $0xe0] sm:$0xff]  ;;  %v6972_v42 = vld [vmem:[#allocation6 + $0x4b0] ss:$8 sps:$4 sm:$0xff]  }
 0x1e3   :  { %v3370_v19 = vunpack.c.l.bf16 %v3017_v12  ;;  %v3530_v54 = vadd.f32 %v3402_v40, %v3274_v1  ;;  %v3546_v48 = vadd.f32 %v3418_v35, %v3290_v8  ;;  %v3562_v46 = vadd.f32 %v3434_v27, %v3306_v59  ;;  %v8084_v44 = vld [vmem:[#allocation3 + $0x120] sm:$0xff] }
 0x1e4   :  { %v3177_v30 = vpack.i.bf16 %v3176_v22, %v3176_v22  ;;  %5906 = vmatpush2.bf16.msra.mxu0 %v6954_v5  ;;  %v3578_v2 = vadd.f32 %v3450_v15, %v3322_v0  ;;  %v3594_v21 = vadd.f32 %v3466_v41, %v3338_v53  ;;  %v3610_v50 = vadd.f32 %v3482_v43, %v3354_v9  ;;  %v8086_v47 = vld [vmem:[#allocation3 + $0x160] sm:$0xff] }
 0x1e5   :  { %v3626_v6 = vadd.f32 %v3498_v31, %v3370_v19  ;;  %5907 = vmatprep.subr.bf16.mxu0 %v6962_v16  ;;  %v3658_v49 = vpack.c.bf16 %v3530_v54, %v3530_v54  ;;  %v3674_v36 = vpack.c.bf16 %v3546_v48, %v3546_v48  ;;  %v3690_v34 = vpack.c.bf16 %v3562_v46, %v3562_v46  ;;  %v8091_v55 = vld [vmem:[#allocation3 + $0x1a0] sm:$0xff] }
 0x1e6   :  { %v3386_v57 = vunpack.c.l.bf16 %v3177_v30  ;;  %v3706_v61 = vpack.c.bf16 %v3578_v2, %v3578_v2  ;;  %v3722_v11 = vpack.c.bf16 %v3594_v21, %v3594_v21  ;;  %v3738_v23 = vpack.c.bf16 %v3610_v50, %v3610_v50  ;;  %v8093_v51 = vld [vmem:[#allocation3 + $0x1e0] sm:$0xff]  ;;  %v6903_v50 = vld [vmem:[#allocation6 + $0x570] ss:$8 sps:$4 sm:$0xff]  }
 0x1e7   :  { %v3754_v7 = vpack.c.bf16 %v3626_v6, %v3626_v6  ;;  %v4170_v18 = vunpack.c.l.b16 %v3658_v49  ;;  %v4186_v24 = vunpack.c.l.b16 %v3674_v36  ;;  %v4202_v13 = vunpack.c.l.b16 %v3690_v34  ;;  %v8095_v1 = vld [vmem:[#allocation3 + $0x220] sm:$0xff] }
 0x1e8   :  { %v3642_v3 = vadd.f32 %v3514_v33, %v3386_v57  ;;  %5908 = vmatpush2.bf16.msra.mxu0 %v6960_v38  ;;  %v4218_v45 = vunpack.c.l.b16 %v3706_v61  ;;  %v4234_v25 = vunpack.c.l.b16 %v3722_v11  ;;  %v4250_v20 = vunpack.c.l.b16 %v3738_v23  ;;  %v8101_v0 = vld [vmem:[#allocation3 + $0x260] sm:$0xff]  ;;  %v6986_v61 = vld [vmem:[#allocation6 + $0x494] ss:$8 sps:$4 sm:$0xff]  }
 0x1e9   :  { %v4266_v37 = vunpack.c.l.b16 %v3754_v7  ;;  %5909 = vmatprep.subr.bf16.mxu0 %v6968_v4  ;;  %v4341_v32 = vsel %vm4292_vm0, %v4186_v24, %v4170_v18  ;;  %v205_v39 = vunpack.c.h.bf16 %v8075_v56  ;;  %v221_v14 = vunpack.c.h.bf16 %v8077_v62  ;;  %v8103_v40 = vld [vmem:[#allocation3 + $0x2a0] sm:$0xff] }
 0x1ea   :  { %v3770_v60 = vpack.c.bf16 %v3642_v3, %v3642_v3  ;;  %v4342_v28 = vsel %vm4294_vm1, %v4202_v13, %v4341_v32  ;;  %v237_v52 = vunpack.c.h.bf16 %v8079_v58  ;;  %v253_v63 = vunpack.c.h.bf16 %v8082_v29  ;;  %v6980_v35 = vld [vmem:[#allocation6 + $0x4a4] ss:$8 sps:$4 sm:$0xff]   ;;  %v6978_v6 = vld [vmem:[#allocation6 + $0x4a0] ss:$8 sps:$4 sm:$0xff]  }
 0x1eb   :  { %v269_v8 = vunpack.c.h.bf16 %v8084_v44  ;;  %v4343_v10 = vsel %vm4296_vm2, %v4218_v45, %v4342_v28  ;;  %v285_v5 = vunpack.c.h.bf16 %v8086_v47  ;;  %v301_v12 = vunpack.c.h.bf16 %v8091_v55  ;;  %v8108_v27 = vld [vmem:[#allocation3 + $0x2e0] sm:$0xff]  ;;  %v6917_v28 = vld [vmem:[#allocation6 + $0x554] ss:$8 sps:$4 sm:$0xff]  }
 0x1ec   :  { %v4282_v59 = vunpack.c.l.b16 %v3770_v60  ;;  %5910 = vmatpush2.bf16.msra.mxu0 %v6966_v17  ;;  %v4344_v53 = vsel %vm4298_vm3, %v4234_v25, %v4343_v10  ;;  %v8110_v16 = vld [vmem:[#allocation3 + $0x320] sm:$0xff]  ;;  %v317_v22 = vunpack.c.h.bf16 %v8093_v51  ;;  %v333_v9 = vunpack.c.h.bf16 %v8095_v1 }
 0x1ed   :  { %5911 = vmatprep.subr.bf16.mxu0 %v6974_v26  ;;  %v349_v15 = vunpack.c.h.bf16 %v8101_v0  ;;  %v4345_v41 = vsel %vm4300_vm4, %v4250_v20, %v4344_v53  ;;  %v8116_v19 = vld [vmem:[#allocation3 + $0x360] sm:$0xff]  ;;  %v365_v33 = vunpack.c.h.bf16 %v8103_v40  ;;  %v381_v30 = vunpack.c.h.bf16 %v8108_v27  ;;  %v6984_v26 = vld [vmem:[#allocation6 + $0x490] ss:$8 sps:$4 sm:$0xff]  }
 0x1ee   :  { %v8118_v43 = vld [vmem:[#allocation3 + $0x3a0] sm:$0xff]  ;;  %v397_v54 = vunpack.c.h.bf16 %v8110_v16  ;;  %v4346_v48 = vsel %vm4302_vm5, %v4266_v37, %v4345_v41  ;;  %v413_v46 = vunpack.c.h.bf16 %v8116_v19  ;;  %v515_v4 = vadd.f32 %v221_v14, %v205_v39  ;;  %v6915_v41 = vld [vmem:[#allocation6 + $0x550] ss:$8 sps:$4 sm:$0xff]  }
 0x1ef   :  { %v8120_v31 = vld [vmem:[#allocation3 + $0x3e0] sm:$0xff]  ;;  %v429_v38 = vunpack.c.h.bf16 %v8118_v43  ;;  %v4347_v21 = vsel %vm4304_vm6, %v4282_v59, %v4346_v48  ;;  %v627_v57 = vadd.f32 %v253_v63, %v237_v52  ;;  %v739_v49 = vadd.f32 %v285_v5, %v269_v8 }
 0x1f0   :  { %v445_v2 = vunpack.c.h.bf16 %v8120_v31  ;;  %5912 = vmatpush2.bf16.msra.mxu0 %v6972_v42  ;;  %v4417_v36 = vpack.c.b16 %v4347_v21, %v4347_v21  ;;  %v6911_v34 = vld [vmem:[#allocation6 + $0x564] ss:$8 sps:$4 sm:$0xff]   ;;  %v851_v11 = vadd.f32 %v317_v22, %v301_v12  ;;  %v963_v23 = vadd.f32 %v349_v15, %v333_v9  ;;  %v6909_v37 = vld [vmem:[#allocation6 + $0x560] ss:$8 sps:$4 sm:$0xff]  }
 0x1f1   :  { %5913 = vmatprep.subr.bf16.mxu0 %v6980_v35  ;;  %v1075_v7 = vadd.f32 %v381_v30, %v365_v33  ;;  %v516_v3 = vrot.slane %v515_v4, 4  ;;  %v628_v18 = vrot.slane %v627_v57, 4  ;;  %v740_v24 = vrot.slane %v739_v49, 4  ;;  %v6992_v52 = vld [vmem:[#allocation6 + $0x484] ss:$8 sps:$4 sm:$0xff]  }
 0x1f2   :  { %v1187_v13 = vadd.f32 %v413_v46, %v397_v54  ;;  %5879 = vmatmul.mubr.bf16.vlgmr.msra.gmra.mxu1 %v4417_v36  ;;  %v852_v17 = vrot.slane %v851_v11, 4  ;;  %v964_v45 = vrot.slane %v963_v23, 4  ;;  %v1299_v20 = vadd.f32 %v445_v2, %v429_v38  ;;  %v6990_v33 = vld [vmem:[#allocation6 + $0x480] ss:$8 sps:$4 sm:$0xff]   ;;  %v6923_v38 = vld [vmem:[#allocation6 + $0x544] ss:$8 sps:$4 sm:$0xff]  }
 0x1f3   :  { %v1076_v25 = vrot.slane %v1075_v7, 4  ;;  %5929 = vmatpush1.bf16.msra.mxu1 %v6903_v50  ;;  %v517_v60 = vadd.f32 %v516_v3, %v515_v4  ;;  %v629_v32 = vadd.f32 %v628_v18, %v627_v57  ;;  %v741_v39 = vadd.f32 %v740_v24, %v739_v49 }
 0x1f4   :  { %5914 = vmatpush2.bf16.msra.mxu0 %v6978_v6  ;;  %v1188_v14 = vrot.slane %v1187_v13, 4  ;;  %5930 = vmatprep.subr.bf16.mxu1 %v6911_v34  ;;  %v853_v63 = vadd.f32 %v852_v17, %v851_v11  ;;  %v965_v8 = vadd.f32 %v964_v45, %v963_v23  ;;  %v1300_v10 = vrot.slane %v1299_v20, 4  ;;  %v6929_v17 = vld [vmem:[#allocation6 + $0x534] ss:$8 sps:$4 sm:$0xff]  }
 0x1f5   :  { %5915 = vmatprep.subr.bf16.mxu0 %v6986_v61  ;;  %v1077_v59 = vadd.f32 %v1076_v25, %v1075_v7  ;;  %v518_v42 = vrot.slane %v517_v60, 2  ;;  %v630_v5 = vrot.slane %v629_v32, 2  ;;  %v742_v12 = vrot.slane %v741_v39, 2  ;;  %v6921_v7 = vld [vmem:[#allocation6 + $0x540] ss:$8 sps:$4 sm:$0xff]  }
 0x1f6   :  { %v1189_v53 = vadd.f32 %v1188_v14, %v1187_v13  ;;  %v854_v35 = vrot.slane %v853_v63, 2  ;;  %v966_v22 = vrot.slane %v965_v8, 2  ;;  %v1301_v15 = vadd.f32 %v1300_v10, %v1299_v20 }
 0x1f7   :  { %v1078_v9 = vrot.slane %v1077_v59, 2  ;;  %5931 = vmatpush1.bf16.msra.mxu1 %v6909_v37  ;;  %v519_v30 = vadd.f32 %v518_v42, %v517_v60  ;;  %v631_v54 = vadd.f32 %v630_v5, %v629_v32  ;;  %v743_v48 = vadd.f32 %v742_v12, %v741_v39 }
 0x1f8   :  { %5916 = vmatpush2.bf16.msra.mxu0 %v6984_v26  ;;  %v1190_v46 = vrot.slane %v1189_v53, 2  ;;  %5932 = vmatprep.subr.bf16.mxu1 %v6917_v28  ;;  %v855_v2 = vadd.f32 %v854_v35, %v853_v63  ;;  %v967_v21 = vadd.f32 %v966_v22, %v965_v8  ;;  %v1302_v6 = vrot.slane %v1301_v15, 2  ;;  %v6927_v8 = vld [vmem:[#allocation6 + $0x530] ss:$8 sps:$4 sm:$0xff]   ;;  %v6941_v35 = vld [vmem:[#allocation6 + $0x514] ss:$8 sps:$4 sm:$0xff]  }
 0x1f9   :  { %5917 = vmatprep.subr.bf16.mxu0 %v6992_v52  ;;  %v1079_v50 = vadd.f32 %v1078_v9, %v1077_v59  ;;  %v520_v4 = vrot.slane %v519_v30, 1  ;;  %v632_v57 = vrot.slane %v631_v54, 1  ;;  %v744_v49 = vrot.slane %v743_v48, 1 }
 0x1fa   :  { %v1191_v36 = vadd.f32 %v1190_v46, %v1189_v53  ;;  %v856_v34 = vrot.slane %v855_v2, 1  ;;  %v968_v61 = vrot.slane %v967_v21, 1  ;;  %v1303_v23 = vadd.f32 %v1302_v6, %v1301_v15 }
 0x1fb   :  { %v1080_v11 = vrot.slane %v1079_v50, 1  ;;  %5933 = vmatpush1.bf16.msra.mxu1 %v6915_v41  ;;  %v8130_v3 = vadd.f32 %v520_v4, %v519_v30  ;;  %v8132_v18 = vadd.f32 %v632_v57, %v631_v54  ;;  %v8134_v24 = vadd.f32 %v744_v49, %v743_v48 }
 0x1fc   :  { %5918 = vmatpush2.bf16.msra.mxu0 %v6990_v33  ;;  %v1192_v13 = vrot.slane %v1191_v36, 1  ;;  %5934 = vmatprep.subr.bf16.mxu1 %v6923_v38  ;;  %v8136_v45 = vadd.f32 %v856_v34, %v855_v2  ;;  %v8138_v25 = vadd.f32 %v968_v61, %v967_v21  ;;  %v1304_v37 = vrot.slane %v1303_v23, 1 }
 0x1fd   :  { %v8140_v20 = vadd.f32 %v1080_v11, %v1079_v50  ;;  %v6288_v60 = vcombine.high %v8075_v56, %v8077_v62  ;;  %v6304_v32 = vcombine.high %v8079_v58, %v8082_v29  ;;  %v6320_v39 = vcombine.high %v8084_v44, %v8086_v47  ;;  %v6935_v44 = vld [vmem:[#allocation6 + $0x524] ss:$8 sps:$4 sm:$0xff]   ;;  %v6939_v50 = vld [vmem:[#allocation6 + $0x510] ss:$8 sps:$4 sm:$0xff]  }
 0x1fe   :  { %v8142_v26 = vadd.f32 %v1192_v13, %v1191_v36  ;;  %v8150_v14 = vadd.f32 %v1304_v37, %v1303_v23  ;;  %v6336_v28 = vcombine.high %v8091_v55, %v8093_v51  ;;  %v6352_v52 = vcombine.high %v8095_v1, %v8101_v0  ;;  %v6947_v36 = vld [vmem:[#allocation6 + $0x504] ss:$8 sps:$4 sm:$0xff]  }
 0x1ff   :  { %v6368_v63 = vcombine.high %v8103_v40, %v8108_v27  ;;  %5935 = vmatpush1.bf16.msra.mxu1 %v6921_v7  ;;  %v6384_v56 = vcombine.high %v8110_v16, %v8116_v19  ;;  %v6400_v62 = vcombine.high %v8118_v43, %v8120_v31  ;;  %v2078_v58 = vunpack.i.l.bf16 %v6288_v60  ;;  %v6933_v16 = vld [vmem:[#allocation6 + $0x520] ss:$8 sps:$4 sm:$0xff]  }
 0x200   :  { %v2079_v29 = vunpack.i.h.bf16 %v6288_v60  ;;  %5936 = vmatprep.subr.bf16.mxu1 %v6929_v17  ;;  %v2238_v47 = vunpack.i.l.bf16 %v6304_v32  ;;  %v2239_v55 = vunpack.i.h.bf16 %v6304_v32  ;;  %v2398_v51 = vunpack.i.l.bf16 %v6320_v39 }
 0x201   :  { %v2399_v59 = vunpack.i.h.bf16 %v6320_v39  ;;  %v2558_v0 = vunpack.i.l.bf16 %v6336_v28  ;;  %v2559_v10 = vunpack.i.h.bf16 %v6336_v28  ;;  %v2718_v40 = vunpack.i.l.bf16 %v6352_v52 }
 0x202   :  { %v2080_v1 = vmax.f32 %v2078_v58, %v2079_v29  ;;  %v2240_v27 = vmax.f32 %v2238_v47, %v2239_v55  ;;  %v2719_v5 = vunpack.i.h.bf16 %v6352_v52  ;;  %v2878_v12 = vunpack.i.l.bf16 %v6368_v63  ;;  %v6945_v52 = vld [vmem:[#allocation6 + $0x500] ss:$8 sps:$4 sm:$0xff]   ;;  %v6953_v58 = vld [vmem:[#allocation6 + $0x5f4] ss:$8 sps:$4 sm:$0xff]  }
 0x203   :  { %v2400_v42 = vmax.f32 %v2398_v51, %v2399_v59  ;;  %5937 = vmatpush1.bf16.msra.mxu1 %v6927_v8  ;;  %v2560_v43 = vmax.f32 %v2558_v0, %v2559_v10  ;;  %v2879_v31 = vunpack.i.h.bf16 %v6368_v63  ;;  %v3038_v53 = vunpack.i.l.bf16 %v6384_v56 }
 0x204   :  { %v2081_v19 = vrot.slane %v2080_v1, 4  ;;  %5938 = vmatprep.subr.bf16.mxu1 %v6935_v44  ;;  %v2241_v22 = vrot.slane %v2240_v27, 4  ;;  %v2720_v15 = vmax.f32 %v2718_v40, %v2719_v5  ;;  %v3039_v41 = vunpack.i.h.bf16 %v6384_v56  ;;  %v6951_v5 = vld [vmem:[#allocation6 + $0x5f0] ss:$8 sps:$4 sm:$0xff]  }
 0x205   :  { %v2401_v9 = vrot.slane %v2400_v42, 4  ;;  %v2561_v30 = vrot.slane %v2560_v43, 4  ;;  %v2880_v54 = vmax.f32 %v2878_v12, %v2879_v31  ;;  %v3198_v48 = vunpack.i.l.bf16 %v6400_v62  ;;  %v6959_v31 = vld [vmem:[#allocation6 + $0x5e4] ss:$8 sps:$4 sm:$0xff]  }
 0x206   :  { %v2082_v33 = vmax.f32 %v2080_v1, %v2081_v19  ;;  %v2242_v46 = vmax.f32 %v2240_v27, %v2241_v22  ;;  %v2721_v2 = vrot.slane %v2720_v15, 4  ;;  %v3040_v21 = vmax.f32 %v3038_v53, %v3039_v41 }
 0x207   :  { %v2402_v38 = vmax.f32 %v2400_v42, %v2401_v9  ;;  %5939 = vmatpush1.bf16.msra.mxu1 %v6933_v16  ;;  %v2562_v4 = vmax.f32 %v2560_v43, %v2561_v30  ;;  %v2881_v57 = vrot.slane %v2880_v54, 4  ;;  %v3199_v49 = vunpack.i.h.bf16 %v6400_v62 }
 0x208   :  { %v2083_v6 = vrot.slane %v2082_v33, 2  ;;  %5940 = vmatprep.subr.bf16.mxu1 %v6941_v35  ;;  %v2243_v34 = vrot.slane %v2242_v46, 2  ;;  %v2722_v11 = vmax.f32 %v2720_v15, %v2721_v2  ;;  %v3041_v23 = vrot.slane %v3040_v21, 4  ;;  %v6957_v2 = vld [vmem:[#allocation6 + $0x5e0] ss:$8 sps:$4 sm:$0xff]  }
 0x209   :  { %v2403_v61 = vrot.slane %v2402_v38, 2  ;;  %v2563_v13 = vrot.slane %v2562_v4, 2  ;;  %v2882_v17 = vmax.f32 %v2880_v54, %v2881_v57  ;;  %v3200_v37 = vmax.f32 %v3198_v48, %v3199_v49  ;;  %v6965_v57 = vld [vmem:[#allocation6 + $0x5d4] ss:$8 sps:$4 sm:$0xff]  }
 0x20a   :  { %v2084_v7 = vmax.f32 %v2082_v33, %v2083_v6  ;;  %v2244_v60 = vmax.f32 %v2242_v46, %v2243_v34  ;;  %v2723_v39 = vrot.slane %v2722_v11, 2  ;;  %v3042_v28 = vmax.f32 %v3040_v21, %v3041_v23 }
 0x20b   :  { %v2404_v32 = vmax.f32 %v2402_v38, %v2403_v61  ;;  %5941 = vmatpush1.bf16.msra.mxu1 %v6939_v50  ;;  %v2564_v8 = vmax.f32 %v2562_v4, %v2563_v13  ;;  %v2883_v56 = vrot.slane %v2882_v17, 2  ;;  %v3201_v62 = vrot.slane %v3200_v37, 4 }
 0x20c   :  { %v2085_v63 = vrot.slane %v2084_v7, 1  ;;  %5942 = vmatprep.subr.bf16.mxu1 %v6947_v36  ;;  %v2245_v29 = vrot.slane %v2244_v60, 1  ;;  %v2724_v47 = vmax.f32 %v2722_v11, %v2723_v39  ;;  %v3043_v55 = vrot.slane %v3042_v28, 2 }
 0x20d   :  { %v2405_v44 = vrot.slane %v2404_v32, 1  ;;  %v2565_v59 = vrot.slane %v2564_v8, 1  ;;  %v2884_v1 = vmax.f32 %v2882_v17, %v2883_v56  ;;  %v3202_v0 = vmax.f32 %v3200_v37, %v3201_v62 }
 0x20e   :  { %v2086_v51 = vmax.f32 %v2084_v7, %v2085_v63  ;;  %v2246_v10 = vmax.f32 %v2244_v60, %v2245_v29  ;;  %v2725_v27 = vrot.slane %v2724_v47, 1  ;;  %v3044_v42 = vmax.f32 %v3042_v28, %v3043_v55 }
 0x20f   :  { %v2406_v40 = vmax.f32 %v2404_v32, %v2405_v44  ;;  %5943 = vmatpush1.bf16.msra.mxu1 %v6945_v52  ;;  %v2566_v16 = vmax.f32 %v2564_v8, %v2565_v59  ;;  %v2885_v19 = vrot.slane %v2884_v1, 1  ;;  %v3203_v43 = vrot.slane %v3202_v0, 2  ;;  %v6963_v32 = vld [vmem:[#allocation6 + $0x5d0] ss:$8 sps:$4 sm:$0xff]  }
 0x210   :  { %v2087_v12 = vpack.i.bf16 %v2086_v51, %v2086_v51  ;;  %5944 = vmatprep.subr.bf16.mxu1 %v6953_v58  ;;  %v2247_v53 = vpack.i.bf16 %v2246_v10, %v2246_v10  ;;  %v2726_v22 = vmax.f32 %v2724_v47, %v2725_v27  ;;  %v3045_v9 = vrot.slane %v3044_v42, 1  ;;  %v6969_v47 = vld [vmem:[#allocation6 + $0x5c0] ss:$8 sps:$4 sm:$0xff]   ;;  %v6977_v10 = vld [vmem:[#allocation6 + $0x5b4] ss:$8 sps:$4 sm:$0xff]  }
 0x211   :  { %v2407_v35 = vpack.i.bf16 %v2406_v40, %v2406_v40  ;;  %v2567_v15 = vpack.i.bf16 %v2566_v16, %v2566_v16  ;;  %v2886_v41 = vmax.f32 %v2884_v1, %v2885_v19  ;;  %v3204_v33 = vmax.f32 %v3202_v0, %v3203_v43  ;;  %v8170_v0 = vld [vmem:[#allocation3 + $0x28] sm:$0xff] }
 0x212   :  { %v3277_v30 = vunpack.c.l.bf16 %v2087_v12  ;;  %v2727_v54 = vpack.i.bf16 %v2726_v22, %v2726_v22  ;;  %v3046_v48 = vmax.f32 %v3044_v42, %v3045_v9  ;;  %v3293_v46 = vunpack.c.l.bf16 %v2247_v53  ;;  %v8172_v12 = vld [vmem:[#allocation3 + $0x68] sm:$0xff] }
 0x213   :  { %v3309_v38 = vunpack.c.l.bf16 %v2407_v35  ;;  %5945 = vmatpush2.bf16.msra.mxu1 %v6951_v5  ;;  %v2887_v21 = vpack.i.bf16 %v2886_v41, %v2886_v41  ;;  %v3205_v50 = vrot.slane %v3204_v33, 1  ;;  %v3325_v6 = vunpack.c.l.bf16 %v2567_v15  ;;  %v8174_v16 = vld [vmem:[#allocation3 + $0xa8] sm:$0xff] }
 0x214   :  { %v3405_v4 = vmul.f32 0.0625, %v8130_v3  ;;  %5946 = vmatprep.subr.bf16.mxu1 %v6959_v31  ;;  %v3047_v49 = vpack.i.bf16 %v3046_v48, %v3046_v48  ;;  %v3341_v36 = vunpack.c.l.bf16 %v2727_v54  ;;  %v3421_v34 = vmul.f32 0.0625, %v8132_v18  ;;  %v8177_v31 = vld [vmem:[#allocation3 + $0xe8] sm:$0xff] }
 0x215   :  { %v3437_v61 = vmul.f32 0.0625, %v8134_v24  ;;  %v3206_v11 = vmax.f32 %v3204_v33, %v3205_v50  ;;  %v3357_v23 = vunpack.c.l.bf16 %v2887_v21  ;;  %v3453_v7 = vmul.f32 0.0625, %v8136_v45  ;;  %v6971_v24 = vld [vmem:[#allocation6 + $0x5c4] ss:$8 sps:$4 sm:$0xff]  }
 0x216   :  { %v3469_v13 = vmul.f32 0.0625, %v8138_v25  ;;  %v3373_v17 = vunpack.c.l.bf16 %v3047_v49  ;;  %v3485_v37 = vmul.f32 0.0625, %v8140_v20  ;;  %v3501_v60 = vmul.f32 0.0625, %v8142_v26  ;;  %v8179_v53 = vld [vmem:[#allocation3 + $0x128] sm:$0xff] }
 0x217   :  { %v3517_v3 = vmul.f32 0.0625, %v8150_v14  ;;  %5947 = vmatpush2.bf16.msra.mxu1 %v6957_v2  ;;  %v3207_v39 = vpack.i.bf16 %v3206_v11, %v3206_v11  ;;  %v3533_v28 = vadd.f32 %v3405_v4, %v3277_v30  ;;  %v3549_v18 = vadd.f32 %v3421_v34, %v3293_v46  ;;  %v8181_v35 = vld [vmem:[#allocation3 + $0x168] sm:$0xff] }
 0x218   :  { %v3565_v52 = vadd.f32 %v3437_v61, %v3309_v38  ;;  %5948 = vmatprep.subr.bf16.mxu1 %v6965_v57  ;;  %v3581_v63 = vadd.f32 %v3453_v7, %v3325_v6  ;;  %v3597_v8 = vadd.f32 %v3469_v13, %v3341_v36  ;;  %v3613_v45 = vadd.f32 %v3485_v37, %v3357_v23  ;;  %v8186_v41 = vld [vmem:[#allocation3 + $0x1a8] sm:$0xff]  ;;  %v6975_v38 = vld [vmem:[#allocation6 + $0x5b0] ss:$8 sps:$4 sm:$0xff]  }
 0x219   :  { %v3629_v56 = vadd.f32 %v3501_v60, %v3373_v17  ;;  %v3389_v25 = vunpack.c.l.bf16 %v3207_v39  ;;  %v3661_v62 = vpack.c.bf16 %v3533_v28, %v3533_v28  ;;  %v3677_v58 = vpack.c.bf16 %v3549_v18, %v3549_v18  ;;  %v8188_v33 = vld [vmem:[#allocation3 + $0x1e8] sm:$0xff] }
 0x21a   :  { %v3693_v20 = vpack.c.bf16 %v3565_v52, %v3565_v52  ;;  %v3709_v29 = vpack.c.bf16 %v3581_v63, %v3581_v63  ;;  %v3725_v26 = vpack.c.bf16 %v3597_v8, %v3597_v8  ;;  %v3741_v44 = vpack.c.bf16 %v3613_v45, %v3613_v45  ;;  %v8190_v30 = vld [vmem:[#allocation3 + $0x228] sm:$0xff] }
 0x21b   :  { %v3757_v14 = vpack.c.bf16 %v3629_v56, %v3629_v56  ;;  %5949 = vmatpush2.bf16.msra.mxu1 %v6963_v32  ;;  %v3645_v55 = vadd.f32 %v3517_v3, %v3389_v25  ;;  %v4173_v51 = vunpack.c.l.b16 %v3661_v62  ;;  %v4189_v59 = vunpack.c.l.b16 %v3677_v58  ;;  %v8196_v50 = vld [vmem:[#allocation3 + $0x268] sm:$0xff]  ;;  %v6989_v62 = vld [vmem:[#allocation6 + $0x594] ss:$8 sps:$4 sm:$0xff]  }
 0x21c   :  { %v4205_v1 = vunpack.c.l.b16 %v3693_v20  ;;  %5950 = vmatprep.subr.bf16.mxu1 %v6971_v24  ;;  %v4221_v40 = vunpack.c.l.b16 %v3709_v29  ;;  %v4237_v27 = vunpack.c.l.b16 %v3725_v26  ;;  %v4253_v42 = vunpack.c.l.b16 %v3741_v44  ;;  %v8198_v6 = vld [vmem:[#allocation3 + $0x2a8] sm:$0xff] }
 0x21d   :  { %v4269_v5 = vunpack.c.l.b16 %v3757_v14  ;;  %v3773_v19 = vpack.c.bf16 %v3645_v55, %v3645_v55  ;;  %v4362_v43 = vsel %vm4292_vm0, %v4189_v59, %v4173_v51  ;;  %v207_v22 = vunpack.c.h.bf16 %v8170_v0  ;;  %v6983_v49 = vld [vmem:[#allocation6 + $0x5a4] ss:$8 sps:$4 sm:$0xff]   ;;  %v6981_v63 = vld [vmem:[#allocation6 + $0x5a0] ss:$8 sps:$4 sm:$0xff]  }
 0x21e   :  { %v223_v9 = vunpack.c.h.bf16 %v8172_v12  ;;  %v4363_v15 = vsel %vm4294_vm1, %v4205_v1, %v4362_v43  ;;  %v239_v54 = vunpack.c.h.bf16 %v8174_v16  ;;  %v255_v48 = vunpack.c.h.bf16 %v8177_v31  ;;  %v8203_v34 = vld [vmem:[#allocation3 + $0x2e8] sm:$0xff] }
 0x21f   :  { %v271_v46 = vunpack.c.h.bf16 %v8179_v53  ;;  %5951 = vmatpush2.bf16.msra.mxu1 %v6969_v47  ;;  %v4285_v2 = vunpack.c.l.b16 %v3773_v19  ;;  %v4364_v21 = vsel %vm4296_vm2, %v4221_v40, %v4363_v15  ;;  %v287_v4 = vunpack.c.h.bf16 %v8181_v35  ;;  %8832 = vst [vmem:[#allocation16_spill] sm:$0xff] %v8203_v34  ;;  %v8205_v61 = vld [vmem:[#allocation3 + $0x328] sm:$0xff]  ;;  %v6987_v40 = vld [vmem:[#allocation6 + $0x590] ss:$8 sps:$4 sm:$0xff]  }
 0x220   :  { %v303_v57 = vunpack.c.h.bf16 %v8186_v41  ;;  %5952 = vmatprep.subr.bf16.mxu1 %v6977_v10  ;;  %v4365_v36 = vsel %vm4298_vm3, %v4237_v27, %v4364_v21  ;;  %8833 = vst [vmem:[#allocation17_spill] sm:$0xff] %v8205_v61  ;;  %v319_v11 = vunpack.c.h.bf16 %v8188_v33  ;;  %v335_v23 = vunpack.c.h.bf16 %v8190_v30  ;;  %v8211_v17 = vld [vmem:[#allocation3 + $0x368] sm:$0xff] }
 0x221   :  { %v351_v7 = vunpack.c.h.bf16 %v8196_v50  ;;  %v4366_v13 = vsel %vm4300_vm4, %v4253_v42, %v4365_v36  ;;  %8834 = vst [vmem:[#allocation18_spill] sm:$0xff] %v8211_v17  ;;  %v8213_v37 = vld [vmem:[#allocation3 + $0x3a8] sm:$0xff]  ;;  %v367_v3 = vunpack.c.h.bf16 %v8198_v6  ;;  %v383_v32 = vunpack.c.h.bf16 %v8203_v34 }
 0x222   :  { %8835 = vst [vmem:[#allocation19_spill] sm:$0xff] %v8213_v37  ;;  %v8215_v60 = vld [vmem:[#allocation3 + $0x3e8] sm:$0xff]  ;;  %v399_v39 = vunpack.c.h.bf16 %v8205_v61  ;;  %v4367_v28 = vsel %vm4302_vm5, %v4269_v5, %v4366_v13  ;;  %v415_v18 = vunpack.c.h.bf16 %v8211_v17  ;;  %v431_v52 = vunpack.c.h.bf16 %v8213_v37 }
 0x223   :  { %8836 = vst [vmem:[#allocation20_spill] sm:$0xff] %v8215_v60  ;;  %v447_v24 = vunpack.c.h.bf16 %v8215_v60  ;;  %5953 = vmatpush2.bf16.msra.mxu1 %v6975_v38  ;;  %v4368_v8 = vsel %vm4304_vm6, %v4285_v2, %v4367_v28  ;;  %v529_v45 = vadd.f32 %v223_v9, %v207_v22  ;;  %v641_v56 = vadd.f32 %v255_v48, %v239_v54  ;;  %v6995_v43 = vld [vmem:[#allocation6 + $0x584] ss:$8 sps:$4 sm:$0xff]   ;;  %v6993_v36 = vld [vmem:[#allocation6 + $0x580] ss:$8 sps:$4 sm:$0xff]  }
 0x224   :  { %v753_v25 = vadd.f32 %v287_v4, %v271_v46  ;;  %5954 = vmatprep.subr.bf16.mxu1 %v6983_v49  ;;  %v4420_v58 = vpack.c.b16 %v4368_v8, %v4368_v8  ;;  %v865_v20 = vadd.f32 %v319_v11, %v303_v57  ;;  %v977_v29 = vadd.f32 %v351_v7, %v335_v23 }
 0x225   :  { %v1089_v26 = vadd.f32 %v383_v32, %v367_v3  ;;  %v530_v44 = vrot.slane %v529_v45, 4  ;;  %v642_v14 = vrot.slane %v641_v56, 4  ;;  %v1201_v55 = vadd.f32 %v415_v18, %v399_v39 }
 0x226   :  { %v754_v47 = vrot.slane %v753_v25, 4  ;;  %5919 = vmatprep.mubr.bf16.mxu0 %v4420_v58  ;;  %v866_v51 = vrot.slane %v865_v20, 4  ;;  %v978_v59 = vrot.slane %v977_v29, 4  ;;  %v1313_v10 = vadd.f32 %v447_v24, %v431_v52 }
 0x227   :  { %v1090_v1 = vrot.slane %v1089_v26, 4  ;;  %5955 = vmatpush2.bf16.msra.mxu1 %v6981_v63  ;;  %v531_v27 = vadd.f32 %v530_v44, %v529_v45  ;;  %v643_v42 = vadd.f32 %v642_v14, %v641_v56  ;;  %v1202_v19 = vrot.slane %v1201_v55, 4 }
 0x228   :  { %v755_v5 = vadd.f32 %v754_v47, %v753_v25  ;;  %5956 = vmatprep.subr.bf16.mxu1 %v6989_v62  ;;  %v867_v22 = vadd.f32 %v866_v51, %v865_v20  ;;  %v979_v9 = vadd.f32 %v978_v59, %v977_v29  ;;  %v1314_v54 = vrot.slane %v1313_v10, 4 }
 0x229   :  { %v1091_v15 = vadd.f32 %v1090_v1, %v1089_v26  ;;  %v532_v48 = vrot.slane %v531_v27, 2  ;;  %v644_v46 = vrot.slane %v643_v42, 2  ;;  %v1203_v2 = vadd.f32 %v1202_v19, %v1201_v55 }
 0x22a   :  { %v756_v38 = vrot.slane %v755_v5, 2  ;;  %v868_v21 = vrot.slane %v867_v22, 2  ;;  %v980_v4 = vrot.slane %v979_v9, 2  ;;  %v1315_v49 = vadd.f32 %v1314_v54, %v1313_v10 }
 0x22b   :  { %v1092_v57 = vrot.slane %v1091_v15, 2  ;;  %5957 = vmatpush2.bf16.msra.mxu1 %v6987_v40  ;;  %v533_v11 = vadd.f32 %v532_v48, %v531_v27  ;;  %v645_v23 = vadd.f32 %v644_v46, %v643_v42  ;;  %v1204_v13 = vrot.slane %v1203_v2, 2 }
 0x22c   :  { %v757_v7 = vadd.f32 %v756_v38, %v755_v5  ;;  %5958 = vmatprep.subr.bf16.mxu1 %v6995_v43  ;;  %v869_v3 = vadd.f32 %v868_v21, %v867_v22  ;;  %v981_v32 = vadd.f32 %v980_v4, %v979_v9  ;;  %v1316_v28 = vrot.slane %v1315_v49, 2 }
 0x22d   :  { %v1093_v39 = vadd.f32 %v1092_v57, %v1091_v15  ;;  %v534_v18 = vrot.slane %v533_v11, 1  ;;  %v646_v52 = vrot.slane %v645_v23, 1  ;;  %v1205_v63 = vadd.f32 %v1204_v13, %v1203_v2 }
 0x22e   :  { %v758_v24 = vrot.slane %v757_v7, 1  ;;  %v870_v8 = vrot.slane %v869_v3, 1  ;;  %v982_v45 = vrot.slane %v981_v32, 1  ;;  %v1317_v25 = vadd.f32 %v1316_v28, %v1315_v49 }
 0x22f   :  { %v1094_v56 = vrot.slane %v1093_v39, 1  ;;  %5959 = vmatpush2.bf16.msra.mxu1 %v6993_v36  ;;  %v8225_v62 = vadd.f32 %v534_v18, %v533_v11  ;;  %v8227_v58 = vadd.f32 %v646_v52, %v645_v23  ;;  %v1206_v29 = vrot.slane %v1205_v63, 1 }
 0x230   :  { %v8229_v20 = vadd.f32 %v758_v24, %v757_v7  ;;  %v8231_v26 = vadd.f32 %v870_v8, %v869_v3  ;;  %v8233_v44 = vadd.f32 %v982_v45, %v981_v32  ;;  %v1318_v47 = vrot.slane %v1317_v25, 1 }
 0x231   :  { %v8235_v14 = vadd.f32 %v1094_v56, %v1093_v39  ;;  %v8237_v55 = vadd.f32 %v1206_v29, %v1205_v63  ;;  %v6290_v51 = vcombine.high %v8170_v0, %v8172_v12  ;;  %v6306_v59 = vcombine.high %v8174_v16, %v8177_v31 }
 0x232   :  { %v6322_v1 = vcombine.high %v8179_v53, %v8181_v35  ;;  %v8245_v10 = vadd.f32 %v1318_v47, %v1317_v25  ;;  %v6338_v40 = vcombine.high %v8186_v41, %v8188_v33  ;;  %v6354_v27 = vcombine.high %v8190_v30, %v8196_v50 }
 0x233   :  { %v6370_v42 = vcombine.high %v8198_v6, %v8203_v34  ;;  %v6386_v5 = vcombine.high %v8205_v61, %v8211_v17  ;;  %v6402_v19 = vcombine.high %v8213_v37, %v8215_v60  ;;  %v2098_v43 = vunpack.i.l.bf16 %v6290_v51 }
 0x234   :  { %v2099_v22 = vunpack.i.h.bf16 %v6290_v51  ;;  %v2258_v9 = vunpack.i.l.bf16 %v6306_v59  ;;  %v2259_v15 = vunpack.i.h.bf16 %v6306_v59  ;;  %v2418_v54 = vunpack.i.l.bf16 %v6322_v1 }
 0x235   :  { %v2419_v48 = vunpack.i.h.bf16 %v6322_v1  ;;  %v2578_v38 = vunpack.i.l.bf16 %v6338_v40  ;;  %v2579_v2 = vunpack.i.h.bf16 %v6338_v40  ;;  %v2738_v21 = vunpack.i.l.bf16 %v6354_v27 }
 0x236   :  { %v2100_v46 = vmax.f32 %v2098_v43, %v2099_v22  ;;  %v2260_v4 = vmax.f32 %v2258_v9, %v2259_v15  ;;  %v2739_v49 = vunpack.i.h.bf16 %v6354_v27  ;;  %v2898_v36 = vunpack.i.l.bf16 %v6370_v42 }
 0x237   :  { %v2420_v57 = vmax.f32 %v2418_v54, %v2419_v48  ;;  %v2580_v23 = vmax.f32 %v2578_v38, %v2579_v2  ;;  %v2899_v7 = vunpack.i.h.bf16 %v6370_v42  ;;  %v3058_v13 = vunpack.i.l.bf16 %v6386_v5 }
 0x238   :  { %v2101_v11 = vrot.slane %v2100_v46, 4  ;;  %v2261_v3 = vrot.slane %v2260_v4, 4  ;;  %v2740_v39 = vmax.f32 %v2738_v21, %v2739_v49  ;;  %v3059_v28 = vunpack.i.h.bf16 %v6386_v5 }
 0x239   :  { %v2421_v32 = vrot.slane %v2420_v57, 4  ;;  %v2581_v52 = vrot.slane %v2580_v23, 4  ;;  %v2900_v24 = vmax.f32 %v2898_v36, %v2899_v7  ;;  %v3218_v63 = vunpack.i.l.bf16 %v6402_v19 }
 0x23a   :  { %v2102_v18 = vmax.f32 %v2100_v46, %v2101_v11  ;;  %v2262_v8 = vmax.f32 %v2260_v4, %v2261_v3  ;;  %v2741_v56 = vrot.slane %v2740_v39, 4  ;;  %v3060_v25 = vmax.f32 %v3058_v13, %v3059_v28  ;;  %v6998_v11 = vld [vmem:[#allocation6 + $0x674] ss:$8 sps:$4 sm:$0xff]  }
 0x23b   :  { %v2422_v45 = vmax.f32 %v2420_v57, %v2421_v32  ;;  %v2582_v47 = vmax.f32 %v2580_v23, %v2581_v52  ;;  %v2901_v51 = vrot.slane %v2900_v24, 4  ;;  %v3219_v59 = vunpack.i.h.bf16 %v6402_v19  ;;  %5969 = vmatprep.subr.bf16.mxu0 %v6998_v11  ;;  %v7001_v52 = vld [vmem:[#allocation6 + $0x774] ss:$8 sps:$4 sm:$0xff]  }
 0x23c   :  { %v2103_v29 = vrot.slane %v2102_v18, 2  ;;  %v2263_v1 = vrot.slane %v2262_v8, 2  ;;  %v2742_v27 = vmax.f32 %v2740_v39, %v2741_v56  ;;  %v3061_v42 = vrot.slane %v3060_v25, 4  ;;  %6010 = vmatprep.subr.bf16.mxu1 %v7001_v52 }
 0x23d   :  { %v2423_v40 = vrot.slane %v2422_v45, 2  ;;  %v2583_v22 = vrot.slane %v2582_v47, 2  ;;  %v2902_v9 = vmax.f32 %v2900_v24, %v2901_v51  ;;  %v3220_v5 = vmax.f32 %v3218_v63, %v3219_v59 }
 0x23e   :  { %v2104_v43 = vmax.f32 %v2102_v18, %v2103_v29  ;;  %v2264_v15 = vmax.f32 %v2262_v8, %v2263_v1  ;;  %v2743_v48 = vrot.slane %v2742_v27, 2  ;;  %v3062_v46 = vmax.f32 %v3060_v25, %v3061_v42 }
 0x23f   :  { %v2424_v54 = vmax.f32 %v2422_v45, %v2423_v40  ;;  %v2584_v2 = vmax.f32 %v2582_v47, %v2583_v22  ;;  %v2903_v21 = vrot.slane %v2902_v9, 2  ;;  %v3221_v4 = vrot.slane %v3220_v5, 4 }
 0x240   :  { %v2105_v38 = vrot.slane %v2104_v43, 1  ;;  %v2265_v57 = vrot.slane %v2264_v15, 1  ;;  %v2744_v36 = vmax.f32 %v2742_v27, %v2743_v48  ;;  %v3063_v19 = vrot.slane %v3062_v46, 2 }
 0x241   :  { %v2425_v49 = vrot.slane %v2424_v54, 1  ;;  %v2585_v7 = vrot.slane %v2584_v2, 1  ;;  %v2904_v13 = vmax.f32 %v2902_v9, %v2903_v21  ;;  %v3222_v3 = vmax.f32 %v3220_v5, %v3221_v4 }
 0x242   :  { %v2106_v23 = vmax.f32 %v2104_v43, %v2105_v38  ;;  %v2266_v32 = vmax.f32 %v2264_v15, %v2265_v57  ;;  %v2745_v28 = vrot.slane %v2744_v36, 1  ;;  %v3064_v18 = vmax.f32 %v3062_v46, %v3063_v19 }
 0x243   :  { %v2426_v39 = vmax.f32 %v2424_v54, %v2425_v49  ;;  %v2586_v63 = vmax.f32 %v2584_v2, %v2585_v7  ;;  %v2905_v8 = vrot.slane %v2904_v13, 1  ;;  %v3223_v45 = vrot.slane %v3222_v3, 2 }
 0x244   :  { %v2107_v24 = vpack.i.bf16 %v2106_v23, %v2106_v23  ;;  %v2267_v56 = vpack.i.bf16 %v2266_v32, %v2266_v32  ;;  %v2746_v29 = vmax.f32 %v2744_v36, %v2745_v28  ;;  %v3065_v47 = vrot.slane %v3064_v18, 1 }
 0x245   :  { %v2427_v25 = vpack.i.bf16 %v2426_v39, %v2426_v39  ;;  %v2587_v51 = vpack.i.bf16 %v2586_v63, %v2586_v63  ;;  %v2906_v59 = vmax.f32 %v2904_v13, %v2905_v8  ;;  %v3224_v1 = vmax.f32 %v3222_v3, %v3223_v45 }
 0x246   :  { %v3279_v40 = vunpack.c.l.bf16 %v2107_v24  ;;  %v2747_v27 = vpack.i.bf16 %v2746_v29, %v2746_v29  ;;  %v3066_v42 = vmax.f32 %v3064_v18, %v3065_v47  ;;  %v3295_v43 = vunpack.c.l.bf16 %v2267_v56 }
 0x247   :  { %v3311_v22 = vunpack.c.l.bf16 %v2427_v25  ;;  %v2907_v9 = vpack.i.bf16 %v2906_v59, %v2906_v59  ;;  %v3225_v5 = vrot.slane %v3224_v1, 1  ;;  %v3327_v15 = vunpack.c.l.bf16 %v2587_v51 }
 0x248   :  { %v3407_v54 = vmul.f32 0.0625, %v8225_v62  ;;  %v3067_v48 = vpack.i.bf16 %v3066_v42, %v3066_v42  ;;  %v3343_v46 = vunpack.c.l.bf16 %v2747_v27  ;;  %v3423_v38 = vmul.f32 0.0625, %v8227_v58  ;;  %v8269_v27 = vld [vmem:[#allocation3 + $0x60] sm:$0xff] }
 0x249   :  { %v3439_v2 = vmul.f32 0.0625, %v8229_v20  ;;  %v3226_v21 = vmax.f32 %v3224_v1, %v3225_v5  ;;  %v3359_v4 = vunpack.c.l.bf16 %v2907_v9  ;;  %v3455_v57 = vmul.f32 0.0625, %v8231_v26  ;;  %v8266_v1 = vld [vmem:[#allocation3 + $0x20] sm:$0xff] }
 0x24a   :  { %v3471_v49 = vmul.f32 0.0625, %v8233_v44  ;;  %v3375_v36 = vunpack.c.l.bf16 %v3067_v48  ;;  %v3487_v19 = vmul.f32 0.0625, %v8235_v14  ;;  %v3503_v11 = vmul.f32 0.0625, %v8237_v55  ;;  %v8276_v5 = vld [vmem:[#allocation3 + $0xe0] sm:$0xff] }
 0x24b   :  { %v3519_v23 = vmul.f32 0.0625, %v8245_v10  ;;  %v3227_v62 = vpack.i.bf16 %v3226_v21, %v3226_v21  ;;  %v3535_v7 = vadd.f32 %v3407_v54, %v3279_v40  ;;  %v3551_v13 = vadd.f32 %v3423_v38, %v3295_v43  ;;  %v8279_v54 = vld [vmem:[#allocation3 + $0x120] sm:$0xff] }
 0x24c   :  { %v3567_v3 = vadd.f32 %v3439_v2, %v3311_v22  ;;  %v3583_v58 = vadd.f32 %v3455_v57, %v3327_v15  ;;  %v3599_v32 = vadd.f32 %v3471_v49, %v3343_v46  ;;  %v3615_v20 = vadd.f32 %v3487_v19, %v3359_v4  ;;  %v8273_v22 = vld [vmem:[#allocation3 + $0xa0] sm:$0xff] }
 0x24d   :  { %v3631_v39 = vadd.f32 %v3503_v11, %v3375_v36  ;;  %v3391_v28 = vunpack.c.l.bf16 %v3227_v62  ;;  %v3663_v18 = vpack.c.bf16 %v3535_v7, %v3535_v7  ;;  %v3679_v26 = vpack.c.bf16 %v3551_v13, %v3551_v13  ;;  %v8283_v2 = vld [vmem:[#allocation3 + $0x160] sm:$0xff] }
 0x24e   :  { %v3695_v52 = vpack.c.bf16 %v3567_v3, %v3567_v3  ;;  %v3711_v44 = vpack.c.bf16 %v3583_v58, %v3583_v58  ;;  %v3727_v24 = vpack.c.bf16 %v3599_v32, %v3599_v32  ;;  %v3743_v63 = vpack.c.bf16 %v3615_v20, %v3615_v20  ;;  %v8286_v4 = vld [vmem:[#allocation3 + $0x1a0] sm:$0xff] }
 0x24f   :  { %v3759_v14 = vpack.c.bf16 %v3631_v39, %v3631_v39  ;;  %v3647_v8 = vadd.f32 %v3519_v23, %v3391_v28  ;;  %v4175_v55 = vunpack.c.l.b16 %v3663_v18  ;;  %v4191_v45 = vunpack.c.l.b16 %v3679_v26  ;;  %v8290_v36 = vld [vmem:[#allocation3 + $0x1e0] sm:$0xff] }
 0x250   :  { %v4207_v10 = vunpack.c.l.b16 %v3695_v52  ;;  %v4223_v56 = vunpack.c.l.b16 %v3711_v44  ;;  %v4239_v25 = vunpack.c.l.b16 %v3727_v24  ;;  %v4255_v29 = vunpack.c.l.b16 %v3743_v63  ;;  %v8293_v11 = vld [vmem:[#allocation3 + $0x220] sm:$0xff] }
 0x251   :  { %v4271_v47 = vunpack.c.l.b16 %v3759_v14  ;;  %v3775_v51 = vpack.c.bf16 %v3647_v8, %v3647_v8  ;;  %v4376_v59 = vsel %vm4292_vm0, %v4191_v45, %v4175_v55  ;;  %v204_v40 = vunpack.c.l.bf16 %v8266_v1  ;;  %v8296_v62 = vld [vmem:[#allocation3 + $0x260] sm:$0xff] }
 0x252   :  { %v220_v42 = vunpack.c.l.bf16 %v8269_v27  ;;  %v4377_v43 = vsel %vm4294_vm1, %v4207_v10, %v4376_v59  ;;  %v236_v9 = vunpack.c.l.bf16 %v8273_v22  ;;  %v252_v15 = vunpack.c.l.bf16 %v8276_v5  ;;  %v8300_v3 = vld [vmem:[#allocation3 + $0x2a0] sm:$0xff] }
 0x253   :  { %v268_v48 = vunpack.c.l.bf16 %v8279_v54  ;;  %v4287_v46 = vunpack.c.l.b16 %v3775_v51  ;;  %v4378_v38 = vsel %vm4296_vm2, %v4223_v56, %v4377_v43  ;;  %v284_v21 = vunpack.c.l.bf16 %v8283_v2  ;;  %v8303_v32 = vld [vmem:[#allocation3 + $0x2e0] sm:$0xff] }
 0x254   :  { %v300_v57 = vunpack.c.l.bf16 %v8286_v4  ;;  %v4379_v49 = vsel %vm4298_vm3, %v4239_v25, %v4378_v38  ;;  %v316_v19 = vunpack.c.l.bf16 %v8290_v36  ;;  %v332_v23 = vunpack.c.l.bf16 %v8293_v11  ;;  %v8306_v39 = vld [vmem:[#allocation3 + $0x320] sm:$0xff] }
 0x255   :  { %v348_v7 = vunpack.c.l.bf16 %v8296_v62  ;;  %v4380_v13 = vsel %vm4300_vm4, %v4255_v29, %v4379_v49  ;;  %v364_v58 = vunpack.c.l.bf16 %v8300_v3  ;;  %v380_v20 = vunpack.c.l.bf16 %v8303_v32  ;;  %v8310_v26 = vld [vmem:[#allocation3 + $0x360] sm:$0xff] }
 0x256   :  { %v396_v28 = vunpack.c.l.bf16 %v8306_v39  ;;  %v4381_v18 = vsel %vm4302_vm5, %v4271_v47, %v4380_v13  ;;  %v412_v52 = vunpack.c.l.bf16 %v8310_v26  ;;  %v8313_v44 = vld [vmem:[#allocation3 + $0x3a0] sm:$0xff]  ;;  %v508_v55 = vadd.f32 %v220_v42, %v204_v40 }
 0x257   :  { %v428_v24 = vunpack.c.l.bf16 %v8313_v44  ;;  %v8316_v63 = vld [vmem:[#allocation3 + $0x3e0] sm:$0xff]  ;;  %v4382_v8 = vsel %vm4304_vm6, %v4287_v46, %v4381_v18  ;;  %v620_v45 = vadd.f32 %v252_v15, %v236_v9  ;;  %v732_v10 = vadd.f32 %v284_v21, %v268_v48 }
 0x258   :  { %v444_v14 = vunpack.c.l.bf16 %v8316_v63  ;;  %v4422_v56 = vpack.c.b16 %v4382_v8, %v4382_v8  ;;  %v844_v25 = vadd.f32 %v316_v19, %v300_v57  ;;  %v956_v29 = vadd.f32 %v348_v7, %v332_v23 }
 0x259   :  { %v1068_v47 = vadd.f32 %v380_v20, %v364_v58  ;;  %v509_v51 = vrot.slane %v508_v55, 4  ;;  %v621_v59 = vrot.slane %v620_v45, 4  ;;  %v733_v43 = vrot.slane %v732_v10, 4 }
 0x25a   :  { %v1180_v38 = vadd.f32 %v412_v52, %v396_v28  ;;  %5960 = vmatprep.mubr.bf16.mxu1 %v4422_v56  ;;  %v845_v49 = vrot.slane %v844_v25, 4  ;;  %v957_v13 = vrot.slane %v956_v29, 4  ;;  %v1292_v37 = vadd.f32 %v444_v14, %v428_v24 }
 0x25b   :  { %v1069_v60 = vrot.slane %v1068_v47, 4  ;;  %v510_v17 = vadd.f32 %v509_v51, %v508_v55  ;;  %v622_v61 = vadd.f32 %v621_v59, %v620_v45  ;;  %v734_v34 = vadd.f32 %v733_v43, %v732_v10 }
 0x25c   :  { %v1181_v46 = vrot.slane %v1180_v38, 4  ;;  %v846_v40 = vadd.f32 %v845_v49, %v844_v25  ;;  %v958_v42 = vadd.f32 %v957_v13, %v956_v29  ;;  %v1293_v15 = vrot.slane %v1292_v37, 4 }
 0x25d   :  { %v1070_v9 = vadd.f32 %v1069_v60, %v1068_v47  ;;  %v511_v48 = vrot.slane %v510_v17, 2  ;;  %v623_v21 = vrot.slane %v622_v61, 2  ;;  %v735_v57 = vrot.slane %v734_v34, 2 }
 0x25e   :  { %v1182_v19 = vadd.f32 %v1181_v46, %v1180_v38  ;;  %v847_v23 = vrot.slane %v846_v40, 2  ;;  %v959_v7 = vrot.slane %v958_v42, 2  ;;  %v1294_v20 = vadd.f32 %v1293_v15, %v1292_v37 }
 0x25f   :  { %v1071_v58 = vrot.slane %v1070_v9, 2  ;;  %v512_v28 = vadd.f32 %v511_v48, %v510_v17  ;;  %v624_v18 = vadd.f32 %v623_v21, %v622_v61  ;;  %v736_v52 = vadd.f32 %v735_v57, %v734_v34 }
 0x260   :  { %v1183_v24 = vrot.slane %v1182_v19, 2  ;;  %v848_v14 = vadd.f32 %v847_v23, %v846_v40  ;;  %v960_v8 = vadd.f32 %v959_v7, %v958_v42  ;;  %v1295_v45 = vrot.slane %v1294_v20, 2 }
 0x261   :  { %v1072_v55 = vadd.f32 %v1071_v58, %v1070_v9  ;;  %v513_v10 = vrot.slane %v512_v28, 1  ;;  %v625_v56 = vrot.slane %v624_v18, 1  ;;  %v737_v60 = vrot.slane %v736_v52, 1 }
 0x262   :  { %v1184_v25 = vadd.f32 %v1183_v24, %v1182_v19  ;;  %v849_v29 = vrot.slane %v848_v14, 1  ;;  %v961_v47 = vrot.slane %v960_v8, 1  ;;  %v1296_v59 = vadd.f32 %v1295_v45, %v1294_v20 }
 0x263   :  { %v1073_v51 = vrot.slane %v1072_v55, 1  ;;  %v8320_v43 = vadd.f32 %v513_v10, %v512_v28  ;;  %v8322_v38 = vadd.f32 %v625_v56, %v624_v18  ;;  %v8324_v17 = vadd.f32 %v737_v60, %v736_v52 }
 0x264   :  { %v1185_v34 = vrot.slane %v1184_v25, 1  ;;  %v8326_v61 = vadd.f32 %v849_v29, %v848_v14  ;;  %v8328_v37 = vadd.f32 %v961_v47, %v960_v8  ;;  %v1297_v13 = vrot.slane %v1296_v59, 1 }
 0x265   :  { %v8330_v49 = vadd.f32 %v1073_v51, %v1072_v55  ;;  %v6287_v40 = vcombine.low %v8266_v1, %v8269_v27  ;;  %v6303_v42 = vcombine.low %v8273_v22, %v8276_v5  ;;  %v6319_v9 = vcombine.low %v8279_v54, %v8283_v2 }
 0x266   :  { %v8332_v46 = vadd.f32 %v1185_v34, %v1184_v25  ;;  %v8340_v15 = vadd.f32 %v1297_v13, %v1296_v59  ;;  %v6335_v48 = vcombine.low %v8286_v4, %v8290_v36  ;;  %v6351_v21 = vcombine.low %v8293_v11, %v8296_v62 }
 0x267   :  { %v6367_v57 = vcombine.low %v8300_v3, %v8303_v32  ;;  %v6383_v1 = vcombine.low %v8306_v39, %v8310_v26  ;;  %v6399_v27 = vcombine.low %v8313_v44, %v8316_v63  ;;  %v2068_v22 = vunpack.i.l.bf16 %v6287_v40 }
 0x268   :  { %v2069_v5 = vunpack.i.h.bf16 %v6287_v40  ;;  %v2228_v54 = vunpack.i.l.bf16 %v6303_v42  ;;  %v2229_v2 = vunpack.i.h.bf16 %v6303_v42  ;;  %v2388_v19 = vunpack.i.l.bf16 %v6319_v9 }
 0x269   :  { %v2389_v23 = vunpack.i.h.bf16 %v6319_v9  ;;  %v2548_v4 = vunpack.i.l.bf16 %v6335_v48  ;;  %v2549_v36 = vunpack.i.h.bf16 %v6335_v48  ;;  %v2708_v58 = vunpack.i.l.bf16 %v6351_v21 }
 0x26a   :  { %v2070_v7 = vmax.f32 %v2068_v22, %v2069_v5  ;;  %v2230_v11 = vmax.f32 %v2228_v54, %v2229_v2  ;;  %v2709_v20 = vunpack.i.h.bf16 %v6351_v21  ;;  %v2868_v3 = vunpack.i.l.bf16 %v6367_v57 }
 0x26b   :  { %v2390_v62 = vmax.f32 %v2388_v19, %v2389_v23  ;;  %v2550_v28 = vmax.f32 %v2548_v4, %v2549_v36  ;;  %v2869_v39 = vunpack.i.h.bf16 %v6367_v57  ;;  %v3028_v26 = vunpack.i.l.bf16 %v6383_v1 }
 0x26c   :  { %v2071_v32 = vrot.slane %v2070_v7, 4  ;;  %v2231_v18 = vrot.slane %v2230_v11, 4  ;;  %v2710_v63 = vmax.f32 %v2708_v58, %v2709_v20  ;;  %v3029_v52 = vunpack.i.h.bf16 %v6383_v1 }
 0x26d   :  { %v2391_v44 = vrot.slane %v2390_v62, 4  ;;  %v2551_v14 = vrot.slane %v2550_v28, 4  ;;  %v2870_v8 = vmax.f32 %v2868_v3, %v2869_v39  ;;  %v3188_v55 = vunpack.i.l.bf16 %v6399_v27 }
 0x26e   :  { %v2072_v24 = vmax.f32 %v2070_v7, %v2071_v32  ;;  %v2232_v45 = vmax.f32 %v2230_v11, %v2231_v18  ;;  %v2711_v56 = vrot.slane %v2710_v63, 4  ;;  %v3030_v60 = vmax.f32 %v3028_v26, %v3029_v52 }
 0x26f   :  { %v2392_v10 = vmax.f32 %v2390_v62, %v2391_v44  ;;  %v2552_v29 = vmax.f32 %v2550_v28, %v2551_v14  ;;  %v2871_v47 = vrot.slane %v2870_v8, 4  ;;  %v3189_v51 = vunpack.i.h.bf16 %v6399_v27 }
 0x270   :  { %v2073_v25 = vrot.slane %v2072_v24, 2  ;;  %v2233_v59 = vrot.slane %v2232_v45, 2  ;;  %v2712_v13 = vmax.f32 %v2710_v63, %v2711_v56  ;;  %v3031_v40 = vrot.slane %v3030_v60, 4 }
 0x271   :  { %v2393_v34 = vrot.slane %v2392_v10, 2  ;;  %v2553_v9 = vrot.slane %v2552_v29, 2  ;;  %v2872_v48 = vmax.f32 %v2870_v8, %v2871_v47  ;;  %v3190_v21 = vmax.f32 %v3188_v55, %v3189_v51 }
 0x272   :  { %v2074_v42 = vmax.f32 %v2072_v24, %v2073_v25  ;;  %v2234_v57 = vmax.f32 %v2232_v45, %v2233_v59  ;;  %v2713_v22 = vrot.slane %v2712_v13, 2  ;;  %v3032_v5 = vmax.f32 %v3030_v60, %v3031_v40 }
 0x273   :  { %v2394_v1 = vmax.f32 %v2392_v10, %v2393_v34  ;;  %v2554_v2 = vmax.f32 %v2552_v29, %v2553_v9  ;;  %v2873_v19 = vrot.slane %v2872_v48, 2  ;;  %v3191_v23 = vrot.slane %v3190_v21, 4 }
 0x274   :  { %v2075_v54 = vrot.slane %v2074_v42, 1  ;;  %v2235_v7 = vrot.slane %v2234_v57, 1  ;;  %v2714_v36 = vmax.f32 %v2712_v13, %v2713_v22  ;;  %v3033_v27 = vrot.slane %v3032_v5, 2 }
 0x275   :  { %v2395_v4 = vrot.slane %v2394_v1, 1  ;;  %v2555_v11 = vrot.slane %v2554_v2, 1  ;;  %v2874_v62 = vmax.f32 %v2872_v48, %v2873_v19  ;;  %v3192_v20 = vmax.f32 %v3190_v21, %v3191_v23 }
 0x276   :  { %v2076_v58 = vmax.f32 %v2074_v42, %v2075_v54  ;;  %v2236_v3 = vmax.f32 %v2234_v57, %v2235_v7  ;;  %v2715_v28 = vrot.slane %v2714_v36, 1  ;;  %v3034_v39 = vmax.f32 %v3032_v5, %v3033_v27 }
 0x277   :  { %v2396_v32 = vmax.f32 %v2394_v1, %v2395_v4  ;;  %v2556_v18 = vmax.f32 %v2554_v2, %v2555_v11  ;;  %v2875_v44 = vrot.slane %v2874_v62, 1  ;;  %v3193_v63 = vrot.slane %v3192_v20, 2 }
 0x278   :  { %v2077_v26 = vpack.i.bf16 %v2076_v58, %v2076_v58  ;;  %v2237_v52 = vpack.i.bf16 %v2236_v3, %v2236_v3  ;;  %v2716_v14 = vmax.f32 %v2714_v36, %v2715_v28  ;;  %v3035_v8 = vrot.slane %v3034_v39, 1 }
 0x279   :  { %v2397_v24 = vpack.i.bf16 %v2396_v32, %v2396_v32  ;;  %v2557_v55 = vpack.i.bf16 %v2556_v18, %v2556_v18  ;;  %v2876_v45 = vmax.f32 %v2874_v62, %v2875_v44  ;;  %v3194_v10 = vmax.f32 %v3192_v20, %v3193_v63 }
 0x27a   :  { %v3276_v56 = vunpack.c.l.bf16 %v2077_v26  ;;  %v2717_v60 = vpack.i.bf16 %v2716_v14, %v2716_v14  ;;  %v3036_v25 = vmax.f32 %v3034_v39, %v3035_v8  ;;  %v3292_v29 = vunpack.c.l.bf16 %v2237_v52 }
 0x27b   :  { %v3308_v47 = vunpack.c.l.bf16 %v2397_v24  ;;  %v2877_v51 = vpack.i.bf16 %v2876_v45, %v2876_v45  ;;  %v3195_v59 = vrot.slane %v3194_v10, 1  ;;  %v3324_v34 = vunpack.c.l.bf16 %v2557_v55 }
 0x27c   :  { %v3404_v13 = vmul.f32 0.0625, %v8320_v43  ;;  %v3037_v40 = vpack.i.bf16 %v3036_v25, %v3036_v25  ;;  %v3340_v42 = vunpack.c.l.bf16 %v2717_v60  ;;  %v3420_v9 = vmul.f32 0.0625, %v8322_v38 }
 0x27d   :  { %v3436_v48 = vmul.f32 0.0625, %v8324_v17  ;;  %v3196_v21 = vmax.f32 %v3194_v10, %v3195_v59  ;;  %v3356_v57 = vunpack.c.l.bf16 %v2877_v51  ;;  %v3452_v1 = vmul.f32 0.0625, %v8326_v61 }
 0x27e   :  { %v3468_v22 = vmul.f32 0.0625, %v8328_v37  ;;  %v3372_v5 = vunpack.c.l.bf16 %v3037_v40  ;;  %v3484_v54 = vmul.f32 0.0625, %v8330_v49  ;;  %v3500_v2 = vmul.f32 0.0625, %v8332_v46  ;;  %v8839_v40 = vld [vmem:[#allocation18_spill] sm:$0xff] }
 0x27f   :  { %v3516_v19 = vmul.f32 0.0625, %v8340_v15  ;;  %v3197_v43 = vpack.i.bf16 %v3196_v21, %v3196_v21  ;;  %v3532_v23 = vadd.f32 %v3404_v13, %v3276_v56  ;;  %v3548_v7 = vadd.f32 %v3420_v9, %v3292_v29 }
 0x280   :  { %v3564_v4 = vadd.f32 %v3436_v48, %v3308_v47  ;;  %v3580_v38 = vadd.f32 %v3452_v1, %v3324_v34  ;;  %v3596_v36 = vadd.f32 %v3468_v22, %v3340_v42  ;;  %v3612_v17 = vadd.f32 %v3484_v54, %v3356_v57  ;;  %v8838_v34 = vld [vmem:[#allocation17_spill] sm:$0xff]  ;;  %v8840_v42 = vld [vmem:[#allocation19_spill] sm:$0xff]  ;;  %v8841_v48 = vld [vmem:[#allocation20_spill] sm:$0xff] }
 0x281   :  { %v3628_v27 = vadd.f32 %v3500_v2, %v3372_v5  ;;  %v3388_v58 = vunpack.c.l.bf16 %v3197_v43  ;;  %v3660_v11 = vpack.c.bf16 %v3532_v23, %v3532_v23  ;;  %v3676_v61 = vpack.c.bf16 %v3548_v7, %v3548_v7  ;;  %v6996_v1 = vld [vmem:[#allocation6 + $0x670] ss:$8 sps:$4 sm:$0xff]   ;;  %v7004_v2 = vld [vmem:[#allocation6 + $0x664] ss:$8 sps:$4 sm:$0xff]  }
 0x282   :  { %v3692_v62 = vpack.c.bf16 %v3564_v4, %v3564_v4  ;;  %v3708_v37 = vpack.c.bf16 %v3580_v38, %v3580_v38  ;;  %v3724_v20 = vpack.c.bf16 %v3596_v36, %v3596_v36  ;;  %v3740_v3 = vpack.c.bf16 %v3612_v17, %v3612_v17 }
 0x283   :  { %v3756_v49 = vpack.c.bf16 %v3628_v27, %v3628_v27  ;;  %v3644_v32 = vadd.f32 %v3516_v19, %v3388_v58  ;;  %v4172_v46 = vunpack.c.l.b16 %v3660_v11  ;;  %v4188_v28 = vunpack.c.l.b16 %v3676_v61 }
 0x284   :  { %v4204_v15 = vunpack.c.l.b16 %v3692_v62  ;;  %v4220_v39 = vunpack.c.l.b16 %v3708_v37  ;;  %v4236_v26 = vunpack.c.l.b16 %v3724_v20  ;;  %v4252_v18 = vunpack.c.l.b16 %v3740_v3  ;;  %v7002_v62 = vld [vmem:[#allocation6 + $0x660] ss:$8 sps:$4 sm:$0xff]  }
 0x285   :  { %v4268_v44 = vunpack.c.l.b16 %v3756_v49  ;;  %v3772_v63 = vpack.c.bf16 %v3644_v32, %v3644_v32  ;;  %v4355_v52 = vsel %vm4292_vm0, %v4188_v28, %v4172_v46  ;;  %v206_v24 = vunpack.c.l.bf16 %v8170_v0  ;;  %v7010_v32 = vld [vmem:[#allocation6 + $0x654] ss:$8 sps:$4 sm:$0xff]  }
 0x286   :  { %v222_v14 = vunpack.c.l.bf16 %v8172_v12  ;;  %v4356_v8 = vsel %vm4294_vm1, %v4204_v15, %v4355_v52  ;;  %v238_v55 = vunpack.c.l.bf16 %v8174_v16  ;;  %v254_v45 = vunpack.c.l.bf16 %v8177_v31 }
 0x287   :  { %v270_v10 = vunpack.c.l.bf16 %v8179_v53  ;;  %v4284_v56 = vunpack.c.l.b16 %v3772_v63  ;;  %v4357_v60 = vsel %vm4296_vm2, %v4220_v39, %v4356_v8  ;;  %v286_v25 = vunpack.c.l.bf16 %v8181_v35  ;;  %v8837_v53 = vld [vmem:[#allocation16_spill] sm:$0xff] }
 0x288   :  { %v302_v29 = vunpack.c.l.bf16 %v8186_v41  ;;  %v4358_v47 = vsel %vm4298_vm3, %v4236_v26, %v4357_v60  ;;  %v318_v0 = vunpack.c.l.bf16 %v8188_v33  ;;  %v334_v12 = vunpack.c.l.bf16 %v8190_v30 }
 0x289   :  { %v350_v51 = vunpack.c.l.bf16 %v8196_v50  ;;  %v4359_v16 = vsel %vm4300_vm4, %v4252_v18, %v4358_v47  ;;  %v366_v31 = vunpack.c.l.bf16 %v8198_v6  ;;  %v382_v59 = vunpack.c.l.bf16 %v8837_v53 }
 0x28a   :  { %v398_v13 = vunpack.c.l.bf16 %v8838_v34  ;;  %v4360_v35 = vsel %vm4302_vm5, %v4268_v44, %v4359_v16  ;;  %v414_v41 = vunpack.c.l.bf16 %v8839_v40  ;;  %v430_v9 = vunpack.c.l.bf16 %v8840_v42  ;;  %v7014_v40 = vld [vmem:[#allocation6 + $0x640] ss:$8 sps:$4 sm:$0xff]  }
 0x28b   :  { %v446_v33 = vunpack.c.l.bf16 %v8841_v48  ;;  %v4361_v30 = vsel %vm4304_vm6, %v4284_v56, %v4360_v35  ;;  %v522_v21 = vadd.f32 %v222_v14, %v206_v24  ;;  %v634_v50 = vadd.f32 %v254_v45, %v238_v55  ;;  %v7008_v55 = vld [vmem:[#allocation6 + $0x650] ss:$8 sps:$4 sm:$0xff]  }
 0x28c   :  { %v746_v57 = vadd.f32 %v286_v25, %v270_v10  ;;  %v4419_v22 = vpack.c.b16 %v4361_v30, %v4361_v30  ;;  %v858_v6 = vadd.f32 %v318_v0, %v302_v29  ;;  %v970_v5 = vadd.f32 %v350_v51, %v334_v12  ;;  %v7016_v25 = vld [vmem:[#allocation6 + $0x644] ss:$8 sps:$4 sm:$0xff]  }
 0x28d   :  { %v1082_v54 = vadd.f32 %v382_v59, %v366_v31  ;;  %v523_v19 = vrot.slane %v522_v21, 4  ;;  %v635_v43 = vrot.slane %v634_v50, 4  ;;  %v1194_v7 = vadd.f32 %v414_v41, %v398_v13 }
 0x28e   :  { %v747_v23 = vrot.slane %v746_v57, 4  ;;  %5920 = vmatmul.mubr.bf16.vlgmr.msra.gmra.mxu0 %v4419_v22  ;;  %v859_v4 = vrot.slane %v858_v6, 4  ;;  %v971_v38 = vrot.slane %v970_v5, 4  ;;  %v1306_v17 = vadd.f32 %v446_v33, %v430_v9  ;;  %v7022_v33 = vld [vmem:[#allocation6 + $0x634] ss:$8 sps:$4 sm:$0xff]   ;;  %v7179_v22 = vld [vmem:[#allocation3 + $0xe8] sm:$0xff] }
 0x28f   :  { %v1083_v36 = vrot.slane %v1082_v54, 4  ;;  %v524_v27 = vadd.f32 %v523_v19, %v522_v21  ;;  %v636_v58 = vadd.f32 %v635_v43, %v634_v50  ;;  %v1195_v61 = vrot.slane %v1194_v7, 4  ;;  %5970 = vmatpush1.bf16.msra.mxu0 %v6996_v1  ;;  %v7176_v21 = vld [vmem:[#allocation3 + $0x28] sm:$0xff] }
 0x290   :  { %v748_v11 = vadd.f32 %v747_v23, %v746_v57  ;;  %v860_v37 = vadd.f32 %v859_v4, %v858_v6  ;;  %v972_v20 = vadd.f32 %v971_v38, %v970_v5  ;;  %v1307_v49 = vrot.slane %v1306_v17, 4  ;;  %5971 = vmatprep.subr.bf16.mxu0 %v7004_v2  ;;  %v7177_v50 = vld [vmem:[#allocation3 + $0x68] sm:$0xff] }
 0x291   :  { %v1084_v3 = vadd.f32 %v1083_v36, %v1082_v54  ;;  %v525_v46 = vrot.slane %v524_v27, 2  ;;  %v637_v28 = vrot.slane %v636_v58, 2  ;;  %v1196_v39 = vadd.f32 %v1195_v61, %v1194_v7  ;;  %v7178_v1 = vld [vmem:[#allocation3 + $0xa8] sm:$0xff] }
 0x292   :  { %v749_v15 = vrot.slane %v748_v11, 2  ;;  %v861_v26 = vrot.slane %v860_v37, 2  ;;  %v973_v18 = vrot.slane %v972_v20, 2  ;;  %v1308_v63 = vadd.f32 %v1307_v49, %v1306_v17  ;;  %v7180_v5 = vld [vmem:[#allocation3 + $0x128] sm:$0xff] }
 0x293   :  { %v1085_v44 = vrot.slane %v1084_v3, 2  ;;  %v526_v52 = vadd.f32 %v525_v46, %v524_v27  ;;  %v638_v24 = vadd.f32 %v637_v28, %v636_v58  ;;  %v1197_v8 = vrot.slane %v1196_v39, 2  ;;  %5972 = vmatpush1.bf16.msra.mxu0 %v7002_v62  ;;  %v7181_v54 = vld [vmem:[#allocation3 + $0x168] sm:$0xff]  ;;  %v7020_v46 = vld [vmem:[#allocation6 + $0x630] ss:$8 sps:$4 sm:$0xff]  }
 0x294   :  { %v750_v14 = vadd.f32 %v749_v15, %v748_v11  ;;  %v862_v45 = vadd.f32 %v861_v26, %v860_v37  ;;  %v974_v10 = vadd.f32 %v973_v18, %v972_v20  ;;  %v1309_v60 = vrot.slane %v1308_v63, 2  ;;  %5973 = vmatprep.subr.bf16.mxu0 %v7010_v32  ;;  %v7182_v43 = vld [vmem:[#allocation3 + $0x1a8] sm:$0xff] }
 0x295   :  { %v1086_v56 = vadd.f32 %v1085_v44, %v1084_v3  ;;  %v527_v29 = vrot.slane %v526_v52, 1  ;;  %v639_v47 = vrot.slane %v638_v24, 1  ;;  %v1198_v12 = vadd.f32 %v1197_v8, %v1196_v39  ;;  %v7183_v23 = vld [vmem:[#allocation3 + $0x1e8] sm:$0xff] }
 0x296   :  { %v751_v0 = vrot.slane %v750_v14, 1  ;;  %v863_v51 = vrot.slane %v862_v45, 1  ;;  %v975_v16 = vrot.slane %v974_v10, 1  ;;  %v1310_v53 = vadd.f32 %v1309_v60, %v1308_v63  ;;  %v7184_v4 = vld [vmem:[#allocation3 + $0x228] sm:$0xff] }
 0x297   :  { %v1087_v31 = vrot.slane %v1086_v56, 1  ;;  %v8383_v59 = vadd.f32 %v527_v29, %v526_v52  ;;  %v8385_v34 = vadd.f32 %v639_v47, %v638_v24  ;;  %v1199_v35 = vrot.slane %v1198_v12, 1  ;;  %5974 = vmatpush1.bf16.msra.mxu0 %v7008_v55  ;;  %v7185_v38 = vld [vmem:[#allocation3 + $0x268] sm:$0xff] }
 0x298   :  { %v8387_v13 = vadd.f32 %v751_v0, %v750_v14  ;;  %v8389_v41 = vadd.f32 %v863_v51, %v862_v45  ;;  %v8391_v42 = vadd.f32 %v975_v16, %v974_v10  ;;  %v1311_v48 = vrot.slane %v1310_v53, 1  ;;  %5975 = vmatprep.subr.bf16.mxu0 %v7016_v25  ;;  %v7186_v17 = vld [vmem:[#allocation3 + $0x2a8] sm:$0xff]  ;;  %v7034_v16 = vld [vmem:[#allocation6 + $0x614] ss:$8 sps:$4 sm:$0xff]  }
 0x299   :  { %v8393_v9 = vadd.f32 %v1087_v31, %v1086_v56  ;;  %v8395_v30 = vadd.f32 %v1199_v35, %v1198_v12  ;;  %v6289_v57 = vcombine.low %v7176_v21, %v7177_v50  ;;  %v6305_v6 = vcombine.low %v7178_v1, %v7179_v22  ;;  %v7187_v27 = vld [vmem:[#allocation3 + $0x2e8] sm:$0xff] }
 0x29a   :  { %v6321_v2 = vcombine.low %v7180_v5, %v7181_v54  ;;  %v8397_v19 = vadd.f32 %v1311_v48, %v1310_v53  ;;  %v6337_v7 = vcombine.low %v7182_v43, %v7183_v23  ;;  %v6353_v36 = vcombine.low %v7184_v4, %v7185_v38  ;;  %v7188_v11 = vld [vmem:[#allocation3 + $0x328] sm:$0xff]  ;;  %v7032_v5 = vld [vmem:[#allocation6 + $0x610] ss:$8 sps:$4 sm:$0xff]  }
 0x29b   :  { %v6369_v58 = vcombine.low %v7186_v17, %v7187_v27  ;;  %v7189_v61 = vld [vmem:[#allocation3 + $0x368] sm:$0xff]  ;;  %v2088_v49 = vunpack.i.l.bf16 %v6289_v57  ;;  %v2089_v32 = vunpack.i.h.bf16 %v6289_v57  ;;  %5976 = vmatpush1.bf16.msra.mxu0 %v7014_v40  ;;  %v2248_v28 = vunpack.i.l.bf16 %v6305_v6 }
 0x29c   :  { %v6385_v62 = vcombine.low %v7188_v11, %v7189_v61  ;;  %v7190_v37 = vld [vmem:[#allocation3 + $0x3a8] sm:$0xff]  ;;  %v2249_v15 = vunpack.i.h.bf16 %v6305_v6  ;;  %v2408_v39 = vunpack.i.l.bf16 %v6321_v2  ;;  %v2409_v26 = vunpack.i.h.bf16 %v6321_v2  ;;  %5977 = vmatprep.subr.bf16.mxu0 %v7022_v33 }
 0x29d   :  { %v7191_v20 = vld [vmem:[#allocation3 + $0x3e8] sm:$0xff]  ;;  %v2090_v44 = vmax.f32 %v2088_v49, %v2089_v32  ;;  %v2568_v63 = vunpack.i.l.bf16 %v6337_v7  ;;  %v2569_v52 = vunpack.i.h.bf16 %v6337_v7  ;;  %v2728_v24 = vunpack.i.l.bf16 %v6353_v36 }
 0x29e   :  { %v6401_v3 = vcombine.low %v7190_v37, %v7191_v20  ;;  %v7028_v18 = vld [vmem:[#allocation6 + $0x624] ss:$8 sps:$4 sm:$0xff]   ;;  %v2250_v14 = vmax.f32 %v2248_v28, %v2249_v15  ;;  %v2410_v8 = vmax.f32 %v2408_v39, %v2409_v26  ;;  %v2729_v55 = vunpack.i.h.bf16 %v6353_v36  ;;  %v7026_v29 = vld [vmem:[#allocation6 + $0x620] ss:$8 sps:$4 sm:$0xff]   ;;  %v7046_v39 = vld [vmem:[#allocation6 + $0x6f4] ss:$8 sps:$4 sm:$0xff]  }
 0x29f   :  { %v2888_v45 = vunpack.i.l.bf16 %v6369_v58  ;;  %v2091_v10 = vrot.slane %v2090_v44, 4  ;;  %v2570_v56 = vmax.f32 %v2568_v63, %v2569_v52  ;;  %v2889_v60 = vunpack.i.h.bf16 %v6369_v58  ;;  %5978 = vmatpush1.bf16.msra.mxu0 %v7020_v46  ;;  %v7040_v7 = vld [vmem:[#allocation6 + $0x604] ss:$8 sps:$4 sm:$0xff]   ;;  %v7038_v49 = vld [vmem:[#allocation6 + $0x600] ss:$8 sps:$4 sm:$0xff]  }
 0x2a0   :  { %v3048_v25 = vunpack.i.l.bf16 %v6385_v62  ;;  %v2251_v47 = vrot.slane %v2250_v14, 4  ;;  %v2411_v0 = vrot.slane %v2410_v8, 4  ;;  %v2730_v12 = vmax.f32 %v2728_v24, %v2729_v55  ;;  %5979 = vmatprep.subr.bf16.mxu0 %v7028_v18 }
 0x2a1   :  { %v3049_v51 = vunpack.i.h.bf16 %v6385_v62  ;;  %v2092_v31 = vmax.f32 %v2090_v44, %v2091_v10  ;;  %v2571_v53 = vrot.slane %v2570_v56, 4  ;;  %v2890_v35 = vmax.f32 %v2888_v45, %v2889_v60  ;;  %v7044_v60 = vld [vmem:[#allocation6 + $0x6f0] ss:$8 sps:$4 sm:$0xff]  }
 0x2a2   :  { %v3208_v40 = vunpack.i.l.bf16 %v6401_v3  ;;  %v2252_v48 = vmax.f32 %v2250_v14, %v2251_v47  ;;  %v2412_v33 = vmax.f32 %v2410_v8, %v2411_v0  ;;  %v2731_v21 = vrot.slane %v2730_v12, 4 }
 0x2a3   :  { %v3050_v50 = vmax.f32 %v3048_v25, %v3049_v51  ;;  %v2093_v57 = vrot.slane %v2092_v31, 2  ;;  %v2572_v1 = vmax.f32 %v2570_v56, %v2571_v53  ;;  %v2891_v22 = vrot.slane %v2890_v35, 4  ;;  %5980 = vmatpush1.bf16.msra.mxu0 %v7026_v29 }
 0x2a4   :  { %v3209_v6 = vunpack.i.h.bf16 %v6401_v3  ;;  %v2253_v54 = vrot.slane %v2252_v48, 2  ;;  %v2413_v2 = vrot.slane %v2412_v33, 2  ;;  %v2732_v43 = vmax.f32 %v2730_v12, %v2731_v21  ;;  %5981 = vmatprep.subr.bf16.mxu0 %v7034_v16  ;;  %v7052_v12 = vld [vmem:[#allocation6 + $0x6e4] ss:$8 sps:$4 sm:$0xff]  }
 0x2a5   :  { %v3051_v23 = vrot.slane %v3050_v50, 4  ;;  %v2094_v4 = vmax.f32 %v2092_v31, %v2093_v57  ;;  %v2573_v38 = vrot.slane %v2572_v1, 2  ;;  %v2892_v36 = vmax.f32 %v2890_v35, %v2891_v22  ;;  %v7050_v22 = vld [vmem:[#allocation6 + $0x6e0] ss:$8 sps:$4 sm:$0xff]  }
 0x2a6   :  { %v3210_v17 = vmax.f32 %v3208_v40, %v3209_v6  ;;  %v2254_v27 = vmax.f32 %v2252_v48, %v2253_v54  ;;  %v2414_v58 = vmax.f32 %v2412_v33, %v2413_v2  ;;  %v2733_v11 = vrot.slane %v2732_v43, 2 }
 0x2a7   :  { %v3052_v61 = vmax.f32 %v3050_v50, %v3051_v23  ;;  %v2095_v62 = vrot.slane %v2094_v4, 1  ;;  %v2574_v37 = vmax.f32 %v2572_v1, %v2573_v38  ;;  %v2893_v20 = vrot.slane %v2892_v36, 2  ;;  %5982 = vmatpush1.bf16.msra.mxu0 %v7032_v5 }
 0x2a8   :  { %v3211_v3 = vrot.slane %v3210_v17, 4  ;;  %v2255_v32 = vrot.slane %v2254_v27, 1  ;;  %v2415_v46 = vrot.slane %v2414_v58, 1  ;;  %v2734_v28 = vmax.f32 %v2732_v43, %v2733_v11  ;;  %5983 = vmatprep.subr.bf16.mxu0 %v7040_v7  ;;  %v7058_v43 = vld [vmem:[#allocation6 + $0x6d4] ss:$8 sps:$4 sm:$0xff]  }
 0x2a9   :  { %v3053_v15 = vrot.slane %v3052_v61, 2  ;;  %v2096_v26 = vmax.f32 %v2094_v4, %v2095_v62  ;;  %v2575_v18 = vrot.slane %v2574_v37, 1  ;;  %v2894_v44 = vmax.f32 %v2892_v36, %v2893_v20 }
 0x2aa   :  { %v3212_v63 = vmax.f32 %v3210_v17, %v3211_v3  ;;  %v2256_v52 = vmax.f32 %v2254_v27, %v2255_v32  ;;  %v2416_v24 = vmax.f32 %v2414_v58, %v2415_v46  ;;  %v2735_v14 = vrot.slane %v2734_v28, 1 }
 0x2ab   :  { %v3054_v8 = vmax.f32 %v3052_v61, %v3053_v15  ;;  %v2097_v55 = vpack.i.bf16 %v2096_v26, %v2096_v26  ;;  %v2576_v45 = vmax.f32 %v2574_v37, %v2575_v18  ;;  %v2895_v10 = vrot.slane %v2894_v44, 1  ;;  %5984 = vmatpush1.bf16.msra.mxu0 %v7038_v49 }
 0x2ac   :  { %v3213_v56 = vrot.slane %v3212_v63, 2  ;;  %v2257_v25 = vpack.i.bf16 %v2256_v52, %v2256_v52  ;;  %v2417_v29 = vpack.i.bf16 %v2416_v24, %v2416_v24  ;;  %v2736_v47 = vmax.f32 %v2734_v28, %v2735_v14  ;;  %5985 = vmatprep.subr.bf16.mxu0 %v7046_v39 }
 0x2ad   :  { %v3055_v0 = vrot.slane %v3054_v8, 1  ;;  %v2577_v51 = vpack.i.bf16 %v2576_v45, %v2576_v45  ;;  %v2896_v16 = vmax.f32 %v2894_v44, %v2895_v10  ;;  %v3278_v53 = vunpack.c.l.bf16 %v2097_v55  ;;  %v7062_v44 = vld [vmem:[#allocation6 + $0x6c0] ss:$8 sps:$4 sm:$0xff]   ;;  %v7070_v55 = vld [vmem:[#allocation6 + $0x6b4] ss:$8 sps:$4 sm:$0xff]  }
 0x2ae   :  { %v3214_v31 = vmax.f32 %v3212_v63, %v3213_v56  ;;  %v2737_v35 = vpack.i.bf16 %v2736_v47, %v2736_v47  ;;  %v3294_v48 = vunpack.c.l.bf16 %v2257_v25  ;;  %v3310_v33 = vunpack.c.l.bf16 %v2417_v29  ;;  %v8407_v63 = vld [vmem:[#allocation3 + $0x30] sm:$0xff] }
 0x2af   :  { %v3056_v40 = vmax.f32 %v3054_v8, %v3055_v0  ;;  %v2897_v21 = vpack.i.bf16 %v2896_v16, %v2896_v16  ;;  %v3326_v57 = vunpack.c.l.bf16 %v2577_v51  ;;  %v3406_v1 = vmul.f32 0.0625, %v8383_v59  ;;  %5986 = vmatpush2.bf16.msra.mxu0 %v7044_v60  ;;  %v8409_v45 = vld [vmem:[#allocation3 + $0x70] sm:$0xff] }
 0x2b0   :  { %v3215_v50 = vrot.slane %v3214_v31, 1  ;;  %v3342_v5 = vunpack.c.l.bf16 %v2737_v35  ;;  %v3422_v54 = vmul.f32 0.0625, %v8385_v34  ;;  %v3438_v2 = vmul.f32 0.0625, %v8387_v13  ;;  %5987 = vmatprep.subr.bf16.mxu0 %v7052_v12  ;;  %v7056_v13 = vld [vmem:[#allocation6 + $0x6d0] ss:$8 sps:$4 sm:$0xff]  }
 0x2b1   :  { %v3057_v6 = vpack.i.bf16 %v3056_v40, %v3056_v40  ;;  %v3358_v7 = vunpack.c.l.bf16 %v2897_v21  ;;  %v3454_v4 = vmul.f32 0.0625, %v8389_v41  ;;  %v3470_v38 = vmul.f32 0.0625, %v8391_v42  ;;  %v7064_v41 = vld [vmem:[#allocation6 + $0x6c4] ss:$8 sps:$4 sm:$0xff]   ;;  %v8411_v10 = vld [vmem:[#allocation3 + $0xb0] sm:$0xff] }
 0x2b2   :  { %v3216_v23 = vmax.f32 %v3214_v31, %v3215_v50  ;;  %v3486_v17 = vmul.f32 0.0625, %v8393_v9  ;;  %v3502_v59 = vmul.f32 0.0625, %v8395_v30  ;;  %v3518_v27 = vmul.f32 0.0625, %v8397_v19  ;;  %v8414_v25 = vld [vmem:[#allocation3 + $0xf0] sm:$0xff] }
 0x2b3   :  { %v3374_v36 = vunpack.c.l.bf16 %v3057_v6  ;;  %v3534_v11 = vadd.f32 %v3406_v1, %v3278_v53  ;;  %v3550_v34 = vadd.f32 %v3422_v54, %v3294_v48  ;;  %v3566_v61 = vadd.f32 %v3438_v2, %v3310_v33  ;;  %5988 = vmatpush2.bf16.msra.mxu0 %v7050_v22  ;;  %v8416_v29 = vld [vmem:[#allocation3 + $0x130] sm:$0xff]  ;;  %v7076_v54 = vld [vmem:[#allocation6 + $0x6a4] ss:$8 sps:$4 sm:$0xff]  }
 0x2b4   :  { %v3217_v58 = vpack.i.bf16 %v3216_v23, %v3216_v23  ;;  %v3582_v62 = vadd.f32 %v3454_v4, %v3326_v57  ;;  %v3598_v37 = vadd.f32 %v3470_v38, %v3342_v5  ;;  %v3614_v20 = vadd.f32 %v3486_v17, %v3358_v7  ;;  %5989 = vmatprep.subr.bf16.mxu0 %v7058_v43  ;;  %v8418_v47 = vld [vmem:[#allocation3 + $0x170] sm:$0xff] }
 0x2b5   :  { %v3630_v3 = vadd.f32 %v3502_v59, %v3374_v36  ;;  %v3662_v49 = vpack.c.bf16 %v3534_v11, %v3534_v11  ;;  %v3678_v32 = vpack.c.bf16 %v3550_v34, %v3550_v34  ;;  %v3694_v9 = vpack.c.bf16 %v3566_v61, %v3566_v61  ;;  %v8423_v16 = vld [vmem:[#allocation3 + $0x1b0] sm:$0xff] }
 0x2b6   :  { %v3390_v42 = vunpack.c.l.bf16 %v3217_v58  ;;  %v3710_v46 = vpack.c.bf16 %v3582_v62, %v3582_v62  ;;  %v3726_v30 = vpack.c.bf16 %v3598_v37, %v3598_v37  ;;  %v3742_v28 = vpack.c.bf16 %v3614_v20, %v3614_v20  ;;  %v8425_v31 = vld [vmem:[#allocation3 + $0x1f0] sm:$0xff] }
 0x2b7   :  { %v3758_v19 = vpack.c.bf16 %v3630_v3, %v3630_v3  ;;  %v4174_v39 = vunpack.c.l.b16 %v3662_v49  ;;  %v4190_v26 = vunpack.c.l.b16 %v3678_v32  ;;  %v4206_v18 = vunpack.c.l.b16 %v3694_v9  ;;  %5990 = vmatpush2.bf16.msra.mxu0 %v7056_v13  ;;  %v8427_v53 = vld [vmem:[#allocation3 + $0x230] sm:$0xff]  ;;  %v7074_v3 = vld [vmem:[#allocation6 + $0x6a0] ss:$8 sps:$4 sm:$0xff]   ;;  %v7007_v9 = vld [vmem:[#allocation6 + $0x764] ss:$8 sps:$4 sm:$0xff]  }
 0x2b8   :  { %v3646_v15 = vadd.f32 %v3518_v27, %v3390_v42  ;;  %v4222_v52 = vunpack.c.l.b16 %v3710_v46  ;;  %v4238_v24 = vunpack.c.l.b16 %v3726_v30  ;;  %v4254_v14 = vunpack.c.l.b16 %v3742_v28  ;;  %5991 = vmatprep.subr.bf16.mxu0 %v7064_v41  ;;  %v7068_v50 = vld [vmem:[#allocation6 + $0x6b0] ss:$8 sps:$4 sm:$0xff]   ;;  %v7082_v46 = vld [vmem:[#allocation6 + $0x694] ss:$8 sps:$4 sm:$0xff]  }
 0x2b9   :  { %v4270_v8 = vunpack.c.l.b16 %v3758_v19  ;;  %v4369_v60 = vsel %vm4292_vm0, %v4190_v26, %v4174_v39  ;;  %v209_v0 = vunpack.c.h.bf16 %v8407_v63  ;;  %v225_v12 = vunpack.c.h.bf16 %v8409_v45  ;;  %v8433_v57 = vld [vmem:[#allocation3 + $0x270] sm:$0xff] }
 0x2ba   :  { %v3774_v56 = vpack.c.bf16 %v3646_v15, %v3646_v15  ;;  %v4370_v51 = vsel %vm4294_vm1, %v4206_v18, %v4369_v60  ;;  %v241_v35 = vunpack.c.h.bf16 %v8411_v10  ;;  %v257_v40 = vunpack.c.h.bf16 %v8414_v25  ;;  %v8435_v1 = vld [vmem:[#allocation3 + $0x2b0] sm:$0xff] }
 0x2bb   :  { %v273_v48 = vunpack.c.h.bf16 %v8416_v29  ;;  %v4371_v21 = vsel %vm4296_vm2, %v4222_v52, %v4370_v51  ;;  %5992 = vmatpush2.bf16.msra.mxu0 %v7062_v44  ;;  %v289_v22 = vunpack.c.h.bf16 %v8418_v47  ;;  %v305_v6 = vunpack.c.h.bf16 %v8423_v16  ;;  %v8440_v2 = vld [vmem:[#allocation3 + $0x2f0] sm:$0xff] }
 0x2bc   :  { %v4286_v33 = vunpack.c.l.b16 %v3774_v56  ;;  %v4372_v5 = vsel %vm4298_vm3, %v4238_v24, %v4371_v21  ;;  %5993 = vmatprep.subr.bf16.mxu0 %v7070_v55  ;;  %v8442_v43 = vld [vmem:[#allocation3 + $0x330] sm:$0xff]  ;;  %v321_v23 = vunpack.c.h.bf16 %v8425_v31  ;;  %v337_v7 = vunpack.c.h.bf16 %v8427_v53 }
 0x2bd   :  { %v353_v4 = vunpack.c.h.bf16 %v8433_v57  ;;  %v4373_v38 = vsel %vm4300_vm4, %v4254_v14, %v4372_v5  ;;  %v8448_v36 = vld [vmem:[#allocation3 + $0x370] sm:$0xff]  ;;  %v369_v27 = vunpack.c.h.bf16 %v8435_v1  ;;  %v385_v58 = vunpack.c.h.bf16 %v8440_v2 }
 0x2be   :  { %v8450_v17 = vld [vmem:[#allocation3 + $0x3b0] sm:$0xff]  ;;  %v401_v11 = vunpack.c.h.bf16 %v8442_v43  ;;  %v4374_v34 = vsel %vm4302_vm5, %v4270_v8, %v4373_v38  ;;  %v417_v61 = vunpack.c.h.bf16 %v8448_v36  ;;  %v543_v41 = vadd.f32 %v225_v12, %v209_v0  ;;  %v7005_v8 = vld [vmem:[#allocation6 + $0x760] ss:$8 sps:$4 sm:$0xff]  }
 0x2bf   :  { %v8452_v59 = vld [vmem:[#allocation3 + $0x3f0] sm:$0xff]  ;;  %v433_v13 = vunpack.c.h.bf16 %v8450_v17  ;;  %v4375_v37 = vsel %vm4304_vm6, %v4286_v33, %v4374_v34  ;;  %5994 = vmatpush2.bf16.msra.mxu0 %v7068_v50  ;;  %v655_v42 = vadd.f32 %v257_v40, %v241_v35  ;;  %v767_v49 = vadd.f32 %v289_v22, %v273_v48  ;;  %v7088_v35 = vld [vmem:[#allocation6 + $0x684] ss:$8 sps:$4 sm:$0xff]  }
 0x2c0   :  { %v449_v62 = vunpack.c.h.bf16 %v8452_v59  ;;  %v6999_v20 = vld [vmem:[#allocation6 + $0x770] ss:$8 sps:$4 sm:$0xff]   ;;  %v4421_v32 = vpack.c.b16 %v4375_v37, %v4375_v37  ;;  %5995 = vmatprep.subr.bf16.mxu0 %v7076_v54  ;;  %v879_v30 = vadd.f32 %v321_v23, %v305_v6  ;;  %v991_v28 = vadd.f32 %v353_v4, %v337_v7  ;;  %v7013_v51 = vld [vmem:[#allocation6 + $0x754] ss:$8 sps:$4 sm:$0xff]  }
 0x2c1   :  { %v1103_v19 = vadd.f32 %v385_v58, %v369_v27  ;;  %v544_v15 = vrot.slane %v543_v41, 4  ;;  %v656_v39 = vrot.slane %v655_v42, 4  ;;  %v768_v26 = vrot.slane %v767_v49, 4  ;;  %v7080_v55 = vld [vmem:[#allocation6 + $0x690] ss:$8 sps:$4 sm:$0xff]  }
 0x2c2   :  { %v1215_v18 = vadd.f32 %v417_v61, %v401_v11  ;;  %5961 = vmatmul.mubr.bf16.vlgmr.msra.gmra.mxu1 %v4421_v32  ;;  %v880_v44 = vrot.slane %v879_v30, 4  ;;  %v992_v52 = vrot.slane %v991_v28, 4  ;;  %v1327_v14 = vadd.f32 %v449_v62, %v433_v13  ;;  %v7011_v38 = vld [vmem:[#allocation6 + $0x750] ss:$8 sps:$4 sm:$0xff]   ;;  %v7086_v27 = vld [vmem:[#allocation6 + $0x680] ss:$8 sps:$4 sm:$0xff]  }
 0x2c3   :  { %v1104_v24 = vrot.slane %v1103_v19, 4  ;;  %6011 = vmatpush1.bf16.msra.mxu1 %v6999_v20  ;;  %5996 = vmatpush2.bf16.msra.mxu0 %v7074_v3  ;;  %v545_v56 = vadd.f32 %v544_v15, %v543_v41  ;;  %v657_v60 = vadd.f32 %v656_v39, %v655_v42  ;;  %v769_v0 = vadd.f32 %v768_v26, %v767_v49  ;;  %v7019_v13 = vld [vmem:[#allocation6 + $0x744] ss:$8 sps:$4 sm:$0xff]  }
 0x2c4   :  { %v1216_v12 = vrot.slane %v1215_v18, 4  ;;  %6012 = vmatprep.subr.bf16.mxu1 %v7007_v9  ;;  %5997 = vmatprep.subr.bf16.mxu0 %v7082_v46  ;;  %v881_v40 = vadd.f32 %v880_v44, %v879_v30  ;;  %v993_v48 = vadd.f32 %v992_v52, %v991_v28  ;;  %v1328_v21 = vrot.slane %v1327_v14, 4  ;;  %v7025_v44 = vld [vmem:[#allocation6 + $0x734] ss:$8 sps:$4 sm:$0xff]  }
 0x2c5   :  { %v1105_v33 = vadd.f32 %v1104_v24, %v1103_v19  ;;  %v546_v50 = vrot.slane %v545_v56, 2  ;;  %v658_v22 = vrot.slane %v657_v60, 2  ;;  %v770_v6 = vrot.slane %v769_v0, 2  ;;  %v7017_v19 = vld [vmem:[#allocation6 + $0x740] ss:$8 sps:$4 sm:$0xff]  }
 0x2c6   :  { %v1217_v5 = vadd.f32 %v1216_v12, %v1215_v18  ;;  %v882_v54 = vrot.slane %v881_v40, 2  ;;  %v994_v23 = vrot.slane %v993_v48, 2  ;;  %v1329_v4 = vadd.f32 %v1328_v21, %v1327_v14 }
 0x2c7   :  { %v1106_v7 = vrot.slane %v1105_v33, 2  ;;  %6013 = vmatpush1.bf16.msra.mxu1 %v7005_v8  ;;  %5998 = vmatpush2.bf16.msra.mxu0 %v7080_v55  ;;  %v547_v58 = vadd.f32 %v546_v50, %v545_v56  ;;  %v659_v11 = vadd.f32 %v658_v22, %v657_v60  ;;  %v771_v34 = vadd.f32 %v770_v6, %v769_v0 }
 0x2c8   :  { %v1218_v61 = vrot.slane %v1217_v5, 2  ;;  %6014 = vmatprep.subr.bf16.mxu1 %v7013_v51  ;;  %5999 = vmatprep.subr.bf16.mxu0 %v7088_v35  ;;  %v883_v62 = vadd.f32 %v882_v54, %v881_v40  ;;  %v995_v37 = vadd.f32 %v994_v23, %v993_v48  ;;  %v1330_v3 = vrot.slane %v1329_v4, 2  ;;  %v7023_v48 = vld [vmem:[#allocation6 + $0x730] ss:$8 sps:$4 sm:$0xff]   ;;  %v7037_v54 = vld [vmem:[#allocation6 + $0x714] ss:$8 sps:$4 sm:$0xff]  }
 0x2c9   :  { %v1107_v20 = vadd.f32 %v1106_v7, %v1105_v33  ;;  %v548_v41 = vrot.slane %v547_v58, 1  ;;  %v660_v42 = vrot.slane %v659_v11, 1  ;;  %v772_v49 = vrot.slane %v771_v34, 1 }
 0x2ca   :  { %v1219_v32 = vadd.f32 %v1218_v61, %v1217_v5  ;;  %v884_v9 = vrot.slane %v883_v62, 1  ;;  %v996_v46 = vrot.slane %v995_v37, 1  ;;  %v1331_v28 = vadd.f32 %v1330_v3, %v1329_v4 }
 0x2cb   :  { %v1108_v30 = vrot.slane %v1107_v20, 1  ;;  %6015 = vmatpush1.bf16.msra.mxu1 %v7011_v38  ;;  %6000 = vmatpush2.bf16.msra.mxu0 %v7086_v27  ;;  %v8462_v15 = vadd.f32 %v548_v41, %v547_v58  ;;  %v8464_v39 = vadd.f32 %v660_v42, %v659_v11  ;;  %v8466_v26 = vadd.f32 %v772_v49, %v771_v34 }
 0x2cc   :  { %v1220_v18 = vrot.slane %v1219_v32, 1  ;;  %6016 = vmatprep.subr.bf16.mxu1 %v7019_v13  ;;  %v8468_v52 = vadd.f32 %v884_v9, %v883_v62  ;;  %v8470_v24 = vadd.f32 %v996_v46, %v995_v37  ;;  %v1332_v8 = vrot.slane %v1331_v28, 1 }
 0x2cd   :  { %v8472_v14 = vadd.f32 %v1108_v30, %v1107_v20  ;;  %v6292_v56 = vcombine.high %v8407_v63, %v8409_v45  ;;  %v6308_v60 = vcombine.high %v8411_v10, %v8414_v25  ;;  %v6324_v0 = vcombine.high %v8416_v29, %v8418_v47  ;;  %v7031_v29 = vld [vmem:[#allocation6 + $0x724] ss:$8 sps:$4 sm:$0xff]   ;;  %v7035_v20 = vld [vmem:[#allocation6 + $0x710] ss:$8 sps:$4 sm:$0xff]  }
 0x2ce   :  { %v8474_v55 = vadd.f32 %v1220_v18, %v1219_v32  ;;  %v8482_v12 = vadd.f32 %v1332_v8, %v1331_v28  ;;  %v6340_v51 = vcombine.high %v8423_v16, %v8425_v31  ;;  %v6356_v35 = vcombine.high %v8427_v53, %v8433_v57  ;;  %v7043_v32 = vld [vmem:[#allocation6 + $0x704] ss:$8 sps:$4 sm:$0xff]  }
 0x2cf   :  { %v6372_v40 = vcombine.high %v8435_v1, %v8440_v2  ;;  %6017 = vmatpush1.bf16.msra.mxu1 %v7017_v19  ;;  %v6388_v63 = vcombine.high %v8442_v43, %v8448_v36  ;;  %v6404_v45 = vcombine.high %v8450_v17, %v8452_v59  ;;  %v2118_v10 = vunpack.i.l.bf16 %v6292_v56  ;;  %v7029_v43 = vld [vmem:[#allocation6 + $0x720] ss:$8 sps:$4 sm:$0xff]  }
 0x2d0   :  { %v2119_v25 = vunpack.i.h.bf16 %v6292_v56  ;;  %6018 = vmatprep.subr.bf16.mxu1 %v7025_v44  ;;  %v2278_v47 = vunpack.i.l.bf16 %v6308_v60  ;;  %v2279_v16 = vunpack.i.h.bf16 %v6308_v60  ;;  %v2438_v31 = vunpack.i.l.bf16 %v6324_v0 }
 0x2d1   :  { %v2439_v33 = vunpack.i.h.bf16 %v6324_v0  ;;  %v2598_v57 = vunpack.i.l.bf16 %v6340_v51  ;;  %v2599_v21 = vunpack.i.h.bf16 %v6340_v51  ;;  %v2758_v1 = vunpack.i.l.bf16 %v6356_v35 }
 0x2d2   :  { %v2120_v53 = vmax.f32 %v2118_v10, %v2119_v25  ;;  %v2280_v2 = vmax.f32 %v2278_v47, %v2279_v16  ;;  %v2759_v22 = vunpack.i.h.bf16 %v6356_v35  ;;  %v2918_v6 = vunpack.i.l.bf16 %v6372_v40  ;;  %v7041_v35 = vld [vmem:[#allocation6 + $0x700] ss:$8 sps:$4 sm:$0xff]   ;;  %v7049_v10 = vld [vmem:[#allocation6 + $0x7f4] ss:$8 sps:$4 sm:$0xff]  }
 0x2d3   :  { %v2440_v50 = vmax.f32 %v2438_v31, %v2439_v33  ;;  %6019 = vmatpush1.bf16.msra.mxu1 %v7023_v48  ;;  %v2600_v17 = vmax.f32 %v2598_v57, %v2599_v21  ;;  %v2919_v59 = vunpack.i.h.bf16 %v6372_v40  ;;  %v3078_v5 = vunpack.i.l.bf16 %v6388_v63 }
 0x2d4   :  { %v2121_v36 = vrot.slane %v2120_v53, 4  ;;  %6020 = vmatprep.subr.bf16.mxu1 %v7031_v29  ;;  %v2281_v23 = vrot.slane %v2280_v2, 4  ;;  %v2760_v4 = vmax.f32 %v2758_v1, %v2759_v22  ;;  %v3079_v38 = vunpack.i.h.bf16 %v6388_v63  ;;  %v7047_v22 = vld [vmem:[#allocation6 + $0x7f0] ss:$8 sps:$4 sm:$0xff]  }
 0x2d5   :  { %v2441_v7 = vrot.slane %v2440_v50, 4  ;;  %v2601_v58 = vrot.slane %v2600_v17, 4  ;;  %v2920_v11 = vmax.f32 %v2918_v6, %v2919_v59  ;;  %v3238_v34 = vunpack.i.l.bf16 %v6404_v45  ;;  %v7055_v59 = vld [vmem:[#allocation6 + $0x7e4] ss:$8 sps:$4 sm:$0xff]  }
 0x2d6   :  { %v2122_v27 = vmax.f32 %v2120_v53, %v2121_v36  ;;  %v2282_v61 = vmax.f32 %v2280_v2, %v2281_v23  ;;  %v2761_v62 = vrot.slane %v2760_v4, 4  ;;  %v3080_v37 = vmax.f32 %v3078_v5, %v3079_v38 }
 0x2d7   :  { %v2442_v13 = vmax.f32 %v2440_v50, %v2441_v7  ;;  %6021 = vmatpush1.bf16.msra.mxu1 %v7029_v43  ;;  %v2602_v41 = vmax.f32 %v2600_v17, %v2601_v58  ;;  %v2921_v42 = vrot.slane %v2920_v11, 4  ;;  %v3239_v49 = vunpack.i.h.bf16 %v6404_v45 }
 0x2d8   :  { %v2123_v3 = vrot.slane %v2122_v27, 2  ;;  %6022 = vmatprep.subr.bf16.mxu1 %v7037_v54  ;;  %v2283_v9 = vrot.slane %v2282_v61, 2  ;;  %v2762_v30 = vmax.f32 %v2760_v4, %v2761_v62  ;;  %v3081_v28 = vrot.slane %v3080_v37, 4  ;;  %v7053_v62 = vld [vmem:[#allocation6 + $0x7e0] ss:$8 sps:$4 sm:$0xff]  }
 0x2d9   :  { %v2443_v46 = vrot.slane %v2442_v13, 2  ;;  %v2603_v18 = vrot.slane %v2602_v41, 2  ;;  %v2922_v44 = vmax.f32 %v2920_v11, %v2921_v42  ;;  %v3240_v8 = vmax.f32 %v3238_v34, %v3239_v49  ;;  %v7061_v42 = vld [vmem:[#allocation6 + $0x7d4] ss:$8 sps:$4 sm:$0xff]  }
 0x2da   :  { %v2124_v19 = vmax.f32 %v2122_v27, %v2123_v3  ;;  %v2284_v56 = vmax.f32 %v2282_v61, %v2283_v9  ;;  %v2763_v0 = vrot.slane %v2762_v30, 2  ;;  %v3082_v51 = vmax.f32 %v3080_v37, %v3081_v28 }
 0x2db   :  { %v2444_v60 = vmax.f32 %v2442_v13, %v2443_v46  ;;  %6023 = vmatpush1.bf16.msra.mxu1 %v7035_v20  ;;  %v2604_v48 = vmax.f32 %v2602_v41, %v2603_v18  ;;  %v2923_v63 = vrot.slane %v2922_v44, 2  ;;  %v3241_v45 = vrot.slane %v3240_v8, 4 }
 0x2dc   :  { %v2125_v40 = vrot.slane %v2124_v19, 1  ;;  %6024 = vmatprep.subr.bf16.mxu1 %v7043_v32  ;;  %v2285_v25 = vrot.slane %v2284_v56, 1  ;;  %v2764_v47 = vmax.f32 %v2762_v30, %v2763_v0  ;;  %v3083_v16 = vrot.slane %v3082_v51, 2 }
 0x2dd   :  { %v2445_v29 = vrot.slane %v2444_v60, 1  ;;  %v2605_v33 = vrot.slane %v2604_v48, 1  ;;  %v2924_v53 = vmax.f32 %v2922_v44, %v2923_v63  ;;  %v3242_v57 = vmax.f32 %v3240_v8, %v3241_v45 }
 0x2de   :  { %v2126_v31 = vmax.f32 %v2124_v19, %v2125_v40  ;;  %v2286_v21 = vmax.f32 %v2284_v56, %v2285_v25  ;;  %v2765_v2 = vrot.slane %v2764_v47, 1  ;;  %v3084_v50 = vmax.f32 %v3082_v51, %v3083_v16 }
 0x2df   :  { %v2446_v1 = vmax.f32 %v2444_v60, %v2445_v29  ;;  %6025 = vmatpush1.bf16.msra.mxu1 %v7041_v35  ;;  %v2606_v43 = vmax.f32 %v2604_v48, %v2605_v33  ;;  %v2925_v36 = vrot.slane %v2924_v53, 1  ;;  %v3243_v17 = vrot.slane %v3242_v57, 2  ;;  %v7059_v60 = vld [vmem:[#allocation6 + $0x7d0] ss:$8 sps:$4 sm:$0xff]  }
 0x2e0   :  { %v2127_v6 = vpack.i.bf16 %v2126_v31, %v2126_v31  ;;  %6026 = vmatprep.subr.bf16.mxu1 %v7049_v10  ;;  %v2287_v5 = vpack.i.bf16 %v2286_v21, %v2286_v21  ;;  %v2766_v23 = vmax.f32 %v2764_v47, %v2765_v2  ;;  %v3085_v7 = vrot.slane %v3084_v50, 1  ;;  %v7065_v47 = vld [vmem:[#allocation6 + $0x7c0] ss:$8 sps:$4 sm:$0xff]   ;;  %v7073_v21 = vld [vmem:[#allocation6 + $0x7b4] ss:$8 sps:$4 sm:$0xff]  }
 0x2e1   :  { %v2447_v54 = vpack.i.bf16 %v2446_v1, %v2446_v1  ;;  %v2607_v4 = vpack.i.bf16 %v2606_v43, %v2606_v43  ;;  %v2926_v38 = vmax.f32 %v2924_v53, %v2925_v36  ;;  %v3244_v27 = vmax.f32 %v3242_v57, %v3243_v17  ;;  %v8502_v57 = vld [vmem:[#allocation3 + $0x38] sm:$0xff] }
 0x2e2   :  { %v3281_v58 = vunpack.c.l.bf16 %v2127_v6  ;;  %v2767_v11 = vpack.i.bf16 %v2766_v23, %v2766_v23  ;;  %v3086_v34 = vmax.f32 %v3084_v50, %v3085_v7  ;;  %v3297_v61 = vunpack.c.l.bf16 %v2287_v5  ;;  %v8504_v6 = vld [vmem:[#allocation3 + $0x78] sm:$0xff] }
 0x2e3   :  { %v3313_v13 = vunpack.c.l.bf16 %v2447_v54  ;;  %6027 = vmatpush2.bf16.msra.mxu1 %v7047_v22  ;;  %v2927_v37 = vpack.i.bf16 %v2926_v38, %v2926_v38  ;;  %v3245_v20 = vrot.slane %v3244_v27, 1  ;;  %v3329_v3 = vunpack.c.l.bf16 %v2607_v4  ;;  %v8506_v43 = vld [vmem:[#allocation3 + $0xb8] sm:$0xff] }
 0x2e4   :  { %v3409_v41 = vmul.f32 0.0625, %v8462_v15  ;;  %6028 = vmatprep.subr.bf16.mxu1 %v7055_v59  ;;  %v3087_v49 = vpack.i.bf16 %v3086_v34, %v3086_v34  ;;  %v3345_v32 = vunpack.c.l.bf16 %v2767_v11  ;;  %v3425_v9 = vmul.f32 0.0625, %v8464_v39  ;;  %v8509_v59 = vld [vmem:[#allocation3 + $0xf8] sm:$0xff] }
 0x2e5   :  { %v3441_v46 = vmul.f32 0.0625, %v8466_v26  ;;  %v3246_v30 = vmax.f32 %v3244_v27, %v3245_v20  ;;  %v3361_v28 = vunpack.c.l.bf16 %v2927_v37  ;;  %v3457_v19 = vmul.f32 0.0625, %v8468_v52  ;;  %v7067_v26 = vld [vmem:[#allocation6 + $0x7c4] ss:$8 sps:$4 sm:$0xff]   ;;  %v8511_v5 = vld [vmem:[#allocation3 + $0x138] sm:$0xff] }
 0x2e6   :  { %v3473_v18 = vmul.f32 0.0625, %v8470_v24  ;;  %v3377_v44 = vunpack.c.l.bf16 %v3087_v49  ;;  %v3489_v8 = vmul.f32 0.0625, %v8472_v14  ;;  %v3505_v56 = vmul.f32 0.0625, %v8474_v55  ;;  %v8513_v54 = vld [vmem:[#allocation3 + $0x178] sm:$0xff]  ;;  %v7079_v49 = vld [vmem:[#allocation6 + $0x7a4] ss:$8 sps:$4 sm:$0xff]  }
 0x2e7   :  { %v3521_v15 = vmul.f32 0.0625, %v8482_v12  ;;  %6029 = vmatpush2.bf16.msra.mxu1 %v7053_v62  ;;  %v3247_v0 = vpack.i.bf16 %v3246_v30, %v3246_v30  ;;  %v3537_v51 = vadd.f32 %v3409_v41, %v3281_v58  ;;  %v3553_v39 = vadd.f32 %v3425_v9, %v3297_v61  ;;  %v8518_v38 = vld [vmem:[#allocation3 + $0x1b8] sm:$0xff] }
 0x2e8   :  { %v3569_v35 = vadd.f32 %v3441_v46, %v3313_v13  ;;  %6030 = vmatprep.subr.bf16.mxu1 %v7061_v42  ;;  %v3585_v40 = vadd.f32 %v3457_v19, %v3329_v3  ;;  %v3601_v48 = vadd.f32 %v3473_v18, %v3345_v32  ;;  %v3617_v52 = vadd.f32 %v3489_v8, %v3361_v28  ;;  %v8520_v27 = vld [vmem:[#allocation3 + $0x1f8] sm:$0xff] }
 0x2e9   :  { %v3633_v63 = vadd.f32 %v3505_v56, %v3377_v44  ;;  %v3393_v24 = vunpack.c.l.bf16 %v3247_v0  ;;  %v3665_v45 = vpack.c.bf16 %v3537_v51, %v3537_v51  ;;  %v3681_v10 = vpack.c.bf16 %v3553_v39, %v3553_v39  ;;  %v8522_v58 = vld [vmem:[#allocation3 + $0x238] sm:$0xff] }
 0x2ea   :  { %v3697_v14 = vpack.c.bf16 %v3569_v35, %v3569_v35  ;;  %v3713_v25 = vpack.c.bf16 %v3585_v40, %v3585_v40  ;;  %v3729_v55 = vpack.c.bf16 %v3601_v48, %v3601_v48  ;;  %v3745_v29 = vpack.c.bf16 %v3617_v52, %v3617_v52  ;;  %v7071_v13 = vld [vmem:[#allocation6 + $0x7b0] ss:$8 sps:$4 sm:$0xff]   ;;  %v7077_v40 = vld [vmem:[#allocation6 + $0x7a0] ss:$8 sps:$4 sm:$0xff]  }
 0x2eb   :  { %v3761_v12 = vpack.c.bf16 %v3633_v63, %v3633_v63  ;;  %6031 = vmatpush2.bf16.msra.mxu1 %v7059_v60  ;;  %v3649_v16 = vadd.f32 %v3521_v15, %v3393_v24  ;;  %v4177_v31 = vunpack.c.l.b16 %v3665_v45  ;;  %v4193_v33 = vunpack.c.l.b16 %v3681_v10  ;;  %v8528_v20 = vld [vmem:[#allocation3 + $0x278] sm:$0xff] }
 0x2ec   :  { %v4209_v53 = vunpack.c.l.b16 %v3697_v14  ;;  %6032 = vmatprep.subr.bf16.mxu1 %v7067_v26  ;;  %v4225_v1 = vunpack.c.l.b16 %v3713_v25  ;;  %v4241_v2 = vunpack.c.l.b16 %v3729_v55  ;;  %v4257_v50 = vunpack.c.l.b16 %v3745_v29  ;;  %v8530_v3 = vld [vmem:[#allocation3 + $0x2b8] sm:$0xff] }
 0x2ed   :  { %v4273_v22 = vunpack.c.l.b16 %v3761_v12  ;;  %v3777_v36 = vpack.c.bf16 %v3649_v16, %v3649_v16  ;;  %v4390_v17 = vsel %vm4292_vm0, %v4193_v33, %v4177_v31  ;;  %v211_v23 = vunpack.c.h.bf16 %v8502_v57  ;;  %v8535_v9 = vld [vmem:[#allocation3 + $0x2f8] sm:$0xff] }
 0x2ee   :  { %v227_v7 = vunpack.c.h.bf16 %v8504_v6  ;;  %v4391_v4 = vsel %vm4294_vm1, %v4209_v53, %v4390_v17  ;;  %v243_v11 = vunpack.c.h.bf16 %v8506_v43  ;;  %v259_v34 = vunpack.c.h.bf16 %v8509_v59  ;;  %v8537_v46 = vld [vmem:[#allocation3 + $0x338] sm:$0xff]  ;;  %v7091_v17 = vld [vmem:[#allocation6 + $0x784] ss:$8 sps:$4 sm:$0xff]  }
 0x2ef   :  { %v275_v61 = vunpack.c.h.bf16 %v8511_v5  ;;  %6033 = vmatpush2.bf16.msra.mxu1 %v7065_v47  ;;  %v4289_v62 = vunpack.c.l.b16 %v3777_v36  ;;  %v4392_v37 = vsel %vm4296_vm2, %v4225_v1, %v4391_v4  ;;  %v291_v41 = vunpack.c.h.bf16 %v8513_v54  ;;  %8842 = vst [vmem:[#allocation16_spill] sm:$0xff] %v8537_v46  ;;  %v8543_v44 = vld [vmem:[#allocation3 + $0x378] sm:$0xff] }
 0x2f0   :  { %v307_v42 = vunpack.c.h.bf16 %v8518_v38  ;;  %6034 = vmatprep.subr.bf16.mxu1 %v7073_v21  ;;  %v4393_v32 = vsel %vm4298_vm3, %v4241_v2, %v4392_v37  ;;  %v323_v30 = vunpack.c.h.bf16 %v8520_v27  ;;  %v339_v28 = vunpack.c.h.bf16 %v8522_v58  ;;  %8843 = vst [vmem:[#allocation17_spill] sm:$0xff] %v8543_v44  ;;  %v8545_v8 = vld [vmem:[#allocation3 + $0x3b8] sm:$0xff] }
 0x2f1   :  { %v355_v19 = vunpack.c.h.bf16 %v8528_v20  ;;  %v4394_v18 = vsel %vm4300_vm4, %v4257_v50, %v4393_v32  ;;  %8844 = vst [vmem:[#allocation18_spill] sm:$0xff] %v8545_v8  ;;  %v8547_v56 = vld [vmem:[#allocation3 + $0x3f8] sm:$0xff]  ;;  %v371_v15 = vunpack.c.h.bf16 %v8530_v3  ;;  %v387_v60 = vunpack.c.h.bf16 %v8535_v9  ;;  %v7089_v32 = vld [vmem:[#allocation6 + $0x780] ss:$8 sps:$4 sm:$0xff]  }
 0x2f2   :  { %8845 = vst [vmem:[#allocation19_spill] sm:$0xff] %v8547_v56  ;;  %v403_v0 = vunpack.c.h.bf16 %v8537_v46  ;;  %v4395_v51 = vsel %vm4302_vm5, %v4273_v22, %v4394_v18  ;;  %v419_v39 = vunpack.c.h.bf16 %v8543_v44  ;;  %v435_v35 = vunpack.c.h.bf16 %v8545_v8  ;;  %v7085_v45 = vld [vmem:[#allocation6 + $0x794] ss:$8 sps:$4 sm:$0xff]   ;;  %v7083_v1 = vld [vmem:[#allocation6 + $0x790] ss:$8 sps:$4 sm:$0xff]  }
 0x2f3   :  { %v451_v26 = vunpack.c.h.bf16 %v8547_v56  ;;  %6035 = vmatpush2.bf16.msra.mxu1 %v7071_v13  ;;  %v4396_v48 = vsel %vm4304_vm6, %v4289_v62, %v4395_v51  ;;  %v557_v52 = vadd.f32 %v227_v7, %v211_v23  ;;  %v669_v63 = vadd.f32 %v259_v34, %v243_v11 }
 0x2f4   :  { %v781_v24 = vadd.f32 %v291_v41, %v275_v61  ;;  %6036 = vmatprep.subr.bf16.mxu1 %v7079_v49  ;;  %v4424_v10 = vpack.c.b16 %v4396_v48, %v4396_v48  ;;  %v893_v14 = vadd.f32 %v323_v30, %v307_v42  ;;  %v1005_v25 = vadd.f32 %v355_v19, %v339_v28 }
 0x2f5   :  { %v1117_v55 = vadd.f32 %v387_v60, %v371_v15  ;;  %v558_v29 = vrot.slane %v557_v52, 4  ;;  %v670_v12 = vrot.slane %v669_v63, 4  ;;  %v1229_v16 = vadd.f32 %v419_v39, %v403_v0 }
 0x2f6   :  { %v782_v47 = vrot.slane %v781_v24, 4  ;;  %6001 = vmatprep.mubr.bf16.mxu0 %v4424_v10  ;;  %v894_v31 = vrot.slane %v893_v14, 4  ;;  %v1006_v33 = vrot.slane %v1005_v25, 4  ;;  %v1341_v21 = vadd.f32 %v451_v26, %v435_v35 }
 0x2f7   :  { %v1118_v53 = vrot.slane %v1117_v55, 4  ;;  %6037 = vmatpush2.bf16.msra.mxu1 %v7077_v40  ;;  %v559_v2 = vadd.f32 %v558_v29, %v557_v52  ;;  %v671_v50 = vadd.f32 %v670_v12, %v669_v63  ;;  %v1230_v36 = vrot.slane %v1229_v16, 4 }
 0x2f8   :  { %v783_v22 = vadd.f32 %v782_v47, %v781_v24  ;;  %6038 = vmatprep.subr.bf16.mxu1 %v7085_v45  ;;  %v895_v23 = vadd.f32 %v894_v31, %v893_v14  ;;  %v1007_v7 = vadd.f32 %v1006_v33, %v1005_v25  ;;  %v1342_v11 = vrot.slane %v1341_v21, 4 }
 0x2f9   :  { %v1119_v4 = vadd.f32 %v1118_v53, %v1117_v55  ;;  %v560_v34 = vrot.slane %v559_v2, 2  ;;  %v672_v61 = vrot.slane %v671_v50, 2  ;;  %v1231_v62 = vadd.f32 %v1230_v36, %v1229_v16 }
 0x2fa   :  { %v784_v13 = vrot.slane %v783_v22, 2  ;;  %v896_v37 = vrot.slane %v895_v23, 2  ;;  %v1008_v41 = vrot.slane %v1007_v7, 2  ;;  %v1343_v49 = vadd.f32 %v1342_v11, %v1341_v21 }
 0x2fb   :  { %v1120_v42 = vrot.slane %v1119_v4, 2  ;;  %6039 = vmatpush2.bf16.msra.mxu1 %v7083_v1  ;;  %v561_v30 = vadd.f32 %v560_v34, %v559_v2  ;;  %v673_v28 = vadd.f32 %v672_v61, %v671_v50  ;;  %v1232_v18 = vrot.slane %v1231_v62, 2 }
 0x2fc   :  { %v785_v19 = vadd.f32 %v784_v13, %v783_v22  ;;  %6040 = vmatprep.subr.bf16.mxu1 %v7091_v17  ;;  %v897_v15 = vadd.f32 %v896_v37, %v895_v23  ;;  %v1009_v60 = vadd.f32 %v1008_v41, %v1007_v7  ;;  %v1344_v51 = vrot.slane %v1343_v49, 2 }
 0x2fd   :  { %v1121_v0 = vadd.f32 %v1120_v42, %v1119_v4  ;;  %v562_v39 = vrot.slane %v561_v30, 1  ;;  %v674_v35 = vrot.slane %v673_v28, 1  ;;  %v1233_v40 = vadd.f32 %v1232_v18, %v1231_v62 }
 0x2fe   :  { %v786_v26 = vrot.slane %v785_v19, 1  ;;  %v898_v48 = vrot.slane %v897_v15, 1  ;;  %v1010_v52 = vrot.slane %v1009_v60, 1  ;;  %v1345_v24 = vadd.f32 %v1344_v51, %v1343_v49 }
 0x2ff   :  { %v1122_v63 = vrot.slane %v1121_v0, 1  ;;  %6041 = vmatpush2.bf16.msra.mxu1 %v7089_v32  ;;  %v8557_v45 = vadd.f32 %v562_v39, %v561_v30  ;;  %v8559_v10 = vadd.f32 %v674_v35, %v673_v28  ;;  %v1234_v25 = vrot.slane %v1233_v40, 1 }
 0x300   :  { %v8561_v14 = vadd.f32 %v786_v26, %v785_v19  ;;  %v8563_v55 = vadd.f32 %v898_v48, %v897_v15  ;;  %v8565_v29 = vadd.f32 %v1010_v52, %v1009_v60  ;;  %v1346_v47 = vrot.slane %v1345_v24, 1 }
 0x301   :  { %v8567_v12 = vadd.f32 %v1122_v63, %v1121_v0  ;;  %v8569_v16 = vadd.f32 %v1234_v25, %v1233_v40  ;;  %v6294_v31 = vcombine.high %v8502_v57, %v8504_v6  ;;  %v6310_v33 = vcombine.high %v8506_v43, %v8509_v59 }
 0x302   :  { %v6326_v53 = vcombine.high %v8511_v5, %v8513_v54  ;;  %v8577_v21 = vadd.f32 %v1346_v47, %v1345_v24  ;;  %v6342_v1 = vcombine.high %v8518_v38, %v8520_v27  ;;  %v6358_v2 = vcombine.high %v8522_v58, %v8528_v20 }
 0x303   :  { %v6374_v50 = vcombine.high %v8530_v3, %v8535_v9  ;;  %v6390_v22 = vcombine.high %v8537_v46, %v8543_v44  ;;  %v6406_v36 = vcombine.high %v8545_v8, %v8547_v56  ;;  %v2138_v17 = vunpack.i.l.bf16 %v6294_v31 }
 0x304   :  { %v2139_v23 = vunpack.i.h.bf16 %v6294_v31  ;;  %v2298_v7 = vunpack.i.l.bf16 %v6310_v33  ;;  %v2299_v4 = vunpack.i.h.bf16 %v6310_v33  ;;  %v2458_v11 = vunpack.i.l.bf16 %v6326_v53 }
 0x305   :  { %v2459_v34 = vunpack.i.h.bf16 %v6326_v53  ;;  %v2618_v13 = vunpack.i.l.bf16 %v6342_v1  ;;  %v2619_v62 = vunpack.i.h.bf16 %v6342_v1  ;;  %v2778_v37 = vunpack.i.l.bf16 %v6358_v2 }
 0x306   :  { %v2140_v61 = vmax.f32 %v2138_v17, %v2139_v23  ;;  %v2300_v41 = vmax.f32 %v2298_v7, %v2299_v4  ;;  %v2779_v49 = vunpack.i.h.bf16 %v6358_v2  ;;  %v2938_v32 = vunpack.i.l.bf16 %v6374_v50 }
 0x307   :  { %v2460_v42 = vmax.f32 %v2458_v11, %v2459_v34  ;;  %v2620_v28 = vmax.f32 %v2618_v13, %v2619_v62  ;;  %v2939_v19 = vunpack.i.h.bf16 %v6374_v50  ;;  %v3098_v18 = vunpack.i.l.bf16 %v6390_v22  ;;  %v8589_v13 = vpop.f32.mrf.mxu0  ;;  %v8591_v62 = vpop.f32.mrf.mxu1 }
 0x308   :  { %v2141_v30 = vrot.slane %v2140_v61, 4  ;;  %v2301_v15 = vrot.slane %v2300_v41, 4  ;;  %v2780_v0 = vmax.f32 %v2778_v37, %v2779_v49  ;;  %v3099_v51 = vunpack.i.h.bf16 %v6390_v22 }
 0x309   :  { %v2461_v60 = vrot.slane %v2460_v42, 4  ;;  %v2621_v35 = vrot.slane %v2620_v28, 4  ;;  %v2940_v26 = vmax.f32 %v2938_v32, %v2939_v19  ;;  %v3258_v40 = vunpack.i.l.bf16 %v6406_v36 }
 0x30a   :  { %v2142_v39 = vmax.f32 %v2140_v61, %v2141_v30  ;;  %v2302_v48 = vmax.f32 %v2300_v41, %v2301_v15  ;;  %v2781_v63 = vrot.slane %v2780_v0, 4  ;;  %v3100_v24 = vmax.f32 %v3098_v18, %v3099_v51 }
 0x30b   :  { %v2462_v52 = vmax.f32 %v2460_v42, %v2461_v60  ;;  %v2622_v47 = vmax.f32 %v2620_v28, %v2621_v35  ;;  %v2941_v31 = vrot.slane %v2940_v26, 4  ;;  %v3259_v33 = vunpack.i.h.bf16 %v6406_v36 }
 0x30c   :  { %v2143_v25 = vrot.slane %v2142_v39, 2  ;;  %v2303_v53 = vrot.slane %v2302_v48, 2  ;;  %v2782_v2 = vmax.f32 %v2780_v0, %v2781_v63  ;;  %v3101_v50 = vrot.slane %v3100_v24, 4 }
 0x30d   :  { %v2463_v1 = vrot.slane %v2462_v52, 2  ;;  %v2623_v23 = vrot.slane %v2622_v47, 2  ;;  %v2942_v7 = vmax.f32 %v2940_v26, %v2941_v31  ;;  %v3260_v22 = vmax.f32 %v3258_v40, %v3259_v33  ;;  %v8593_v26 = vpop.f32.mrf.mxu0  ;;  %v8595_v40 = vpop.f32.mrf.mxu1 }
 0x30e   :  { %v2144_v17 = vmax.f32 %v2142_v39, %v2143_v25  ;;  %v2304_v4 = vmax.f32 %v2302_v48, %v2303_v53  ;;  %v2783_v34 = vrot.slane %v2782_v2, 2  ;;  %v3102_v61 = vmax.f32 %v3100_v24, %v3101_v50  ;;  %8846 = vst [vmem:[#allocation20_spill] sm:$0xff] %v8593_v26  ;;  %8847 = vst [vmem:[#allocation21_spill] sm:$0xff] %v8595_v40 }
 0x30f   :  { %v2464_v11 = vmax.f32 %v2462_v52, %v2463_v1  ;;  %v2624_v41 = vmax.f32 %v2622_v47, %v2623_v23  ;;  %v2943_v42 = vrot.slane %v2942_v7, 2  ;;  %v3261_v36 = vrot.slane %v3260_v22, 4  ;;  %v5761_v53 = vpop.f32.mrf.mxu0  ;;  %v5802_v1 = vpop.f32.mrf.mxu1 }
 0x310   :  { %v2145_v37 = vrot.slane %v2144_v17, 1  ;;  %v2305_v49 = vrot.slane %v2304_v4, 1  ;;  %v2784_v30 = vmax.f32 %v2782_v2, %v2783_v34  ;;  %v3103_v28 = vrot.slane %v3102_v61, 2 }
 0x311   :  { %v2465_v32 = vrot.slane %v2464_v11, 1  ;;  %v2625_v18 = vrot.slane %v2624_v41, 1  ;;  %v2944_v15 = vmax.f32 %v2942_v7, %v2943_v42  ;;  %v3262_v60 = vmax.f32 %v3260_v22, %v3261_v36  ;;  %v5762_v34 = vpop.f32.mrf.mxu0 }
 0x312   :  { %v2146_v19 = vmax.f32 %v2144_v17, %v2145_v37  ;;  %v2306_v0 = vmax.f32 %v2304_v4, %v2305_v49  ;;  %v2785_v39 = vrot.slane %v2784_v30, 1  ;;  %v3104_v35 = vmax.f32 %v3102_v61, %v3103_v28  ;;  %v5803_v61 = vpop.f32.mrf.mxu1 }
 0x313   :  { %v2466_v51 = vmax.f32 %v2464_v11, %v2465_v32  ;;  %v2626_v52 = vmax.f32 %v2624_v41, %v2625_v18  ;;  %v2945_v63 = vrot.slane %v2944_v15, 1  ;;  %v3263_v24 = vrot.slane %v3262_v60, 2 }
 0x314   :  { %v2147_v48 = vpack.i.bf16 %v2146_v19, %v2146_v19  ;;  %v2307_v25 = vpack.i.bf16 %v2306_v0, %v2306_v0  ;;  %v2786_v31 = vmax.f32 %v2784_v30, %v2785_v39  ;;  %v3105_v33 = vrot.slane %v3104_v35, 1  ;;  %v8600_v19 = vpop.f32.mrf.mxu0  ;;  %v8602_v18 = vpop.f32.mrf.mxu1 }
 0x315   :  { %v2467_v47 = vpack.i.bf16 %v2466_v51, %v2466_v51  ;;  %v2627_v2 = vpack.i.bf16 %v2626_v52, %v2626_v52  ;;  %v2946_v50 = vmax.f32 %v2944_v15, %v2945_v63  ;;  %v3264_v17 = vmax.f32 %v3262_v60, %v3263_v24  ;;  %8848 = vst [vmem:[#allocation22_spill] sm:$0xff] %v8600_v19 }
 0x316   :  { %v3283_v23 = vunpack.c.l.bf16 %v2147_v48  ;;  %v2787_v7 = vpack.i.bf16 %v2786_v31, %v2786_v31  ;;  %v3106_v22 = vmax.f32 %v3104_v35, %v3105_v33  ;;  %v3299_v4 = vunpack.c.l.bf16 %v2307_v25  ;;  %8849 = vst [vmem:[#allocation23_spill] sm:$0xff] %v8602_v18 }
 0x317   :  { %v3315_v11 = vunpack.c.l.bf16 %v2467_v47  ;;  %v2947_v37 = vpack.i.bf16 %v2946_v50, %v2946_v50  ;;  %v3265_v41 = vrot.slane %v3264_v17, 1  ;;  %v3331_v42 = vunpack.c.l.bf16 %v2627_v2 }
 0x318   :  { %v3411_v36 = vmul.f32 0.0625, %v8557_v45  ;;  %v3107_v49 = vpack.i.bf16 %v3106_v22, %v3106_v22  ;;  %v3347_v32 = vunpack.c.l.bf16 %v2787_v7  ;;  %v3427_v30 = vmul.f32 0.0625, %v8559_v10  ;;  %v8609_v10 = vpop.f32.mrf.mxu0 }
 0x319   :  { %v3443_v28 = vmul.f32 0.0625, %v8561_v14  ;;  %v3266_v15 = vmax.f32 %v3264_v17, %v3265_v41  ;;  %v3363_v60 = vunpack.c.l.bf16 %v2947_v37  ;;  %v3459_v0 = vmul.f32 0.0625, %v8563_v55  ;;  %8850 = vst [vmem:[#allocation24_spill] sm:$0xff] %v8609_v10  ;;  %v8611_v14 = vpop.f32.mrf.mxu1 }
 0x31a   :  { %v3475_v51 = vmul.f32 0.0625, %v8565_v29  ;;  %v3379_v39 = vunpack.c.l.bf16 %v3107_v49  ;;  %v3491_v35 = vmul.f32 0.0625, %v8567_v12  ;;  %v3507_v45 = vmul.f32 0.0625, %v8569_v16  ;;  %8851 = vst [vmem:[#allocation25_spill] sm:$0xff] %v8611_v14  ;;  %v5843_v29 = vpop.f32.mrf.mxu0 }
 0x31b   :  { %v3523_v48 = vmul.f32 0.0625, %v8577_v21  ;;  %v3267_v52 = vpack.i.bf16 %v3266_v15, %v3266_v15  ;;  %v3539_v63 = vadd.f32 %v3411_v36, %v3283_v23  ;;  %v3555_v24 = vadd.f32 %v3427_v30, %v3299_v4  ;;  %v5884_v53 = vpop.f32.mrf.mxu1 }
 0x31c   :  { %v3571_v25 = vadd.f32 %v3443_v28, %v3315_v11  ;;  %v3587_v47 = vadd.f32 %v3459_v0, %v3331_v42  ;;  %v3603_v31 = vadd.f32 %v3475_v51, %v3347_v32  ;;  %v3619_v55 = vadd.f32 %v3491_v35, %v3363_v60  ;;  %v5844_v22 = vpop.f32.mrf.mxu0  ;;  %v8618_v28 = vld [vmem:[#allocation3 + $0x30] sm:$0xff] }
 0x31d   :  { %v3635_v33 = vadd.f32 %v3507_v45, %v3379_v39  ;;  %v3395_v1 = vunpack.c.l.bf16 %v3267_v52  ;;  %v3667_v12 = vpack.c.bf16 %v3539_v63, %v3539_v63  ;;  %v3683_v2 = vpack.c.bf16 %v3555_v24, %v3555_v24  ;;  %v5885_v34 = vpop.f32.mrf.mxu1  ;;  %v8622_v0 = vld [vmem:[#allocation3 + $0x70] sm:$0xff] }
 0x31e   :  { %v3699_v16 = vpack.c.bf16 %v3571_v25, %v3571_v25  ;;  %v3715_v50 = vpack.c.bf16 %v3587_v47, %v3587_v47  ;;  %v3731_v21 = vpack.c.bf16 %v3603_v31, %v3603_v31  ;;  %v3747_v17 = vpack.c.bf16 %v3619_v55, %v3619_v55  ;;  %v8625_v39 = vld [vmem:[#allocation3 + $0xb0] sm:$0xff] }
 0x31f   :  { %v3763_v7 = vpack.c.bf16 %v3635_v33, %v3635_v33  ;;  %v3651_v61 = vadd.f32 %v3523_v48, %v3395_v1  ;;  %v4179_v23 = vunpack.c.l.b16 %v3667_v12  ;;  %v4195_v4 = vunpack.c.l.b16 %v3683_v2  ;;  %v8628_v45 = vld [vmem:[#allocation3 + $0xf0] sm:$0xff] }
 0x320   :  { %v4211_v11 = vunpack.c.l.b16 %v3699_v16  ;;  %v4227_v37 = vunpack.c.l.b16 %v3715_v50  ;;  %v4243_v41 = vunpack.c.l.b16 %v3731_v21  ;;  %v4259_v42 = vunpack.c.l.b16 %v3747_v17  ;;  %v8632_v52 = vld [vmem:[#allocation3 + $0x130] sm:$0xff] }
 0x321   :  { %v4275_v36 = vunpack.c.l.b16 %v3763_v7  ;;  %v3779_v49 = vpack.c.bf16 %v3651_v61, %v3651_v61  ;;  %v4404_v32 = vsel %vm4292_vm0, %v4195_v4, %v4179_v23  ;;  %v8616_v30 = vadd.f32 %v8591_v62, %v8589_v13  ;;  %v8635_v24 = vld [vmem:[#allocation3 + $0x170] sm:$0xff] }
 0x322   :  { %v208_v15 = vunpack.c.l.bf16 %v8618_v28  ;;  %v4405_v60 = vsel %vm4294_vm1, %v4211_v11, %v4404_v32  ;;  %v224_v51 = vunpack.c.l.bf16 %v8622_v0  ;;  %v240_v35 = vunpack.c.l.bf16 %v8625_v39  ;;  %v8639_v31 = vld [vmem:[#allocation3 + $0x1b0] sm:$0xff] }
 0x323   :  { %8852 = vst [vmem:[#allocation26_spill] sm:$0xff] %v8616_v30  ;;  %v256_v48 = vunpack.c.l.bf16 %v8628_v45  ;;  %v4291_v13 = vunpack.c.l.b16 %v3779_v49  ;;  %v4406_v62 = vsel %vm4296_vm2, %v4227_v37, %v4405_v60  ;;  %v272_v63 = vunpack.c.l.bf16 %v8632_v52  ;;  %v8642_v33 = vld [vmem:[#allocation3 + $0x1f0] sm:$0xff] }
 0x324   :  { %v288_v25 = vunpack.c.l.bf16 %v8635_v24  ;;  %v4407_v47 = vsel %vm4298_vm3, %v4243_v41, %v4406_v62  ;;  %v304_v55 = vunpack.c.l.bf16 %v8639_v31  ;;  %v320_v29 = vunpack.c.l.bf16 %v8642_v33  ;;  %v8645_v53 = vld [vmem:[#allocation3 + $0x230] sm:$0xff] }
 0x325   :  { %v336_v1 = vunpack.c.l.bf16 %v8645_v53  ;;  %v4408_v12 = vsel %vm4300_vm4, %v4259_v42, %v4407_v47  ;;  %v8649_v2 = vld [vmem:[#allocation3 + $0x270] sm:$0xff]  ;;  %v536_v32 = vadd.f32 %v224_v51, %v208_v15 }
 0x326   :  { %v352_v16 = vunpack.c.l.bf16 %v8649_v2  ;;  %v8652_v50 = vld [vmem:[#allocation3 + $0x2b0] sm:$0xff]  ;;  %v4409_v22 = vsel %vm4302_vm5, %v4275_v36, %v4408_v12  ;;  %v648_v36 = vadd.f32 %v256_v48, %v240_v35  ;;  %v760_v62 = vadd.f32 %v288_v25, %v272_v63 }
 0x327   :  { %v368_v21 = vunpack.c.l.bf16 %v8652_v50  ;;  %v8655_v17 = vld [vmem:[#allocation3 + $0x2f0] sm:$0xff]  ;;  %v4410_v41 = vsel %vm4304_vm6, %v4291_v13, %v4409_v22  ;;  %v872_v47 = vadd.f32 %v320_v29, %v304_v55  ;;  %v537_v14 = vrot.slane %v536_v32, 4 }
 0x328   :  { %v384_v7 = vunpack.c.l.bf16 %v8655_v17  ;;  %v8659_v34 = vld [vmem:[#allocation3 + $0x330] sm:$0xff]  ;;  %v4426_v60 = vpack.c.b16 %v4410_v41, %v4410_v41  ;;  %v984_v12 = vadd.f32 %v352_v16, %v336_v1  ;;  %v649_v18 = vrot.slane %v648_v36, 4 }
 0x329   :  { %v400_v61 = vunpack.c.l.bf16 %v8659_v34  ;;  %v8662_v23 = vld [vmem:[#allocation3 + $0x370] sm:$0xff]  ;;  %v761_v30 = vrot.slane %v760_v62, 4  ;;  %v873_v40 = vrot.slane %v872_v47, 4  ;;  %v538_v13 = vadd.f32 %v537_v14, %v536_v32 }
 0x32a   :  { %v416_v4 = vunpack.c.l.bf16 %v8662_v23  ;;  %v8665_v11 = vld [vmem:[#allocation3 + $0x3b0] sm:$0xff]  ;;  %v1096_v10 = vadd.f32 %v384_v7, %v368_v21  ;;  %6042 = vmatprep.mubr.bf16.mxu1 %v4426_v60  ;;  %v985_v26 = vrot.slane %v984_v12, 4  ;;  %v650_v22 = vadd.f32 %v649_v18, %v648_v36 }
 0x32b   :  { %v432_v37 = vunpack.c.l.bf16 %v8665_v11  ;;  %v8669_v42 = vld [vmem:[#allocation3 + $0x3f0] sm:$0xff]  ;;  %v762_v46 = vadd.f32 %v761_v30, %v760_v62  ;;  %v874_v15 = vadd.f32 %v873_v40, %v872_v47  ;;  %v539_v48 = vrot.slane %v538_v13, 2 }
 0x32c   :  { %v448_v49 = vunpack.c.l.bf16 %v8669_v42  ;;  %v1208_v19 = vadd.f32 %v416_v4, %v400_v61  ;;  %v1097_v8 = vrot.slane %v1096_v10, 4  ;;  %v986_v51 = vadd.f32 %v985_v26, %v984_v12 }
 0x32d   :  { %v651_v63 = vrot.slane %v650_v22, 2  ;;  %v763_v29 = vrot.slane %v762_v46, 2  ;;  %v875_v1 = vrot.slane %v874_v15, 2  ;;  %v540_v7 = vadd.f32 %v539_v48, %v538_v13 }
 0x32e   :  { %v1320_v56 = vadd.f32 %v448_v49, %v432_v37  ;;  %v1209_v44 = vrot.slane %v1208_v19, 4  ;;  %v1098_v25 = vadd.f32 %v1097_v8, %v1096_v10  ;;  %v987_v16 = vrot.slane %v986_v51, 2 }
 0x32f   :  { %v652_v61 = vadd.f32 %v651_v63, %v650_v22  ;;  %v764_v14 = vadd.f32 %v763_v29, %v762_v46  ;;  %v876_v18 = vadd.f32 %v875_v1, %v874_v15  ;;  %v541_v30 = vrot.slane %v540_v7, 1 }
 0x330   :  { %v1321_v35 = vrot.slane %v1320_v56, 4  ;;  %v1210_v55 = vadd.f32 %v1209_v44, %v1208_v19  ;;  %v1099_v4 = vrot.slane %v1098_v25, 2  ;;  %v988_v41 = vadd.f32 %v987_v16, %v986_v51 }
 0x331   :  { %v653_v40 = vrot.slane %v652_v61, 1  ;;  %v765_v36 = vrot.slane %v764_v14, 1  ;;  %v877_v60 = vrot.slane %v876_v18, 1  ;;  %v8672_v19 = vadd.f32 %v541_v30, %v540_v7 }
 0x332   :  { %v1322_v21 = vadd.f32 %v1321_v35, %v1320_v56  ;;  %v1211_v37 = vrot.slane %v1210_v55, 2  ;;  %v1100_v26 = vadd.f32 %v1099_v4, %v1098_v25  ;;  %v989_v8 = vrot.slane %v988_v41, 1 }
 0x333   :  { %v8674_v10 = vadd.f32 %v653_v40, %v652_v61  ;;  %v8676_v47 = vadd.f32 %v765_v36, %v764_v14  ;;  %v8678_v46 = vadd.f32 %v877_v60, %v876_v18  ;;  %v6291_v51 = vcombine.low %v8618_v28, %v8622_v0 }
 0x334   :  { %v1323_v49 = vrot.slane %v1322_v21, 2  ;;  %v1212_v32 = vadd.f32 %v1211_v37, %v1210_v55  ;;  %v1101_v56 = vrot.slane %v1100_v26, 1  ;;  %v8680_v12 = vadd.f32 %v989_v8, %v988_v41 }
 0x335   :  { %v6307_v35 = vcombine.low %v8625_v39, %v8628_v45  ;;  %v6323_v63 = vcombine.low %v8632_v52, %v8635_v24  ;;  %v6339_v25 = vcombine.low %v8639_v31, %v8642_v33  ;;  %v6355_v55 = vcombine.low %v8645_v53, %v8649_v2 }
 0x336   :  { %v1324_v44 = vadd.f32 %v1323_v49, %v1322_v21  ;;  %v1213_v62 = vrot.slane %v1212_v32, 1  ;;  %v8682_v22 = vadd.f32 %v1101_v56, %v1100_v26  ;;  %v6371_v29 = vcombine.low %v8652_v50, %v8655_v17 }
 0x337   :  { %v6387_v28 = vcombine.low %v8659_v34, %v8662_v23  ;;  %v6403_v0 = vcombine.low %v8665_v11, %v8669_v42  ;;  %v2108_v39 = vunpack.i.l.bf16 %v6291_v51  ;;  %v2109_v45 = vunpack.i.h.bf16 %v6291_v51 }
 0x338   :  { %v1325_v13 = vrot.slane %v1324_v44, 1  ;;  %v8684_v15 = vadd.f32 %v1213_v62, %v1212_v32  ;;  %v2268_v1 = vunpack.i.l.bf16 %v6307_v35  ;;  %v2269_v16 = vunpack.i.h.bf16 %v6307_v35 }
 0x339   :  { %v2428_v52 = vunpack.i.l.bf16 %v6323_v63  ;;  %v2429_v24 = vunpack.i.h.bf16 %v6323_v63  ;;  %v2588_v21 = vunpack.i.l.bf16 %v6339_v25  ;;  %v2589_v31 = vunpack.i.h.bf16 %v6339_v25 }
 0x33a   :  { %v8690_v48 = vadd.f32 %v1325_v13, %v1324_v44  ;;  %v2748_v33 = vunpack.i.l.bf16 %v6355_v55  ;;  %v2110_v7 = vmax.f32 %v2108_v39, %v2109_v45  ;;  %v2270_v53 = vmax.f32 %v2268_v1, %v2269_v16 }
 0x33b   :  { %v2749_v2 = vunpack.i.h.bf16 %v6355_v55  ;;  %v2908_v61 = vunpack.i.l.bf16 %v6371_v29  ;;  %v2430_v50 = vmax.f32 %v2428_v52, %v2429_v24  ;;  %v2590_v17 = vmax.f32 %v2588_v21, %v2589_v31 }
 0x33c   :  { %v2909_v4 = vunpack.i.h.bf16 %v6371_v29  ;;  %v3068_v34 = vunpack.i.l.bf16 %v6387_v28  ;;  %v2111_v23 = vrot.slane %v2110_v7, 4  ;;  %v2271_v37 = vrot.slane %v2270_v53, 4 }
 0x33d   :  { %v2750_v11 = vmax.f32 %v2748_v33, %v2749_v2  ;;  %v3069_v42 = vunpack.i.h.bf16 %v6387_v28  ;;  %v2431_v14 = vrot.slane %v2430_v50, 4  ;;  %v2591_v18 = vrot.slane %v2590_v17, 4 }
 0x33e   :  { %v2910_v41 = vmax.f32 %v2908_v61, %v2909_v4  ;;  %v3228_v49 = vunpack.i.l.bf16 %v6403_v0  ;;  %v2112_v30 = vmax.f32 %v2110_v7, %v2111_v23  ;;  %v2272_v40 = vmax.f32 %v2270_v53, %v2271_v37 }
 0x33f   :  { %v2751_v26 = vrot.slane %v2750_v11, 4  ;;  %v3070_v32 = vmax.f32 %v3068_v34, %v3069_v42  ;;  %v2432_v36 = vmax.f32 %v2430_v50, %v2431_v14  ;;  %v2592_v60 = vmax.f32 %v2590_v17, %v2591_v18 }
 0x340   :  { %v2911_v8 = vrot.slane %v2910_v41, 4  ;;  %v3229_v44 = vunpack.i.h.bf16 %v6403_v0  ;;  %v2113_v56 = vrot.slane %v2112_v30, 2  ;;  %v2273_v62 = vrot.slane %v2272_v40, 2 }
 0x341   :  { %v2752_v13 = vmax.f32 %v2750_v11, %v2751_v26  ;;  %v3071_v51 = vrot.slane %v3070_v32, 4  ;;  %v2433_v35 = vrot.slane %v2432_v36, 2  ;;  %v2593_v63 = vrot.slane %v2592_v60, 2 }
 0x342   :  { %v2912_v25 = vmax.f32 %v2910_v41, %v2911_v8  ;;  %v3230_v55 = vmax.f32 %v3228_v49, %v3229_v44  ;;  %v2114_v29 = vmax.f32 %v2112_v30, %v2113_v56  ;;  %v2274_v28 = vmax.f32 %v2272_v40, %v2273_v62 }
 0x343   :  { %v2753_v39 = vrot.slane %v2752_v13, 2  ;;  %v3072_v45 = vmax.f32 %v3070_v32, %v3071_v51  ;;  %v2434_v1 = vmax.f32 %v2432_v36, %v2433_v35  ;;  %v2594_v16 = vmax.f32 %v2592_v60, %v2593_v63 }
 0x344   :  { %v2913_v52 = vrot.slane %v2912_v25, 2  ;;  %v3231_v24 = vrot.slane %v3230_v55, 4  ;;  %v2115_v21 = vrot.slane %v2114_v29, 1  ;;  %v2275_v31 = vrot.slane %v2274_v28, 1 }
 0x345   :  { %v2754_v33 = vmax.f32 %v2752_v13, %v2753_v39  ;;  %v3073_v0 = vrot.slane %v3072_v45, 2  ;;  %v2435_v7 = vrot.slane %v2434_v1, 1  ;;  %v2595_v53 = vrot.slane %v2594_v16, 1 }
 0x346   :  { %v2914_v2 = vmax.f32 %v2912_v25, %v2913_v52  ;;  %v3232_v61 = vmax.f32 %v3230_v55, %v3231_v24  ;;  %v2116_v50 = vmax.f32 %v2114_v29, %v2115_v21  ;;  %v2276_v17 = vmax.f32 %v2274_v28, %v2275_v31 }
 0x347   :  { %v2755_v4 = vrot.slane %v2754_v33, 1  ;;  %v3074_v34 = vmax.f32 %v3072_v45, %v3073_v0  ;;  %v2436_v23 = vmax.f32 %v2434_v1, %v2435_v7  ;;  %v2596_v37 = vmax.f32 %v2594_v16, %v2595_v53 }
 0x348   :  { %v2915_v11 = vrot.slane %v2914_v2, 1  ;;  %v3233_v42 = vrot.slane %v3232_v61, 2  ;;  %v2117_v14 = vpack.i.bf16 %v2116_v50, %v2116_v50  ;;  %v2277_v18 = vpack.i.bf16 %v2276_v17, %v2276_v17 }
 0x349   :  { %v2756_v41 = vmax.f32 %v2754_v33, %v2755_v4  ;;  %v3075_v49 = vrot.slane %v3074_v34, 1  ;;  %v2437_v30 = vpack.i.bf16 %v2436_v23, %v2436_v23  ;;  %v2597_v40 = vpack.i.bf16 %v2596_v37, %v2596_v37 }
 0x34a   :  { %v2916_v26 = vmax.f32 %v2914_v2, %v2915_v11  ;;  %v3234_v32 = vmax.f32 %v3232_v61, %v3233_v42  ;;  %v3280_v8 = vunpack.c.l.bf16 %v2117_v14  ;;  %v3296_v44 = vunpack.c.l.bf16 %v2277_v18 }
 0x34b   :  { %v2757_v36 = vpack.i.bf16 %v2756_v41, %v2756_v41  ;;  %v3076_v60 = vmax.f32 %v3074_v34, %v3075_v49  ;;  %v3312_v13 = vunpack.c.l.bf16 %v2437_v30  ;;  %v3328_v51 = vunpack.c.l.bf16 %v2597_v40 }
 0x34c   :  { %v2917_v56 = vpack.i.bf16 %v2916_v26, %v2916_v26  ;;  %v3235_v62 = vrot.slane %v3234_v32, 1  ;;  %v3408_v25 = vmul.f32 0.0625, %v8672_v19  ;;  %v3424_v55 = vmul.f32 0.0625, %v8674_v10 }
 0x34d   :  { %v3077_v35 = vpack.i.bf16 %v3076_v60, %v3076_v60  ;;  %v3344_v63 = vunpack.c.l.bf16 %v2757_v36  ;;  %v3440_v39 = vmul.f32 0.0625, %v8676_v47  ;;  %v3456_v45 = vmul.f32 0.0625, %v8678_v46 }
 0x34e   :  { %v3236_v29 = vmax.f32 %v3234_v32, %v3235_v62  ;;  %v3360_v28 = vunpack.c.l.bf16 %v2917_v56  ;;  %v3472_v16 = vmul.f32 0.0625, %v8680_v12  ;;  %v3488_v52 = vmul.f32 0.0625, %v8682_v22  ;;  %v8711_v21 = vpop.f32.mrf.mxu0 }
 0x34f   :  { %v3376_v1 = vunpack.c.l.bf16 %v3077_v35  ;;  %v3504_v24 = vmul.f32 0.0625, %v8684_v15  ;;  %v3520_v19 = vmul.f32 0.0625, %v8690_v48  ;;  %v3536_v33 = vadd.f32 %v3408_v25, %v3280_v8 }
 0x350   :  { %v3237_v31 = vpack.i.bf16 %v3236_v29, %v3236_v29  ;;  %v3552_v10 = vadd.f32 %v3424_v55, %v3296_v44  ;;  %v3568_v0 = vadd.f32 %v3440_v39, %v3312_v13  ;;  %v3584_v7 = vadd.f32 %v3456_v45, %v3328_v51  ;;  %v8714_v2 = vpop.f32.mrf.mxu0  ;;  %v8853_v29 = vld [vmem:[#allocation16_spill] sm:$0xff]  ;;  %v8855_v45 = vld [vmem:[#allocation18_spill] sm:$0xff] }
 0x351   :  { %v3600_v53 = vadd.f32 %v3472_v16, %v3344_v63  ;;  %v3616_v47 = vadd.f32 %v3488_v52, %v3360_v28  ;;  %v3632_v61 = vadd.f32 %v3504_v24, %v3376_v1  ;;  %v3664_v12 = vpack.c.bf16 %v3536_v33, %v3536_v33  ;;  %v8854_v28 = vld [vmem:[#allocation17_spill] sm:$0xff]  ;;  %v8856_v1 = vld [vmem:[#allocation19_spill] sm:$0xff] }
 0x352   :  { %v3392_v46 = vunpack.c.l.bf16 %v3237_v31  ;;  %v3680_v50 = vpack.c.bf16 %v3552_v10, %v3552_v10  ;;  %v3696_v22 = vpack.c.bf16 %v3568_v0, %v3568_v0  ;;  %v3712_v17 = vpack.c.bf16 %v3584_v7, %v3584_v7  ;;  %v5925_v34 = vpop.f32.mrf.mxu0 }
 0x353   :  { %v3728_v15 = vpack.c.bf16 %v3600_v53, %v3600_v53  ;;  %v3744_v4 = vpack.c.bf16 %v3616_v47, %v3616_v47  ;;  %v3760_v37 = vpack.c.bf16 %v3632_v61, %v3632_v61  ;;  %v4176_v48 = vunpack.c.l.b16 %v3664_v12 }
 0x354   :  { %v3648_v23 = vadd.f32 %v3520_v19, %v3392_v46  ;;  %v4192_v11 = vunpack.c.l.b16 %v3680_v50  ;;  %v4208_v42 = vunpack.c.l.b16 %v3696_v22  ;;  %v4224_v14 = vunpack.c.l.b16 %v3712_v17  ;;  %v5926_v49 = vpop.f32.mrf.mxu0 }
 0x355   :  { %v4240_v18 = vunpack.c.l.b16 %v3728_v15  ;;  %v4256_v41 = vunpack.c.l.b16 %v3744_v4  ;;  %v4272_v40 = vunpack.c.l.b16 %v3760_v37  ;;  %v210_v32 = vunpack.c.l.bf16 %v8502_v57 }
 0x356   :  { %v3776_v30 = vpack.c.bf16 %v3648_v23, %v3648_v23  ;;  %v4383_v26 = vsel %vm4292_vm0, %v4192_v11, %v4176_v48  ;;  %v226_v60 = vunpack.c.l.bf16 %v8504_v6  ;;  %v242_v8 = vunpack.c.l.bf16 %v8506_v43 }
 0x357   :  { %v4384_v36 = vsel %vm4294_vm1, %v4208_v42, %v4383_v26  ;;  %v258_v44 = vunpack.c.l.bf16 %v8509_v59  ;;  %v274_v13 = vunpack.c.l.bf16 %v8511_v5  ;;  %v290_v51 = vunpack.c.l.bf16 %v8513_v54 }
 0x358   :  { %v4288_v56 = vunpack.c.l.b16 %v3776_v30  ;;  %v4385_v62 = vsel %vm4296_vm2, %v4224_v14, %v4384_v36  ;;  %v306_v63 = vunpack.c.l.bf16 %v8518_v38  ;;  %v322_v57 = vunpack.c.l.bf16 %v8520_v27 }
 0x359   :  { %v4386_v35 = vsel %vm4298_vm3, %v4240_v18, %v4385_v62  ;;  %v338_v25 = vunpack.c.l.bf16 %v8522_v58  ;;  %v354_v43 = vunpack.c.l.bf16 %v8528_v20  ;;  %v370_v59 = vunpack.c.l.bf16 %v8530_v3 }
 0x35a   :  { %v4387_v6 = vsel %vm4300_vm4, %v4256_v41, %v4386_v35  ;;  %v386_v55 = vunpack.c.l.bf16 %v8535_v9  ;;  %v402_v54 = vunpack.c.l.bf16 %v8853_v29  ;;  %v418_v39 = vunpack.c.l.bf16 %v8854_v28 }
 0x35b   :  { %v4388_v5 = vsel %vm4302_vm5, %v4272_v40, %v4387_v6  ;;  %v434_v38 = vunpack.c.l.bf16 %v8855_v45  ;;  %v450_v58 = vunpack.c.l.bf16 %v8856_v1  ;;  %v550_v16 = vadd.f32 %v226_v60, %v210_v32  ;;  %v7209_v45 = vld [vmem:[#allocation3 + $0x78] sm:$0xff] }
 0x35c   :  { %v4389_v27 = vsel %vm4304_vm6, %v4288_v56, %v4388_v5  ;;  %v662_v52 = vadd.f32 %v258_v44, %v242_v8  ;;  %v774_v20 = vadd.f32 %v290_v51, %v274_v13  ;;  %v886_v31 = vadd.f32 %v322_v57, %v306_v63  ;;  %v7211_v1 = vld [vmem:[#allocation3 + $0xf8] sm:$0xff] }
 0x35d   :  { %v4423_v24 = vpack.c.b16 %v4389_v27, %v4389_v27  ;;  %v998_v3 = vadd.f32 %v354_v43, %v338_v25  ;;  %v551_v19 = vrot.slane %v550_v16, 4  ;;  %v1110_v33 = vadd.f32 %v386_v55, %v370_v59  ;;  %v7210_v27 = vld [vmem:[#allocation3 + $0xb8] sm:$0xff] }
 0x35e   :  { %v663_v9 = vrot.slane %v662_v52, 4  ;;  %v1222_v10 = vadd.f32 %v418_v39, %v402_v54  ;;  %v775_v0 = vrot.slane %v774_v20, 4  ;;  %v887_v7 = vrot.slane %v886_v31, 4  ;;  %v7208_v39 = vld [vmem:[#allocation3 + $0x38] sm:$0xff] }
 0x35f   :  { %6002 = vmatmul.mubr.bf16.vlgmr.msra.gmra.mxu0 %v4423_v24  ;;  %v999_v53 = vrot.slane %v998_v3, 4  ;;  %v1334_v47 = vadd.f32 %v450_v58, %v434_v38  ;;  %v552_v46 = vadd.f32 %v551_v19, %v550_v16  ;;  %v1111_v12 = vrot.slane %v1110_v33, 4  ;;  %v7213_v24 = vld [vmem:[#allocation3 + $0x178] sm:$0xff] }
 0x360   :  { %v664_v61 = vadd.f32 %v663_v9, %v662_v52  ;;  %v1223_v50 = vrot.slane %v1222_v10, 4  ;;  %v776_v22 = vadd.f32 %v775_v0, %v774_v20  ;;  %v888_v17 = vadd.f32 %v887_v7, %v886_v31  ;;  %v7212_v52 = vld [vmem:[#allocation3 + $0x138] sm:$0xff] }
 0x361   :  { %v1000_v15 = vadd.f32 %v999_v53, %v998_v3  ;;  %v1335_v4 = vrot.slane %v1334_v47, 4  ;;  %v553_v34 = vrot.slane %v552_v46, 2  ;;  %v1112_v37 = vadd.f32 %v1111_v12, %v1110_v33  ;;  %v7214_v31 = vld [vmem:[#allocation3 + $0x1b8] sm:$0xff] }
 0x362   :  { %v665_v23 = vrot.slane %v664_v61, 2  ;;  %v1224_v48 = vadd.f32 %v1223_v50, %v1222_v10  ;;  %v777_v11 = vrot.slane %v776_v22, 2  ;;  %v889_v42 = vrot.slane %v888_v17, 2  ;;  %v7215_v3 = vld [vmem:[#allocation3 + $0x1f8] sm:$0xff] }
 0x363   :  { %v1001_v14 = vrot.slane %v1000_v15, 2  ;;  %v1336_v18 = vadd.f32 %v1335_v4, %v1334_v47  ;;  %v554_v41 = vadd.f32 %v553_v34, %v552_v46  ;;  %v1113_v30 = vrot.slane %v1112_v37, 2  ;;  %v7216_v9 = vld [vmem:[#allocation3 + $0x238] sm:$0xff] }
 0x364   :  { %v666_v49 = vadd.f32 %v665_v23, %v664_v61  ;;  %v1225_v40 = vrot.slane %v1224_v48, 2  ;;  %v778_v26 = vadd.f32 %v777_v11, %v776_v22  ;;  %v890_v32 = vadd.f32 %v889_v42, %v888_v17  ;;  %v7217_v33 = vld [vmem:[#allocation3 + $0x278] sm:$0xff] }
 0x365   :  { %v1002_v36 = vadd.f32 %v1001_v14, %v1000_v15  ;;  %v1337_v60 = vrot.slane %v1336_v18, 2  ;;  %v555_v8 = vrot.slane %v554_v41, 1  ;;  %v1114_v56 = vadd.f32 %v1113_v30, %v1112_v37  ;;  %v7218_v0 = vld [vmem:[#allocation3 + $0x2b8] sm:$0xff] }
 0x366   :  { %v667_v44 = vrot.slane %v666_v49, 1  ;;  %v1226_v62 = vadd.f32 %v1225_v40, %v1224_v48  ;;  %v779_v13 = vrot.slane %v778_v26, 1  ;;  %v891_v51 = vrot.slane %v890_v32, 1  ;;  %v7219_v7 = vld [vmem:[#allocation3 + $0x2f8] sm:$0xff] }
 0x367   :  { %v1003_v35 = vrot.slane %v1002_v36, 1  ;;  %v1338_v63 = vadd.f32 %v1337_v60, %v1336_v18  ;;  %v8739_v57 = vadd.f32 %v555_v8, %v554_v41  ;;  %v1115_v6 = vrot.slane %v1114_v56, 1  ;;  %v7220_v47 = vld [vmem:[#allocation3 + $0x338] sm:$0xff] }
 0x368   :  { %v8741_v25 = vadd.f32 %v667_v44, %v666_v49  ;;  %v1227_v43 = vrot.slane %v1226_v62, 1  ;;  %v8743_v59 = vadd.f32 %v779_v13, %v778_v26  ;;  %v8745_v55 = vadd.f32 %v891_v51, %v890_v32  ;;  %v7221_v46 = vld [vmem:[#allocation3 + $0x378] sm:$0xff] }
 0x369   :  { %v8747_v5 = vadd.f32 %v1003_v35, %v1002_v36  ;;  %v1339_v29 = vrot.slane %v1338_v63, 1  ;;  %v8749_v54 = vadd.f32 %v1115_v6, %v1114_v56  ;;  %v6293_v38 = vcombine.low %v7208_v39, %v7209_v45  ;;  %v7222_v12 = vld [vmem:[#allocation3 + $0x3b8] sm:$0xff] }
 0x36a   :  { %v8751_v28 = vadd.f32 %v1227_v43, %v1226_v62  ;;  %v6309_v58 = vcombine.low %v7210_v27, %v7211_v1  ;;  %v6325_v20 = vcombine.low %v7212_v52, %v7213_v24  ;;  %v6341_v19 = vcombine.low %v7214_v31, %v7215_v3  ;;  %v7223_v50 = vld [vmem:[#allocation3 + $0x3f8] sm:$0xff] }
 0x36b   :  { %v8753_v16 = vadd.f32 %v1339_v29, %v1338_v63  ;;  %v6357_v10 = vcombine.low %v7216_v9, %v7217_v33  ;;  %v6373_v53 = vcombine.low %v7218_v0, %v7219_v7  ;;  %v6389_v61 = vcombine.low %v7220_v47, %v7221_v46 }
 0x36c   :  { %v6405_v22 = vcombine.low %v7222_v12, %v7223_v50  ;;  %v2128_v17 = vunpack.i.l.bf16 %v6293_v38  ;;  %v2129_v15 = vunpack.i.h.bf16 %v6293_v38  ;;  %v2288_v4 = vunpack.i.l.bf16 %v6309_v58 }
 0x36d   :  { %v2289_v34 = vunpack.i.h.bf16 %v6309_v58  ;;  %v2448_v23 = vunpack.i.l.bf16 %v6325_v20  ;;  %v2449_v37 = vunpack.i.h.bf16 %v6325_v20  ;;  %v2608_v48 = vunpack.i.l.bf16 %v6341_v19 }
 0x36e   :  { %v2609_v11 = vunpack.i.h.bf16 %v6341_v19  ;;  %v2768_v42 = vunpack.i.l.bf16 %v6357_v10  ;;  %v2130_v14 = vmax.f32 %v2128_v17, %v2129_v15  ;;  %v2769_v41 = vunpack.i.h.bf16 %v6357_v10 }
 0x36f   :  { %v2290_v18 = vmax.f32 %v2288_v4, %v2289_v34  ;;  %v2928_v49 = vunpack.i.l.bf16 %v6373_v53  ;;  %v2450_v30 = vmax.f32 %v2448_v23, %v2449_v37  ;;  %v2929_v26 = vunpack.i.h.bf16 %v6373_v53 }
 0x370   :  { %v2610_v40 = vmax.f32 %v2608_v48, %v2609_v11  ;;  %v3088_v32 = vunpack.i.l.bf16 %v6389_v61  ;;  %v2131_v36 = vrot.slane %v2130_v14, 4  ;;  %v2770_v8 = vmax.f32 %v2768_v42, %v2769_v41 }
 0x371   :  { %v2291_v60 = vrot.slane %v2290_v18, 4  ;;  %v3089_v44 = vunpack.i.h.bf16 %v6389_v61  ;;  %v2451_v56 = vrot.slane %v2450_v30, 4  ;;  %v2930_v13 = vmax.f32 %v2928_v49, %v2929_v26 }
 0x372   :  { %v2611_v62 = vrot.slane %v2610_v40, 4  ;;  %v3248_v51 = vunpack.i.l.bf16 %v6405_v22  ;;  %v2132_v35 = vmax.f32 %v2130_v14, %v2131_v36  ;;  %v2771_v6 = vrot.slane %v2770_v8, 4 }
 0x373   :  { %v2292_v63 = vmax.f32 %v2290_v18, %v2291_v60  ;;  %v3090_v43 = vmax.f32 %v3088_v32, %v3089_v44  ;;  %v2452_v29 = vmax.f32 %v2450_v30, %v2451_v56  ;;  %v2931_v45 = vrot.slane %v2930_v13, 4 }
 0x374   :  { %v2612_v39 = vmax.f32 %v2610_v40, %v2611_v62  ;;  %v3249_v38 = vunpack.i.h.bf16 %v6405_v22  ;;  %v2133_v27 = vrot.slane %v2132_v35, 2  ;;  %v2772_v58 = vmax.f32 %v2770_v8, %v2771_v6 }
 0x375   :  { %v2293_v1 = vrot.slane %v2292_v63, 2  ;;  %v3091_v52 = vrot.slane %v3090_v43, 4  ;;  %v2453_v24 = vrot.slane %v2452_v29, 2  ;;  %v2932_v31 = vmax.f32 %v2930_v13, %v2931_v45 }
 0x376   :  { %v2613_v20 = vrot.slane %v2612_v39, 2  ;;  %v3250_v3 = vmax.f32 %v3248_v51, %v3249_v38  ;;  %v2134_v19 = vmax.f32 %v2132_v35, %v2133_v27  ;;  %v2773_v33 = vrot.slane %v2772_v58, 2 }
 0x377   :  { %v2294_v9 = vmax.f32 %v2292_v63, %v2293_v1  ;;  %v3092_v10 = vmax.f32 %v3090_v43, %v3091_v52  ;;  %v2454_v0 = vmax.f32 %v2452_v29, %v2453_v24  ;;  %v2933_v53 = vrot.slane %v2932_v31, 2 }
 0x378   :  { %v2614_v7 = vmax.f32 %v2612_v39, %v2613_v20  ;;  %v3251_v47 = vrot.slane %v3250_v3, 4  ;;  %v2135_v46 = vrot.slane %v2134_v19, 1  ;;  %v2774_v12 = vmax.f32 %v2772_v58, %v2773_v33 }
 0x379   :  { %v2295_v61 = vrot.slane %v2294_v9, 1  ;;  %v3093_v50 = vrot.slane %v3092_v10, 2  ;;  %v2455_v22 = vrot.slane %v2454_v0, 1  ;;  %v2934_v15 = vmax.f32 %v2932_v31, %v2933_v53 }
 0x37a   :  { %v2615_v17 = vrot.slane %v2614_v7, 1  ;;  %v3252_v4 = vmax.f32 %v3250_v3, %v3251_v47  ;;  %v2136_v34 = vmax.f32 %v2134_v19, %v2135_v46  ;;  %v2775_v37 = vrot.slane %v2774_v12, 1 }
 0x37b   :  { %v2296_v23 = vmax.f32 %v2294_v9, %v2295_v61  ;;  %v3094_v48 = vmax.f32 %v3092_v10, %v3093_v50  ;;  %v2456_v11 = vmax.f32 %v2454_v0, %v2455_v22  ;;  %v2935_v14 = vrot.slane %v2934_v15, 1 }
 0x37c   :  { %v2616_v42 = vmax.f32 %v2614_v7, %v2615_v17  ;;  %v3253_v18 = vrot.slane %v3252_v4, 2  ;;  %v2137_v41 = vpack.i.bf16 %v2136_v34, %v2136_v34  ;;  %v2776_v30 = vmax.f32 %v2774_v12, %v2775_v37 }
 0x37d   :  { %v2297_v49 = vpack.i.bf16 %v2296_v23, %v2296_v23  ;;  %v3095_v40 = vrot.slane %v3094_v48, 1  ;;  %v2457_v26 = vpack.i.bf16 %v2456_v11, %v2456_v11  ;;  %v2936_v36 = vmax.f32 %v2934_v15, %v2935_v14  ;;  %v8857_v11 = vld [vmem:[#allocation20_spill] sm:$0xff] }
 0x37e   :  { %v2617_v32 = vpack.i.bf16 %v2616_v42, %v2616_v42  ;;  %v3254_v60 = vmax.f32 %v3252_v4, %v3253_v18  ;;  %v2777_v8 = vpack.i.bf16 %v2776_v30, %v2776_v30  ;;  %v3282_v56 = vunpack.c.l.bf16 %v2137_v41  ;;  %v8858_v42 = vld [vmem:[#allocation21_spill] sm:$0xff]  ;;  %v8860_v30 = vld [vmem:[#allocation22_spill] sm:$0xff] }
 0x37f   :  { %v3096_v44 = vmax.f32 %v3094_v48, %v3095_v40  ;;  %v3298_v62 = vunpack.c.l.bf16 %v2297_v49  ;;  %v2937_v13 = vpack.i.bf16 %v2936_v36, %v2936_v36  ;;  %v3314_v35 = vunpack.c.l.bf16 %v2457_v26  ;;  %v8859_v49 = vld [vmem:[#allocation26_spill] sm:$0xff]  ;;  %v8861_v36 = vld [vmem:[#allocation24_spill] sm:$0xff] }
 0x380   :  { %v3255_v51 = vrot.slane %v3254_v60, 1  ;;  %v3330_v63 = vunpack.c.l.bf16 %v2617_v32  ;;  %v3346_v43 = vunpack.c.l.bf16 %v2777_v8  ;;  %v3410_v29 = vmul.f32 0.0625, %v8739_v57 }
 0x381   :  { %v3097_v6 = vpack.i.bf16 %v3096_v44, %v3096_v44  ;;  %v3426_v39 = vmul.f32 0.0625, %v8741_v25  ;;  %v3362_v38 = vunpack.c.l.bf16 %v2937_v13  ;;  %v3442_v27 = vmul.f32 0.0625, %v8743_v59  ;;  %v8862_v44 = vld [vmem:[#allocation23_spill] sm:$0xff]  ;;  %v8863_v13 = vld [vmem:[#allocation25_spill] sm:$0xff] }
 0x382   :  { %v3256_v45 = vmax.f32 %v3254_v60, %v3255_v51  ;;  %v3458_v1 = vmul.f32 0.0625, %v8745_v55  ;;  %v3474_v52 = vmul.f32 0.0625, %v8747_v5  ;;  %v3490_v24 = vmul.f32 0.0625, %v8749_v54  ;;  %v5962_v31 = vpop.f32.mrf.mxu1 }
 0x383   :  { %v3378_v58 = vunpack.c.l.bf16 %v3097_v6  ;;  %v3506_v20 = vmul.f32 0.0625, %v8751_v28  ;;  %v3522_v19 = vmul.f32 0.0625, %v8753_v16  ;;  %v3538_v57 = vadd.f32 %v3410_v29, %v3282_v56 }
 0x384   :  { %v3257_v3 = vpack.i.bf16 %v3256_v45, %v3256_v45  ;;  %v3554_v9 = vadd.f32 %v3426_v39, %v3298_v62  ;;  %v3570_v25 = vadd.f32 %v3442_v27, %v3314_v35  ;;  %v3586_v33 = vadd.f32 %v3458_v1, %v3330_v63  ;;  %v5964_v59 = vpop.f32.mrf.mxu1  ;;  %v6154_v27 = vld [vmem:[#allocation8 + $0x78] sm:$0xff]  ;;  %v6169_v1 = vld [vmem:[#allocation8 + $0xf0] sm:$0xff] }
 0x385   :  { %v3602_v10 = vadd.f32 %v3474_v52, %v3346_v43  ;;  %v3618_v0 = vadd.f32 %v3490_v24, %v3362_v38  ;;  %v3634_v55 = vadd.f32 %v3506_v20, %v3378_v58  ;;  %v3666_v53 = vpack.c.bf16 %v3538_v57, %v3538_v57  ;;  %v6170_v38 = vld [vmem:[#allocation8 + $0xf8] sm:$0xff]  ;;  %v6153_v58 = vld [vmem:[#allocation8 + $0x70] sm:$0xff]  ;;  %v6168_v52 = vld [vmem:[#allocation8 + $0xe8] sm:$0xff] }
 0x386   :  { %v3394_v7 = vunpack.c.l.bf16 %v3257_v3  ;;  %v3682_v47 = vpack.c.bf16 %v3554_v9, %v3554_v9  ;;  %v3698_v5 = vpack.c.bf16 %v3570_v25, %v3570_v25  ;;  %v3714_v46 = vpack.c.bf16 %v3586_v33, %v3586_v33  ;;  %v5966_v28 = vpop.f32.mrf.mxu1  ;;  %6664 = vmatprep.subr.mxu0 %v6170_v38  ;;  %v6167_v24 = vld [vmem:[#allocation8 + $0xe0] sm:$0xff]  ;;  %v6166_v20 = vld [vmem:[#allocation8 + $0xd8] sm:$0xff]  ;;  %v6165_v3 = vld [vmem:[#allocation8 + $0xd0] sm:$0xff] }
 0x387   :  { %v3730_v54 = vpack.c.bf16 %v3602_v10, %v3602_v10  ;;  %v3746_v61 = vpack.c.bf16 %v3618_v0, %v3618_v0  ;;  %v3762_v50 = vpack.c.bf16 %v3634_v55, %v3634_v55  ;;  %v4178_v22 = vunpack.c.l.b16 %v3666_v53  ;;  %6665 = vmatpush3.msra.mxu0 %v6154_v27  ;;  %v6164_v57 = vld [vmem:[#allocation8 + $0xc8] sm:$0xff]  ;;  %v6163_v25 = vld [vmem:[#allocation8 + $0xc0] sm:$0xff]  ;;  %v6162_v10 = vld [vmem:[#allocation8 + $0xb8] sm:$0xff] }
 0x388   :  { %v3650_v12 = vadd.f32 %v3522_v19, %v3394_v7  ;;  %v4194_v16 = vunpack.c.l.b16 %v3682_v47  ;;  %v4210_v17 = vunpack.c.l.b16 %v3698_v5  ;;  %v4226_v15 = vunpack.c.l.b16 %v3714_v46  ;;  %v5967_v34 = vpop.f32.mrf.mxu1  ;;  %6666 = vmatprep.subr.mxu0 %v6169_v1  ;;  %v6149_v19 = vld [vmem:[#allocation8 + $0x50] sm:$0xff]  ;;  %v6148_v9 = vld [vmem:[#allocation8 + $0x48] sm:$0xff]  ;;  %v6147_v33 = vld [vmem:[#allocation8 + $0x40] sm:$0xff] }
 0x389   :  { %v4242_v4 = vunpack.c.l.b16 %v3730_v54  ;;  %v4258_v37 = vunpack.c.l.b16 %v3746_v61  ;;  %v5801_v14 = vadd.f32 %v8858_v42, %v8857_v11  ;;  %v4274_v18 = vunpack.c.l.b16 %v3762_v50  ;;  %6667 = vmatpush3.msra.mxu0 %v6153_v58  ;;  %v6146_v0 = vld [vmem:[#allocation8 + $0x38] sm:$0xff]  ;;  %v6145_v7 = vld [vmem:[#allocation8 + $0x30] sm:$0xff]  ;;  %v6160_v55 = vld [vmem:[#allocation8 + $0xa8] sm:$0xff] }
 0x38a   :  { %v3778_v23 = vpack.c.bf16 %v3650_v12, %v3650_v12  ;;  %v4397_v48 = vsel %vm4292_vm0, %v4194_v16, %v4178_v22  ;;  %v5840_v40 = vadd.f32 %v8860_v30, %v8859_v49  ;;  %6668 = vmatprep.subr.mxu0 %v6168_v52  ;;  %v6144_v53 = vld [vmem:[#allocation8 + $0x28] sm:$0xff]  ;;  %v6159_v47 = vld [vmem:[#allocation8 + $0xa0] sm:$0xff]  ;;  %v6158_v46 = vld [vmem:[#allocation8 + $0x98] sm:$0xff] }
 0x38b   :  { %v4398_v41 = vsel %vm4294_vm1, %v4210_v17, %v4397_v48  ;;  %v5842_v60 = vadd.f32 %v8861_v36, %v5801_v14  ;;  %v6143_v5 = vld [vmem:[#allocation8 + $0x20] sm:$0xff]  ;;  %v6142_v54 = vld [vmem:[#allocation8 + $0x18] sm:$0xff]  ;;  %v6157_v61 = vld [vmem:[#allocation8 + $0x90] sm:$0xff] }
 0x38c   :  { %v4290_v26 = vunpack.c.l.b16 %v3778_v23  ;;  %v4399_v32 = vsel %vm4296_vm2, %v4226_v15, %v4398_v41  ;;  %v5881_v56 = vadd.f32 %v8862_v44, %v5840_v40  ;;  %v6141_v28 = vld [vmem:[#allocation8 + $0x10] sm:$0xff]  ;;  %v6156_v12 = vld [vmem:[#allocation8 + $0x88] sm:$0xff]  ;;  %v6155_v22 = vld [vmem:[#allocation8 + $0x80] sm:$0xff] }
 0x38d   :  { %v4400_v8 = vsel %vm4298_vm3, %v4242_v4, %v4399_v32  ;;  %v5883_v51 = vadd.f32 %v8863_v13, %v5842_v60  ;;  %v6140_v50 = vld [vmem:[#allocation8 + $0x8] sm:$0xff]  ;;  %v6139_v16 = vld [vmem:[#allocation8] sm:$0xff] }
 0x38e   :  { %v4401_v62 = vsel %vm4300_vm4, %v4258_v37, %v4400_v8  ;;  %v5922_v63 = vadd.f32 %v8711_v21, %v5881_v56  ;;  %v6152_v21 = vld [vmem:[#allocation8 + $0x68] sm:$0xff] }
 0x38f   :  { %v4402_v35 = vsel %vm4302_vm5, %v4274_v18, %v4401_v62  ;;  %v5924_v43 = vadd.f32 %v8714_v2, %v5883_v51  ;;  %6669 = vmatpush3.msra.mxu0 %v6152_v21  ;;  %v6151_v2 = vld [vmem:[#allocation8 + $0x60] sm:$0xff] }
 0x390   :  { %v4403_v6 = vsel %vm4304_vm6, %v4290_v26, %v4402_v35  ;;  %v8779_v39 = vadd.f32 %v5962_v31, %v5922_v63  ;;  %6670 = vmatprep.subr.mxu0 %v6167_v24  ;;  %v6150_v31 = vld [vmem:[#allocation8 + $0x58] sm:$0xff] }
 0x391   :  { %v4425_v29 = vpack.c.b16 %v4403_v6, %v4403_v6  ;;  %v8781_v45 = vadd.f32 %v5964_v59, %v5924_v43  ;;  %6671 = vmatpush3.msra.mxu0 %v6151_v2  ;;  %v6161_v59 = vld [vmem:[#allocation8 + $0xb0] sm:$0xff] }
 0x392   :  { %6672 = vmatprep.subr.mxu0 %v6166_v20 }
 0x393   :  { %6043 = vmatmul.mubr.bf16.vlgmr.msra.gmra.mxu1 %v4425_v29  ;;  %6673 = vmatpush3.msra.mxu0 %v6150_v31 }
 0x394   :  { %6674 = vmatprep.subr.mxu0 %v6165_v3 }
 0x395   :  { %6675 = vmatpush3.msra.mxu0 %v6149_v19 }
 0x396   :  { %6676 = vmatprep.subr.mxu0 %v6164_v57 }
 0x397   :  { %6677 = vmatpush3.msra.mxu0 %v6148_v9  ;;  %v6109_v9 = vlaneseq }
 0x398   :  { %6678 = vmatprep.subr.mxu0 %v6163_v25 }
 0x399   :  { %6679 = vmatpush3.msra.mxu0 %v6147_v33  ;;  %v6110_v33 = vshrl.u32 %v6109_v9, 7 }
 0x39a   :  { %6680 = vmatprep.subr.mxu0 %v6162_v10 }
 0x39b   :  { %6681 = vmatpush3.msra.mxu0 %v6146_v0  ;;  %v6111_v10 = vsub.s32 0, %v6110_v33  ;;  %v6107_v0 = vld [vmem:[%s8802_s2] sm:$0x3]  ;;  %s7339_s2 = smov [#allocation9]  }
 0x39c   :  { %6682 = vmatprep.subr.mxu0 %v6161_v59  ;;  %v6115_v59 = vsub.s32 1, %v6110_v33 }
 0x39d   :  { %6683 = vmatpush3.msra.mxu0 %v6145_v7  ;;  %v6121_v7 = vld [vmem:[%s8803_s3] sm:$0x3]  ;;  %s6255_s3 = sshll.u32 %s7339_s2, 4  ;;  %s6256_s3 = int_to_ptr.vmem [resolvable:$true] %s6255_s3 }
 0x39e   :  { %6684 = vmatprep.subr.mxu0 %v6160_v55  ;;  %v6112_v55 = vrot.slane %v6107_v0, %v6111_v10  ;;  %s7284_s21 = scalar_lea.vmem %s6256_s3, 256  ;;  %p7289_p2 = scmp.lt.s32.totalorder %s6256_s3, %s6256_s3 }
 0x39f   :  { %6685 = vmatpush3.msra.mxu0 %v6144_v53  ;;  %p7285_p1 = scmp.ne.s32.totalorder %s6256_s3, %s7284_s21  ;;  %p7290_p3 = scmp.lt.s32.totalorder %s7284_s21, %s7284_s21 }
 0x3a0   :  { %6686 = vmatprep.subr.mxu0 %v6159_v47 }
 0x3a1   :  { %6687 = vmatpush3.msra.mxu0 %v6143_v5  ;;  %v6116_v5 = vrot.slane %v6107_v0, %v6115_v59  ;;  %p7291_p4 = por %p7290_p3, %p7289_p2 }
 0x3a2   :  { %6688 = vmatprep.subr.mxu0 %v6158_v46  ;;  %v6126_v46 = vrot.slane %v6121_v7, %v6111_v10 }
 0x3a3   :  { %6689 = vmatpush3.msra.mxu0 %v6142_v54  ;;  %p7292_p5 = pnand %p7291_p4, %p7285_p1 }
 0x3a4   :  { %6690 = vmatprep.subr.mxu0 %v6157_v61 }
 0x3a5   :  { %6691 = vmatpush3.msra.mxu0 %v6141_v28 }
 0x3a6   :  { %6692 = vmatprep.subr.mxu0 %v6156_v12  ;;  %v6130_v12 = vrot.slane %v6121_v7, %v6115_v59 }
 0x3a7   :  { %6693 = vmatpush3.msra.mxu0 %v6140_v50 }
 0x3a8   :  { %6694 = vmatprep.subr.mxu0 %v6155_v22 }
 0x3a9   :  { %6695 = vmatpush3.msra.mxu0 %v6139_v16 }
 0x41f   :  { %v6003_v17 = vpop.f32.mrf.mxu0 }
 0x420   :  { %v6004_v23 = vadd.f32 %v6003_v17, %v8779_v39 }
 0x421   :  { %v6005_v15 = vpop.f32.mrf.mxu0 }
 0x422   :  { %v6006_v37 = vadd.f32 %v6005_v15, %v8781_v45 }
 0x423   :  { %v6007_v4 = vpop.f32.mrf.mxu0 }
 0x425   :  { %v6008_v34 = vpop.f32.mrf.mxu0 }
 0x453   :  { %v6044_v48 = vpop.f32.mrf.mxu1 }
 0x454   :  { %v6045_v11 = vadd.f32 %v6044_v48, %v6004_v23 }
 0x455   :  { %v6046_v42 = vpop.f32.mrf.mxu1 }
 0x456   :  { %v6068_v14 = vrot.slane %v6045_v11, 4  ;;  %v6047_v18 = vadd.f32 %v6046_v42, %v6006_v37 }
 0x457   :  { %v6048_v41 = vpop.f32.mrf.mxu1 }
 0x458   :  { %v6069_v49 = vadd.f32 %v6068_v14, %v6045_v11  ;;  %v6074_v30 = vrot.slane %v6047_v18, 4 }
 0x459   :  { %v6049_v40 = vpop.f32.mrf.mxu1 }
 0x45a   :  { %v6070_v26 = vrot.slane %v6069_v49, 2  ;;  %v6075_v32 = vadd.f32 %v6074_v30, %v6047_v18 }
 0x45c   :  { %v6071_v36 = vadd.f32 %v6070_v26, %v6069_v49  ;;  %v6076_v60 = vrot.slane %v6075_v32, 2 }
 0x45e   :  { %v6072_v8 = vrot.slane %v6071_v36, 1  ;;  %v6077_v44 = vadd.f32 %v6076_v60, %v6075_v32 }
 0x460   :  { %v6073_v56 = vadd.f32 %v6072_v8, %v6071_v36  ;;  %v6078_v62 = vrot.slane %v6077_v44, 1 }
 0x462   :  { %v6081_v13 = vmul.f32 0.125, %v6073_v56  ;;  %v6079_v51 = vadd.f32 %v6078_v62, %v6077_v44 }
 0x464   :  { %v6083_v35 = vsub.f32 %v6045_v11, %v6081_v13  ;;  %v6082_v63 = vmul.f32 0.125, %v6079_v51 }
 0x466   :  { %v6085_v6 = vmul.f32 %v6083_v35, %v6083_v35  ;;  %v6084_v43 = vsub.f32 %v6047_v18, %v6082_v63 }
 0x468   :  { %v6087_v29 = vrot.slane %v6085_v6, 4  ;;  %v6086_v39 = vmul.f32 %v6084_v43, %v6084_v43 }
 0x46a   :  { %v6088_v45 = vadd.f32 %v6087_v29, %v6085_v6  ;;  %v6093_v38 = vrot.slane %v6086_v39, 4 }
 0x46c   :  { %v6089_v27 = vrot.slane %v6088_v45, 2  ;;  %v6094_v1 = vadd.f32 %v6093_v38, %v6086_v39 }
 0x46e   :  { %v6090_v58 = vadd.f32 %v6089_v27, %v6088_v45  ;;  %v6095_v52 = vrot.slane %v6094_v1, 2 }
 0x470   :  { %v6091_v21 = vrot.slane %v6090_v58, 1  ;;  %v6096_v24 = vadd.f32 %v6095_v52, %v6094_v1 }
 0x472   :  { %v6092_v2 = vadd.f32 %v6091_v21, %v6090_v58  ;;  %v6097_v20 = vrot.slane %v6096_v24, 1 }
 0x474   :  { %v6099_v31 = vmul.f32 0.125, %v6092_v2  ;;  %v6098_v3 = vadd.f32 %v6097_v20, %v6096_v24 }
 0x476   :  { %v6101_v19 = vadd.f32 1e-05, %v6099_v31  ;;  %v6100_v57 = vmul.f32 0.125, %v6098_v3 }
 0x478   :  { %7092 = vrsqrt.f32 %v6101_v19  ;;  %v6102_v25 = vadd.f32 1e-05, %v6100_v57 }
 0x47a   :  { %7094 = vrsqrt.f32 %v6102_v25 }
 0x485   :  { %v7093_v53 = vpop.eup %7092 }
 0x486   :  { %v6105_v47 = vmul.f32 %v7093_v53, %v6083_v35 }
 0x487   :  { %v7095_v54 = vpop.eup %7094 }
 0x488   :  { %v6119_v61 = vmul.f32 %v6112_v55, %v6105_v47  ;;  %v6106_v28 = vmul.f32 %v7095_v54, %v6084_v43 }
 0x48a   :  { %v6120_v50 = vmul.f32 %v6116_v5, %v6106_v28  ;;  %v6133_v22 = vadd.f32 %v6126_v46, %v6119_v61 }
 0x48c   :  { %v6134_v16 = vadd.f32 %v6130_v12, %v6120_v50  ;;  %v6135_v17 = vmax.f32 %v6133_v22, 0.0 }
 0x48e   :  { %v6136_v15 = vmax.f32 %v6134_v16, 0.0  ;;  %6137 = vst [vmem:[#allocation9] sm:$0xff] %v6135_v17 }
 0x490   :  { %6242 = vmatprep.mubr.f32.mxu0 %v6136_v15  ;;  %6138 = vst [vmem:[#allocation9 + $0x8] sm:$0xff] %v6136_v15 }
 0x491   :  { %6243 = vmatmul.mubr.f32.vlgmr.msra.gmra.mxu0 %v6135_v17 }
 0x492   :  { %7295 = shalt.err (!%p7292_p5)
}
 0x493   :  { %6258 = dma.vmem_to_hbm [thread:$0]  %s6256_s3, 256, %s8806_s6, [#allocation5]   ;;  %v6663_v34 = vld [vmem:[%s8805_s5] ss:$0 sm:$0xff] }
 0x494   :  { %s7340_s26 = smov [#allocation10]  }
 0x495   :  { %s6265_s27 = sshll.u32 %s7340_s26, 4  ;;  %s6266_s27 = int_to_ptr.vmem [resolvable:$true] %s6265_s27 }
 0x496   :  { %s7304_s28 = scalar_lea.vmem %s6266_s27, 128  ;;  %p7309_p7 = scmp.lt.s32.totalorder %s6266_s27, %s6266_s27 }
 0x497   :  { %p7305_p6 = scmp.ne.s32.totalorder %s6266_s27, %s7304_s28  ;;  %p7310_p8 = scmp.lt.s32.totalorder %s7304_s28, %s7304_s28 }
 0x499   :  { %p7311_p9 = por %p7310_p8, %p7309_p7 }
 0x49b   :  { %p7312_p10 = pnand %p7311_p9, %p7305_p6 }
 0x551   :  { %v6696_v4 = vpop.f32.mrf.mxu0 }
 0x553   :  { %v6697_v23 = vpop.f32.mrf.mxu0 }
 0x554   :  { %v6698_v37 = vadd.f32 %v6697_v23, %v6696_v4 }
 0x556   :  { %v6245_v48 = vadd.f32 %v6698_v37, %v6663_v34 }
 0x558   :  { %6248 = vst [vmem:[#allocation10] sm:$0xff] %v6245_v48 }
 0x559   :  { %7315 = shalt.err (!%p7312_p10)
}
 0x55a   :  { %6268 = dma.vmem_to_hbm [thread:$0]  %s6266_s27, 128, %s8807_s7, [#allocation11]  }
 0x55b   :  { %7328 = dma.done.wait [#allocation5], 256  }
 0x55c   :  { %7329 = vsyncadd [#allocation5], 4294967040 }
 0x55d   :  { %7330 = dma.done.wait [#allocation11], 128  }
 0x55e   :  { %7331 = vsyncadd [#allocation11], 4294967168 }
 0x55f   :  { %6275 = vsyncpa [#allocation4], 1 }
 0x560   :  { %6276 = vsyncpa [#allocation7], 1 }
 0x561   :  { %6277 = vsyncpa [#allocation5], 1 }
 0x562   :  { %6278 = vsyncpa [#allocation11], 1 }

</bundles_post_ra>
